<compile_context>
chip_gen: v5e
topology: v5e:2x2
jax: 0.10.0
libtpu: 0.0.40
codegen_flags: <defaults>
</compile_context>

<pallas_src>
import jax
import jax.numpy as jnp
from jax.experimental import pallas as pl
from jax.experimental.pallas import tpu as pltpu


_CP = 128  # padded channel count: lane-dense vregs / MXU tiles everywhere.
           # (v6e/v7x: use a multiple of 256 once real channels exceed 128.)


# ----------------------------------------------------------------------------
# Fused DenseNet kernel.  Grid axis = layer id (0 = conv1, i>0 = dense layer i).
# The feature map lives in the VMEM output block for the entire grid.
# ----------------------------------------------------------------------------
def _make_densenet_kernel(N, H, W, CP, eps):
    NHW = N * H * W
    inv_nhw = 1.0 / NHW
    taps = [(dy, dx) for dy in range(3) for dx in range(3)]

    def conv3x3_accum(a_ref, w_ref, acc_ref):
        """3x3 'same' conv as 9 accumulating MXU dots (no im2col buffer).

        a_ref  : (N, H+2, W+2, CP) f32 activation with a zero 1-pixel border.
        w_ref  : (9, CP, CP) bf16 per-tap packed weights (t = dy*3 + dx).
        acc_ref: (NHW, CP) f32 accumulator scratch.
        Operands are cast to bf16 right before the dot; accumulation is f32.
        """
        acc_ref[...] = jnp.zeros_like(acc_ref)
        for t, (dy, dx) in enumerate(taps):
            win = a_ref[:, dy:dy + H, dx:dx + W, :].reshape(NHW, CP)
            acc_ref[...] += jnp.dot(win.astype(jnp.bfloat16), w_ref[t],
                                    preferred_element_type=jnp.float32)

    def kernel(xpad_ref, w_ref, gamma_ref, beta_ref, out_ref,
               apad_ref, acc_ref):
        layer = pl.program_id(0)

        @pl.when(layer == 0)
        def _():
            # conv1 straight off the (pre spatial+channel padded) input.
            conv3x3_accum(xpad_ref, w_ref, acc_ref)
            out_ref[...] = acc_ref[...].reshape(N, H, W, CP)
            # Zero the padded-activation scratch ONCE; later layers rewrite
            # only its interior, so the zero conv halo persists (zero padding
            # is applied AFTER BN+ReLU, matching PyTorch).
            apad_ref[...] = jnp.zeros_like(apad_ref)

        @pl.when(layer > 0)
        def _():
            flat = out_ref[...].reshape(NHW, CP)

            # BatchNorm2d training-mode batch stats over (N,H,W), ONE pass in
            # f32: biased var = E[x^2] - mean^2.  Padded channels have
            # gamma = beta = 0, so they stay exactly zero through BN+ReLU.
            mean = jnp.sum(flat, axis=0, keepdims=True) * inv_nhw     # (1, CP)
            ex2 = jnp.sum(flat * flat, axis=0, keepdims=True) * inv_nhw
            var = ex2 - mean * mean
            scale = gamma_ref[...] * jax.lax.rsqrt(var + eps)         # (1, CP)
            shift = beta_ref[...] - mean * scale
            act = jnp.maximum(flat * scale + shift, 0.0)              # BN+ReLU
            apad_ref[:, 1:H + 1, 1:W + 1, :] = act.reshape(N, H, W, CP)

            # The packed weight places this layer's growth-rate outputs at
            # their concat offset (zero columns elsewhere), so the add below
            # IS the channel concat.  Re-read out_ref here instead of carrying
            # `flat` live across the nine dots (frees the big live range).
            conv3x3_accum(apad_ref, w_ref, acc_ref)
            out_ref[...] = out_ref[...] + acc_ref[...].reshape(N, H, W, CP)

    return kernel


# ----------------------------------------------------------------------------
# Wrapper: parameter packing (channel padding to CP, bf16 weights) + pallas_call
# ----------------------------------------------------------------------------
def _pack_conv_weight(w_hwio, cin, cout_offset, CP=_CP):
    """(3,3,cin,cout) HWIO weight -> (9, CP, CP) per-tap matmul weights.
    Input channels occupy rows [0, cin); output channels sit at columns
    [cout_offset, cout_offset + cout).  Everything else is zero."""
    cout = w_hwio.shape[-1]
    w = jnp.zeros((3, 3, CP, CP), jnp.float32)
    w = w.at[:, :, :cin, cout_offset:cout_offset + cout].set(
        w_hwio.astype(jnp.float32))
    return w.reshape(9, CP, CP)


def densenet_forward(params, x_nchw, eps=1e-5):
    CP = _CP
    N, c_img, H, W = x_nchw.shape

    x = jnp.transpose(x_nchw, (0, 2, 3, 1)).astype(jnp.float32)   # NCHW->NHWC
    # One-time spatial halo (+1) and channel (->CP) zero pad of the input.
    xpad = jnp.pad(x, ((0, 0), (1, 1), (1, 1), (0, CP - c_img)))

    w1 = params["conv1_w"]                          # (3, 3, c_img, c0) HWIO
    c0 = w1.shape[-1]
    layers = params["layers"]
    n_blocks = len(layers)

    w_stack = [_pack_conv_weight(w1, c_img, 0, CP)]  # layer 0 = conv1
    gammas = [jnp.zeros((CP,), jnp.float32)]         # dummies (unused at l=0)
    betas = [jnp.zeros((CP,), jnp.float32)]
    ch = c0
    for layer in layers:
        growth = layer["conv_w"].shape[-1]
        gammas.append(jnp.zeros((CP,), jnp.float32).at[:ch].set(layer["gamma"]))
        betas.append(jnp.zeros((CP,), jnp.float32).at[:ch].set(layer["beta"]))
        w_stack.append(_pack_conv_weight(layer["conv_w"], ch, ch, CP))
        ch += growth
    c_total = ch
    assert c_total <= CP, "pad channels to a larger multiple of 128/256"

    L = n_blocks + 1
    w_stack = jnp.stack(w_stack).astype(jnp.bfloat16)   # (L, 9, CP, CP) bf16
    gammas = jnp.stack(gammas)[:, None, :]               # (L, 1, CP) f32
    betas = jnp.stack(betas)[:, None, :]                 # (L, 1, CP) f32

    cost = pl.CostEstimate(
        flops=2 * L * 9 * N * H * W * CP * CP,
        transcendentals=n_blocks * CP,
        bytes_accessed=int(xpad.size) * 4 + int(w_stack.size) * 2
        + int(gammas.size) * 8 + N * H * W * CP * 4,
    )

    out_pad = pl.pallas_call(
        _make_densenet_kernel(N, H, W, CP, eps),
        out_shape=jax.ShapeDtypeStruct((N, H, W, CP), jnp.float32),
        grid_spec=pltpu.PrefetchScalarGridSpec(
            num_scalar_prefetch=0,
            grid=(L,),                                    # layer axis
            in_specs=[
                # Padded input image: one block, VMEM-resident all grid steps.
                pl.BlockSpec((N, H + 2, W + 2, CP), lambda l: (0, 0, 0, 0)),
                # Per-layer packed weights / BN params stay in HBM; one
                # layer's block is DMA'd (double-buffered) per grid step.
                pl.BlockSpec((None, 9, CP, CP), lambda l: (l, 0, 0, 0)),
                pl.BlockSpec((None, 1, CP), lambda l: (l, 0, 0)),
                pl.BlockSpec((None, 1, CP), lambda l: (l, 0, 0)),
            ],
            # Constant block index -> the growing feature map stays
            # VMEM-resident across all layers, written back to HBM once.
            out_specs=pl.BlockSpec((N, H, W, CP), lambda l: (0, 0, 0, 0)),
            scratch_shapes=[
                pltpu.VMEM((N, H + 2, W + 2, CP), jnp.float32),  # padded act
                pltpu.VMEM((N * H * W, CP), jnp.float32),        # conv accum
            ],
        ),
        compiler_params=pltpu.CompilerParams(
            dimension_semantics=("arbitrary",),   # layers are sequential
            vmem_limit_bytes=32 * 1024 * 1024,
        ),
        cost_estimate=cost,
    )(xpad, w_stack, gammas, betas)

    out = out_pad[..., :c_total]                  # drop channel padding
    return jnp.transpose(out, (0, 3, 1, 2))       # NHWC -> NCHW
    # (the module's trailing self.bn1 is defined but unused in forward -> omitted)


# ----------------------------------------------------------------------------
# DenseNet parameters (matches the PyTorch module's structure)
# ----------------------------------------------------------------------------
def _conv_weight(key, cout, cin):
    # deterministic stand-in for torch's kaiming-uniform conv init; HWIO layout
    bound = (1.0 / (cin * 9)) ** 0.5
    return jax.random.uniform(key, (3, 3, cin, cout), jnp.float32, -bound, bound)


def densenet_init(key, growth_rate, depth):
    n_blocks = (depth - 4) // 3
    n_channels = 2 * growth_rate
    keys = jax.random.split(key, n_blocks + 1)
    params = {"conv1_w": _conv_weight(keys[0], n_channels, 3), "layers": []}
    ch = n_channels
    for i in range(n_blocks):
        params["layers"].append({
            "gamma": jnp.ones((ch,), jnp.float32),   # BatchNorm2d default init
            "beta": jnp.zeros((ch,), jnp.float32),
            "conv_w": _conv_weight(keys[i + 1], growth_rate, ch),
        })
        ch += growth_rate
    return params


# ----------------------------------------------------------------------------
# Pure-JAX f32 reference (for a correctness sanity check)
# ----------------------------------------------------------------------------
def _conv3x3_ref(x_nhwc, w_hwio):
    return jax.lax.conv_general_dilated(
        x_nhwc, w_hwio, window_strides=(1, 1), padding=((1, 1), (1, 1)),
        dimension_numbers=("NHWC", "HWIO", "NHWC"))


def densenet_ref(params, x_nchw, eps=1e-5):
    x = jnp.transpose(x_nchw, (0, 2, 3, 1))
    out = _conv3x3_ref(x, params["conv1_w"])
    for layer in params["layers"]:
        mean = jnp.mean(out, axis=(0, 1, 2))
        var = jnp.mean((out - mean) ** 2, axis=(0, 1, 2))
        norm = (out - mean) / jnp.sqrt(var + eps)
        act = jnp.maximum(norm * layer["gamma"] + layer["beta"], 0.0)
        out = jnp.concatenate([out, _conv3x3_ref(act, layer["conv_w"])], axis=-1)
    return jnp.transpose(out, (0, 3, 1, 2))


if __name__ == "__main__":
    growth_rate, depth = 4, 10                    # nDenseBlocks = (10 - 4) // 3 = 2
    key = jax.random.PRNGKey(0)
    pkey, xkey = jax.random.split(key)

    params = densenet_init(pkey, growth_rate, depth)
    x = jax.random.normal(xkey, (2, 3, 16, 16), jnp.float32)   # NCHW like PyTorch

    fwd = jax.jit(densenet_forward)
    out = jax.block_until_ready(fwd(params, x))

    ref = jax.block_until_ready(densenet_ref(params, x))
    n_blocks = (depth - 4) // 3
    assert out.shape == (2, 2 * growth_rate + n_blocks * growth_rate, 16, 16)
    # Tolerance reflects bf16 MXU operands (f32 accumulation) vs the pure-f32
    # reference; genuine logic errors (tap order, BN, concat offset) produce
    # errors orders of magnitude larger.
    assert jnp.allclose(out, ref, rtol=2e-2, atol=2e-2), "mismatch vs reference"

    print("KERNEL_OK")
</pallas_src>

<mosaic_0001>
module attributes {stable_mosaic.version = 11 : i64} {
  func.func @kernel(%arg0: i32, %arg1: memref<2x18x18x128xf32, #tpu.memory_space<vmem>>, %arg2: memref<1x9x128x128xbf16, #tpu.memory_space<vmem>>, %arg3: memref<1x1x128xf32, #tpu.memory_space<vmem>>, %arg4: memref<1x1x128xf32, #tpu.memory_space<vmem>>, %arg5: memref<2x16x16x128xf32, #tpu.memory_space<vmem>>, %arg6: memref<2x18x18x128xf32, #tpu.memory_space<vmem>>, %arg7: memref<512x128xf32, #tpu.memory_space<vmem>>) attributes {dimension_semantics = [#tpu.dimension_semantics<arbitrary>], iteration_bounds = array<i64: 3>, scalar_prefetch = 0 : i64, scratch_operands = 2 : i64, tpu.core_type = #tpu.core_type<tc>, window_params = [{pipeline_mode = #tpu.pipeline_mode<synchronous>, transform_indices = @transform_0, window_bounds = array<i64: 2, 18, 18, 128>}, {transform_indices = @transform_1, window_bounds = array<i64: 1, 9, 128, 128>}, {transform_indices = @transform_2, window_bounds = array<i64: 1, 1, 128>}, {transform_indices = @transform_3, window_bounds = array<i64: 1, 1, 128>}, {pipeline_mode = #tpu.pipeline_mode<synchronous>, transform_indices = @transform_4, window_bounds = array<i64: 2, 16, 16, 128>}]} {
    %c0_i32 = arith.constant 0 : i32
    %0 = arith.cmpi eq, %arg0, %c0_i32 : i32
    %1 = arith.extui %0 : i1 to i32
    %c0_i32_0 = arith.constant 0 : i32
    %2 = arith.cmpi ne, %1, %c0_i32_0 : i32
    scf.if %2 {
      %cst = arith.constant 0.000000e+00 : f32
      %6 = vector.broadcast %cst : f32 to vector<512x128xf32>
      %c0 = arith.constant 0 : index
      %c0_3 = arith.constant 0 : index
      %7 = vector.load %arg7[%c0, %c0_3] : memref<512x128xf32, #tpu.memory_space<vmem>>, vector<512x128xf32>
      tpu.vector_store %arg7[%c0, %c0_3], %6 {strides = array<i32>} : memref<512x128xf32, #tpu.memory_space<vmem>>, vector<512x128xf32>,
      %c0_4 = arith.constant 0 : index
      %c0_5 = arith.constant 0 : index
      %c0_6 = arith.constant 0 : index
      %c0_7 = arith.constant 0 : index
      %8 = vector.load %arg1[%c0_4, %c0_5, %c0_6, %c0_7] : memref<2x18x18x128xf32, #tpu.memory_space<vmem>>, vector<2x16x16x128xf32>
      %9 = vector.shape_cast %8 : vector<2x16x16x128xf32> to vector<512x128xf32>
      %c0_8 = arith.constant 0 : index
      %c0_9 = arith.constant 0 : index
      %10 = vector.load %arg7[%c0_8, %c0_9] : memref<512x128xf32, #tpu.memory_space<vmem>>, vector<512x128xf32>
      %11 = arith.truncf %9 : vector<512x128xf32> to vector<512x128xbf16>
      %c0_10 = arith.constant 0 : index
      %c0_11 = arith.constant 0 : index
      %c0_12 = arith.constant 0 : index
      %c0_13 = arith.constant 0 : index
      %12 = vector.load %arg2[%c0_10, %c0_11, %c0_12, %c0_13] : memref<1x9x128x128xbf16, #tpu.memory_space<vmem>>, vector<1x1x128x128xbf16>
      %13 = vector.shape_cast %12 : vector<1x1x128x128xbf16> to vector<128x128xbf16>
      %cst_14 = arith.constant dense<0.000000e+00> : vector<512x128xf32>
      %14 = tpu.matmul %11, %13, %cst_14 {dimension_numbers = #tpu.dot_dimension_numbers<[1], [0], [0], [1], [0, 0, 1, 1], [], []>} : vector<512x128xbf16>, vector<128x128xbf16>, vector<512x128xf32> -> vector<512x128xf32>
      %15 = arith.addf %10, %14 : vector<512x128xf32>
      %c0_15 = arith.constant 0 : index
      %c0_16 = arith.constant 0 : index
      %16 = vector.load %arg7[%c0_15, %c0_16] : memref<512x128xf32, #tpu.memory_space<vmem>>, vector<512x128xf32>
      tpu.vector_store %arg7[%c0_15, %c0_16], %15 {strides = array<i32>} : memref<512x128xf32, #tpu.memory_space<vmem>>, vector<512x128xf32>,
      %c0_17 = arith.constant 0 : index
      %c0_18 = arith.constant 0 : index
      %c1 = arith.constant 1 : index
      %c0_19 = arith.constant 0 : index
      %17 = vector.load %arg1[%c0_17, %c0_18, %c1, %c0_19] : memref<2x18x18x128xf32, #tpu.memory_space<vmem>>, vector<2x16x16x128xf32>
      %18 = vector.shape_cast %17 : vector<2x16x16x128xf32> to vector<512x128xf32>
      %c0_20 = arith.constant 0 : index
      %c0_21 = arith.constant 0 : index
      %19 = vector.load %arg7[%c0_20, %c0_21] : memref<512x128xf32, #tpu.memory_space<vmem>>, vector<512x128xf32>
      %20 = arith.truncf %18 : vector<512x128xf32> to vector<512x128xbf16>
      %c0_22 = arith.constant 0 : index
      %c1_23 = arith.constant 1 : index
      %c0_24 = arith.constant 0 : index
      %c0_25 = arith.constant 0 : index
      %21 = vector.load %arg2[%c0_22, %c1_23, %c0_24, %c0_25] : memref<1x9x128x128xbf16, #tpu.memory_space<vmem>>, vector<1x1x128x128xbf16>
      %22 = vector.shape_cast %21 : vector<1x1x128x128xbf16> to vector<128x128xbf16>
      %cst_26 = arith.constant dense<0.000000e+00> : vector<512x128xf32>
      %23 = tpu.matmul %20, %22, %cst_26 {dimension_numbers = #tpu.dot_dimension_numbers<[1], [0], [0], [1], [0, 0, 1, 1], [], []>} : vector<512x128xbf16>, vector<128x128xbf16>, vector<512x128xf32> -> vector<512x128xf32>
      %24 = arith.addf %19, %23 : vector<512x128xf32>
      %c0_27 = arith.constant 0 : index
      %c0_28 = arith.constant 0 : index
      %25 = vector.load %arg7[%c0_27, %c0_28] : memref<512x128xf32, #tpu.memory_space<vmem>>, vector<512x128xf32>
      tpu.vector_store %arg7[%c0_27, %c0_28], %24 {strides = array<i32>} : memref<512x128xf32, #tpu.memory_space<vmem>>, vector<512x128xf32>,
      %c0_29 = arith.constant 0 : index
      %c0_30 = arith.constant 0 : index
      %c2 = arith.constant 2 : index
      %c0_31 = arith.constant 0 : index
      %26 = vector.load %arg1[%c0_29, %c0_30, %c2, %c0_31] : memref<2x18x18x128xf32, #tpu.memory_space<vmem>>, vector<2x16x16x128xf32>
      %27 = vector.shape_cast %26 : vector<2x16x16x128xf32> to vector<512x128xf32>
      %c0_32 = arith.constant 0 : index
      %c0_33 = arith.constant 0 : index
      %28 = vector.load %arg7[%c0_32, %c0_33] : memref<512x128xf32, #tpu.memory_space<vmem>>, vector<512x128xf32>
      %29 = arith.truncf %27 : vector<512x128xf32> to vector<512x128xbf16>
      %c0_34 = arith.constant 0 : index
      %c2_35 = arith.constant 2 : index
      %c0_36 = arith.constant 0 : index
      %c0_37 = arith.constant 0 : index
      %30 = vector.load %arg2[%c0_34, %c2_35, %c0_36, %c0_37] : memref<1x9x128x128xbf16, #tpu.memory_space<vmem>>, vector<1x1x128x128xbf16>
      %31 = vector.shape_cast %30 : vector<1x1x128x128xbf16> to vector<128x128xbf16>
      %cst_38 = arith.constant dense<0.000000e+00> : vector<512x128xf32>
      %32 = tpu.matmul %29, %31, %cst_38 {dimension_numbers = #tpu.dot_dimension_numbers<[1], [0], [0], [1], [0, 0, 1, 1], [], []>} : vector<512x128xbf16>, vector<128x128xbf16>, vector<512x128xf32> -> vector<512x128xf32>
      %33 = arith.addf %28, %32 : vector<512x128xf32>
      %c0_39 = arith.constant 0 : index
      %c0_40 = arith.constant 0 : index
      %34 = vector.load %arg7[%c0_39, %c0_40] : memref<512x128xf32, #tpu.memory_space<vmem>>, vector<512x128xf32>
      tpu.vector_store %arg7[%c0_39, %c0_40], %33 {strides = array<i32>} : memref<512x128xf32, #tpu.memory_space<vmem>>, vector<512x128xf32>,
      %c0_41 = arith.constant 0 : index
      %c1_42 = arith.constant 1 : index
      %c0_43 = arith.constant 0 : index
      %c0_44 = arith.constant 0 : index
      %35 = vector.load %arg1[%c0_41, %c1_42, %c0_43, %c0_44] : memref<2x18x18x128xf32, #tpu.memory_space<vmem>>, vector<2x16x16x128xf32>
      %36 = vector.shape_cast %35 : vector<2x16x16x128xf32> to vector<512x128xf32>
      %c0_45 = arith.constant 0 : index
      %c0_46 = arith.constant 0 : index
      %37 = vector.load %arg7[%c0_45, %c0_46] : memref<512x128xf32, #tpu.memory_space<vmem>>, vector<512x128xf32>
      %38 = arith.truncf %36 : vector<512x128xf32> to vector<512x128xbf16>
      %c0_47 = arith.constant 0 : index
      %c3 = arith.constant 3 : index
      %c0_48 = arith.constant 0 : index
      %c0_49 = arith.constant 0 : index
      %39 = vector.load %arg2[%c0_47, %c3, %c0_48, %c0_49] : memref<1x9x128x128xbf16, #tpu.memory_space<vmem>>, vector<1x1x128x128xbf16>
      %40 = vector.shape_cast %39 : vector<1x1x128x128xbf16> to vector<128x128xbf16>
      %cst_50 = arith.constant dense<0.000000e+00> : vector<512x128xf32>
      %41 = tpu.matmul %38, %40, %cst_50 {dimension_numbers = #tpu.dot_dimension_numbers<[1], [0], [0], [1], [0, 0, 1, 1], [], []>} : vector<512x128xbf16>, vector<128x128xbf16>, vector<512x128xf32> -> vector<512x128xf32>
      %42 = arith.addf %37, %41 : vector<512x128xf32>
      %c0_51 = arith.constant 0 : index
      %c0_52 = arith.constant 0 : index
      %43 = vector.load %arg7[%c0_51, %c0_52] : memref<512x128xf32, #tpu.memory_space<vmem>>, vector<512x128xf32>
      tpu.vector_store %arg7[%c0_51, %c0_52], %42 {strides = array<i32>} : memref<512x128xf32, #tpu.memory_space<vmem>>, vector<512x128xf32>,
      %c0_53 = arith.constant 0 : index
      %c1_54 = arith.constant 1 : index
      %c1_55 = arith.constant 1 : index
      %c0_56 = arith.constant 0 : index
      %44 = vector.load %arg1[%c0_53, %c1_54, %c1_55, %c0_56] : memref<2x18x18x128xf32, #tpu.memory_space<vmem>>, vector<2x16x16x128xf32>
      %45 = vector.shape_cast %44 : vector<2x16x16x128xf32> to vector<512x128xf32>
      %c0_57 = arith.constant 0 : index
      %c0_58 = arith.constant 0 : index
      %46 = vector.load %arg7[%c0_57, %c0_58] : memref<512x128xf32, #tpu.memory_space<vmem>>, vector<512x128xf32>
      %47 = arith.truncf %45 : vector<512x128xf32> to vector<512x128xbf16>
      %c0_59 = arith.constant 0 : index
      %c4 = arith.constant 4 : index
      %c0_60 = arith.constant 0 : index
      %c0_61 = arith.constant 0 : index
      %48 = vector.load %arg2[%c0_59, %c4, %c0_60, %c0_61] : memref<1x9x128x128xbf16, #tpu.memory_space<vmem>>, vector<1x1x128x128xbf16>
      %49 = vector.shape_cast %48 : vector<1x1x128x128xbf16> to vector<128x128xbf16>
      %cst_62 = arith.constant dense<0.000000e+00> : vector<512x128xf32>
      %50 = tpu.matmul %47, %49, %cst_62 {dimension_numbers = #tpu.dot_dimension_numbers<[1], [0], [0], [1], [0, 0, 1, 1], [], []>} : vector<512x128xbf16>, vector<128x128xbf16>, vector<512x128xf32> -> vector<512x128xf32>
      %51 = arith.addf %46, %50 : vector<512x128xf32>
      %c0_63 = arith.constant 0 : index
      %c0_64 = arith.constant 0 : index
      %52 = vector.load %arg7[%c0_63, %c0_64] : memref<512x128xf32, #tpu.memory_space<vmem>>, vector<512x128xf32>
      tpu.vector_store %arg7[%c0_63, %c0_64], %51 {strides = array<i32>} : memref<512x128xf32, #tpu.memory_space<vmem>>, vector<512x128xf32>,
      %c0_65 = arith.constant 0 : index
      %c1_66 = arith.constant 1 : index
      %c2_67 = arith.constant 2 : index
      %c0_68 = arith.constant 0 : index
      %53 = vector.load %arg1[%c0_65, %c1_66, %c2_67, %c0_68] : memref<2x18x18x128xf32, #tpu.memory_space<vmem>>, vector<2x16x16x128xf32>
      %54 = vector.shape_cast %53 : vector<2x16x16x128xf32> to vector<512x128xf32>
      %c0_69 = arith.constant 0 : index
      %c0_70 = arith.constant 0 : index
      %55 = vector.load %arg7[%c0_69, %c0_70] : memref<512x128xf32, #tpu.memory_space<vmem>>, vector<512x128xf32>
      %56 = arith.truncf %54 : vector<512x128xf32> to vector<512x128xbf16>
      %c0_71 = arith.constant 0 : index
      %c5 = arith.constant 5 : index
      %c0_72 = arith.constant 0 : index
      %c0_73 = arith.constant 0 : index
      %57 = vector.load %arg2[%c0_71, %c5, %c0_72, %c0_73] : memref<1x9x128x128xbf16, #tpu.memory_space<vmem>>, vector<1x1x128x128xbf16>
      %58 = vector.shape_cast %57 : vector<1x1x128x128xbf16> to vector<128x128xbf16>
      %cst_74 = arith.constant dense<0.000000e+00> : vector<512x128xf32>
      %59 = tpu.matmul %56, %58, %cst_74 {dimension_numbers = #tpu.dot_dimension_numbers<[1], [0], [0], [1], [0, 0, 1, 1], [], []>} : vector<512x128xbf16>, vector<128x128xbf16>, vector<512x128xf32> -> vector<512x128xf32>
      %60 = arith.addf %55, %59 : vector<512x128xf32>
      %c0_75 = arith.constant 0 : index
      %c0_76 = arith.constant 0 : index
      %61 = vector.load %arg7[%c0_75, %c0_76] : memref<512x128xf32, #tpu.memory_space<vmem>>, vector<512x128xf32>
      tpu.vector_store %arg7[%c0_75, %c0_76], %60 {strides = array<i32>} : memref<512x128xf32, #tpu.memory_space<vmem>>, vector<512x128xf32>,
      %c0_77 = arith.constant 0 : index
      %c2_78 = arith.constant 2 : index
      %c0_79 = arith.constant 0 : index
      %c0_80 = arith.constant 0 : index
      %62 = vector.load %arg1[%c0_77, %c2_78, %c0_79, %c0_80] : memref<2x18x18x128xf32, #tpu.memory_space<vmem>>, vector<2x16x16x128xf32>
      %63 = vector.shape_cast %62 : vector<2x16x16x128xf32> to vector<512x128xf32>
      %c0_81 = arith.constant 0 : index
      %c0_82 = arith.constant 0 : index
      %64 = vector.load %arg7[%c0_81, %c0_82] : memref<512x128xf32, #tpu.memory_space<vmem>>, vector<512x128xf32>
      %65 = arith.truncf %63 : vector<512x128xf32> to vector<512x128xbf16>
      %c0_83 = arith.constant 0 : index
      %c6 = arith.constant 6 : index
      %c0_84 = arith.constant 0 : index
      %c0_85 = arith.constant 0 : index
      %66 = vector.load %arg2[%c0_83, %c6, %c0_84, %c0_85] : memref<1x9x128x128xbf16, #tpu.memory_space<vmem>>, vector<1x1x128x128xbf16>
      %67 = vector.shape_cast %66 : vector<1x1x128x128xbf16> to vector<128x128xbf16>
      %cst_86 = arith.constant dense<0.000000e+00> : vector<512x128xf32>
      %68 = tpu.matmul %65, %67, %cst_86 {dimension_numbers = #tpu.dot_dimension_numbers<[1], [0], [0], [1], [0, 0, 1, 1], [], []>} : vector<512x128xbf16>, vector<128x128xbf16>, vector<512x128xf32> -> vector<512x128xf32>
      %69 = arith.addf %64, %68 : vector<512x128xf32>
      %c0_87 = arith.constant 0 : index
      %c0_88 = arith.constant 0 : index
      %70 = vector.load %arg7[%c0_87, %c0_88] : memref<512x128xf32, #tpu.memory_space<vmem>>, vector<512x128xf32>
      tpu.vector_store %arg7[%c0_87, %c0_88], %69 {strides = array<i32>} : memref<512x128xf32, #tpu.memory_space<vmem>>, vector<512x128xf32>,
      %c0_89 = arith.constant 0 : index
      %c2_90 = arith.constant 2 : index
      %c1_91 = arith.constant 1 : index
      %c0_92 = arith.constant 0 : index
      %71 = vector.load %arg1[%c0_89, %c2_90, %c1_91, %c0_92] : memref<2x18x18x128xf32, #tpu.memory_space<vmem>>, vector<2x16x16x128xf32>
      %72 = vector.shape_cast %71 : vector<2x16x16x128xf32> to vector<512x128xf32>
      %c0_93 = arith.constant 0 : index
      %c0_94 = arith.constant 0 : index
      %73 = vector.load %arg7[%c0_93, %c0_94] : memref<512x128xf32, #tpu.memory_space<vmem>>, vector<512x128xf32>
      %74 = arith.truncf %72 : vector<512x128xf32> to vector<512x128xbf16>
      %c0_95 = arith.constant 0 : index
      %c7 = arith.constant 7 : index
      %c0_96 = arith.constant 0 : index
      %c0_97 = arith.constant 0 : index
      %75 = vector.load %arg2[%c0_95, %c7, %c0_96, %c0_97] : memref<1x9x128x128xbf16, #tpu.memory_space<vmem>>, vector<1x1x128x128xbf16>
      %76 = vector.shape_cast %75 : vector<1x1x128x128xbf16> to vector<128x128xbf16>
      %cst_98 = arith.constant dense<0.000000e+00> : vector<512x128xf32>
      %77 = tpu.matmul %74, %76, %cst_98 {dimension_numbers = #tpu.dot_dimension_numbers<[1], [0], [0], [1], [0, 0, 1, 1], [], []>} : vector<512x128xbf16>, vector<128x128xbf16>, vector<512x128xf32> -> vector<512x128xf32>
      %78 = arith.addf %73, %77 : vector<512x128xf32>
      %c0_99 = arith.constant 0 : index
      %c0_100 = arith.constant 0 : index
      %79 = vector.load %arg7[%c0_99, %c0_100] : memref<512x128xf32, #tpu.memory_space<vmem>>, vector<512x128xf32>
      tpu.vector_store %arg7[%c0_99, %c0_100], %78 {strides = array<i32>} : memref<512x128xf32, #tpu.memory_space<vmem>>, vector<512x128xf32>,
      %c0_101 = arith.constant 0 : index
      %c2_102 = arith.constant 2 : index
      %c2_103 = arith.constant 2 : index
      %c0_104 = arith.constant 0 : index
      %80 = vector.load %arg1[%c0_101, %c2_102, %c2_103, %c0_104] : memref<2x18x18x128xf32, #tpu.memory_space<vmem>>, vector<2x16x16x128xf32>
      %81 = vector.shape_cast %80 : vector<2x16x16x128xf32> to vector<512x128xf32>
      %c0_105 = arith.constant 0 : index
      %c0_106 = arith.constant 0 : index
      %82 = vector.load %arg7[%c0_105, %c0_106] : memref<512x128xf32, #tpu.memory_space<vmem>>, vector<512x128xf32>
      %83 = arith.truncf %81 : vector<512x128xf32> to vector<512x128xbf16>
      %c0_107 = arith.constant 0 : index
      %c8 = arith.constant 8 : index
      %c0_108 = arith.constant 0 : index
      %c0_109 = arith.constant 0 : index
      %84 = vector.load %arg2[%c0_107, %c8, %c0_108, %c0_109] : memref<1x9x128x128xbf16, #tpu.memory_space<vmem>>, vector<1x1x128x128xbf16>
      %85 = vector.shape_cast %84 : vector<1x1x128x128xbf16> to vector<128x128xbf16>
      %cst_110 = arith.constant dense<0.000000e+00> : vector<512x128xf32>
      %86 = tpu.matmul %83, %85, %cst_110 {dimension_numbers = #tpu.dot_dimension_numbers<[1], [0], [0], [1], [0, 0, 1, 1], [], []>} : vector<512x128xbf16>, vector<128x128xbf16>, vector<512x128xf32> -> vector<512x128xf32>
      %87 = arith.addf %82, %86 : vector<512x128xf32>
      %c0_111 = arith.constant 0 : index
      %c0_112 = arith.constant 0 : index
      %88 = vector.load %arg7[%c0_111, %c0_112] : memref<512x128xf32, #tpu.memory_space<vmem>>, vector<512x128xf32>
      tpu.vector_store %arg7[%c0_111, %c0_112], %87 {strides = array<i32>} : memref<512x128xf32, #tpu.memory_space<vmem>>, vector<512x128xf32>,
      %c0_113 = arith.constant 0 : index
      %c0_114 = arith.constant 0 : index
      %89 = vector.load %arg7[%c0_113, %c0_114] : memref<512x128xf32, #tpu.memory_space<vmem>>, vector<512x128xf32>
      %90 = vector.shape_cast %89 : vector<512x128xf32> to vector<2x16x16x128xf32>
      %c0_115 = arith.constant 0 : index
      %c0_116 = arith.constant 0 : index
      %c0_117 = arith.constant 0 : index
      %c0_118 = arith.constant 0 : index
      %91 = vector.load %arg5[%c0_115, %c0_116, %c0_117, %c0_118] : memref<2x16x16x128xf32, #tpu.memory_space<vmem>>, vector<2x16x16x128xf32>
      tpu.vector_store %arg5[%c0_115, %c0_116, %c0_117, %c0_118], %90 {strides = array<i32>} : memref<2x16x16x128xf32, #tpu.memory_space<vmem>>, vector<2x16x16x128xf32>,
      %cst_119 = arith.constant 0.000000e+00 : f32
      %92 = vector.broadcast %cst_119 : f32 to vector<2x18x18x128xf32>
      %c0_120 = arith.constant 0 : index
      %c0_121 = arith.constant 0 : index
      %c0_122 = arith.constant 0 : index
      %c0_123 = arith.constant 0 : index
      %93 = vector.load %arg6[%c0_120, %c0_121, %c0_122, %c0_123] : memref<2x18x18x128xf32, #tpu.memory_space<vmem>>, vector<2x18x18x128xf32>
      tpu.vector_store %arg6[%c0_120, %c0_121, %c0_122, %c0_123], %92 {strides = array<i32>} : memref<2x18x18x128xf32, #tpu.memory_space<vmem>>, vector<2x18x18x128xf32>,
    } else {
    }
    %c0_i32_1 = arith.constant 0 : i32
    %3 = arith.cmpi sgt, %arg0, %c0_i32_1 : i32
    %4 = arith.extui %3 : i1 to i32
    %c0_i32_2 = arith.constant 0 : i32
    %5 = arith.cmpi ne, %4, %c0_i32_2 : i32
    scf.if %5 {
      %c0 = arith.constant 0 : index
      %c0_3 = arith.constant 0 : index
      %c0_4 = arith.constant 0 : index
      %c0_5 = arith.constant 0 : index
      %6 = vector.load %arg5[%c0, %c0_3, %c0_4, %c0_5] : memref<2x16x16x128xf32, #tpu.memory_space<vmem>>, vector<2x16x16x128xf32>
      %7 = vector.shape_cast %6 : vector<2x16x16x128xf32> to vector<512x128xf32>
      %cst = arith.constant dense<0.000000e+00> : vector<128xf32>
      %8 = vector.multi_reduction <add>, %7, %cst [0] : vector<512x128xf32> to vector<128xf32>
      %9 = vector.shape_cast %8 : vector<128xf32> to vector<1x128xf32>
      %cst_6 = arith.constant 0.001953125 : f32
      %10 = vector.broadcast %cst_6 : f32 to vector<1x128xf32>
      %11 = arith.mulf %9, %10 : vector<1x128xf32>
      %12 = arith.mulf %7, %7 : vector<512x128xf32>
      %cst_7 = arith.constant dense<0.000000e+00> : vector<128xf32>
      %13 = vector.multi_reduction <add>, %12, %cst_7 [0] : vector<512x128xf32> to vector<128xf32>
      %14 = vector.shape_cast %13 : vector<128xf32> to vector<1x128xf32>
      %cst_8 = arith.constant 0.001953125 : f32
      %15 = vector.broadcast %cst_8 : f32 to vector<1x128xf32>
      %16 = arith.mulf %14, %15 : vector<1x128xf32>
      %17 = arith.mulf %11, %11 : vector<1x128xf32>
      %18 = arith.subf %16, %17 : vector<1x128xf32>
      %c0_9 = arith.constant 0 : index
      %c0_10 = arith.constant 0 : index
      %c0_11 = arith.constant 0 : index
      %19 = vector.load %arg3[%c0_9, %c0_10, %c0_11] : memref<1x1x128xf32, #tpu.memory_space<vmem>>, vector<1x1x128xf32>
      %20 = vector.shape_cast %19 : vector<1x1x128xf32> to vector<1x128xf32>
      %cst_12 = arith.constant 9.99999974E-6 : f32
      %21 = vector.broadcast %cst_12 : f32 to vector<1x128xf32>
      %22 = arith.addf %18, %21 : vector<1x128xf32>
      %23 = math.rsqrt %22 : vector<1x128xf32>
      %24 = arith.mulf %20, %23 : vector<1x128xf32>
      %c0_13 = arith.constant 0 : index
      %c0_14 = arith.constant 0 : index
      %c0_15 = arith.constant 0 : index
      %25 = vector.load %arg4[%c0_13, %c0_14, %c0_15] : memref<1x1x128xf32, #tpu.memory_space<vmem>>, vector<1x1x128xf32>
      %26 = vector.shape_cast %25 : vector<1x1x128xf32> to vector<1x128xf32>
      %27 = arith.mulf %11, %24 : vector<1x128xf32>
      %28 = arith.subf %26, %27 : vector<1x128xf32>
      %29 = vector.broadcast %24 : vector<1x128xf32> to vector<512x128xf32>
      %30 = arith.mulf %7, %29 : vector<512x128xf32>
      %31 = vector.broadcast %28 : vector<1x128xf32> to vector<512x128xf32>
      %32 = arith.addf %30, %31 : vector<512x128xf32>
      %cst_16 = arith.constant 0.000000e+00 : f32
      %33 = vector.broadcast %cst_16 : f32 to vector<512x128xf32>
      %34 = arith.maximumf %32, %33 : vector<512x128xf32>
      %35 = vector.shape_cast %34 : vector<512x128xf32> to vector<2x16x16x128xf32>
      %c0_17 = arith.constant 0 : index
      %c1 = arith.constant 1 : index
      %c1_18 = arith.constant 1 : index
      %c0_19 = arith.constant 0 : index
      %36 = vector.load %arg6[%c0_17, %c1, %c1_18, %c0_19] : memref<2x18x18x128xf32, #tpu.memory_space<vmem>>, vector<2x16x16x128xf32>
      tpu.vector_store %arg6[%c0_17, %c1, %c1_18, %c0_19], %35 {strides = array<i32>} : memref<2x18x18x128xf32, #tpu.memory_space<vmem>>, vector<2x16x16x128xf32>,
      %cst_20 = arith.constant 0.000000e+00 : f32
      %37 = vector.broadcast %cst_20 : f32 to vector<512x128xf32>
      %c0_21 = arith.constant 0 : index
      %c0_22 = arith.constant 0 : index
      %38 = vector.load %arg7[%c0_21, %c0_22] : memref<512x128xf32, #tpu.memory_space<vmem>>, vector<512x128xf32>
      tpu.vector_store %arg7[%c0_21, %c0_22], %37 {strides = array<i32>} : memref<512x128xf32, #tpu.memory_space<vmem>>, vector<512x128xf32>,
      %c0_23 = arith.constant 0 : index
      %c0_24 = arith.constant 0 : index
      %c0_25 = arith.constant 0 : index
      %c0_26 = arith.constant 0 : index
      %39 = vector.load %arg6[%c0_23, %c0_24, %c0_25, %c0_26] : memref<2x18x18x128xf32, #tpu.memory_space<vmem>>, vector<2x16x16x128xf32>
      %40 = vector.shape_cast %39 : vector<2x16x16x128xf32> to vector<512x128xf32>
      %c0_27 = arith.constant 0 : index
      %c0_28 = arith.constant 0 : index
      %41 = vector.load %arg7[%c0_27, %c0_28] : memref<512x128xf32, #tpu.memory_space<vmem>>, vector<512x128xf32>
      %42 = arith.truncf %40 : vector<512x128xf32> to vector<512x128xbf16>
      %c0_29 = arith.constant 0 : index
      %c0_30 = arith.constant 0 : index
      %c0_31 = arith.constant 0 : index
      %c0_32 = arith.constant 0 : index
      %43 = vector.load %arg2[%c0_29, %c0_30, %c0_31, %c0_32] : memref<1x9x128x128xbf16, #tpu.memory_space<vmem>>, vector<1x1x128x128xbf16>
      %44 = vector.shape_cast %43 : vector<1x1x128x128xbf16> to vector<128x128xbf16>
      %cst_33 = arith.constant dense<0.000000e+00> : vector<512x128xf32>
      %45 = tpu.matmul %42, %44, %cst_33 {dimension_numbers = #tpu.dot_dimension_numbers<[1], [0], [0], [1], [0, 0, 1, 1], [], []>} : vector<512x128xbf16>, vector<128x128xbf16>, vector<512x128xf32> -> vector<512x128xf32>
      %46 = arith.addf %41, %45 : vector<512x128xf32>
      %c0_34 = arith.constant 0 : index
      %c0_35 = arith.constant 0 : index
      %47 = vector.load %arg7[%c0_34, %c0_35] : memref<512x128xf32, #tpu.memory_space<vmem>>, vector<512x128xf32>
      tpu.vector_store %arg7[%c0_34, %c0_35], %46 {strides = array<i32>} : memref<512x128xf32, #tpu.memory_space<vmem>>, vector<512x128xf32>,
      %c0_36 = arith.constant 0 : index
      %c0_37 = arith.constant 0 : index
      %c1_38 = arith.constant 1 : index
      %c0_39 = arith.constant 0 : index
      %48 = vector.load %arg6[%c0_36, %c0_37, %c1_38, %c0_39] : memref<2x18x18x128xf32, #tpu.memory_space<vmem>>, vector<2x16x16x128xf32>
      %49 = vector.shape_cast %48 : vector<2x16x16x128xf32> to vector<512x128xf32>
      %c0_40 = arith.constant 0 : index
      %c0_41 = arith.constant 0 : index
      %50 = vector.load %arg7[%c0_40, %c0_41] : memref<512x128xf32, #tpu.memory_space<vmem>>, vector<512x128xf32>
      %51 = arith.truncf %49 : vector<512x128xf32> to vector<512x128xbf16>
      %c0_42 = arith.constant 0 : index
      %c1_43 = arith.constant 1 : index
      %c0_44 = arith.constant 0 : index
      %c0_45 = arith.constant 0 : index
      %52 = vector.load %arg2[%c0_42, %c1_43, %c0_44, %c0_45] : memref<1x9x128x128xbf16, #tpu.memory_space<vmem>>, vector<1x1x128x128xbf16>
      %53 = vector.shape_cast %52 : vector<1x1x128x128xbf16> to vector<128x128xbf16>
      %cst_46 = arith.constant dense<0.000000e+00> : vector<512x128xf32>
      %54 = tpu.matmul %51, %53, %cst_46 {dimension_numbers = #tpu.dot_dimension_numbers<[1], [0], [0], [1], [0, 0, 1, 1], [], []>} : vector<512x128xbf16>, vector<128x128xbf16>, vector<512x128xf32> -> vector<512x128xf32>
      %55 = arith.addf %50, %54 : vector<512x128xf32>
      %c0_47 = arith.constant 0 : index
      %c0_48 = arith.constant 0 : index
      %56 = vector.load %arg7[%c0_47, %c0_48] : memref<512x128xf32, #tpu.memory_space<vmem>>, vector<512x128xf32>
      tpu.vector_store %arg7[%c0_47, %c0_48], %55 {strides = array<i32>} : memref<512x128xf32, #tpu.memory_space<vmem>>, vector<512x128xf32>,
      %c0_49 = arith.constant 0 : index
      %c0_50 = arith.constant 0 : index
      %c2 = arith.constant 2 : index
      %c0_51 = arith.constant 0 : index
      %57 = vector.load %arg6[%c0_49, %c0_50, %c2, %c0_51] : memref<2x18x18x128xf32, #tpu.memory_space<vmem>>, vector<2x16x16x128xf32>
      %58 = vector.shape_cast %57 : vector<2x16x16x128xf32> to vector<512x128xf32>
      %c0_52 = arith.constant 0 : index
      %c0_53 = arith.constant 0 : index
      %59 = vector.load %arg7[%c0_52, %c0_53] : memref<512x128xf32, #tpu.memory_space<vmem>>, vector<512x128xf32>
      %60 = arith.truncf %58 : vector<512x128xf32> to vector<512x128xbf16>
      %c0_54 = arith.constant 0 : index
      %c2_55 = arith.constant 2 : index
      %c0_56 = arith.constant 0 : index
      %c0_57 = arith.constant 0 : index
      %61 = vector.load %arg2[%c0_54, %c2_55, %c0_56, %c0_57] : memref<1x9x128x128xbf16, #tpu.memory_space<vmem>>, vector<1x1x128x128xbf16>
      %62 = vector.shape_cast %61 : vector<1x1x128x128xbf16> to vector<128x128xbf16>
      %cst_58 = arith.constant dense<0.000000e+00> : vector<512x128xf32>
      %63 = tpu.matmul %60, %62, %cst_58 {dimension_numbers = #tpu.dot_dimension_numbers<[1], [0], [0], [1], [0, 0, 1, 1], [], []>} : vector<512x128xbf16>, vector<128x128xbf16>, vector<512x128xf32> -> vector<512x128xf32>
      %64 = arith.addf %59, %63 : vector<512x128xf32>
      %c0_59 = arith.constant 0 : index
      %c0_60 = arith.constant 0 : index
      %65 = vector.load %arg7[%c0_59, %c0_60] : memref<512x128xf32, #tpu.memory_space<vmem>>, vector<512x128xf32>
      tpu.vector_store %arg7[%c0_59, %c0_60], %64 {strides = array<i32>} : memref<512x128xf32, #tpu.memory_space<vmem>>, vector<512x128xf32>,
      %c0_61 = arith.constant 0 : index
      %c1_62 = arith.constant 1 : index
      %c0_63 = arith.constant 0 : index
      %c0_64 = arith.constant 0 : index
      %66 = vector.load %arg6[%c0_61, %c1_62, %c0_63, %c0_64] : memref<2x18x18x128xf32, #tpu.memory_space<vmem>>, vector<2x16x16x128xf32>
      %67 = vector.shape_cast %66 : vector<2x16x16x128xf32> to vector<512x128xf32>
      %c0_65 = arith.constant 0 : index
      %c0_66 = arith.constant 0 : index
      %68 = vector.load %arg7[%c0_65, %c0_66] : memref<512x128xf32, #tpu.memory_space<vmem>>, vector<512x128xf32>
      %69 = arith.truncf %67 : vector<512x128xf32> to vector<512x128xbf16>
      %c0_67 = arith.constant 0 : index
      %c3 = arith.constant 3 : index
      %c0_68 = arith.constant 0 : index
      %c0_69 = arith.constant 0 : index
      %70 = vector.load %arg2[%c0_67, %c3, %c0_68, %c0_69] : memref<1x9x128x128xbf16, #tpu.memory_space<vmem>>, vector<1x1x128x128xbf16>
      %71 = vector.shape_cast %70 : vector<1x1x128x128xbf16> to vector<128x128xbf16>
      %cst_70 = arith.constant dense<0.000000e+00> : vector<512x128xf32>
      %72 = tpu.matmul %69, %71, %cst_70 {dimension_numbers = #tpu.dot_dimension_numbers<[1], [0], [0], [1], [0, 0, 1, 1], [], []>} : vector<512x128xbf16>, vector<128x128xbf16>, vector<512x128xf32> -> vector<512x128xf32>
      %73 = arith.addf %68, %72 : vector<512x128xf32>
      %c0_71 = arith.constant 0 : index
      %c0_72 = arith.constant 0 : index
      %74 = vector.load %arg7[%c0_71, %c0_72] : memref<512x128xf32, #tpu.memory_space<vmem>>, vector<512x128xf32>
      tpu.vector_store %arg7[%c0_71, %c0_72], %73 {strides = array<i32>} : memref<512x128xf32, #tpu.memory_space<vmem>>, vector<512x128xf32>,
      %c0_73 = arith.constant 0 : index
      %c1_74 = arith.constant 1 : index
      %c1_75 = arith.constant 1 : index
      %c0_76 = arith.constant 0 : index
      %75 = vector.load %arg6[%c0_73, %c1_74, %c1_75, %c0_76] : memref<2x18x18x128xf32, #tpu.memory_space<vmem>>, vector<2x16x16x128xf32>
      %76 = vector.shape_cast %75 : vector<2x16x16x128xf32> to vector<512x128xf32>
      %c0_77 = arith.constant 0 : index
      %c0_78 = arith.constant 0 : index
      %77 = vector.load %arg7[%c0_77, %c0_78] : memref<512x128xf32, #tpu.memory_space<vmem>>, vector<512x128xf32>
      %78 = arith.truncf %76 : vector<512x128xf32> to vector<512x128xbf16>
      %c0_79 = arith.constant 0 : index
      %c4 = arith.constant 4 : index
      %c0_80 = arith.constant 0 : index
      %c0_81 = arith.constant 0 : index
      %79 = vector.load %arg2[%c0_79, %c4, %c0_80, %c0_81] : memref<1x9x128x128xbf16, #tpu.memory_space<vmem>>, vector<1x1x128x128xbf16>
      %80 = vector.shape_cast %79 : vector<1x1x128x128xbf16> to vector<128x128xbf16>
      %cst_82 = arith.constant dense<0.000000e+00> : vector<512x128xf32>
      %81 = tpu.matmul %78, %80, %cst_82 {dimension_numbers = #tpu.dot_dimension_numbers<[1], [0], [0], [1], [0, 0, 1, 1], [], []>} : vector<512x128xbf16>, vector<128x128xbf16>, vector<512x128xf32> -> vector<512x128xf32>
      %82 = arith.addf %77, %81 : vector<512x128xf32>
      %c0_83 = arith.constant 0 : index
      %c0_84 = arith.constant 0 : index
      %83 = vector.load %arg7[%c0_83, %c0_84] : memref<512x128xf32, #tpu.memory_space<vmem>>, vector<512x128xf32>
      tpu.vector_store %arg7[%c0_83, %c0_84], %82 {strides = array<i32>} : memref<512x128xf32, #tpu.memory_space<vmem>>, vector<512x128xf32>,
      %c0_85 = arith.constant 0 : index
      %c1_86 = arith.constant 1 : index
      %c2_87 = arith.constant 2 : index
      %c0_88 = arith.constant 0 : index
      %84 = vector.load %arg6[%c0_85, %c1_86, %c2_87, %c0_88] : memref<2x18x18x128xf32, #tpu.memory_space<vmem>>, vector<2x16x16x128xf32>
      %85 = vector.shape_cast %84 : vector<2x16x16x128xf32> to vector<512x128xf32>
      %c0_89 = arith.constant 0 : index
      %c0_90 = arith.constant 0 : index
      %86 = vector.load %arg7[%c0_89, %c0_90] : memref<512x128xf32, #tpu.memory_space<vmem>>, vector<512x128xf32>
      %87 = arith.truncf %85 : vector<512x128xf32> to vector<512x128xbf16>
      %c0_91 = arith.constant 0 : index
      %c5 = arith.constant 5 : index
      %c0_92 = arith.constant 0 : index
      %c0_93 = arith.constant 0 : index
      %88 = vector.load %arg2[%c0_91, %c5, %c0_92, %c0_93] : memref<1x9x128x128xbf16, #tpu.memory_space<vmem>>, vector<1x1x128x128xbf16>
      %89 = vector.shape_cast %88 : vector<1x1x128x128xbf16> to vector<128x128xbf16>
      %cst_94 = arith.constant dense<0.000000e+00> : vector<512x128xf32>
      %90 = tpu.matmul %87, %89, %cst_94 {dimension_numbers = #tpu.dot_dimension_numbers<[1], [0], [0], [1], [0, 0, 1, 1], [], []>} : vector<512x128xbf16>, vector<128x128xbf16>, vector<512x128xf32> -> vector<512x128xf32>
      %91 = arith.addf %86, %90 : vector<512x128xf32>
      %c0_95 = arith.constant 0 : index
      %c0_96 = arith.constant 0 : index
      %92 = vector.load %arg7[%c0_95, %c0_96] : memref<512x128xf32, #tpu.memory_space<vmem>>, vector<512x128xf32>
      tpu.vector_store %arg7[%c0_95, %c0_96], %91 {strides = array<i32>} : memref<512x128xf32, #tpu.memory_space<vmem>>, vector<512x128xf32>,
      %c0_97 = arith.constant 0 : index
      %c2_98 = arith.constant 2 : index
      %c0_99 = arith.constant 0 : index
      %c0_100 = arith.constant 0 : index
      %93 = vector.load %arg6[%c0_97, %c2_98, %c0_99, %c0_100] : memref<2x18x18x128xf32, #tpu.memory_space<vmem>>, vector<2x16x16x128xf32>
      %94 = vector.shape_cast %93 : vector<2x16x16x128xf32> to vector<512x128xf32>
      %c0_101 = arith.constant 0 : index
      %c0_102 = arith.constant 0 : index
      %95 = vector.load %arg7[%c0_101, %c0_102] : memref<512x128xf32, #tpu.memory_space<vmem>>, vector<512x128xf32>
      %96 = arith.truncf %94 : vector<512x128xf32> to vector<512x128xbf16>
      %c0_103 = arith.constant 0 : index
      %c6 = arith.constant 6 : index
      %c0_104 = arith.constant 0 : index
      %c0_105 = arith.constant 0 : index
      %97 = vector.load %arg2[%c0_103, %c6, %c0_104, %c0_105] : memref<1x9x128x128xbf16, #tpu.memory_space<vmem>>, vector<1x1x128x128xbf16>
      %98 = vector.shape_cast %97 : vector<1x1x128x128xbf16> to vector<128x128xbf16>
      %cst_106 = arith.constant dense<0.000000e+00> : vector<512x128xf32>
      %99 = tpu.matmul %96, %98, %cst_106 {dimension_numbers = #tpu.dot_dimension_numbers<[1], [0], [0], [1], [0, 0, 1, 1], [], []>} : vector<512x128xbf16>, vector<128x128xbf16>, vector<512x128xf32> -> vector<512x128xf32>
      %100 = arith.addf %95, %99 : vector<512x128xf32>
      %c0_107 = arith.constant 0 : index
      %c0_108 = arith.constant 0 : index
      %101 = vector.load %arg7[%c0_107, %c0_108] : memref<512x128xf32, #tpu.memory_space<vmem>>, vector<512x128xf32>
      tpu.vector_store %arg7[%c0_107, %c0_108], %100 {strides = array<i32>} : memref<512x128xf32, #tpu.memory_space<vmem>>, vector<512x128xf32>,
      %c0_109 = arith.constant 0 : index
      %c2_110 = arith.constant 2 : index
      %c1_111 = arith.constant 1 : index
      %c0_112 = arith.constant 0 : index
      %102 = vector.load %arg6[%c0_109, %c2_110, %c1_111, %c0_112] : memref<2x18x18x128xf32, #tpu.memory_space<vmem>>, vector<2x16x16x128xf32>
      %103 = vector.shape_cast %102 : vector<2x16x16x128xf32> to vector<512x128xf32>
      %c0_113 = arith.constant 0 : index
      %c0_114 = arith.constant 0 : index
      %104 = vector.load %arg7[%c0_113, %c0_114] : memref<512x128xf32, #tpu.memory_space<vmem>>, vector<512x128xf32>
      %105 = arith.truncf %103 : vector<512x128xf32> to vector<512x128xbf16>
      %c0_115 = arith.constant 0 : index
      %c7 = arith.constant 7 : index
      %c0_116 = arith.constant 0 : index
      %c0_117 = arith.constant 0 : index
      %106 = vector.load %arg2[%c0_115, %c7, %c0_116, %c0_117] : memref<1x9x128x128xbf16, #tpu.memory_space<vmem>>, vector<1x1x128x128xbf16>
      %107 = vector.shape_cast %106 : vector<1x1x128x128xbf16> to vector<128x128xbf16>
      %cst_118 = arith.constant dense<0.000000e+00> : vector<512x128xf32>
      %108 = tpu.matmul %105, %107, %cst_118 {dimension_numbers = #tpu.dot_dimension_numbers<[1], [0], [0], [1], [0, 0, 1, 1], [], []>} : vector<512x128xbf16>, vector<128x128xbf16>, vector<512x128xf32> -> vector<512x128xf32>
      %109 = arith.addf %104, %108 : vector<512x128xf32>
      %c0_119 = arith.constant 0 : index
      %c0_120 = arith.constant 0 : index
      %110 = vector.load %arg7[%c0_119, %c0_120] : memref<512x128xf32, #tpu.memory_space<vmem>>, vector<512x128xf32>
      tpu.vector_store %arg7[%c0_119, %c0_120], %109 {strides = array<i32>} : memref<512x128xf32, #tpu.memory_space<vmem>>, vector<512x128xf32>,
      %c0_121 = arith.constant 0 : index
      %c2_122 = arith.constant 2 : index
      %c2_123 = arith.constant 2 : index
      %c0_124 = arith.constant 0 : index
      %111 = vector.load %arg6[%c0_121, %c2_122, %c2_123, %c0_124] : memref<2x18x18x128xf32, #tpu.memory_space<vmem>>, vector<2x16x16x128xf32>
      %112 = vector.shape_cast %111 : vector<2x16x16x128xf32> to vector<512x128xf32>
      %c0_125 = arith.constant 0 : index
      %c0_126 = arith.constant 0 : index
      %113 = vector.load %arg7[%c0_125, %c0_126] : memref<512x128xf32, #tpu.memory_space<vmem>>, vector<512x128xf32>
      %114 = arith.truncf %112 : vector<512x128xf32> to vector<512x128xbf16>
      %c0_127 = arith.constant 0 : index
      %c8 = arith.constant 8 : index
      %c0_128 = arith.constant 0 : index
      %c0_129 = arith.constant 0 : index
      %115 = vector.load %arg2[%c0_127, %c8, %c0_128, %c0_129] : memref<1x9x128x128xbf16, #tpu.memory_space<vmem>>, vector<1x1x128x128xbf16>
      %116 = vector.shape_cast %115 : vector<1x1x128x128xbf16> to vector<128x128xbf16>
      %cst_130 = arith.constant dense<0.000000e+00> : vector<512x128xf32>
      %117 = tpu.matmul %114, %116, %cst_130 {dimension_numbers = #tpu.dot_dimension_numbers<[1], [0], [0], [1], [0, 0, 1, 1], [], []>} : vector<512x128xbf16>, vector<128x128xbf16>, vector<512x128xf32> -> vector<512x128xf32>
      %118 = arith.addf %113, %117 : vector<512x128xf32>
      %c0_131 = arith.constant 0 : index
      %c0_132 = arith.constant 0 : index
      %119 = vector.load %arg7[%c0_131, %c0_132] : memref<512x128xf32, #tpu.memory_space<vmem>>, vector<512x128xf32>
      tpu.vector_store %arg7[%c0_131, %c0_132], %118 {strides = array<i32>} : memref<512x128xf32, #tpu.memory_space<vmem>>, vector<512x128xf32>,
      %c0_133 = arith.constant 0 : index
      %c0_134 = arith.constant 0 : index
      %c0_135 = arith.constant 0 : index
      %c0_136 = arith.constant 0 : index
      %120 = vector.load %arg5[%c0_133, %c0_134, %c0_135, %c0_136] : memref<2x16x16x128xf32, #tpu.memory_space<vmem>>, vector<2x16x16x128xf32>
      %c0_137 = arith.constant 0 : index
      %c0_138 = arith.constant 0 : index
      %121 = vector.load %arg7[%c0_137, %c0_138] : memref<512x128xf32, #tpu.memory_space<vmem>>, vector<512x128xf32>
      %122 = vector.shape_cast %121 : vector<512x128xf32> to vector<2x16x16x128xf32>
      %123 = arith.addf %120, %122 : vector<2x16x16x128xf32>
      %c0_139 = arith.constant 0 : index
      %c0_140 = arith.constant 0 : index
      %c0_141 = arith.constant 0 : index
      %c0_142 = arith.constant 0 : index
      %124 = vector.load %arg5[%c0_139, %c0_140, %c0_141, %c0_142] : memref<2x16x16x128xf32, #tpu.memory_space<vmem>>, vector<2x16x16x128xf32>
      tpu.vector_store %arg5[%c0_139, %c0_140, %c0_141, %c0_142], %123 {strides = array<i32>} : memref<2x16x16x128xf32, #tpu.memory_space<vmem>>, vector<2x16x16x128xf32>,
    } else {
    }
    return
  }
  func.func @transform_0(%arg0: i32) -> (i32, i32, i32, i32) {
    %c0_i32 = arith.constant 0 : i32
    %c0_i32_0 = arith.constant 0 : i32
    %c0_i32_1 = arith.constant 0 : i32
    %c0_i32_2 = arith.constant 0 : i32
    %c0_i32_3 = arith.constant 0 : i32
    return %c0_i32, %c0_i32_0, %c0_i32_1, %c0_i32_2 : i32, i32, i32, i32
  }
  func.func @transform_1(%arg0: i32) -> (i32, i32, i32, i32) {
    %c0_i32 = arith.constant 0 : i32
    %c0_i32_0 = arith.constant 0 : i32
    %c0_i32_1 = arith.constant 0 : i32
    %c0_i32_2 = arith.constant 0 : i32
    return %arg0, %c0_i32, %c0_i32_0, %c0_i32_1 : i32, i32, i32, i32
  }
  func.func @transform_2(%arg0: i32) -> (i32, i32, i32) {
    %c0_i32 = arith.constant 0 : i32
    %c0_i32_0 = arith.constant 0 : i32
    %c0_i32_1 = arith.constant 0 : i32
    return %arg0, %c0_i32, %c0_i32_0 : i32, i32, i32
  }
  func.func @transform_3(%arg0: i32) -> (i32, i32, i32) {
    %c0_i32 = arith.constant 0 : i32
    %c0_i32_0 = arith.constant 0 : i32
    %c0_i32_1 = arith.constant 0 : i32
    return %arg0, %c0_i32, %c0_i32_0 : i32, i32, i32
  }
  func.func @transform_4(%arg0: i32) -> (i32, i32, i32, i32) {
    %c0_i32 = arith.constant 0 : i32
    %c0_i32_0 = arith.constant 0 : i32
    %c0_i32_1 = arith.constant 0 : i32
    %c0_i32_2 = arith.constant 0 : i32
    %c0_i32_3 = arith.constant 0 : i32
    return %c0_i32, %c0_i32_0, %c0_i32_1, %c0_i32_2 : i32, i32, i32, i32
  }
}

</mosaic_0001>

<bundles_post_ra>
// kernel: densenet_forward.1
= control target key start
LH: loop header
LB: loop body
LE: loop exit
PB: predicated region body
PF: predicated region fallthrough
CT: control target
= control target key end

     0   :  { %s12308_s15 = smov 0   ;;  %s15489_s0 = inlined_call_operand.vmem [shape: f32[2,18,18,128], index: 0, kind: input, shape index: {}]   ;;  %s15490_s1 = inlined_call_operand.vmem [shape: bf16[3,9,128,128], index: 1, kind: input, shape index: {}]   ;;  %s15491_s2 = inlined_call_operand.vmem [shape: f32[3,1,128], index: 2, kind: input, shape index: {}]   ;;  %s15492_s3 = inlined_call_operand.vmem [shape: f32[3,1,128], index: 3, kind: input, shape index: {}]   ;;  %s15493_s4 = inlined_call_operand.vmem [shape: f32[2,16,16,128], index: 4, kind: output, shape index: {}]  }
   0x1 LB: > { %s12314_s16 = sadd.s32 4294967295, %s12280_s15   ;;  %p10834_p0 = scmp.ge.s32.totalorder %s12280_s15, 1  ;;  %s12280_s15 = sphi %s12308_s15, %s14_s15  }
   0x2   : > { %p173_p1 = scmp.lt.s32.totalorder %s12280_s15, 4 }
   0x4   : > { %p174_p2 = pnand %p10834_p0, %p173_p1 }
   0x5   : > { %p200_p3 = scmp.lt.s32.totalorder (!%p174_p2), %s12314_s16, 2  ;;  %p10836_p4 = scmp.ne.s32.totalorder (!%p174_p2), %s12314_s16, 0 }
   0x6   : > { %177 = sbr.rel (%p174_p2) target bundleno = 2832 (0xb10), region = 36 }
   0xb   : > { %s12320_s17 = scalar_select %p200_p3, %s12314_s16, 2 }
   0xc   : > { %214 = sbr.rel (%p10836_p4) target bundleno = 1351 (0x547), region = 40 }
   0xd   : > { %s12248_s18 = smul.u32 576, %s12320_s17  ;;  %s207_s21 = scalar_lea.vmem %s15491_s2, %s12320_s17 }
   0xe   : > { %s210_s24 = scalar_lea.vmem %s15492_s3, %s12320_s17 }
   0xf   : > { %s12334_s27 = scalar_lea.vmem %s15490_s1, %s12248_s18 }
  0x11   : > { %v12063_v0 = vld [vmem:[%s12334_s27 + $0x38] sm:$0xff]  ;;  %v12062_v1 = vld [vmem:[%s12334_s27 + $0x30] sm:$0xff]  ;;  %v12061_v2 = vld [vmem:[%s12334_s27 + $0x28] sm:$0xff] }
  0x12   : > { %12200 = vmatpush.bf16.msra.mxu1 %v12063_v0  ;;  %12201 = vmatpush.bf16.msra.mxu2 %v12063_v0  ;;  %v12060_v3 = vld [vmem:[%s12334_s27 + $0x20] sm:$0xff]  ;;  %v12059_v4 = vld [vmem:[%s12334_s27 + $0x18] sm:$0xff]  ;;  %v12058_v5 = vld [vmem:[%s12334_s27 + $0x10] sm:$0xff] }
  0x13   : > { %12202 = vmatpush.bf16.msra.mxu3 %v12063_v0  ;;  %503 = vmatpush.bf16.msra.mxu0 %v12063_v0  ;;  %v12057_v6 = vld [vmem:[%s12334_s27 + $0x8] sm:$0xff]  ;;  %v12056_v7 = vld [vmem:[%s12334_s27] sm:$0xff]  ;;  %v311_v10 = vld [vmem:[%s15489_s0 + $0x1b0] sm:$0xff] }
  0x14   : > { %v295_v8 = vld [vmem:[%s15489_s0 + $0xc0] sm:$0xff]  ;;  %v296_v9 = vld [vmem:[%s15489_s0 + $0xc8] sm:$0xff]  ;;  %v312_v11 = vld [vmem:[%s15489_s0 + $0x1b8] sm:$0xff] }
  0x15   : > { %v12071_v12 = vld [vmem:[%s12334_s27 + $0x78] sm:$0xff]  ;;  %v327_v13 = vld [vmem:[%s15489_s0 + $0x270] sm:$0xff]  ;;  %v415_v17 = vpack.c.bf16 %v296_v9, %v295_v8  ;;  %v423_v18 = vpack.c.bf16 %v312_v11, %v311_v10  ;;  %v279_v20 = vld [vmem:[%s15489_s0] sm:$0xff] }
  0x16   : > { %12203 = vmatpush.bf16.msra.mxu1 %v12062_v1  ;;  %12204 = vmatpush.bf16.msra.mxu2 %v12062_v1  ;;  %v328_v14 = vld [vmem:[%s15489_s0 + $0x278] sm:$0xff]  ;;  %v280_v21 = vld [vmem:[%s15489_s0 + $0x8] sm:$0xff]  ;;  %v12070_v22 = vld [vmem:[%s12334_s27 + $0x70] sm:$0xff] }
  0x17   : > { %12205 = vmatpush.bf16.msra.mxu3 %v12062_v1  ;;  %504 = vmatpush.bf16.msra.mxu0 %v12062_v1  ;;  %v12079_v15 = vld [vmem:[%s12334_s27 + $0xb8] sm:$0xff]  ;;  %v431_v19 = vpack.c.bf16 %v328_v14, %v327_v13  ;;  %v12078_v24 = vld [vmem:[%s12334_s27 + $0xb0] sm:$0xff]  ;;  %v407_v26 = vpack.c.bf16 %v280_v21, %v279_v20  ;;  %v12069_v27 = vld [vmem:[%s12334_s27 + $0x68] sm:$0xff] }
  0x18   : > { %v12087_v16 = vld [vmem:[%s12334_s27 + $0xf8] sm:$0xff]  ;;  %v12086_v25 = vld [vmem:[%s12334_s27 + $0xf0] sm:$0xff]  ;;  %v12077_v29 = vld [vmem:[%s12334_s27 + $0xa8] sm:$0xff] }
  0x19   : > { %v12095_v23 = vld [vmem:[%s12334_s27 + $0x138] sm:$0xff]  ;;  %v12094_v28 = vld [vmem:[%s12334_s27 + $0x130] sm:$0xff]  ;;  %v12085_v30 = vld [vmem:[%s12334_s27 + $0xe8] sm:$0xff] }
  0x1a   : > { %12206 = vmatpush.bf16.msra.mxu1 %v12061_v2  ;;  %12207 = vmatpush.bf16.msra.mxu2 %v12061_v2  ;;  %v297_v31 = vld [vmem:[%s15489_s0 + $0xd8] sm:$0xff]  ;;  %v298_v32 = vld [vmem:[%s15489_s0 + $0xe0] sm:$0xff]  ;;  %v313_v33 = vld [vmem:[%s15489_s0 + $0x1c8] sm:$0xff] }
  0x1b   : > { %12208 = vmatpush.bf16.msra.mxu3 %v12061_v2  ;;  %505 = vmatpush.bf16.msra.mxu0 %v12061_v2  ;;  %v314_v34 = vld [vmem:[%s15489_s0 + $0x1d0] sm:$0xff]  ;;  %v329_v35 = vld [vmem:[%s15489_s0 + $0x288] sm:$0xff]  ;;  %v416_v37 = vpack.c.bf16 %v298_v32, %v297_v31  ;;  %v281_v40 = vld [vmem:[%s15489_s0 + $0x18] sm:$0xff] }
  0x1c   : > { %v330_v36 = vld [vmem:[%s15489_s0 + $0x290] sm:$0xff]  ;;  %v424_v38 = vpack.c.bf16 %v314_v34, %v313_v33  ;;  %v282_v41 = vld [vmem:[%s15489_s0 + $0x20] sm:$0xff]  ;;  %v12093_v46 = vld [vmem:[%s12334_s27 + $0x128] sm:$0xff] }
  0x1d   : > { %v432_v39 = vpack.c.bf16 %v330_v36, %v329_v35  ;;  %v12404_v42 = vpack.c.bf16 %v282_v41, %v281_v40  ;;  %v12068_v43 = vld [vmem:[%s12334_s27 + $0x60] sm:$0xff]  ;;  %v299_v47 = vld [vmem:[%s15489_s0 + $0xf0] sm:$0xff]  ;;  %v300_v48 = vld [vmem:[%s15489_s0 + $0xf8] sm:$0xff] }
  0x1e   : > { %12209 = vmatpush.bf16.msra.mxu1 %v12060_v3  ;;  %12210 = vmatpush.bf16.msra.mxu2 %v12060_v3  ;;  %v12076_v44 = vld [vmem:[%s12334_s27 + $0xa0] sm:$0xff]  ;;  %v316_v50 = vld [vmem:[%s15489_s0 + $0x1e8] sm:$0xff]  ;;  %v417_v53 = vpack.c.bf16 %v300_v48, %v299_v47  ;;  %v283_v56 = vld [vmem:[%s15489_s0 + $0x30] sm:$0xff] }
  0x1f   : > { %12211 = vmatpush.bf16.msra.mxu3 %v12060_v3  ;;  %506 = vmatpush.bf16.msra.mxu0 %v12060_v3  ;;  %v12084_v45 = vld [vmem:[%s12334_s27 + $0xe0] sm:$0xff]  ;;  %v332_v52 = vld [vmem:[%s15489_s0 + $0x2a8] sm:$0xff]  ;;  %v284_v57 = vld [vmem:[%s15489_s0 + $0x38] sm:$0xff] }
  0x20   : > { %v315_v49 = vld [vmem:[%s15489_s0 + $0x1e0] sm:$0xff]  ;;  %v12435_v58 = vpack.c.bf16 %v284_v57, %v283_v56  ;;  %v12067_v59 = vld [vmem:[%s12334_s27 + $0x58] sm:$0xff]  ;;  %v301_v63 = vld [vmem:[%s15489_s0 + $0x108] sm:$0xff] }
  0x21   : > { %v331_v51 = vld [vmem:[%s15489_s0 + $0x2a0] sm:$0xff]  ;;  %v425_v54 = vpack.c.bf16 %v316_v50, %v315_v49  ;;  %v12075_v60 = vld [vmem:[%s12334_s27 + $0x98] sm:$0xff]  ;;  %v302_v0 = vld [vmem:[%s15489_s0 + $0x110] sm:$0xff] }
  0x22   : > { %12212 = vmatpush.bf16.msra.mxu1 %v12059_v4  ;;  %12213 = vmatpush.bf16.msra.mxu2 %v12059_v4  ;;  %v433_v55 = vpack.c.bf16 %v332_v52, %v331_v51  ;;  %v12083_v61 = vld [vmem:[%s12334_s27 + $0xd8] sm:$0xff]  ;;  %v12092_v62 = vld [vmem:[%s12334_s27 + $0x120] sm:$0xff]  ;;  %v285_v8 = vld [vmem:[%s15489_s0 + $0x48] sm:$0xff] }
  0x23   : > { %12214 = vmatpush.bf16.msra.mxu3 %v12059_v4  ;;  %507 = vmatpush.bf16.msra.mxu0 %v12059_v4  ;;  %v317_v1 = vld [vmem:[%s15489_s0 + $0x1f8] sm:$0xff]  ;;  %v318_v2 = vld [vmem:[%s15489_s0 + $0x200] sm:$0xff]  ;;  %v286_v9 = vld [vmem:[%s15489_s0 + $0x50] sm:$0xff] }
  0x24   : > { %v333_v3 = vld [vmem:[%s15489_s0 + $0x2b8] sm:$0xff]  ;;  %v334_v4 = vld [vmem:[%s15489_s0 + $0x2c0] sm:$0xff]  ;;  %v12466_v10 = vpack.c.bf16 %v286_v9, %v285_v8  ;;  %v12066_v11 = vld [vmem:[%s12334_s27 + $0x50] sm:$0xff] }
  0x25   : > { %v12082_v13 = vld [vmem:[%s12334_s27 + $0xd0] sm:$0xff]  ;;  %v12091_v14 = vld [vmem:[%s12334_s27 + $0x118] sm:$0xff]  ;;  %v306_v32 = vld [vmem:[%s15489_s0 + $0x140] sm:$0xff] }
  0x26   : > { %12215 = vmatpush.bf16.msra.mxu1 %v12058_v5  ;;  %12216 = vmatpush.bf16.msra.mxu2 %v12058_v5  ;;  %v336_v20 = vld [vmem:[%s15489_s0 + $0x2d8] sm:$0xff]  ;;  %v321_v33 = vld [vmem:[%s15489_s0 + $0x228] sm:$0xff]  ;;  %v322_v34 = vld [vmem:[%s15489_s0 + $0x230] sm:$0xff] }
  0x27   : > { %12217 = vmatpush.bf16.msra.mxu3 %v12058_v5  ;;  %508 = vmatpush.bf16.msra.mxu0 %v12058_v5  ;;  %v418_v5 = vpack.c.bf16 %v302_v0, %v301_v63  ;;  %v305_v31 = vld [vmem:[%s15489_s0 + $0x138] sm:$0xff]  ;;  %v337_v35 = vld [vmem:[%s15489_s0 + $0x2e8] sm:$0xff]  ;;  %v338_v36 = vld [vmem:[%s15489_s0 + $0x2f0] sm:$0xff] }
  0x28   : > { %v289_v40 = vld [vmem:[%s15489_s0 + $0x78] sm:$0xff]  ;;  %v290_v41 = vld [vmem:[%s15489_s0 + $0x80] sm:$0xff]  ;;  %v307_v47 = vld [vmem:[%s15489_s0 + $0x150] sm:$0xff] }
  0x29   : > { %v308_v48 = vld [vmem:[%s15489_s0 + $0x158] sm:$0xff]  ;;  %v323_v49 = vld [vmem:[%s15489_s0 + $0x240] sm:$0xff]  ;;  %v324_v50 = vld [vmem:[%s15489_s0 + $0x248] sm:$0xff] }
  0x2a   : > { %12218 = vmatpush.bf16.msra.mxu1 %v12057_v6  ;;  %12219 = vmatpush.bf16.msra.mxu2 %v12057_v6  ;;  %v339_v51 = vld [vmem:[%s15489_s0 + $0x300] sm:$0xff]  ;;  %v340_v52 = vld [vmem:[%s15489_s0 + $0x308] sm:$0xff]  ;;  %v291_v57 = vld [vmem:[%s15489_s0 + $0x90] sm:$0xff] }
  0x2b   : > { %12220 = vmatpush.bf16.msra.mxu3 %v12057_v6  ;;  %509 = vmatpush.bf16.msra.mxu0 %v12057_v6  ;;  %v426_v6 = vpack.c.bf16 %v318_v2, %v317_v1  ;;  %v437_v56 = vpack.c.bf16 %v340_v52, %v339_v51  ;;  %v310_v63 = vld [vmem:[%s15489_s0 + $0x170] sm:$0xff]  ;;  %v325_v0 = vld [vmem:[%s15489_s0 + $0x258] sm:$0xff]  ;;  %v326_v1 = vld [vmem:[%s15489_s0 + $0x260] sm:$0xff] }
  0x2c   : > { %v341_v2 = vld [vmem:[%s15489_s0 + $0x318] sm:$0xff]  ;;  %v801_v8 = vld [vmem:[%s15489_s0 + $0x9] sm:$0xff] }
  0x2d   : > { %v1322_v9 = vld [vmem:[%s15489_s0 + $0x2] sm:$0xff]  ;;  %v807_v52 = vld [vmem:[%s15489_s0 + $0x51] sm:$0xff] }
  0x2e   : > { %12221 = vmatpush.bf16.msra.mxu1 %v12056_v7  ;;  %12222 = vmatpush.bf16.msra.mxu2 %v12056_v7  ;;  %v806_v51 = vld [vmem:[%s15489_s0 + $0x49] sm:$0xff] }
  0x2f   : > { %12223 = vmatpush.bf16.msra.mxu3 %v12056_v7  ;;  %510 = vmatpush.bf16.msra.mxu0 %v12056_v7  ;;  %v434_v7 = vpack.c.bf16 %v334_v4, %v333_v3  ;;  %v342_v3 = vld [vmem:[%s15489_s0 + $0x320] sm:$0xff] }
  0x31   : > { %551 = vmatmul.bf16.vlgmr.msra.gmra.mxu1 %v415_v17  ;;  %591 = vmatmul.bf16.vlgmr.msra.gmra.mxu2 %v423_v18  ;;  %v319_v17 = vld [vmem:[%s15489_s0 + $0x210] sm:$0xff]  ;;  %v320_v18 = vld [vmem:[%s15489_s0 + $0x218] sm:$0xff] }
  0x32   : > { %1025 = vmatpush.bf16.msrb.mxu1 %v12071_v12  ;;  %1547 = vmatpush.bf16.msrb.mxu2 %v12079_v15  ;;  %v12074_v12 = vld [vmem:[%s12334_s27 + $0x90] sm:$0xff]  ;;  %v303_v15 = vld [vmem:[%s15489_s0 + $0x120] sm:$0xff] }
  0x33   : > { %2070 = vmatpush.bf16.msrb.mxu3 %v12087_v16  ;;  %2592 = vmatpush.bf16.msrb.mxu0 %v12095_v23  ;;  %v304_v16 = vld [vmem:[%s15489_s0 + $0x128] sm:$0xff] }
  0x34   : > { %631 = vmatmul.bf16.vlgmr.msra.gmra.mxu3 %v431_v19  ;;  %511 = vmatmul.bf16.vlgmr.msra.gmra.mxu0 %v407_v26  ;;  %v335_v19 = vld [vmem:[%s15489_s0 + $0x2d0] sm:$0xff]  ;;  %v419_v21 = vpack.c.bf16 %v304_v16, %v303_v15  ;;  %v293_v15 = vld [vmem:[%s15489_s0 + $0xa8] sm:$0xff] }
  0x35   : > { %v435_v23 = vpack.c.bf16 %v336_v20, %v335_v19  ;;  %v803_v19 = vld [vmem:[%s15489_s0 + $0x21] sm:$0xff] }
  0x36   : > { %1026 = vmatpush.bf16.msrb.mxu1 %v12070_v22  ;;  %1548 = vmatpush.bf16.msrb.mxu2 %v12078_v24  ;;  %v427_v22 = vpack.c.bf16 %v320_v18, %v319_v17  ;;  %v287_v24 = vld [vmem:[%s15489_s0 + $0x60] sm:$0xff] }
  0x37   : > { %2071 = vmatpush.bf16.msrb.mxu3 %v12086_v25  ;;  %2593 = vmatpush.bf16.msrb.mxu0 %v12094_v28  ;;  %v288_v25 = vld [vmem:[%s15489_s0 + $0x68] sm:$0xff]  ;;  %v12088_v17 = vld [vmem:[%s12334_s27 + $0x100] sm:$0xff] }
  0x38   : > { %v12497_v26 = vpack.c.bf16 %v288_v25, %v287_v24  ;;  %v12073_v28 = vld [vmem:[%s12334_s27 + $0x88] sm:$0xff]  ;;  %v12111_v25 = vld [vmem:[%s12334_s27 + $0x1b8] sm:$0xff] }
  0x3a   : > { %1027 = vmatpush.bf16.msrb.mxu1 %v12069_v27  ;;  %1549 = vmatpush.bf16.msrb.mxu2 %v12077_v29  ;;  %v12065_v27 = vld [vmem:[%s12334_s27 + $0x48] sm:$0xff] }
  0x3b   : > { %2072 = vmatpush.bf16.msrb.mxu3 %v12085_v30  ;;  %2594 = vmatpush.bf16.msrb.mxu0 %v12093_v46  ;;  %v12081_v29 = vld [vmem:[%s12334_s27 + $0xc8] sm:$0xff]  ;;  %v12090_v30 = vld [vmem:[%s12334_s27 + $0x110] sm:$0xff]  ;;  %v12282_v46 = vmov 0.0  }
  0x3c   : > { %5106 = vst [vmem:[#allocation2] sm:$0xff] %v12282_v46 }
  0x3d   : > { %5107 = vst [vmem:[#allocation2 + $0x8] sm:$0xff] %v12282_v46 }
  0x3e   : > { %1028 = vmatpush.bf16.msrb.mxu1 %v12068_v43  ;;  %1550 = vmatpush.bf16.msrb.mxu2 %v12076_v44  ;;  %v12528_v43 = vpack.c.bf16 %v290_v41, %v289_v40  ;;  %v12064_v44 = vld [vmem:[%s12334_s27 + $0x40] sm:$0xff]  ;;  %5108 = vst [vmem:[#allocation2 + $0x10] sm:$0x3] %v12282_v46 }
  0x3f   : > { %2073 = vmatpush.bf16.msrb.mxu3 %v12084_v45  ;;  %2595 = vmatpush.bf16.msrb.mxu0 %v12092_v62  ;;  %v12072_v45 = vld [vmem:[%s12334_s27 + $0x80] sm:$0xff]  ;;  %5109 = vst [vmem:[#allocation2 + $0x18] sm:$0xff] %v12282_v46  ;;  %v309_v62 = vld [vmem:[%s15489_s0 + $0x168] sm:$0xff] }
  0x40   : > { %5110 = vst [vmem:[#allocation2 + $0x20] sm:$0xff] %v12282_v46  ;;  %v422_v4 = vpack.c.bf16 %v310_v63, %v309_v62  ;;  %v1328_v62 = vld [vmem:[%s15489_s0 + $0x4a] sm:$0xff]  ;;  %v1329_v63 = vld [vmem:[%s15489_s0 + $0x52] sm:$0xff] }
  0x41   : > { %556 = vmatmul.bf16.gmra.mxu1 %v416_v37  ;;  %596 = vmatmul.bf16.gmra.mxu2 %v424_v38  ;;  %v420_v37 = vpack.c.bf16 %v306_v32, %v305_v31  ;;  %v428_v38 = vpack.c.bf16 %v322_v34, %v321_v33  ;;  %5111 = vst [vmem:[#allocation2 + $0x28] sm:$0x3] %v12282_v46  ;;  %v1325_v31 = vld [vmem:[%s15489_s0 + $0x22] sm:$0xff]  ;;  %v804_v34 = vld [vmem:[%s15489_s0 + $0x31] sm:$0xff] }
  0x42   : > { %1029 = vmatpush.bf16.msrb.mxu1 %v12067_v59  ;;  %1551 = vmatpush.bf16.msrb.mxu2 %v12075_v60  ;;  %5112 = vst [vmem:[#allocation2 + $0x30] sm:$0xff] %v12282_v46  ;;  %v292_v59 = vld [vmem:[%s15489_s0 + $0x98] sm:$0xff]  ;;  %v12080_v60 = vld [vmem:[%s12334_s27 + $0xc0] sm:$0xff] }
  0x43   : > { %2074 = vmatpush.bf16.msrb.mxu3 %v12083_v61  ;;  %2596 = vmatpush.bf16.msrb.mxu0 %v12091_v14  ;;  %5113 = vst [vmem:[#allocation2 + $0x38] sm:$0xff] %v12282_v46  ;;  %v12573_v61 = vpack.c.bf16 %v292_v59, %v291_v57  ;;  %v12110_v59 = vld [vmem:[%s12334_s27 + $0x1b0] sm:$0xff] }
  0x44   : > { %636 = vmatmul.bf16.gmra.mxu3 %v432_v39  ;;  %516 = vmatmul.bf16.gmra.mxu0 %v12404_v42  ;;  %v436_v39 = vpack.c.bf16 %v338_v36, %v337_v35  ;;  %5114 = vst [vmem:[#allocation2 + $0x40] sm:$0x3] %v12282_v46  ;;  %v805_v35 = vld [vmem:[%s15489_s0 + $0x39] sm:$0xff] }
  0x45   : > { %5115 = vst [vmem:[#allocation2 + $0x48] sm:$0xff] %v12282_v46 }
  0x46   : > { %1030 = vmatpush.bf16.msrb.mxu1 %v12066_v11  ;;  %1552 = vmatpush.bf16.msrb.mxu2 %v12074_v12  ;;  %5116 = vst [vmem:[#allocation2 + $0x50] sm:$0xff] %v12282_v46  ;;  %v1323_v11 = vld [vmem:[%s15489_s0 + $0xa] sm:$0xff] }
  0x47   : > { %2075 = vmatpush.bf16.msrb.mxu3 %v12082_v13  ;;  %2597 = vmatpush.bf16.msrb.mxu0 %v12090_v30  ;;  %5117 = vst [vmem:[#allocation2 + $0x58] sm:$0x3] %v12282_v46  ;;  %v1450_v13 = vpack.c.bf16 %v1323_v11, %v1322_v9  ;;  %v1324_v30 = vld [vmem:[%s15489_s0 + $0x1a] sm:$0xff] }
  0x48   : > { %5118 = vst [vmem:[#allocation2 + $0x60] sm:$0xff] %v12282_v46  ;;  %v1451_v32 = vpack.c.bf16 %v1325_v31, %v1324_v30 }
  0x49   : > { %5119 = vst [vmem:[#allocation2 + $0x68] sm:$0xff] %v12282_v46 }
  0x4a   : > { %1031 = vmatpush.bf16.msrb.mxu1 %v12065_v27  ;;  %1553 = vmatpush.bf16.msrb.mxu2 %v12073_v28  ;;  %5120 = vst [vmem:[#allocation2 + $0x70] sm:$0x3] %v12282_v46 }
  0x4b   : > { %2076 = vmatpush.bf16.msrb.mxu3 %v12081_v29  ;;  %5121 = vst [vmem:[#allocation2 + $0x78] sm:$0xff] %v12282_v46  ;;  %v12119_v29 = vld [vmem:[%s12334_s27 + $0x1f8] sm:$0xff] }
  0x4c   : > { %5122 = vst [vmem:[#allocation2 + $0x80] sm:$0xff] %v12282_v46 }
  0x4d   : > { %5123 = vst [vmem:[#allocation2 + $0x88] sm:$0x3] %v12282_v46 }
  0x4e   : > { %1032 = vmatpush.bf16.msrb.mxu1 %v12064_v44  ;;  %1554 = vmatpush.bf16.msrb.mxu2 %v12072_v45  ;;  %5124 = vst [vmem:[#allocation2 + $0x90] sm:$0xff] %v12282_v46  ;;  %v1326_v44 = vld [vmem:[%s15489_s0 + $0x32] sm:$0xff]  ;;  %v1327_v45 = vld [vmem:[%s15489_s0 + $0x3a] sm:$0xff] }
  0x4f   : > { %2077 = vmatpush.bf16.msrb.mxu3 %v12080_v60  ;;  %5125 = vst [vmem:[#allocation2 + $0x98] sm:$0xff] %v12282_v46 }
  0x50   : > { %5126 = vst [vmem:[#allocation2 + $0xa0] sm:$0x3] %v12282_v46 }
  0x51   : > { %561 = vmatmul.bf16.gmra.mxu1 %v417_v53  ;;  %601 = vmatmul.bf16.gmra.mxu2 %v425_v54  ;;  %v12089_v53 = vld [vmem:[%s12334_s27 + $0x108] sm:$0xff]  ;;  %v421_v54 = vpack.c.bf16 %v308_v48, %v307_v47  ;;  %5127 = vst [vmem:[#allocation2 + $0xa8] sm:$0xff] %v12282_v46 }
  0x52   : > { %2598 = vmatpush.bf16.msrb.mxu0 %v12089_v53  ;;  %5128 = vst [vmem:[#allocation2 + $0xb0] sm:$0xff] %v12282_v46  ;;  %3637 = vmatpush.bf16.msra.mxu2 %v12111_v25  ;;  %v931_v53 = vpack.c.bf16 %v807_v52, %v806_v51 }
  0x53   : > { %5129 = vst [vmem:[#allocation2 + $0xb8] sm:$0x3] %v12282_v46  ;;  %4159 = vmatpush.bf16.msra.mxu3 %v12119_v29  ;;  %v1333_v29 = vld [vmem:[%s15489_s0 + $0x82] sm:$0xff] }
  0x54   : > { %641 = vmatmul.bf16.gmra.mxu3 %v433_v55  ;;  %521 = vmatmul.bf16.gmra.mxu0 %v12435_v58  ;;  %v429_v55 = vpack.c.bf16 %v324_v50, %v323_v49  ;;  %5130 = vst [vmem:[#allocation2 + $0xc0] sm:$0xff] %v12282_v46  ;;  %v1452_v49 = vpack.c.bf16 %v1327_v45, %v1326_v44  ;;  %v1335_v44 = vld [vmem:[%s15489_s0 + $0x9a] sm:$0xff] }
  0x55   : > { %5131 = vst [vmem:[#allocation2 + $0xc8] sm:$0xff] %v12282_v46 }
  0x56   : > { %5132 = vst [vmem:[#allocation2 + $0xd0] sm:$0x3] %v12282_v46  ;;  %2599 = vmatpush.bf16.msrb.mxu0 %v12088_v17  ;;  %3638 = vmatpush.bf16.msra.mxu2 %v12110_v59 }
  0x57   : > { %5133 = vst [vmem:[#allocation2 + $0xd8] sm:$0xff] %v12282_v46 }
  0x58   : > { %5134 = vst [vmem:[#allocation2 + $0xe0] sm:$0xff] %v12282_v46 }
  0x59   : > { %5135 = vst [vmem:[#allocation2 + $0xe8] sm:$0x3] %v12282_v46 }
  0x5a   : > { %5136 = vst [vmem:[#allocation2 + $0xf0] sm:$0xff] %v12282_v46 }
  0x5b   : > { %5137 = vst [vmem:[#allocation2 + $0xf8] sm:$0xff] %v12282_v46 }
  0x5c   : > { %5138 = vst [vmem:[#allocation2 + $0x100] sm:$0x3] %v12282_v46 }
  0x5d   : > { %5139 = vst [vmem:[#allocation2 + $0x108] sm:$0xff] %v12282_v46 }
  0x5e   : > { %5140 = vst [vmem:[#allocation2 + $0x110] sm:$0xff] %v12282_v46 }
  0x5f   : > { %5141 = vst [vmem:[#allocation2 + $0x118] sm:$0x3] %v12282_v46 }
  0x60   : > { %5142 = vst [vmem:[#allocation2 + $0x120] sm:$0xff] %v12282_v46 }
  0x61   : > { %566 = vmatmul.bf16.gmra.mxu1 %v418_v5  ;;  %606 = vmatmul.bf16.gmra.mxu2 %v426_v6  ;;  %v430_v5 = vpack.c.bf16 %v326_v1, %v325_v0  ;;  %v438_v6 = vpack.c.bf16 %v342_v3, %v341_v2  ;;  %5143 = vst [vmem:[#allocation2 + $0x128] sm:$0xff] %v12282_v46  ;;  %v808_v3 = vld [vmem:[%s15489_s0 + $0x61] sm:$0xff] }
  0x62   : > { %5144 = vst [vmem:[#allocation2 + $0x130] sm:$0x3] %v12282_v46 }
  0x63   : > { %5145 = vst [vmem:[#allocation2 + $0x138] sm:$0xff] %v12282_v46 }
  0x64   : > { %646 = vmatmul.bf16.gmra.mxu3 %v434_v7  ;;  %526 = vmatmul.bf16.gmra.mxu0 %v12466_v10  ;;  %v800_v7 = vld [vmem:[%s15489_s0 + $0x1] sm:$0xff]  ;;  %5146 = vst [vmem:[#allocation2 + $0x140] sm:$0xff] %v12282_v46 }
  0x65   : > { %5147 = vst [vmem:[#allocation2 + $0x148] sm:$0x3] %v12282_v46  ;;  %v928_v12 = vpack.c.bf16 %v801_v8, %v800_v7  ;;  %v12118_v8 = vld [vmem:[%s12334_s27 + $0x1f0] sm:$0xff] }
  0x66   : > { %5148 = vst [vmem:[#allocation2 + $0x150] sm:$0xff] %v12282_v46  ;;  %4160 = vmatpush.bf16.msra.mxu3 %v12118_v8 }
  0x67   : > { %5149 = vst [vmem:[#allocation2 + $0x158] sm:$0xff] %v12282_v46 }
  0x68   : > { %5150 = vst [vmem:[#allocation2 + $0x160] sm:$0x3] %v12282_v46 }
  0x69   : > { %5151 = vst [vmem:[#allocation2 + $0x168] sm:$0xff] %v12282_v46 }
  0x6a   : > { %5152 = vst [vmem:[#allocation2 + $0x170] sm:$0xff] %v12282_v46 }
  0x6b   : > { %5153 = vst [vmem:[#allocation2 + $0x178] sm:$0x3] %v12282_v46 }
  0x6c   : > { %5154 = vst [vmem:[#allocation2 + $0x180] sm:$0xff] %v12282_v46 }
  0x6d   : > { %5155 = vst [vmem:[#allocation2 + $0x188] sm:$0xff] %v12282_v46 }
  0x6e   : > { %5156 = vst [vmem:[#allocation2 + $0x190] sm:$0x3] %v12282_v46 }
  0x6f   : > { %5157 = vst [vmem:[#allocation2 + $0x198] sm:$0xff] %v12282_v46 }
  0x70   : > { %5158 = vst [vmem:[#allocation2 + $0x1a0] sm:$0xff] %v12282_v46 }
  0x71   : > { %571 = vmatmul.bf16.gmra.mxu1 %v419_v21  ;;  %611 = vmatmul.bf16.gmra.mxu2 %v427_v22  ;;  %5159 = vst [vmem:[#allocation2 + $0x1a8] sm:$0x3] %v12282_v46 }
  0x72   : > { %5160 = vst [vmem:[#allocation2 + $0x1b0] sm:$0xff] %v12282_v46 }
  0x73   : > { %5161 = vst [vmem:[#allocation2 + $0x1b8] sm:$0xff] %v12282_v46 }
  0x74   : > { %651 = vmatmul.bf16.gmra.mxu3 %v435_v23  ;;  %531 = vmatmul.bf16.gmra.mxu0 %v12497_v26  ;;  %5162 = vst [vmem:[#allocation2 + $0x1c0] sm:$0x3] %v12282_v46  ;;  %v12103_v23 = vld [vmem:[%s12334_s27 + $0x178] sm:$0xff] }
  0x75   : > { %5163 = vst [vmem:[#allocation2 + $0x1c8] sm:$0xff] %v12282_v46  ;;  %3114 = vmatpush.bf16.msra.mxu1 %v12103_v23  ;;  %v12126_v23 = vld [vmem:[%s12334_s27 + $0x230] sm:$0xff] }
  0x76   : > { %5164 = vst [vmem:[#allocation2 + $0x1d0] sm:$0xff] %v12282_v46 }
  0x77   : > { %5165 = vst [vmem:[#allocation2 + $0x1d8] sm:$0x3] %v12282_v46 }
  0x78   : > { %5166 = vst [vmem:[#allocation2 + $0x1e0] sm:$0xff] %v12282_v46 }
  0x79   : > { %5167 = vst [vmem:[#allocation2 + $0x1e8] sm:$0xff] %v12282_v46 }
  0x7a   : > { %5168 = vst [vmem:[#allocation2 + $0x1f0] sm:$0x3] %v12282_v46 }
  0x7b   : > { %5169 = vst [vmem:[#allocation2 + $0x1f8] sm:$0xff] %v12282_v46 }
  0x7c   : > { %5170 = vst [vmem:[#allocation2 + $0x200] sm:$0xff] %v12282_v46 }
  0x7d   : > { %5171 = vst [vmem:[#allocation2 + $0x208] sm:$0x3] %v12282_v46 }
  0x7e   : > { %5172 = vst [vmem:[#allocation2 + $0x210] sm:$0xff] %v12282_v46 }
  0x7f   : > { %5173 = vst [vmem:[#allocation2 + $0x218] sm:$0xff] %v12282_v46 }
  0x80   : > { %5174 = vst [vmem:[#allocation2 + $0x220] sm:$0x3] %v12282_v46 }
  0x81   : > { %576 = vmatmul.bf16.gmra.mxu1 %v420_v37  ;;  %616 = vmatmul.bf16.gmra.mxu2 %v428_v38  ;;  %5175 = vst [vmem:[#allocation2 + $0x228] sm:$0xff] %v12282_v46  ;;  %v12127_v38 = vld [vmem:[%s12334_s27 + $0x238] sm:$0xff] }
  0x82   : > { %5176 = vst [vmem:[#allocation2 + $0x230] sm:$0xff] %v12282_v46  ;;  %4681 = vmatpush.bf16.msra.mxu0 %v12127_v38 }
  0x83   : > { %5177 = vst [vmem:[#allocation2 + $0x238] sm:$0x3] %v12282_v46 }
  0x84   : > { %656 = vmatmul.bf16.gmra.mxu3 %v436_v39  ;;  %536 = vmatmul.bf16.gmra.mxu0 %v12528_v43  ;;  %5178 = vst [vmem:[#allocation2 + $0x240] sm:$0xff] %v12282_v46  ;;  %v930_v39 = vpack.c.bf16 %v805_v35, %v804_v34  ;;  %v813_v34 = vld [vmem:[%s15489_s0 + $0x99] sm:$0xff] }
  0x85   : > { %5179 = vst [vmem:[#allocation2 + $0x248] sm:$0xff] %v12282_v46 }
  0x86   : > { %5180 = vst [vmem:[#allocation2 + $0x250] sm:$0x3] %v12282_v46  ;;  %4682 = vmatpush.bf16.msra.mxu0 %v12126_v23  ;;  %v1339_v23 = vld [vmem:[%s15489_s0 + $0xca] sm:$0xff] }
  0x87   : > { %5181 = vst [vmem:[#allocation2 + $0x258] sm:$0xff] %v12282_v46 }
  0x88   : > { %5182 = vst [vmem:[#allocation2 + $0x260] sm:$0xff] %v12282_v46 }
  0x89   : > { %5183 = vst [vmem:[#allocation2 + $0x268] sm:$0x3] %v12282_v46 }
  0x8a   : > { %5184 = vst [vmem:[#allocation2 + $0x270] sm:$0xff] %v12282_v46 }
  0x8b   : > { %5185 = vst [vmem:[#allocation2 + $0x278] sm:$0xff] %v12282_v46 }
  0x8c   : > { %5186 = vst [vmem:[#allocation2 + $0x280] sm:$0x3] %v12282_v46 }
  0x8d   : > { %5187 = vst [vmem:[#allocation2 + $0x288] sm:$0xff] %v12282_v46 }
  0x8e   : > { %5188 = vst [vmem:[#allocation2 + $0x290] sm:$0xff] %v12282_v46 }
  0x8f   : > { %5189 = vst [vmem:[#allocation2 + $0x298] sm:$0x3] %v12282_v46 }
  0x90   : > { %5190 = vst [vmem:[#allocation2 + $0x2a0] sm:$0xff] %v12282_v46 }
  0x91   : > { %581 = vmatmul.bf16.gmra.mxu1 %v421_v54  ;;  %621 = vmatmul.bf16.gmra.mxu2 %v429_v55  ;;  %5191 = vst [vmem:[#allocation2 + $0x2a8] sm:$0xff] %v12282_v46 }
  0x92   : > { %5192 = vst [vmem:[#allocation2 + $0x2b0] sm:$0x3] %v12282_v46 }
  0x93   : > { %5193 = vst [vmem:[#allocation2 + $0x2b8] sm:$0xff] %v12282_v46 }
  0x94   : > { %661 = vmatmul.bf16.gmra.mxu3 %v437_v56  ;;  %541 = vmatmul.bf16.gmra.mxu0 %v12573_v61  ;;  %5194 = vst [vmem:[#allocation2 + $0x2c0] sm:$0xff] %v12282_v46  ;;  %v12102_v56 = vld [vmem:[%s12334_s27 + $0x170] sm:$0xff] }
  0x95   : > { %5195 = vst [vmem:[#allocation2 + $0x2c8] sm:$0x3] %v12282_v46  ;;  %3115 = vmatpush.bf16.msra.mxu1 %v12102_v56 }
  0x96   : > { %5196 = vst [vmem:[#allocation2 + $0x2d0] sm:$0xff] %v12282_v46 }
  0x97   : > { %5197 = vst [vmem:[#allocation2 + $0x2d8] sm:$0xff] %v12282_v46 }
  0x98   : > { %5198 = vst [vmem:[#allocation2 + $0x2e0] sm:$0x3] %v12282_v46 }
  0x99   : > { %5199 = vst [vmem:[#allocation2 + $0x2e8] sm:$0xff] %v12282_v46 }
  0x9a   : > { %5200 = vst [vmem:[#allocation2 + $0x2f0] sm:$0xff] %v12282_v46 }
  0x9b   : > { %5201 = vst [vmem:[#allocation2 + $0x2f8] sm:$0x3] %v12282_v46 }
  0x9c   : > { %5202 = vst [vmem:[#allocation2 + $0x300] sm:$0xff] %v12282_v46 }
  0x9d   : > { %5203 = vst [vmem:[#allocation2 + $0x308] sm:$0xff] %v12282_v46 }
  0x9e   : > { %5204 = vst [vmem:[#allocation2 + $0x310] sm:$0x3] %v12282_v46 }
  0x9f   : > { %5205 = vst [vmem:[#allocation2 + $0x318] sm:$0xff] %v12282_v46 }
  0xa0   : > { %5206 = vst [vmem:[#allocation2 + $0x320] sm:$0xff] %v12282_v46 }
  0xa1   : > { %586 = vmatmul.bf16.gmra.mxu1 %v422_v4  ;;  %626 = vmatmul.bf16.gmra.mxu2 %v430_v5  ;;  %5207 = vst [vmem:[#allocation2 + $0x328] sm:$0x3] %v12282_v46  ;;  %v809_v4 = vld [vmem:[%s15489_s0 + $0x69] sm:$0xff] }
  0xa2   : > { %5208 = vst [vmem:[#allocation2 + $0x330] sm:$0xff] %v12282_v46  ;;  %v932_v5 = vpack.c.bf16 %v809_v4, %v808_v3  ;;  %v1337_v3 = vld [vmem:[%s15489_s0 + $0xb2] sm:$0xff] }
  0xa3   : > { %5209 = vst [vmem:[#allocation2 + $0x338] sm:$0xff] %v12282_v46  ;;  %v10981_v4 = vld [vmem:[%s15489_s0 + $0xd8] sm:$0xff] }
  0xa4   : > { %666 = vmatmul.bf16.gmra.mxu3 %v438_v6  ;;  %5210 = vst [vmem:[#allocation2 + $0x340] sm:$0x3] %v12282_v46 }
  0xa5   : > { %5211 = vst [vmem:[#allocation2 + $0x348] sm:$0xff] %v12282_v46 }
  0xa6   : > { %5212 = vst [vmem:[#allocation2 + $0x350] sm:$0xff] %v12282_v46 }
  0xa7   : > { %5213 = vst [vmem:[#allocation2 + $0x358] sm:$0x3] %v12282_v46  ;;  %v1453_v46 = vpack.c.bf16 %v1329_v63, %v1328_v62  ;;  %v12109_v63 = vld [vmem:[%s12334_s27 + $0x1a8] sm:$0xff] }
  0xa8   : > { %3639 = vmatpush.bf16.msra.mxu2 %v12109_v63 }
  0xae   : > { %v552_v14 = vpop.f32.mrf.mxu1 }
  0xaf   : > { %752 = vst [vmem:[#allocation3 + $0xe0] sm:$0xff] %v552_v14 }
  0xb1   : > { %1033 = vmatmul.bf16.vlgmr.msrb.gmra.mxu1 %v928_v12  ;;  %1555 = vmatmul.bf16.vlgmr.msrb.gmra.mxu2 %v1450_v13  ;;  %v12682_v20 = vpop.f32.mrf.mxu0  ;;  %v1330_v12 = vld [vmem:[%s15489_s0 + $0x62] sm:$0xff]  ;;  %v1331_v13 = vld [vmem:[%s15489_s0 + $0x6a] sm:$0xff] }
  0xb4   : > { %2078 = vmatmul.bf16.vlgmr.msrb.gmra.mxu3 %v12404_v42  ;;  %v294_v42 = vld [vmem:[%s15489_s0 + $0xb0] sm:$0xff]  ;;  %v12673_v18 = vpop.f32.mrf.mxu2 }
  0xb5   : > { %v12654_v16 = vpack.c.bf16 %v294_v42, %v293_v15  ;;  %768 = vst [vmem:[#allocation3 + $0x148] sm:$0xff] %v12673_v18  ;;  %v1454_v42 = vpack.c.bf16 %v1331_v13, %v1330_v12  ;;  %v810_v18 = vld [vmem:[%s15489_s0 + $0x79] sm:$0xff]  ;;  %v816_v12 = vld [vmem:[%s15489_s0 + $0xc1] sm:$0xff]  ;;  %v817_v13 = vld [vmem:[%s15489_s0 + $0xc9] sm:$0xff] }
  0xb6   : > { %v12693_v24 = vpop.f32.mrf.mxu1 }
  0xb7   : > { %546 = vmatmul.bf16.gmra.mxu0 %v12654_v16  ;;  %v12688_v22 = vpop.f32.mrf.mxu3  ;;  %753 = vst [vmem:[#allocation3 + $0x188] sm:$0xff] %v12693_v24 }
  0xb8   : > { %784 = vst [vmem:[#allocation3 + $0xb8] sm:$0xff] %v12688_v22 }
  0xb9   : > { %v12698_v27 = vpop.f32.mrf.mxu0 }
  0xbc   : > { %v12701_v28 = vpop.f32.mrf.mxu2 }
  0xbd   : > { %769 = vst [vmem:[#allocation3 + $0x1d0] sm:$0xff] %v12701_v28  ;;  %v1332_v28 = vld [vmem:[%s15489_s0 + $0x7a] sm:$0xff] }
  0xbf   : > { %v12714_v33 = vpop.f32.mrf.mxu3 }
  0xc0   : > { %785 = vst [vmem:[#allocation3 + $0x88] sm:$0xff] %v12714_v33 }
  0xc1   : > { %1560 = vmatmul.bf16.gmra.mxu2 %v1451_v32  ;;  %v12728_v36 = vpop.f32.mrf.mxu0  ;;  %v1455_v32 = vpack.c.bf16 %v1333_v29, %v1332_v28 }
  0xc4   : > { %2083 = vmatmul.bf16.gmra.mxu3 %v12435_v58  ;;  %v802_v58 = vld [vmem:[%s15489_s0 + $0x19] sm:$0xff]  ;;  %v12731_v37 = vpop.f32.mrf.mxu2 }
  0xc5   : > { %v929_v21 = vpack.c.bf16 %v803_v19, %v802_v58  ;;  %770 = vst [vmem:[#allocation3 + $0x100] sm:$0xff] %v12731_v37  ;;  %v811_v58 = vld [vmem:[%s15489_s0 + $0x81] sm:$0xff] }
  0xc7   : > { %1038 = vmatmul.bf16.gmra.mxu1 %v929_v21  ;;  %2600 = vmatmul.bf16.vlgmr.msrb.gmra.mxu0 %v929_v21  ;;  %v637_v40 = vpop.f32.mrf.mxu3  ;;  %v933_v21 = vpack.c.bf16 %v811_v58, %v810_v18 }
  0xc8   : > { %786 = vst [vmem:[#allocation3 + $0xa8] sm:$0xff] %v637_v40 }
  0xc9   : > { %v12747_v47 = vpop.f32.mrf.mxu0 }
  0xcc   : > { %v599_v48 = vpop.f32.mrf.mxu2 }
  0xcd   : > { %771 = vst [vmem:[#allocation3 + $0xc8] sm:$0xff] %v599_v48 }
  0xcf   : > { %v639_v50 = vpop.f32.mrf.mxu3 }
  0xd0   : > { %787 = vst [vmem:[#allocation3 + $0x1c8] sm:$0xff] %v639_v50  ;;  %v10980_v50 = vld [vmem:[%s15489_s0 + $0xc8] sm:$0xff] }
  0xd1   : > { %1565 = vmatmul.bf16.gmra.mxu2 %v1452_v49  ;;  %v12764_v54 = vpop.f32.mrf.mxu0  ;;  %v10979_v49 = vld [vmem:[%s15489_s0 + $0xc0] sm:$0xff] }
  0xd2   : > { %v1980_v52 = vpack.c.bf16 %v10980_v50, %v10979_v49 }
  0xd4   : > { %2088 = vmatmul.bf16.gmra.mxu3 %v12466_v10  ;;  %v12718_v10 = vpop.f32.mrf.mxu1  ;;  %v602_v55 = vpop.f32.mrf.mxu2 }
  0xd5   : > { %754 = vst [vmem:[#allocation3 + $0x138] sm:$0xff] %v12718_v10  ;;  %v812_v10 = vld [vmem:[%s15489_s0 + $0x91] sm:$0xff] }
  0xd6   : > { %772 = vst [vmem:[#allocation3 + $0x40] sm:$0xff] %v602_v55  ;;  %v934_v37 = vpack.c.bf16 %v813_v34, %v812_v10  ;;  %v815_v55 = vld [vmem:[%s15489_s0 + $0xb1] sm:$0xff]  ;;  %v818_v10 = vld [vmem:[%s15489_s0 + $0xd9] sm:$0xff]  ;;  %v819_v34 = vld [vmem:[%s15489_s0 + $0xe1] sm:$0xff] }
  0xd7   : > { %1043 = vmatmul.bf16.gmra.mxu1 %v930_v39  ;;  %2605 = vmatmul.bf16.gmra.mxu0 %v930_v39  ;;  %v642_v57 = vpop.f32.mrf.mxu3 }
  0xd8   : > { %788 = vst [vmem:[#allocation3 + $0x170] sm:$0xff] %v642_v57 }
  0xd9   : > { %v12782_v0 = vpop.f32.mrf.mxu0 }
  0xdc   : > { %v559_v41 = vpop.f32.mrf.mxu1  ;;  %v604_v1 = vpop.f32.mrf.mxu2 }
  0xdd   : > { %755 = vst [vmem:[#allocation3 + $0x140] sm:$0xff] %v559_v41  ;;  %v1334_v41 = vld [vmem:[%s15489_s0 + $0x92] sm:$0xff] }
  0xde   : > { %773 = vst [vmem:[#allocation3 + $0x1f8] sm:$0xff] %v604_v1  ;;  %v1456_v51 = vpack.c.bf16 %v1335_v44, %v1334_v41 }
  0xdf   : > { %v644_v2 = vpop.f32.mrf.mxu3 }
  0xe0   : > { %789 = vst [vmem:[#allocation3 + $0x178] sm:$0xff] %v644_v2  ;;  %v1336_v2 = vld [vmem:[%s15489_s0 + $0xaa] sm:$0xff] }
  0xe1   : > { %1570 = vmatmul.bf16.gmra.mxu2 %v1453_v46  ;;  %v12796_v6 = vpop.f32.mrf.mxu0 }
  0xe4   : > { %2093 = vmatmul.bf16.gmra.mxu3 %v12497_v26  ;;  %v562_v26 = vpop.f32.mrf.mxu1  ;;  %v607_v7 = vpop.f32.mrf.mxu2 }
  0xe5   : > { %756 = vst [vmem:[#allocation3 + $0x80] sm:$0xff] %v562_v26 }
  0xe6   : > { %774 = vst [vmem:[#allocation3 + $0x20] sm:$0xff] %v607_v7 }
  0xe7   : > { %1048 = vmatmul.bf16.gmra.mxu1 %v931_v53  ;;  %2610 = vmatmul.bf16.gmra.mxu0 %v931_v53  ;;  %v647_v9 = vpop.f32.mrf.mxu3  ;;  %v814_v53 = vld [vmem:[%s15489_s0 + $0xa9] sm:$0xff] }
  0xe8   : > { %790 = vst [vmem:[#allocation3 + $0x68] sm:$0xff] %v647_v9  ;;  %v935_v57 = vpack.c.bf16 %v815_v55, %v814_v53  ;;  %v1457_v9 = vpack.c.bf16 %v1337_v3, %v1336_v2  ;;  %v10986_v53 = vld [vmem:[%s15489_s0 + $0x110] sm:$0xff]  ;;  %v821_v3 = vld [vmem:[%s15489_s0 + $0xf9] sm:$0xff] }
  0xe9   : > { %v12805_v14 = vpop.f32.mrf.mxu0  ;;  %v820_v2 = vld [vmem:[%s15489_s0 + $0xf1] sm:$0xff] }
  0xec   : > { %v564_v60 = vpop.f32.mrf.mxu1  ;;  %v609_v15 = vpop.f32.mrf.mxu2 }
  0xed   : > { %757 = vst [vmem:[#allocation3 + $0x1a8] sm:$0xff] %v564_v60  ;;  %v12101_v60 = vld [vmem:[%s12334_s27 + $0x168] sm:$0xff] }
  0xee   : > { %775 = vst [vmem:[#allocation3 + $0x128] sm:$0xff] %v609_v15  ;;  %3116 = vmatpush.bf16.msra.mxu1 %v12101_v60 }
  0xef   : > { %v649_v17 = vpop.f32.mrf.mxu3 }
  0xf0   : > { %791 = vst [vmem:[#allocation3 + $0x190] sm:$0xff] %v649_v17  ;;  %v936_v17 = vpack.c.bf16 %v817_v13, %v816_v12 }
  0xf1   : > { %1575 = vmatmul.bf16.gmra.mxu2 %v1454_v42  ;;  %v12814_v22 = vpop.f32.mrf.mxu0  ;;  %v12117_v42 = vld [vmem:[%s12334_s27 + $0x1e8] sm:$0xff] }
  0xf2   : > { %4161 = vmatpush.bf16.msra.mxu3 %v12117_v42  ;;  %v1342_v42 = vld [vmem:[%s15489_s0 + $0xf2] sm:$0xff] }
  0xf4   : > { %2098 = vmatmul.bf16.gmra.mxu3 %v12528_v43  ;;  %v567_v43 = vpop.f32.mrf.mxu1 }
  0xf5   : > { %758 = vst [vmem:[#allocation3 + $0x1b8] sm:$0xff] %v567_v43  ;;  %v10982_v43 = vld [vmem:[%s15489_s0 + $0xe0] sm:$0xff] }
  0xf6   : > { %v1981_v7 = vpack.c.bf16 %v10982_v43, %v10981_v4 }
  0xf7   : > { %1053 = vmatmul.bf16.gmra.mxu1 %v932_v5  ;;  %2615 = vmatmul.bf16.gmra.mxu0 %v932_v5  ;;  %v652_v24 = vpop.f32.mrf.mxu3 }
  0xf8   : > { %792 = vst [vmem:[#allocation3 + $0x198] sm:$0xff] %v652_v24  ;;  %v10983_v24 = vld [vmem:[%s15489_s0 + $0xf0] sm:$0xff] }
  0xf9   : > { %v12823_v30 = vpop.f32.mrf.mxu0 }
  0xfc   : > { %v569_v11 = vpop.f32.mrf.mxu1 }
  0xfd   : > { %759 = vst [vmem:[#allocation3 + $0x28] sm:$0xff] %v569_v11 }
  0xff   : > { %v654_v33 = vpop.f32.mrf.mxu3 }
 0x100   : > { %793 = vst [vmem:[#allocation3 + $0x38] sm:$0xff] %v654_v33 }
 0x101   : > { %1580 = vmatmul.bf16.gmra.mxu2 %v1455_v32  ;;  %v12832_v38 = vpop.f32.mrf.mxu0 }
 0x104   : > { %2103 = vmatmul.bf16.gmra.mxu3 %v12573_v61  ;;  %v572_v19 = vpop.f32.mrf.mxu1  ;;  %v612_v61 = vpop.f32.mrf.mxu2 }
 0x105   : > { %760 = vst [vmem:[#allocation3 + $0x1e8] sm:$0xff] %v572_v19 }
 0x106   : > { %776 = vst [vmem:[#allocation3 + $0x1a0] sm:$0xff] %v612_v61  ;;  %v1338_v61 = vld [vmem:[%s15489_s0 + $0xc2] sm:$0xff] }
 0x107   : > { %1058 = vmatmul.bf16.gmra.mxu1 %v933_v21  ;;  %2620 = vmatmul.bf16.gmra.mxu0 %v933_v21  ;;  %v1458_v32 = vpack.c.bf16 %v1339_v23, %v1338_v61 }
 0x109   : > { %v12840_v45 = vpop.f32.mrf.mxu0 }
 0x10c   : > { %v574_v25 = vpop.f32.mrf.mxu1  ;;  %v614_v31 = vpop.f32.mrf.mxu2 }
 0x10d   : > { %761 = vst [vmem:[#allocation3 + $0xf8] sm:$0xff] %v574_v25  ;;  %v10984_v25 = vld [vmem:[%s15489_s0 + $0xf8] sm:$0xff] }
 0x10e   : > { %777 = vst [vmem:[#allocation3 + $0x1f0] sm:$0xff] %v614_v31  ;;  %v1982_v29 = vpack.c.bf16 %v10984_v25, %v10983_v24 }
 0x111   : > { %1585 = vmatmul.bf16.gmra.mxu2 %v1456_v51  ;;  %v12854_v59 = vpop.f32.mrf.mxu0  ;;  %v1340_v51 = vld [vmem:[%s15489_s0 + $0xda] sm:$0xff] }
 0x114   : > { %2108 = vmatmul.bf16.gmra.mxu3 %v12654_v16  ;;  %v577_v35 = vpop.f32.mrf.mxu1  ;;  %v617_v39 = vpop.f32.mrf.mxu2 }
 0x115   : > { %762 = vst [vmem:[#allocation3 + $0x160] sm:$0xff] %v577_v35  ;;  %v657_v16 = vpop.f32.mrf.mxu3 }
 0x116   : > { %778 = vst [vmem:[#allocation3 + $0xe8] sm:$0xff] %v617_v39 }
 0x117   : > { %1063 = vmatmul.bf16.gmra.mxu1 %v934_v37  ;;  %2625 = vmatmul.bf16.gmra.mxu0 %v934_v37  ;;  %794 = vst [vmem:[#allocation3 + $0xc0] sm:$0xff] %v657_v16  ;;  %v12125_v37 = vld [vmem:[%s12334_s27 + $0x228] sm:$0xff]  ;;  %v937_v16 = vpack.c.bf16 %v819_v34, %v818_v10  ;;  %v823_v10 = vld [vmem:[%s15489_s0 + $0x111] sm:$0xff] }
 0x118   : > { %4683 = vmatpush.bf16.msra.mxu0 %v12125_v37 }
 0x119   : > { %v12870_v5 = vpop.f32.mrf.mxu0 }
 0x11c   : > { %v579_v40 = vpop.f32.mrf.mxu1  ;;  %v619_v48 = vpop.f32.mrf.mxu2 }
 0x11d   : > { %763 = vst [vmem:[#allocation3 + $0x30] sm:$0xff] %v579_v40  ;;  %v659_v26 = vpop.f32.mrf.mxu3 }
 0x11e   : > { %779 = vst [vmem:[#allocation3 + $0x78] sm:$0xff] %v619_v48 }
 0x11f   : > { %795 = vst [vmem:[#allocation3 + $0x1c0] sm:$0xff] %v659_v26 }
 0x121   : > { %1590 = vmatmul.bf16.gmra.mxu2 %v1457_v9 }
 0x124   : > { %2113 = vmatmul.bf16.gmra.mxu3 %v1980_v52  ;;  %v582_v56 = vpop.f32.mrf.mxu1  ;;  %v622_v62 = vpop.f32.mrf.mxu2  ;;  %v1341_v52 = vld [vmem:[%s15489_s0 + $0xe2] sm:$0xff] }
 0x125   : > { %764 = vst [vmem:[#allocation3 + $0x1e0] sm:$0xff] %v582_v56  ;;  %v662_v1 = vpop.f32.mrf.mxu3  ;;  %v1459_v63 = vpack.c.bf16 %v1341_v52, %v1340_v51 }
 0x126   : > { %780 = vst [vmem:[#allocation3 + $0x70] sm:$0xff] %v622_v62 }
 0x127   : > { %1068 = vmatmul.bf16.gmra.mxu1 %v935_v57  ;;  %2630 = vmatmul.bf16.gmra.mxu0 %v935_v57  ;;  %796 = vst [vmem:[#allocation3 + $0x158] sm:$0xff] %v662_v1 }
 0x12c   : > { %v584_v46 = vpop.f32.mrf.mxu1  ;;  %v624_v8 = vpop.f32.mrf.mxu2 }
 0x12d   : > { %765 = vst [vmem:[#allocation3] sm:$0xff] %v584_v46  ;;  %v664_v11 = vpop.f32.mrf.mxu3 }
 0x12e   : > { %781 = vst [vmem:[#allocation3 + $0x90] sm:$0xff] %v624_v8 }
 0x12f   : > { %797 = vst [vmem:[#allocation3 + $0x10] sm:$0xff] %v664_v11 }
 0x131   : > { %1595 = vmatmul.bf16.gmra.mxu2 %v1458_v32 }
 0x134   : > { %2118 = vmatmul.bf16.gmra.mxu3 %v1981_v7  ;;  %v587_v15 = vpop.f32.mrf.mxu1  ;;  %v12879_v18 = vpop.f32.mrf.mxu0  ;;  %v938_v7 = vpack.c.bf16 %v821_v3, %v820_v2  ;;  %v824_v2 = vld [vmem:[%s15489_s0 + $0x121] sm:$0xff]  ;;  %v825_v3 = vld [vmem:[%s15489_s0 + $0x129] sm:$0xff] }
 0x135   : > { %766 = vst [vmem:[#allocation3 + $0xf0] sm:$0xff] %v587_v15  ;;  %v627_v58 = vpop.f32.mrf.mxu2  ;;  %v667_v19 = vpop.f32.mrf.mxu3 }
 0x136   : > { %782 = vst [vmem:[#allocation3 + $0x1d8] sm:$0xff] %v627_v58 }
 0x137   : > { %1073 = vmatmul.bf16.gmra.mxu1 %v936_v17  ;;  %2635 = vmatmul.bf16.gmra.mxu0 %v936_v17  ;;  %798 = vst [vmem:[#allocation3 + $0x58] sm:$0xff] %v667_v19  ;;  %v1343_v17 = vld [vmem:[%s15489_s0 + $0xfa] sm:$0xff]  ;;  %v10988_v19 = vld [vmem:[%s15489_s0 + $0x128] sm:$0xff] }
 0x13c   : > { %v589_v21 = vpop.f32.mrf.mxu1  ;;  %v12893_v28 = vpop.f32.mrf.mxu0 }
 0x13d   : > { %767 = vst [vmem:[#allocation3 + $0x8] sm:$0xff] %v589_v21  ;;  %v629_v31 = vpop.f32.mrf.mxu2  ;;  %v669_v33 = vpop.f32.mrf.mxu3 }
 0x13e   : > { %783 = vst [vmem:[#allocation3 + $0xd0] sm:$0xff] %v629_v31 }
 0x13f   : > { %799 = vst [vmem:[#allocation3 + $0xa0] sm:$0xff] %v669_v33  ;;  %v822_v33 = vld [vmem:[%s15489_s0 + $0x109] sm:$0xff] }
 0x140   : > { %v939_v37 = vpack.c.bf16 %v823_v10, %v822_v33  ;;  %v826_v10 = vld [vmem:[%s15489_s0 + $0x139] sm:$0xff] }
 0x141   : > { %1600 = vmatmul.bf16.gmra.mxu2 %v1459_v63 }
 0x144   : > { %2123 = vmatmul.bf16.gmra.mxu3 %v1982_v29  ;;  %v1034_v35 = vpop.f32.mrf.mxu1  ;;  %v2601_v40 = vpop.f32.mrf.mxu0  ;;  %v1460_v29 = vpack.c.bf16 %v1343_v17, %v1342_v42 }
 0x145   : > { %v1194_v39 = vadd.f32 %v1034_v35, %v12682_v20  ;;  %v1556_v41 = vpop.f32.mrf.mxu2  ;;  %v2079_v48 = vpop.f32.mrf.mxu3  ;;  %v10985_v20 = vld [vmem:[%s15489_s0 + $0x108] sm:$0xff] }
 0x146   : > { %v1983_v57 = vpack.c.bf16 %v10986_v53, %v10985_v20  ;;  %v10989_v53 = vld [vmem:[%s15489_s0 + $0x138] sm:$0xff] }
 0x147   : > { %v1716_v44 = vadd.f32 %v1556_v41, %v1194_v39  ;;  %1078 = vmatmul.bf16.gmra.mxu1 %v937_v16  ;;  %2640 = vmatmul.bf16.gmra.mxu0 %v937_v16  ;;  %v12100_v39 = vld [vmem:[%s12334_s27 + $0x160] sm:$0xff] }
 0x148   : > { %3117 = vmatpush.bf16.msra.mxu1 %v12100_v39  ;;  %v12124_v39 = vld [vmem:[%s12334_s27 + $0x220] sm:$0xff] }
 0x149   : > { %v2239_v49 = vadd.f32 %v2079_v48, %v1716_v44  ;;  %v12108_v44 = vld [vmem:[%s12334_s27 + $0x1a0] sm:$0xff]  ;;  %4684 = vmatpush.bf16.msra.mxu0 %v12124_v39 }
 0x14a   : > { %3640 = vmatpush.bf16.msra.mxu2 %v12108_v44 }
 0x14b   : > { %v2761_v26 = vadd.f32 %v2601_v40, %v2239_v49 }
 0x14c   : > { %v1036_v50 = vpop.f32.mrf.mxu1  ;;  %v2603_v56 = vpop.f32.mrf.mxu0 }
 0x14d   : > { %v1195_v55 = vadd.f32 %v1036_v50, %v12698_v27  ;;  %v1558_v60 = vpop.f32.mrf.mxu2  ;;  %2825 = vst [vmem:[#allocation3 + $0xb0] sm:$0xff] %v2761_v26  ;;  %v2081_v1 = vpop.f32.mrf.mxu3  ;;  %v12945_v50 = vld [vmem:[#allocation2] sm:$0xff]  ;;  %v1345_v26 = vld [vmem:[%s15489_s0 + $0x112] sm:$0xff] }
 0x14e   : > { %v677_v51 = vadd.f32 %v12945_v50, %v12782_v0  ;;  %v679_v17 = vadd.f32 %v12945_v50, %v12805_v14 }
 0x14f   : > { %v1717_v62 = vadd.f32 %v1558_v60, %v1195_v55  ;;  %v10990_v55 = vld [vmem:[%s15489_s0 + $0x140] sm:$0xff] }
 0x150   : > { %v1985_v0 = vpack.c.bf16 %v10990_v55, %v10989_v53  ;;  %v10993_v53 = vld [vmem:[%s15489_s0 + $0x168] sm:$0xff]  ;;  %v10994_v55 = vld [vmem:[%s15489_s0 + $0x170] sm:$0xff] }
 0x151   : > { %v2240_v46 = vadd.f32 %v2081_v1, %v1717_v62  ;;  %1605 = vmatmul.bf16.gmra.mxu2 %v1460_v29 }
 0x153   : > { %v2762_v27 = vadd.f32 %v2603_v56, %v2240_v46 }
 0x154   : > { %2128 = vmatmul.bf16.gmra.mxu3 %v1983_v57  ;;  %v1039_v4 = vpop.f32.mrf.mxu1  ;;  %v2606_v9 = vpop.f32.mrf.mxu0 }
 0x155   : > { %v1196_v43 = vadd.f32 %v1039_v4, %v12728_v36  ;;  %v1561_v8 = vpop.f32.mrf.mxu2  ;;  %2826 = vst [vmem:[#allocation3 + $0x1b0] sm:$0xff] %v2762_v27  ;;  %v2084_v12 = vpop.f32.mrf.mxu3  ;;  %v10987_v36 = vld [vmem:[%s15489_s0 + $0x120] sm:$0xff]  ;;  %v678_v4 = vadd.f32 %v12945_v50, %v12796_v6 }
 0x156   : > { %v1984_v61 = vpack.c.bf16 %v10988_v19, %v10987_v36  ;;  %v1346_v6 = vld [vmem:[%s15489_s0 + $0x122] sm:$0xff]  ;;  %v1347_v36 = vld [vmem:[%s15489_s0 + $0x12a] sm:$0xff] }
 0x157   : > { %v1718_v11 = vadd.f32 %v1561_v8, %v1196_v43  ;;  %1083 = vmatmul.bf16.gmra.mxu1 %v938_v7  ;;  %2645 = vmatmul.bf16.gmra.mxu0 %v938_v7  ;;  %v12116_v7 = vld [vmem:[%s12334_s27 + $0x1e0] sm:$0xff] }
 0x158   : > { %4162 = vmatpush.bf16.msra.mxu3 %v12116_v7 }
 0x159   : > { %v2241_v13 = vadd.f32 %v2084_v12, %v1718_v11 }
 0x15b   : > { %v2763_v58 = vadd.f32 %v2606_v9, %v2241_v13  ;;  %v940_v9 = vpack.c.bf16 %v825_v3, %v824_v2  ;;  %v829_v2 = vld [vmem:[%s15489_s0 + $0x159] sm:$0xff]  ;;  %v682_v3 = vadd.f32 %v12945_v50, %v12832_v38 }
 0x15c   : > { %v1041_v15 = vpop.f32.mrf.mxu1  ;;  %v2608_v24 = vpop.f32.mrf.mxu0  ;;  %v1350_v38 = vld [vmem:[%s15489_s0 + $0x152] sm:$0xff] }
 0x15d   : > { %v1197_v21 = vadd.f32 %v1041_v15, %v12747_v47  ;;  %v1563_v23 = vpop.f32.mrf.mxu2  ;;  %2827 = vst [vmem:[#allocation3 + $0xd8] sm:$0xff] %v2763_v58  ;;  %v2086_v31 = vpop.f32.mrf.mxu3 }
 0x15f   : > { %v1719_v25 = vadd.f32 %v1563_v23, %v1197_v21  ;;  %v10991_v21 = vld [vmem:[%s15489_s0 + $0x150] sm:$0xff] }
 0x161   : > { %v2242_v32 = vadd.f32 %v2086_v31, %v1719_v25  ;;  %v1462_v31 = vpack.c.bf16 %v1347_v36, %v1346_v6  ;;  %v10995_v6 = vld [vmem:[%s15489_s0 + $0x180] sm:$0xff]  ;;  %v10996_v36 = vld [vmem:[%s15489_s0 + $0x188] sm:$0xff] }
 0x163   : > { %v2764_v34 = vadd.f32 %v2608_v24, %v2242_v32 }
 0x164   : > { %2133 = vmatmul.bf16.gmra.mxu3 %v1984_v61  ;;  %v1044_v47 = vpop.f32.mrf.mxu1  ;;  %v2611_v40 = vpop.f32.mrf.mxu0  ;;  %v10992_v61 = vld [vmem:[%s15489_s0 + $0x158] sm:$0xff] }
 0x165   : > { %v1198_v35 = vadd.f32 %v1044_v47, %v12764_v54  ;;  %v1566_v16 = vpop.f32.mrf.mxu2  ;;  %2828 = vst [vmem:[#allocation3 + $0x18] sm:$0xff] %v2764_v34  ;;  %v2089_v48 = vpop.f32.mrf.mxu3  ;;  %v1344_v54 = vld [vmem:[%s15489_s0 + $0x10a] sm:$0xff]  ;;  %v1986_v14 = vpack.c.bf16 %v10992_v61, %v10991_v21  ;;  %v827_v47 = vld [vmem:[%s15489_s0 + $0x141] sm:$0xff]  ;;  %v680_v34 = vadd.f32 %v12945_v50, %v12814_v22 }
 0x166   : > { %v1461_v63 = vpack.c.bf16 %v1345_v26, %v1344_v54  ;;  %v1348_v22 = vld [vmem:[%s15489_s0 + $0x13a] sm:$0xff]  ;;  %v1349_v26 = vld [vmem:[%s15489_s0 + $0x142] sm:$0xff] }
 0x167   : > { %v1720_v41 = vadd.f32 %v1566_v16, %v1198_v35  ;;  %1088 = vmatmul.bf16.gmra.mxu1 %v939_v37  ;;  %2650 = vmatmul.bf16.gmra.mxu0 %v939_v37 }
 0x168   : > { %1610 = vmatmul.bf16.gmra.mxu2 %v1461_v63 }
 0x169   : > { %v2243_v49 = vadd.f32 %v2089_v48, %v1720_v41 }
 0x16b   : > { %v2765_v20 = vadd.f32 %v2611_v40, %v2243_v49  ;;  %v941_v40 = vpack.c.bf16 %v827_v47, %v826_v10 }
 0x16c   : > { %v1046_v52 = vpop.f32.mrf.mxu1  ;;  %v2613_v60 = vpop.f32.mrf.mxu0 }
 0x16d   : > { %v1199_v56 = vadd.f32 %v1046_v52, %v677_v51  ;;  %v1568_v57 = vpop.f32.mrf.mxu2  ;;  %2829 = vst [vmem:[#allocation3 + $0x50] sm:$0xff] %v2765_v20  ;;  %v2091_v1 = vpop.f32.mrf.mxu3  ;;  %v681_v52 = vadd.f32 %v12945_v50, %v12823_v30  ;;  %v1987_v30 = vpack.c.bf16 %v10994_v55, %v10993_v53 }
 0x16f   : > { %v1721_v62 = vadd.f32 %v1568_v57, %v1199_v56 }
 0x171   : > { %v2244_v46 = vadd.f32 %v2091_v1, %v1721_v62  ;;  %v1463_v62 = vpack.c.bf16 %v1349_v26, %v1348_v22  ;;  %v10998_v22 = vld [vmem:[%s15489_s0 + $0x1d0] sm:$0xff] }
 0x173   : > { %v2766_v43 = vadd.f32 %v2613_v60, %v2244_v46  ;;  %v828_v46 = vld [vmem:[%s15489_s0 + $0x151] sm:$0xff] }
 0x174   : > { %2138 = vmatmul.bf16.gmra.mxu3 %v1985_v0  ;;  %v1049_v27 = vpop.f32.mrf.mxu1  ;;  %v2616_v12 = vpop.f32.mrf.mxu0  ;;  %v942_v7 = vpack.c.bf16 %v829_v2, %v828_v46 }
 0x175   : > { %v1200_v8 = vadd.f32 %v1049_v27, %v678_v4  ;;  %v1571_v11 = vpop.f32.mrf.mxu2  ;;  %2830 = vst [vmem:[#allocation3 + $0x168] sm:$0xff] %v2766_v43  ;;  %v2094_v15 = vpop.f32.mrf.mxu3 }
 0x177   : > { %v1722_v13 = vadd.f32 %v1571_v11, %v1200_v8  ;;  %1093 = vmatmul.bf16.gmra.mxu1 %v940_v9  ;;  %2655 = vmatmul.bf16.gmra.mxu0 %v940_v9 }
 0x178   : > { %1615 = vmatmul.bf16.gmra.mxu2 %v1462_v31  ;;  %v831_v31 = vld [vmem:[%s15489_s0 + $0x171] sm:$0xff] }
 0x179   : > { %v2245_v42 = vadd.f32 %v2094_v15, %v1722_v13  ;;  %v683_v15 = vadd.f32 %v12945_v50, %v12840_v45  ;;  %v1988_v45 = vpack.c.bf16 %v10996_v36, %v10995_v6 }
 0x17b   : > { %v2767_v19 = vadd.f32 %v2616_v12, %v2245_v42 }
 0x17c   : > { %v1051_v58 = vpop.f32.mrf.mxu1  ;;  %v2618_v25 = vpop.f32.mrf.mxu0 }
 0x17d   : > { %v1201_v23 = vadd.f32 %v1051_v58, %v679_v17  ;;  %v1573_v24 = vpop.f32.mrf.mxu2  ;;  %2831 = vst [vmem:[#allocation3 + $0x130] sm:$0xff] %v2767_v19  ;;  %v2096_v32 = vpop.f32.mrf.mxu3  ;;  %v1351_v17 = vld [vmem:[%s15489_s0 + $0x15a] sm:$0xff] }
 0x17f   : > { %v1723_v29 = vadd.f32 %v1573_v24, %v1201_v23 }
 0x181   : > { %v2246_v33 = vadd.f32 %v2096_v32, %v1723_v29  ;;  %v830_v29 = vld [vmem:[%s15489_s0 + $0x169] sm:$0xff]  ;;  %v684_v32 = vadd.f32 %v12945_v50, %v12854_v59  ;;  %v685_v59 = vadd.f32 %v12945_v50, %v12870_v5 }
 0x183   : > { %v2768_v37 = vadd.f32 %v2618_v25, %v2246_v33 }
 0x184   : > { %2143 = vmatmul.bf16.gmra.mxu3 %v1986_v14  ;;  %v1054_v35 = vpop.f32.mrf.mxu1  ;;  %v2621_v44 = vpop.f32.mrf.mxu0  ;;  %v1464_v14 = vpack.c.bf16 %v1351_v17, %v1350_v38  ;;  %v10999_v17 = vld [vmem:[%s15489_s0 + $0x1e0] sm:$0xff] }
 0x185   : > { %v1202_v16 = vadd.f32 %v1054_v35, %v680_v34  ;;  %v1576_v41 = vpop.f32.mrf.mxu2  ;;  %2832 = vst [vmem:[#allocation3 + $0x48] sm:$0xff] %v2768_v37  ;;  %v2099_v49 = vpop.f32.mrf.mxu3  ;;  %v943_v34 = vpack.c.bf16 %v831_v31, %v830_v29  ;;  %v12099_v35 = vld [vmem:[%s12334_s27 + $0x158] sm:$0xff] }
 0x186   : > { %3118 = vmatpush.bf16.msra.mxu1 %v12099_v35  ;;  %v12123_v31 = vld [vmem:[%s12334_s27 + $0x218] sm:$0xff] }
 0x187   : > { %v1724_v48 = vadd.f32 %v1576_v41, %v1202_v16  ;;  %1098 = vmatmul.bf16.gmra.mxu1 %v941_v40  ;;  %2660 = vmatmul.bf16.gmra.mxu0 %v941_v40  ;;  %v12107_v40 = vld [vmem:[%s12334_s27 + $0x198] sm:$0xff] }
 0x188   : > { %1620 = vmatmul.bf16.gmra.mxu2 %v1463_v62  ;;  %v11107_v62 = vld [vmem:[%s15489_s0 + $0x181] sm:$0xff]  ;;  %4685 = vmatpush.bf16.msra.mxu0 %v12123_v31 }
 0x189   : > { %v2247_v51 = vadd.f32 %v2099_v49, %v1724_v48  ;;  %3641 = vmatpush.bf16.msra.mxu2 %v12107_v40  ;;  %v1352_v49 = vld [vmem:[%s15489_s0 + $0x16a] sm:$0xff] }
 0x18a   : > { %v1356_v40 = vld [vmem:[%s15489_s0 + $0x1ca] sm:$0xff] }
 0x18b   : > { %v2769_v20 = vadd.f32 %v2621_v44, %v2247_v51  ;;  %v1353_v51 = vld [vmem:[%s15489_s0 + $0x172] sm:$0xff]  ;;  %v885_v31 = vld [vmem:[#allocation3 + $0x1a8] sm:$0xff] }
 0x18c   : > { %v1056_v54 = vpop.f32.mrf.mxu1  ;;  %v2623_v57 = vpop.f32.mrf.mxu0 }
 0x18d   : > { %v1203_v56 = vadd.f32 %v1056_v54, %v681_v52  ;;  %v1578_v0 = vpop.f32.mrf.mxu2  ;;  %2833 = vst [vmem:[#allocation3 + $0x180] sm:$0xff] %v2769_v20  ;;  %v2101_v63 = vpop.f32.mrf.mxu3  ;;  %v10997_v54 = vld [vmem:[%s15489_s0 + $0x1c8] sm:$0xff] }
 0x18e   : > { %v1989_v5 = vpack.c.bf16 %v10998_v22, %v10997_v54 }
 0x18f   : > { %v1725_v60 = vadd.f32 %v1578_v0, %v1203_v56  ;;  %v1465_v56 = vpack.c.bf16 %v1353_v51, %v1352_v49  ;;  %v832_v0 = vld [vmem:[%s15489_s0 + $0x1b1] sm:$0xff] }
 0x191   : > { %v2248_v1 = vadd.f32 %v2101_v63, %v1725_v60  ;;  %v11108_v63 = vld [vmem:[%s15489_s0 + $0x189] sm:$0xff] }
 0x193   : > { %v2770_v27 = vadd.f32 %v2623_v57, %v2248_v1  ;;  %v833_v57 = vld [vmem:[%s15489_s0 + $0x1b9] sm:$0xff]  ;;  %v686_v1 = vadd.f32 %v12945_v50, %v12879_v18 }
 0x194   : > { %2148 = vmatmul.bf16.gmra.mxu3 %v1987_v30  ;;  %v1059_v4 = vpop.f32.mrf.mxu1  ;;  %v2626_v9 = vpop.f32.mrf.mxu0 }
 0x195   : > { %v1204_v43 = vadd.f32 %v1059_v4, %v682_v3  ;;  %v1581_v8 = vpop.f32.mrf.mxu2  ;;  %2834 = vst [vmem:[#allocation3 + $0x110] sm:$0xff] %v2770_v27  ;;  %v2104_v12 = vpop.f32.mrf.mxu3  ;;  %v944_v3 = vpack.c.bf16 %v833_v57, %v832_v0  ;;  %v12115_v4 = vld [vmem:[%s12334_s27 + $0x1d8] sm:$0xff] }
 0x196   : > { %4163 = vmatpush.bf16.msra.mxu3 %v12115_v4 }
 0x197   : > { %v1726_v11 = vadd.f32 %v1581_v8, %v1204_v43  ;;  %1103 = vmatmul.bf16.gmra.mxu1 %v942_v7  ;;  %2665 = vmatmul.bf16.gmra.mxu0 %v942_v7  ;;  %v2510_v43 = vpack.c.bf16 %v11108_v63, %v11107_v62 }
 0x198   : > { %1625 = vmatmul.bf16.gmra.mxu2 %v1464_v14  ;;  %v835_v14 = vld [vmem:[%s15489_s0 + $0x1d1] sm:$0xff] }
 0x199   : > { %v2249_v13 = vadd.f32 %v2104_v12, %v1726_v11 }
 0x19b   : > { %v2771_v58 = vadd.f32 %v2626_v9, %v2249_v13  ;;  %v687_v13 = vadd.f32 %v12945_v50, %v12893_v28 }
 0x19c   : > { %v1061_v42 = vpop.f32.mrf.mxu1  ;;  %v2628_v61 = vpop.f32.mrf.mxu0 }
 0x19d   : > { %v1205_v19 = vadd.f32 %v1061_v42, %v683_v15  ;;  %v1583_v21 = vpop.f32.mrf.mxu2  ;;  %2835 = vst [vmem:[#allocation3 + $0x118] sm:$0xff] %v2771_v58  ;;  %v2106_v24 = vpop.f32.mrf.mxu3  ;;  %v1354_v15 = vld [vmem:[%s15489_s0 + $0x1b2] sm:$0xff]  ;;  %v1355_v42 = vld [vmem:[%s15489_s0 + $0x1ba] sm:$0xff]  ;;  %v11000_v58 = vld [vmem:[%s15489_s0 + $0x1e8] sm:$0xff] }
 0x19e   : > { %v1990_v28 = vpack.c.bf16 %v11000_v58, %v10999_v17  ;;  %v838_v58 = vld [vmem:[%s15489_s0 + $0x1f9] sm:$0xff] }
 0x19f   : > { %v1727_v23 = vadd.f32 %v1583_v21, %v1205_v19 }
 0x1a1   : > { %v2250_v25 = vadd.f32 %v2106_v24, %v1727_v23  ;;  %v834_v23 = vld [vmem:[%s15489_s0 + $0x1c9] sm:$0xff] }
 0x1a3   : > { %v2772_v10 = vadd.f32 %v2628_v61, %v2250_v25  ;;  %v880_v25 = vld [vmem:[#allocation3 + $0xe0] sm:$0xff] }
 0x1a4   : > { %2153 = vmatmul.bf16.gmra.mxu3 %v1988_v45  ;;  %v1064_v33 = vpop.f32.mrf.mxu1  ;;  %v2631_v39 = vpop.f32.mrf.mxu0  ;;  %v1466_v45 = vpack.c.bf16 %v1355_v42, %v1354_v15 }
 0x1a5   : > { %v1206_v47 = vadd.f32 %v1064_v33, %v684_v32  ;;  %v1586_v37 = vpop.f32.mrf.mxu2  ;;  %2836 = vst [vmem:[#allocation3 + $0x98] sm:$0xff] %v2772_v10  ;;  %v2109_v41 = vpop.f32.mrf.mxu3  ;;  %v945_v33 = vpack.c.bf16 %v835_v14, %v834_v23 }
 0x1a7   : > { %v1728_v16 = vadd.f32 %v1586_v37, %v1206_v47  ;;  %1108 = vmatmul.bf16.gmra.mxu1 %v943_v34  ;;  %2670 = vmatmul.bf16.gmra.mxu0 %v943_v34 }
 0x1a8   : > { %1630 = vmatmul.bf16.gmra.mxu2 %v1465_v56 }
 0x1a9   : > { %v2251_v44 = vadd.f32 %v2109_v41, %v1728_v16  ;;  %v1357_v41 = vld [vmem:[%s15489_s0 + $0x1d2] sm:$0xff] }
 0x1ab   : > { %v2773_v52 = vadd.f32 %v2631_v39, %v2251_v44  ;;  %v881_v39 = vld [vmem:[#allocation3 + $0x188] sm:$0xff] }
 0x1ac   : > { %v1066_v48 = vpop.f32.mrf.mxu1  ;;  %v2633_v53 = vpop.f32.mrf.mxu0 }
 0x1ad   : > { %v1207_v26 = vadd.f32 %v1066_v48, %v685_v59  ;;  %v1588_v20 = vpop.f32.mrf.mxu2  ;;  %2837 = vst [vmem:[#allocation3 + $0x120] sm:$0xff] %v2773_v52  ;;  %v2111_v30 = vpop.f32.mrf.mxu3  ;;  %v11001_v59 = vld [vmem:[%s15489_s0 + $0x1f8] sm:$0xff]  ;;  %v11002_v48 = vld [vmem:[%s15489_s0 + $0x200] sm:$0xff] }
 0x1ae   : > { %v1991_v51 = vpack.c.bf16 %v11002_v48, %v11001_v59 }
 0x1af   : > { %v1729_v55 = vadd.f32 %v1588_v20, %v1207_v26  ;;  %v1467_v26 = vpack.c.bf16 %v1357_v41, %v1356_v40 }
 0x1b1   : > { %v2252_v60 = vadd.f32 %v2111_v30, %v1729_v55  ;;  %v837_v55 = vld [vmem:[%s15489_s0 + $0x1e9] sm:$0xff]  ;;  %v882_v30 = vld [vmem:[#allocation3 + $0x138] sm:$0xff] }
 0x1b3   : > { %v2774_v2 = vadd.f32 %v2633_v53, %v2252_v60  ;;  %v836_v53 = vld [vmem:[%s15489_s0 + $0x1e1] sm:$0xff] }
 0x1b4   : > { %2158 = vmatmul.bf16.gmra.mxu3 %v1989_v5  ;;  %v1069_v46 = vpop.f32.mrf.mxu1  ;;  %v2636_v8 = vpop.f32.mrf.mxu0  ;;  %v946_v60 = vpack.c.bf16 %v837_v55, %v836_v53 }
 0x1b5   : > { %v1208_v27 = vadd.f32 %v1069_v46, %v686_v1  ;;  %v1591_v7 = vpop.f32.mrf.mxu2  ;;  %2838 = vst [vmem:[#allocation3 + $0x150] sm:$0xff] %v2774_v2  ;;  %v2114_v11 = vpop.f32.mrf.mxu3 }
 0x1b7   : > { %v1730_v9 = vadd.f32 %v1591_v7, %v1208_v27  ;;  %1113 = vmatmul.bf16.gmra.mxu1 %v944_v3  ;;  %2675 = vmatmul.bf16.gmra.mxu0 %v2510_v43  ;;  %v883_v3 = vld [vmem:[#allocation3 + $0x140] sm:$0xff]  ;;  %v1359_v43 = vld [vmem:[%s15489_s0 + $0x1ea] sm:$0xff] }
 0x1b8   : > { %1635 = vmatmul.bf16.gmra.mxu2 %v1466_v45  ;;  %v1358_v27 = vld [vmem:[%s15489_s0 + $0x1e2] sm:$0xff] }
 0x1b9   : > { %v2253_v12 = vadd.f32 %v2114_v11, %v1730_v9  ;;  %v11004_v9 = vld [vmem:[%s15489_s0 + $0x218] sm:$0xff]  ;;  %v1468_v42 = vpack.c.bf16 %v1359_v43, %v1358_v27 }
 0x1bb   : > { %v2775_v38 = vadd.f32 %v2636_v8, %v2253_v12  ;;  %v11003_v8 = vld [vmem:[%s15489_s0 + $0x210] sm:$0xff] }
 0x1bc   : > { %v1071_v18 = vpop.f32.mrf.mxu1  ;;  %v2638_v36 = vpop.f32.mrf.mxu0  ;;  %v1992_v12 = vpack.c.bf16 %v11004_v9, %v11003_v8 }
 0x1bd   : > { %v1209_v6 = vadd.f32 %v1071_v18, %v687_v13  ;;  %v1593_v50 = vpop.f32.mrf.mxu2  ;;  %2839 = vst [vmem:[#allocation3 + $0x108] sm:$0xff] %v2775_v38  ;;  %v2116_v21 = vpop.f32.mrf.mxu3 }
 0x1bf   : > { %v1731_v19 = vadd.f32 %v1593_v50, %v1209_v6  ;;  %v839_v6 = vld [vmem:[%s15489_s0 + $0x201] sm:$0xff] }
 0x1c0   : > { %v884_v50 = vld [vmem:[#allocation3 + $0x80] sm:$0xff]  ;;  %v947_v45 = vpack.c.bf16 %v839_v6, %v838_v58 }
 0x1c1   : > { %v2254_v61 = vadd.f32 %v2116_v21, %v1731_v19  ;;  %v12098_v21 = vld [vmem:[%s12334_s27 + $0x150] sm:$0xff] }
 0x1c2   : > { %3119 = vmatpush.bf16.msra.mxu1 %v12098_v21 }
 0x1c3   : > { %v2776_v29 = vadd.f32 %v2638_v36, %v2254_v61 }
 0x1c4   : > { %2163 = vmatmul.bf16.gmra.mxu3 %v1990_v28  ;;  %v1074_v24 = vpop.f32.mrf.mxu1  ;;  %v2641_v47 = vpop.f32.mrf.mxu0 }
 0x1c5   : > { %v1210_v32 = vadd.f32 %v1074_v24, %v880_v25  ;;  %v1596_v10 = vpop.f32.mrf.mxu2  ;;  %2840 = vst [vmem:[#allocation3 + $0x60] sm:$0xff] %v2776_v29  ;;  %v2119_v35 = vpop.f32.mrf.mxu3  ;;  %v12106_v24 = vld [vmem:[%s12334_s27 + $0x190] sm:$0xff] }
 0x1c6   : > { %3642 = vmatpush.bf16.msra.mxu2 %v12106_v24  ;;  %v11009_v24 = vld [vmem:[%s15489_s0 + $0x258] sm:$0xff] }
 0x1c7   : > { %v1732_v34 = vadd.f32 %v1596_v10, %v1210_v32  ;;  %1118 = vmatmul.bf16.gmra.mxu1 %v945_v33  ;;  %2680 = vmatmul.bf16.gmra.mxu0 %v945_v33  ;;  %v1360_v33 = vld [vmem:[%s15489_s0 + $0x1fa] sm:$0xff]  ;;  %v1361_v10 = vld [vmem:[%s15489_s0 + $0x202] sm:$0xff] }
 0x1c8   : > { %1640 = vmatmul.bf16.gmra.mxu2 %v1467_v26  ;;  %v12114_v26 = vld [vmem:[%s12334_s27 + $0x1d0] sm:$0xff] }
 0x1c9   : > { %v2255_v37 = vadd.f32 %v2119_v35, %v1732_v34  ;;  %v11005_v34 = vld [vmem:[%s15489_s0 + $0x228] sm:$0xff]  ;;  %v11006_v35 = vld [vmem:[%s15489_s0 + $0x230] sm:$0xff]  ;;  %4164 = vmatpush.bf16.msra.mxu3 %v12114_v26 }
 0x1cb   : > { %v2777_v44 = vadd.f32 %v2641_v47, %v2255_v37 }
 0x1cc   : > { %v1076_v16 = vpop.f32.mrf.mxu1  ;;  %v2643_v54 = vpop.f32.mrf.mxu0 }
 0x1cd   : > { %v1211_v49 = vadd.f32 %v1076_v16, %v881_v39  ;;  %v1598_v52 = vpop.f32.mrf.mxu2  ;;  %2841 = vst [vmem:[#allocation3 + $0xe0] sm:$0xff] %v2777_v44  ;;  %v2121_v5 = vpop.f32.mrf.mxu3  ;;  %v1993_v39 = vpack.c.bf16 %v11006_v35, %v11005_v34  ;;  %v1469_v44 = vpack.c.bf16 %v1361_v10, %v1360_v33 }
 0x1cf   : > { %v1733_v22 = vadd.f32 %v1598_v52, %v1211_v49  ;;  %v840_v49 = vld [vmem:[%s15489_s0 + $0x211] sm:$0xff] }
 0x1d1   : > { %v2256_v20 = vadd.f32 %v2121_v5, %v1733_v22 }
 0x1d3   : > { %v2778_v0 = vadd.f32 %v2643_v54, %v2256_v20  ;;  %v886_v54 = vld [vmem:[#allocation3 + $0x1b8] sm:$0xff] }
 0x1d4   : > { %2168 = vmatmul.bf16.gmra.mxu3 %v1991_v51  ;;  %v1079_v56 = vpop.f32.mrf.mxu1  ;;  %v2646_v63 = vpop.f32.mrf.mxu0  ;;  %v841_v51 = vld [vmem:[%s15489_s0 + $0x219] sm:$0xff] }
 0x1d5   : > { %v1212_v57 = vadd.f32 %v1079_v56, %v882_v30  ;;  %v1601_v62 = vpop.f32.mrf.mxu2  ;;  %2842 = vst [vmem:[#allocation3 + $0x188] sm:$0xff] %v2778_v0  ;;  %v2124_v46 = vpop.f32.mrf.mxu3  ;;  %v948_v20 = vpack.c.bf16 %v841_v51, %v840_v49 }
 0x1d7   : > { %v1734_v1 = vadd.f32 %v1601_v62, %v1212_v57  ;;  %1123 = vmatmul.bf16.gmra.mxu1 %v946_v60  ;;  %2685 = vmatmul.bf16.gmra.mxu0 %v946_v60  ;;  %v887_v57 = vld [vmem:[#allocation3 + $0x28] sm:$0xff]  ;;  %v1362_v62 = vld [vmem:[%s15489_s0 + $0x212] sm:$0xff] }
 0x1d8   : > { %1645 = vmatmul.bf16.gmra.mxu2 %v1468_v42 }
 0x1d9   : > { %v2257_v2 = vadd.f32 %v2124_v46, %v1734_v1  ;;  %v11007_v46 = vld [vmem:[%s15489_s0 + $0x240] sm:$0xff] }
 0x1db   : > { %v2779_v7 = vadd.f32 %v2646_v63, %v2257_v2  ;;  %v1363_v63 = vld [vmem:[%s15489_s0 + $0x21a] sm:$0xff]  ;;  %v11008_v2 = vld [vmem:[%s15489_s0 + $0x248] sm:$0xff] }
 0x1dc   : > { %v1081_v4 = vpop.f32.mrf.mxu1  ;;  %v2648_v18 = vpop.f32.mrf.mxu0  ;;  %v1470_v8 = vpack.c.bf16 %v1363_v63, %v1362_v62 }
 0x1dd   : > { %v1213_v11 = vadd.f32 %v1081_v4, %v883_v3  ;;  %v1603_v13 = vpop.f32.mrf.mxu2  ;;  %2843 = vst [vmem:[#allocation3 + $0x138] sm:$0xff] %v2779_v7  ;;  %v2126_v38 = vpop.f32.mrf.mxu3  ;;  %v1994_v4 = vpack.c.bf16 %v11008_v2, %v11007_v46  ;;  %v846_v2 = vld [vmem:[%s15489_s0 + $0x259] sm:$0xff] }
 0x1df   : > { %v1735_v15 = vadd.f32 %v1603_v13, %v1213_v11  ;;  %v843_v13 = vld [vmem:[%s15489_s0 + $0x231] sm:$0xff] }
 0x1e1   : > { %v2258_v17 = vadd.f32 %v2126_v38, %v1735_v15  ;;  %v888_v15 = vld [vmem:[#allocation3 + $0x1e8] sm:$0xff]  ;;  %v12122_v38 = vld [vmem:[%s12334_s27 + $0x210] sm:$0xff] }
 0x1e2   : > { %4686 = vmatpush.bf16.msra.mxu0 %v12122_v38  ;;  %v893_v38 = vld [vmem:[#allocation3] sm:$0xff] }
 0x1e3   : > { %v2780_v36 = vadd.f32 %v2648_v18, %v2258_v17 }
 0x1e4   : > { %2173 = vmatmul.bf16.gmra.mxu3 %v1992_v12  ;;  %v1084_v28 = vpop.f32.mrf.mxu1  ;;  %v2651_v23 = vpop.f32.mrf.mxu0  ;;  %v842_v12 = vld [vmem:[%s15489_s0 + $0x229] sm:$0xff] }
 0x1e5   : > { %v1214_v19 = vadd.f32 %v1084_v28, %v884_v50  ;;  %v1606_v61 = vpop.f32.mrf.mxu2  ;;  %2844 = vst [vmem:[#allocation3 + $0x140] sm:$0xff] %v2780_v36  ;;  %v2129_v25 = vpop.f32.mrf.mxu3  ;;  %v949_v58 = vpack.c.bf16 %v843_v13, %v842_v12 }
 0x1e7   : > { %v1736_v14 = vadd.f32 %v1606_v61, %v1214_v19  ;;  %1128 = vmatmul.bf16.gmra.mxu1 %v947_v45  ;;  %2690 = vmatmul.bf16.gmra.mxu0 %v947_v45  ;;  %v889_v45 = vld [vmem:[#allocation3 + $0xf8] sm:$0xff]  ;;  %v1364_v61 = vld [vmem:[%s15489_s0 + $0x22a] sm:$0xff] }
 0x1e8   : > { %1650 = vmatmul.bf16.gmra.mxu2 %v1469_v44 }
 0x1e9   : > { %v2259_v29 = vadd.f32 %v2129_v25, %v1736_v14  ;;  %v11010_v25 = vld [vmem:[%s15489_s0 + $0x260] sm:$0xff] }
 0x1eb   : > { %v2781_v47 = vadd.f32 %v2651_v23, %v2259_v29  ;;  %v1365_v23 = vld [vmem:[%s15489_s0 + $0x232] sm:$0xff] }
 0x1ec   : > { %v1086_v32 = vpop.f32.mrf.mxu1  ;;  %v2653_v40 = vpop.f32.mrf.mxu0 }
 0x1ed   : > { %v1215_v37 = vadd.f32 %v1086_v32, %v885_v31  ;;  %v1608_v16 = vpop.f32.mrf.mxu2  ;;  %2845 = vst [vmem:[#allocation3 + $0x80] sm:$0xff] %v2781_v47  ;;  %v2131_v59 = vpop.f32.mrf.mxu3  ;;  %v1995_v31 = vpack.c.bf16 %v11010_v25, %v11009_v24  ;;  %v1471_v47 = vpack.c.bf16 %v1365_v23, %v1364_v61 }
 0x1ef   : > { %v1737_v41 = vadd.f32 %v1608_v16, %v1215_v37  ;;  %v844_v37 = vld [vmem:[%s15489_s0 + $0x241] sm:$0xff] }
 0x1f1   : > { %v2260_v48 = vadd.f32 %v2131_v59, %v1737_v41 }
 0x1f3   : > { %v2782_v22 = vadd.f32 %v2653_v40, %v2260_v48  ;;  %v890_v40 = vld [vmem:[#allocation3 + $0x160] sm:$0xff] }
 0x1f4   : > { %2178 = vmatmul.bf16.gmra.mxu3 %v1993_v39  ;;  %v1089_v52 = vpop.f32.mrf.mxu1  ;;  %v2656_v55 = vpop.f32.mrf.mxu0  ;;  %v845_v39 = vld [vmem:[%s15489_s0 + $0x249] sm:$0xff] }
 0x1f5   : > { %v1216_v5 = vadd.f32 %v1089_v52, %v886_v54  ;;  %v1611_v53 = vpop.f32.mrf.mxu2  ;;  %2846 = vst [vmem:[#allocation3 + $0x1a8] sm:$0xff] %v2782_v22  ;;  %v2134_v30 = vpop.f32.mrf.mxu3  ;;  %v950_v59 = vpack.c.bf16 %v845_v39, %v844_v37  ;;  %v891_v22 = vld [vmem:[#allocation3 + $0x30] sm:$0xff] }
 0x1f7   : > { %v1738_v56 = vadd.f32 %v1611_v53, %v1216_v5  ;;  %1133 = vmatmul.bf16.gmra.mxu1 %v948_v20  ;;  %2695 = vmatmul.bf16.gmra.mxu0 %v948_v20  ;;  %v1366_v5 = vld [vmem:[%s15489_s0 + $0x242] sm:$0xff]  ;;  %v1367_v20 = vld [vmem:[%s15489_s0 + $0x24a] sm:$0xff] }
 0x1f8   : > { %1655 = vmatmul.bf16.gmra.mxu2 %v1470_v8  ;;  %v1472_v63 = vpack.c.bf16 %v1367_v20, %v1366_v5 }
 0x1f9   : > { %v2261_v0 = vadd.f32 %v2134_v30, %v1738_v56  ;;  %v11012_v56 = vld [vmem:[%s15489_s0 + $0x278] sm:$0xff] }
 0x1fb   : > { %v2783_v1 = vadd.f32 %v2656_v55, %v2261_v0  ;;  %v11011_v55 = vld [vmem:[%s15489_s0 + $0x270] sm:$0xff] }
 0x1fc   : > { %v1091_v60 = vpop.f32.mrf.mxu1  ;;  %v2658_v43 = vpop.f32.mrf.mxu0  ;;  %v1996_v0 = vpack.c.bf16 %v11012_v56, %v11011_v55 }
 0x1fd   : > { %v1217_v3 = vadd.f32 %v1091_v60, %v887_v57  ;;  %v1613_v27 = vpop.f32.mrf.mxu2  ;;  %2847 = vst [vmem:[#allocation3 + $0x1b8] sm:$0xff] %v2783_v1  ;;  %v2136_v9 = vpop.f32.mrf.mxu3 }
 0x1ff   : > { %v1739_v7 = vadd.f32 %v1613_v27, %v1217_v3  ;;  %v847_v3 = vld [vmem:[%s15489_s0 + $0x261] sm:$0xff] }
 0x200   : > { %v892_v27 = vld [vmem:[#allocation3 + $0x1e0] sm:$0xff]  ;;  %v951_v8 = vpack.c.bf16 %v847_v3, %v846_v2 }
 0x201   : > { %v2262_v11 = vadd.f32 %v2136_v9, %v1739_v7  ;;  %v12097_v9 = vld [vmem:[%s12334_s27 + $0x148] sm:$0xff] }
 0x202   : > { %3120 = vmatpush.bf16.msra.mxu1 %v12097_v9 }
 0x203   : > { %v2784_v42 = vadd.f32 %v2658_v43, %v2262_v11 }
 0x204   : > { %2183 = vmatmul.bf16.gmra.mxu3 %v1994_v4  ;;  %v1094_v18 = vpop.f32.mrf.mxu1  ;;  %v2661_v28 = vpop.f32.mrf.mxu0 }
 0x205   : > { %v1218_v17 = vadd.f32 %v1094_v18, %v888_v15  ;;  %v1616_v6 = vpop.f32.mrf.mxu2  ;;  %2848 = vst [vmem:[#allocation3 + $0x28] sm:$0xff] %v2784_v42  ;;  %v2139_v36 = vpop.f32.mrf.mxu3  ;;  %v12105_v18 = vld [vmem:[%s12334_s27 + $0x188] sm:$0xff] }
 0x206   : > { %3643 = vmatpush.bf16.msra.mxu2 %v12105_v18  ;;  %v11017_v18 = vld [vmem:[%s15489_s0 + $0x2b8] sm:$0xff] }
 0x207   : > { %v1740_v50 = vadd.f32 %v1616_v6, %v1218_v17  ;;  %1138 = vmatmul.bf16.gmra.mxu1 %v949_v58  ;;  %2700 = vmatmul.bf16.gmra.mxu0 %v949_v58  ;;  %v1368_v58 = vld [vmem:[%s15489_s0 + $0x25a] sm:$0xff]  ;;  %v1369_v6 = vld [vmem:[%s15489_s0 + $0x262] sm:$0xff] }
 0x208   : > { %1660 = vmatmul.bf16.gmra.mxu2 %v1471_v47  ;;  %v12113_v47 = vld [vmem:[%s12334_s27 + $0x1c8] sm:$0xff] }
 0x209   : > { %v2263_v19 = vadd.f32 %v2139_v36, %v1740_v50  ;;  %v11013_v50 = vld [vmem:[%s15489_s0 + $0x288] sm:$0xff]  ;;  %v11014_v36 = vld [vmem:[%s15489_s0 + $0x290] sm:$0xff]  ;;  %4165 = vmatpush.bf16.msra.mxu3 %v12113_v47 }
 0x20b   : > { %v2785_v14 = vadd.f32 %v2661_v28, %v2263_v19 }
 0x20c   : > { %v1096_v21 = vpop.f32.mrf.mxu1  ;;  %v2663_v33 = vpop.f32.mrf.mxu0 }
 0x20d   : > { %v1219_v29 = vadd.f32 %v1096_v21, %v889_v45  ;;  %v1618_v32 = vpop.f32.mrf.mxu2  ;;  %2849 = vst [vmem:[#allocation3 + $0x1e8] sm:$0xff] %v2785_v14  ;;  %v2141_v34 = vpop.f32.mrf.mxu3  ;;  %v1997_v45 = vpack.c.bf16 %v11014_v36, %v11013_v50  ;;  %v1473_v14 = vpack.c.bf16 %v1369_v6, %v1368_v58 }
 0x20f   : > { %v1741_v10 = vadd.f32 %v1618_v32, %v1219_v29  ;;  %v848_v29 = vld [vmem:[%s15489_s0 + $0x271] sm:$0xff] }
 0x211   : > { %v2264_v35 = vadd.f32 %v2141_v34, %v1741_v10 }
 0x213   : > { %v2786_v41 = vadd.f32 %v2663_v33, %v2264_v35  ;;  %v894_v33 = vld [vmem:[#allocation3 + $0xf0] sm:$0xff] }
 0x214   : > { %2188 = vmatmul.bf16.gmra.mxu3 %v1995_v31  ;;  %v1099_v16 = vpop.f32.mrf.mxu1  ;;  %v2666_v49 = vpop.f32.mrf.mxu0  ;;  %v849_v31 = vld [vmem:[%s15489_s0 + $0x279] sm:$0xff] }
 0x215   : > { %v1220_v44 = vadd.f32 %v1099_v16, %v890_v40  ;;  %v1621_v48 = vpop.f32.mrf.mxu2  ;;  %2850 = vst [vmem:[#allocation3 + $0xf8] sm:$0xff] %v2786_v41  ;;  %v2144_v52 = vpop.f32.mrf.mxu3  ;;  %v952_v35 = vpack.c.bf16 %v849_v31, %v848_v29 }
 0x217   : > { %v1742_v51 = vadd.f32 %v1621_v48, %v1220_v44  ;;  %1143 = vmatmul.bf16.gmra.mxu1 %v950_v59  ;;  %2705 = vmatmul.bf16.gmra.mxu0 %v950_v59  ;;  %v895_v44 = vld [vmem:[#allocation3 + $0x8] sm:$0xff]  ;;  %v1370_v48 = vld [vmem:[%s15489_s0 + $0x272] sm:$0xff] }
 0x218   : > { %1665 = vmatmul.bf16.gmra.mxu2 %v1472_v63 }
 0x219   : > { %v2265_v54 = vadd.f32 %v2144_v52, %v1742_v51  ;;  %v11015_v52 = vld [vmem:[%s15489_s0 + $0x2a0] sm:$0xff] }
 0x21b   : > { %v2787_v53 = vadd.f32 %v2666_v49, %v2265_v54  ;;  %v1371_v49 = vld [vmem:[%s15489_s0 + $0x27a] sm:$0xff]  ;;  %v11016_v54 = vld [vmem:[%s15489_s0 + $0x2a8] sm:$0xff] }
 0x21c   : > { %v1101_v26 = vpop.f32.mrf.mxu1  ;;  %v2668_v60 = vpop.f32.mrf.mxu0  ;;  %v1474_v55 = vpack.c.bf16 %v1371_v49, %v1370_v48 }
 0x21d   : > { %v1221_v30 = vadd.f32 %v1101_v26, %v891_v22  ;;  %v1623_v57 = vpop.f32.mrf.mxu2  ;;  %2851 = vst [vmem:[#allocation3 + $0x160] sm:$0xff] %v2787_v53  ;;  %v2146_v1 = vpop.f32.mrf.mxu3  ;;  %v1998_v26 = vpack.c.bf16 %v11016_v54, %v11015_v52  ;;  %v854_v54 = vld [vmem:[%s15489_s0 + $0x2b9] sm:$0xff] }
 0x21f   : > { %v1743_v62 = vadd.f32 %v1623_v57, %v1221_v30  ;;  %v851_v57 = vld [vmem:[%s15489_s0 + $0x291] sm:$0xff] }
 0x221   : > { %v2266_v46 = vadd.f32 %v2146_v1, %v1743_v62  ;;  %v896_v62 = vld [vmem:[#allocation3 + $0x148] sm:$0xff] }
 0x222   : > { %v12121_v1 = vld [vmem:[%s12334_s27 + $0x208] sm:$0xff] }
 0x223   : > { %v2788_v43 = vadd.f32 %v2668_v60, %v2266_v46  ;;  %4687 = vmatpush.bf16.msra.mxu0 %v12121_v1  ;;  %v901_v1 = vld [vmem:[#allocation3 + $0x1f8] sm:$0xff] }
 0x224   : > { %2193 = vmatmul.bf16.gmra.mxu3 %v1996_v0  ;;  %v1104_v4 = vpop.f32.mrf.mxu1  ;;  %v2671_v12 = vpop.f32.mrf.mxu0  ;;  %v850_v0 = vld [vmem:[%s15489_s0 + $0x289] sm:$0xff] }
 0x225   : > { %v1222_v7 = vadd.f32 %v1104_v4, %v892_v27  ;;  %v1626_v11 = vpop.f32.mrf.mxu2  ;;  %2852 = vst [vmem:[#allocation3 + $0x30] sm:$0xff] %v2788_v43  ;;  %v2149_v15 = vpop.f32.mrf.mxu3  ;;  %v953_v2 = vpack.c.bf16 %v851_v57, %v850_v0 }
 0x227   : > { %v1744_v13 = vadd.f32 %v1626_v11, %v1222_v7  ;;  %1148 = vmatmul.bf16.gmra.mxu1 %v951_v8  ;;  %2710 = vmatmul.bf16.gmra.mxu0 %v951_v8  ;;  %v897_v8 = vld [vmem:[#allocation3 + $0x1d0] sm:$0xff] }
 0x228   : > { %1670 = vmatmul.bf16.gmra.mxu2 %v1473_v14  ;;  %v1372_v11 = vld [vmem:[%s15489_s0 + $0x28a] sm:$0xff] }
 0x229   : > { %v2267_v42 = vadd.f32 %v2149_v15, %v1744_v13  ;;  %v11018_v15 = vld [vmem:[%s15489_s0 + $0x2c0] sm:$0xff] }
 0x22b   : > { %v2789_v28 = vadd.f32 %v2671_v12, %v2267_v42  ;;  %v1373_v12 = vld [vmem:[%s15489_s0 + $0x292] sm:$0xff] }
 0x22c   : > { %v1106_v17 = vpop.f32.mrf.mxu1  ;;  %v2673_v61 = vpop.f32.mrf.mxu0 }
 0x22d   : > { %v1223_v19 = vadd.f32 %v1106_v17, %v893_v38  ;;  %v1628_v21 = vpop.f32.mrf.mxu2  ;;  %2853 = vst [vmem:[#allocation3 + $0x1e0] sm:$0xff] %v2789_v28  ;;  %v2151_v24 = vpop.f32.mrf.mxu3  ;;  %v1999_v38 = vpack.c.bf16 %v11018_v15, %v11017_v18  ;;  %v1475_v28 = vpack.c.bf16 %v1373_v12, %v1372_v11 }
 0x22f   : > { %v1745_v23 = vadd.f32 %v1628_v21, %v1223_v19  ;;  %v852_v19 = vld [vmem:[%s15489_s0 + $0x2a1] sm:$0xff] }
 0x231   : > { %v2268_v25 = vadd.f32 %v2151_v24, %v1745_v23 }
 0x233   : > { %v2790_v10 = vadd.f32 %v2673_v61, %v2268_v25  ;;  %v898_v61 = vld [vmem:[#allocation3 + $0x100] sm:$0xff] }
 0x234   : > { %2198 = vmatmul.bf16.gmra.mxu3 %v1997_v45  ;;  %v1109_v32 = vpop.f32.mrf.mxu1  ;;  %v2676_v39 = vpop.f32.mrf.mxu0  ;;  %v853_v45 = vld [vmem:[%s15489_s0 + $0x2a9] sm:$0xff] }
 0x235   : > { %v1224_v34 = vadd.f32 %v1109_v32, %v894_v33  ;;  %v1631_v37 = vpop.f32.mrf.mxu2  ;;  %2854 = vst [vmem:[#allocation3] sm:$0xff] %v2790_v10  ;;  %v2154_v40 = vpop.f32.mrf.mxu3  ;;  %v954_v24 = vpack.c.bf16 %v853_v45, %v852_v19  ;;  %v899_v10 = vld [vmem:[#allocation3 + $0xc8] sm:$0xff] }
 0x237   : > { %v1746_v16 = vadd.f32 %v1631_v37, %v1224_v34  ;;  %1153 = vmatmul.bf16.gmra.mxu1 %v952_v35  ;;  %2715 = vmatmul.bf16.gmra.mxu0 %v952_v35  ;;  %v1374_v34 = vld [vmem:[%s15489_s0 + $0x2a2] sm:$0xff]  ;;  %v1375_v35 = vld [vmem:[%s15489_s0 + $0x2aa] sm:$0xff] }
 0x238   : > { %1675 = vmatmul.bf16.gmra.mxu2 %v1474_v55  ;;  %v1476_v49 = vpack.c.bf16 %v1375_v35, %v1374_v34 }
 0x239   : > { %v2269_v41 = vadd.f32 %v2154_v40, %v1746_v16  ;;  %v11020_v16 = vld [vmem:[%s15489_s0 + $0x2d8] sm:$0xff] }
 0x23b   : > { %v2791_v51 = vadd.f32 %v2676_v39, %v2269_v41  ;;  %v11019_v39 = vld [vmem:[%s15489_s0 + $0x2d0] sm:$0xff] }
 0x23c   : > { %v1111_v59 = vpop.f32.mrf.mxu1  ;;  %v2678_v20 = vpop.f32.mrf.mxu0  ;;  %v2000_v41 = vpack.c.bf16 %v11020_v16, %v11019_v39 }
 0x23d   : > { %v1225_v22 = vadd.f32 %v1111_v59, %v895_v44  ;;  %v1633_v5 = vpop.f32.mrf.mxu2  ;;  %2855 = vst [vmem:[#allocation3 + $0xf0] sm:$0xff] %v2791_v51  ;;  %v2156_v56 = vpop.f32.mrf.mxu3 }
 0x23f   : > { %v1747_v53 = vadd.f32 %v1633_v5, %v1225_v22  ;;  %v855_v22 = vld [vmem:[%s15489_s0 + $0x2c1] sm:$0xff] }
 0x240   : > { %v900_v5 = vld [vmem:[#allocation3 + $0x40] sm:$0xff]  ;;  %v955_v55 = vpack.c.bf16 %v855_v22, %v854_v54 }
 0x241   : > { %v2270_v30 = vadd.f32 %v2156_v56, %v1747_v53  ;;  %v12096_v56 = vld [vmem:[%s12334_s27 + $0x140] sm:$0xff] }
 0x242   : > { %3121 = vmatpush.bf16.msra.mxu1 %v12096_v56 }
 0x243   : > { %v2792_v63 = vadd.f32 %v2678_v20, %v2270_v30 }
 0x244   : > { %2203 = vmatmul.bf16.gmra.mxu3 %v1998_v26  ;;  %v1114_v60 = vpop.f32.mrf.mxu1  ;;  %v2681_v4 = vpop.f32.mrf.mxu0 }
 0x245   : > { %v1226_v46 = vadd.f32 %v1114_v60, %v896_v62  ;;  %v1636_v3 = vpop.f32.mrf.mxu2  ;;  %2856 = vst [vmem:[#allocation3 + $0x8] sm:$0xff] %v2792_v63  ;;  %v2159_v43 = vpop.f32.mrf.mxu3  ;;  %v12104_v60 = vld [vmem:[%s12334_s27 + $0x180] sm:$0xff] }
 0x246   : > { %3644 = vmatpush.bf16.msra.mxu2 %v12104_v60  ;;  %v11025_v60 = vld [vmem:[%s15489_s0 + $0x318] sm:$0xff] }
 0x247   : > { %v1748_v27 = vadd.f32 %v1636_v3, %v1226_v46  ;;  %1158 = vmatmul.bf16.gmra.mxu1 %v953_v2  ;;  %2720 = vmatmul.bf16.gmra.mxu0 %v953_v2  ;;  %v1376_v2 = vld [vmem:[%s15489_s0 + $0x2ba] sm:$0xff]  ;;  %v1377_v3 = vld [vmem:[%s15489_s0 + $0x2c2] sm:$0xff] }
 0x248   : > { %1680 = vmatmul.bf16.gmra.mxu2 %v1475_v28  ;;  %v12112_v28 = vld [vmem:[%s12334_s27 + $0x1c0] sm:$0xff] }
 0x249   : > { %v2271_v7 = vadd.f32 %v2159_v43, %v1748_v27  ;;  %v11021_v27 = vld [vmem:[%s15489_s0 + $0x2e8] sm:$0xff]  ;;  %v11022_v43 = vld [vmem:[%s15489_s0 + $0x2f0] sm:$0xff]  ;;  %4166 = vmatpush.bf16.msra.mxu3 %v12112_v28 }
 0x24b   : > { %v2793_v13 = vadd.f32 %v2681_v4, %v2271_v7 }
 0x24c   : > { %v1116_v9 = vpop.f32.mrf.mxu1  ;;  %v2683_v58 = vpop.f32.mrf.mxu0 }
 0x24d   : > { %v1227_v42 = vadd.f32 %v1116_v9, %v897_v8  ;;  %v1638_v17 = vpop.f32.mrf.mxu2  ;;  %2857 = vst [vmem:[#allocation3 + $0x148] sm:$0xff] %v2793_v13  ;;  %v2161_v50 = vpop.f32.mrf.mxu3  ;;  %v2001_v8 = vpack.c.bf16 %v11022_v43, %v11021_v27  ;;  %v1477_v13 = vpack.c.bf16 %v1377_v3, %v1376_v2 }
 0x24f   : > { %v1749_v6 = vadd.f32 %v1638_v17, %v1227_v42  ;;  %v856_v42 = vld [vmem:[%s15489_s0 + $0x2d1] sm:$0xff] }
 0x251   : > { %v2272_v36 = vadd.f32 %v2161_v50, %v1749_v6 }
 0x253   : > { %v2794_v23 = vadd.f32 %v2683_v58, %v2272_v36  ;;  %v902_v58 = vld [vmem:[#allocation3 + $0x20] sm:$0xff] }
 0x254   : > { %2208 = vmatmul.bf16.gmra.mxu3 %v1999_v38  ;;  %v1119_v21 = vpop.f32.mrf.mxu1  ;;  %v2686_v29 = vpop.f32.mrf.mxu0  ;;  %v857_v38 = vld [vmem:[%s15489_s0 + $0x2d9] sm:$0xff] }
 0x255   : > { %v1228_v14 = vadd.f32 %v1119_v21, %v898_v61  ;;  %v1641_v25 = vpop.f32.mrf.mxu2  ;;  %2858 = vst [vmem:[#allocation3 + $0x1d0] sm:$0xff] %v2794_v23  ;;  %v2164_v32 = vpop.f32.mrf.mxu3  ;;  %v956_v36 = vpack.c.bf16 %v857_v38, %v856_v42 }
 0x257   : > { %v1750_v31 = vadd.f32 %v1641_v25, %v1228_v14  ;;  %1163 = vmatmul.bf16.gmra.mxu1 %v954_v24  ;;  %2725 = vmatmul.bf16.gmra.mxu0 %v954_v24  ;;  %v903_v14 = vld [vmem:[#allocation3 + $0x128] sm:$0xff]  ;;  %v1378_v25 = vld [vmem:[%s15489_s0 + $0x2d2] sm:$0xff] }
 0x258   : > { %1685 = vmatmul.bf16.gmra.mxu2 %v1476_v49 }
 0x259   : > { %v2273_v33 = vadd.f32 %v2164_v32, %v1750_v31  ;;  %v11023_v32 = vld [vmem:[%s15489_s0 + $0x300] sm:$0xff] }
 0x25b   : > { %v2795_v37 = vadd.f32 %v2686_v29, %v2273_v33  ;;  %v1379_v29 = vld [vmem:[%s15489_s0 + $0x2da] sm:$0xff]  ;;  %v11024_v33 = vld [vmem:[%s15489_s0 + $0x308] sm:$0xff] }
 0x25c   : > { %v1121_v47 = vpop.f32.mrf.mxu1  ;;  %v2688_v59 = vpop.f32.mrf.mxu0  ;;  %v1478_v39 = vpack.c.bf16 %v1379_v29, %v1378_v25 }
 0x25d   : > { %v1229_v40 = vadd.f32 %v1121_v47, %v899_v10  ;;  %v1643_v44 = vpop.f32.mrf.mxu2  ;;  %2859 = vst [vmem:[#allocation3 + $0x100] sm:$0xff] %v2795_v37  ;;  %v2166_v51 = vpop.f32.mrf.mxu3  ;;  %v2002_v47 = vpack.c.bf16 %v11024_v33, %v11023_v32  ;;  %v862_v33 = vld [vmem:[%s15489_s0 + $0x319] sm:$0xff] }
 0x25f   : > { %v1751_v48 = vadd.f32 %v1643_v44, %v1229_v40  ;;  %v859_v44 = vld [vmem:[%s15489_s0 + $0x2f1] sm:$0xff] }
 0x261   : > { %v2274_v52 = vadd.f32 %v2166_v51, %v1751_v48  ;;  %v904_v48 = vld [vmem:[#allocation3 + $0x1a0] sm:$0xff] }
 0x262   : > { %v12120_v51 = vld [vmem:[%s12334_s27 + $0x200] sm:$0xff] }
 0x263   : > { %v2796_v20 = vadd.f32 %v2688_v59, %v2274_v52  ;;  %4688 = vmatpush.bf16.msra.mxu0 %v12120_v51  ;;  %v1384_v51 = vld [vmem:[%s15489_s0 + $0x31a] sm:$0xff] }
 0x264   : > { %2213 = vmatmul.bf16.gmra.mxu3 %v2000_v41  ;;  %v1124_v26 = vpop.f32.mrf.mxu1  ;;  %v2691_v0 = vpop.f32.mrf.mxu0  ;;  %v858_v41 = vld [vmem:[%s15489_s0 + $0x2e9] sm:$0xff] }
 0x265   : > { %v1230_v53 = vadd.f32 %v1124_v26, %v900_v5  ;;  %v1646_v30 = vpop.f32.mrf.mxu2  ;;  %2860 = vst [vmem:[#allocation3 + $0xc8] sm:$0xff] %v2796_v20  ;;  %v2169_v62 = vpop.f32.mrf.mxu3  ;;  %v957_v54 = vpack.c.bf16 %v859_v44, %v858_v41 }
 0x267   : > { %v1752_v57 = vadd.f32 %v1646_v30, %v1230_v53  ;;  %1168 = vmatmul.bf16.gmra.mxu1 %v955_v55  ;;  %2730 = vmatmul.bf16.gmra.mxu0 %v955_v55  ;;  %v905_v55 = vld [vmem:[#allocation3 + $0x1f0] sm:$0xff] }
 0x268   : > { %1690 = vmatmul.bf16.gmra.mxu2 %v1477_v13  ;;  %v1380_v30 = vld [vmem:[%s15489_s0 + $0x2ea] sm:$0xff] }
 0x269   : > { %v2275_v63 = vadd.f32 %v2169_v62, %v1752_v57  ;;  %v11026_v62 = vld [vmem:[%s15489_s0 + $0x320] sm:$0xff] }
 0x26b   : > { %v2797_v4 = vadd.f32 %v2691_v0, %v2275_v63  ;;  %v1381_v0 = vld [vmem:[%s15489_s0 + $0x2f2] sm:$0xff] }
 0x26c   : > { %v1126_v46 = vpop.f32.mrf.mxu1  ;;  %v2693_v11 = vpop.f32.mrf.mxu0 }
 0x26d   : > { %v1231_v7 = vadd.f32 %v1126_v46, %v901_v1  ;;  %v1648_v9 = vpop.f32.mrf.mxu2  ;;  %2861 = vst [vmem:[#allocation3 + $0x40] sm:$0xff] %v2797_v4  ;;  %v2171_v18 = vpop.f32.mrf.mxu3  ;;  %v2003_v1 = vpack.c.bf16 %v11026_v62, %v11025_v60  ;;  %v1479_v4 = vpack.c.bf16 %v1381_v0, %v1380_v30  ;;  %v11190_v60 = vld [vmem:[%s15489_s0 + $0x22] sm:$0xff] }
 0x26f   : > { %v1753_v12 = vadd.f32 %v1648_v9, %v1231_v7  ;;  %v860_v7 = vld [vmem:[%s15489_s0 + $0x301] sm:$0xff] }
 0x271   : > { %v2276_v15 = vadd.f32 %v2171_v18, %v1753_v12 }
 0x273   : > { %v2798_v6 = vadd.f32 %v2693_v11, %v2276_v15  ;;  %v906_v11 = vld [vmem:[#allocation3 + $0xe8] sm:$0xff] }
 0x274   : > { %2218 = vmatmul.bf16.gmra.mxu3 %v2001_v8  ;;  %v1129_v17 = vpop.f32.mrf.mxu1  ;;  %v2696_v45 = vpop.f32.mrf.mxu0  ;;  %v861_v8 = vld [vmem:[%s15489_s0 + $0x309] sm:$0xff] }
 0x275   : > { %v1232_v50 = vadd.f32 %v1129_v17, %v902_v58  ;;  %v1651_v19 = vpop.f32.mrf.mxu2  ;;  %2862 = vst [vmem:[#allocation3 + $0x1f8] sm:$0xff] %v2798_v6  ;;  %v2174_v61 = vpop.f32.mrf.mxu3  ;;  %v958_v18 = vpack.c.bf16 %v861_v8, %v860_v7  ;;  %v907_v6 = vld [vmem:[#allocation3 + $0x78] sm:$0xff] }
 0x277   : > { %v1754_v21 = vadd.f32 %v1651_v19, %v1232_v50  ;;  %1173 = vmatmul.bf16.gmra.mxu1 %v956_v36  ;;  %2735 = vmatmul.bf16.gmra.mxu0 %v956_v36  ;;  %v1382_v50 = vld [vmem:[%s15489_s0 + $0x302] sm:$0xff]  ;;  %v1383_v36 = vld [vmem:[%s15489_s0 + $0x30a] sm:$0xff] }
 0x278   : > { %1695 = vmatmul.bf16.gmra.mxu2 %v1478_v39  ;;  %v1480_v29 = vpack.c.bf16 %v1383_v36, %v1382_v50 }
 0x279   : > { %v2277_v23 = vadd.f32 %v2174_v61, %v1754_v21  ;;  %v11028_v21 = vld [vmem:[%s15489_s0 + $0x338] sm:$0xff] }
 0x27b   : > { %v2799_v31 = vadd.f32 %v2696_v45, %v2277_v23  ;;  %v11027_v45 = vld [vmem:[%s15489_s0 + $0x330] sm:$0xff] }
 0x27c   : > { %v1131_v24 = vpop.f32.mrf.mxu1  ;;  %v2698_v35 = vpop.f32.mrf.mxu0  ;;  %v2004_v23 = vpack.c.bf16 %v11028_v21, %v11027_v45 }
 0x27d   : > { %v1233_v10 = vadd.f32 %v1131_v24, %v903_v14  ;;  %v1653_v34 = vpop.f32.mrf.mxu2  ;;  %2863 = vst [vmem:[#allocation3 + $0x20] sm:$0xff] %v2799_v31  ;;  %v2176_v16 = vpop.f32.mrf.mxu3 }
 0x27f   : > { %v1755_v37 = vadd.f32 %v1653_v34, %v1233_v10  ;;  %v863_v10 = vld [vmem:[%s15489_s0 + $0x321] sm:$0xff]  ;;  %v908_v34 = vld [vmem:[#allocation3 + $0x70] sm:$0xff] }
 0x280   : > { %v959_v39 = vpack.c.bf16 %v863_v10, %v862_v33 }
 0x281   : > { %v2278_v40 = vadd.f32 %v2176_v16, %v1755_v37 }
 0x283   : > { %v2800_v49 = vadd.f32 %v2698_v35, %v2278_v40 }
 0x284   : > { %2223 = vmatmul.bf16.gmra.mxu3 %v2002_v47  ;;  %v1134_v59 = vpop.f32.mrf.mxu1  ;;  %v2701_v26 = vpop.f32.mrf.mxu0 }
 0x285   : > { %v1234_v52 = vadd.f32 %v1134_v59, %v904_v48  ;;  %v1656_v22 = vpop.f32.mrf.mxu2  ;;  %2864 = vst [vmem:[#allocation3 + $0x128] sm:$0xff] %v2800_v49  ;;  %v2179_v20 = vpop.f32.mrf.mxu3  ;;  %v909_v48 = vld [vmem:[#allocation3 + $0x90] sm:$0xff] }
 0x287   : > { %v1756_v5 = vadd.f32 %v1656_v22, %v1234_v52  ;;  %1178 = vmatmul.bf16.gmra.mxu1 %v957_v54  ;;  %2740 = vmatmul.bf16.gmra.mxu0 %v957_v54  ;;  %v1385_v52 = vld [vmem:[%s15489_s0 + $0x322] sm:$0xff]  ;;  %v11413_v22 = vld [vmem:[%s15489_s0 + $0x31] sm:$0xff] }
 0x288   : > { %1700 = vmatmul.bf16.gmra.mxu2 %v1479_v4  ;;  %v1481_v30 = vpack.c.bf16 %v1385_v52, %v1384_v51 }
 0x289   : > { %v2279_v53 = vadd.f32 %v2179_v20, %v1756_v5  ;;  %v11414_v5 = vld [vmem:[%s15489_s0 + $0x39] sm:$0xff] }
 0x28b   : > { %v2801_v57 = vadd.f32 %v2701_v26, %v2279_v53 }
 0x28c   : > { %v1136_v56 = vpop.f32.mrf.mxu1  ;;  %v2703_v2 = vpop.f32.mrf.mxu0 }
 0x28d   : > { %v1235_v63 = vadd.f32 %v1136_v56, %v905_v55  ;;  %v1658_v46 = vpop.f32.mrf.mxu2  ;;  %2865 = vst [vmem:[#allocation3 + $0x1a0] sm:$0xff] %v2801_v57  ;;  %v2181_v27 = vpop.f32.mrf.mxu3  ;;  %v4062_v55 = vpack.c.bf16 %v11414_v5, %v11413_v22  ;;  %v11189_v57 = vld [vmem:[%s15489_s0 + $0x1a] sm:$0xff] }
 0x28e   : > { %v3017_v4 = vpack.c.bf16 %v11190_v60, %v11189_v57 }
 0x28f   : > { %v1757_v3 = vadd.f32 %v1658_v46, %v1235_v63  ;;  %v11139_v63 = vld [vmem:[%s15489_s0 + $0x331] sm:$0xff] }
 0x291   : > { %v2280_v43 = vadd.f32 %v2181_v27, %v1757_v3 }
 0x293   : > { %v2802_v12 = vadd.f32 %v2703_v2, %v2280_v43  ;;  %v910_v2 = vld [vmem:[#allocation3 + $0x1d8] sm:$0xff] }
 0x294   : > { %2228 = vmatmul.bf16.gmra.mxu3 %v2003_v1  ;;  %v1139_v9 = vpop.f32.mrf.mxu1  ;;  %v2706_v42 = vpop.f32.mrf.mxu0  ;;  %v11140_v1 = vld [vmem:[%s15489_s0 + $0x339] sm:$0xff] }
 0x295   : > { %v1236_v13 = vadd.f32 %v1139_v9, %v906_v11  ;;  %v1661_v15 = vpop.f32.mrf.mxu2  ;;  %2866 = vst [vmem:[#allocation3 + $0x1f0] sm:$0xff] %v2802_v12  ;;  %v2184_v17 = vpop.f32.mrf.mxu3  ;;  %v2526_v43 = vpack.c.bf16 %v11140_v1, %v11139_v63 }
 0x297   : > { %v1758_v38 = vadd.f32 %v1661_v15, %v1236_v13  ;;  %1183 = vmatmul.bf16.gmra.mxu1 %v958_v18  ;;  %2745 = vmatmul.bf16.gmra.mxu0 %v958_v18  ;;  %v911_v13 = vld [vmem:[#allocation3 + $0xd0] sm:$0xff] }
 0x298   : > { %1705 = vmatmul.bf16.gmra.mxu2 %v1480_v29  ;;  %v11301_v15 = vld [vmem:[%s15489_s0 + $0x30] sm:$0xff] }
 0x299   : > { %v2281_v58 = vadd.f32 %v2184_v17, %v1758_v38  ;;  %v11415_v17 = vld [vmem:[%s15489_s0 + $0x49] sm:$0xff] }
 0x29b   : > { %v2803_v19 = vadd.f32 %v2706_v42, %v2281_v58  ;;  %v11302_v42 = vld [vmem:[%s15489_s0 + $0x38] sm:$0xff] }
 0x29c   : > { %v1141_v28 = vpop.f32.mrf.mxu1  ;;  %v2708_v24 = vpop.f32.mrf.mxu0  ;;  %v11416_v58 = vld [vmem:[%s15489_s0 + $0x51] sm:$0xff]  ;;  %v3540_v45 = vpack.c.bf16 %v11302_v42, %v11301_v15 }
 0x29d   : > { %v1237_v61 = vadd.f32 %v1141_v28, %v907_v6  ;;  %v1663_v14 = vpop.f32.mrf.mxu2  ;;  %2867 = vst [vmem:[#allocation3 + $0xe8] sm:$0xff] %v2803_v19  ;;  %v2186_v31 = vpop.f32.mrf.mxu3  ;;  %v4063_v28 = vpack.c.bf16 %v11416_v58, %v11415_v17  ;;  %v11195_v17 = vld [vmem:[%s15489_s0 + $0x62] sm:$0xff]  ;;  %v11196_v58 = vld [vmem:[%s15489_s0 + $0x6a] sm:$0xff] }
 0x29f   : > { %v1759_v25 = vadd.f32 %v1663_v14, %v1237_v61  ;;  %v11192_v14 = vld [vmem:[%s15489_s0 + $0x3a] sm:$0xff] }
 0x2a1   : > { %v2282_v32 = vadd.f32 %v2186_v31, %v1759_v25  ;;  %v912_v25 = vld [vmem:[#allocation3 + $0xb8] sm:$0xff] }
 0x2a3   : > { %v2804_v35 = vadd.f32 %v2708_v24, %v2282_v32 }
 0x2a4   : > { %2233 = vmatmul.bf16.gmra.mxu3 %v2004_v23  ;;  %v1144_v47 = vpop.f32.mrf.mxu1  ;;  %v2711_v40 = vpop.f32.mrf.mxu0  ;;  %v11191_v23 = vld [vmem:[%s15489_s0 + $0x32] sm:$0xff] }
 0x2a5   : > { %v1238_v37 = vadd.f32 %v1144_v47, %v908_v34  ;;  %v1666_v16 = vpop.f32.mrf.mxu2  ;;  %2868 = vst [vmem:[#allocation3 + $0x78] sm:$0xff] %v2804_v35  ;;  %v2189_v44 = vpop.f32.mrf.mxu3  ;;  %v3018_v32 = vpack.c.bf16 %v11192_v14, %v11191_v23 }
 0x2a7   : > { %v1760_v41 = vadd.f32 %v1666_v16, %v1238_v37  ;;  %1188 = vmatmul.bf16.gmra.mxu1 %v959_v39  ;;  %2750 = vmatmul.bf16.gmra.mxu0 %v959_v39  ;;  %v913_v37 = vld [vmem:[#allocation3 + $0x88] sm:$0xff] }
 0x2a8   : > { %1710 = vmatmul.bf16.gmra.mxu2 %v1481_v30  ;;  %v11303_v16 = vld [vmem:[%s15489_s0 + $0x48] sm:$0xff] }
 0x2a9   : > { %v2283_v59 = vadd.f32 %v2189_v44, %v1760_v41  ;;  %v11417_v44 = vld [vmem:[%s15489_s0 + $0x61] sm:$0xff] }
 0x2ab   : > { %v2805_v54 = vadd.f32 %v2711_v40, %v2283_v59  ;;  %v11304_v40 = vld [vmem:[%s15489_s0 + $0x50] sm:$0xff] }
 0x2ac   : > { %v1146_v49 = vpop.f32.mrf.mxu1  ;;  %v2713_v53 = vpop.f32.mrf.mxu0  ;;  %v11418_v59 = vld [vmem:[%s15489_s0 + $0x69] sm:$0xff]  ;;  %v3541_v22 = vpack.c.bf16 %v11304_v40, %v11303_v16 }
 0x2ad   : > { %v1239_v26 = vadd.f32 %v1146_v49, %v909_v48  ;;  %v1668_v20 = vpop.f32.mrf.mxu2  ;;  %2869 = vst [vmem:[#allocation3 + $0x70] sm:$0xff] %v2805_v54  ;;  %v2191_v0 = vpop.f32.mrf.mxu3  ;;  %v4064_v49 = vpack.c.bf16 %v11418_v59, %v11417_v44  ;;  %v11197_v44 = vld [vmem:[%s15489_s0 + $0x7a] sm:$0xff]  ;;  %v11198_v59 = vld [vmem:[%s15489_s0 + $0x82] sm:$0xff] }
 0x2af   : > { %v1761_v56 = vadd.f32 %v1668_v20, %v1239_v26  ;;  %v11193_v20 = vld [vmem:[%s15489_s0 + $0x4a] sm:$0xff] }
 0x2b1   : > { %v2284_v62 = vadd.f32 %v2191_v0, %v1761_v56  ;;  %v914_v56 = vld [vmem:[#allocation3 + $0xa8] sm:$0xff] }
 0x2b3   : > { %v2806_v3 = vadd.f32 %v2713_v53, %v2284_v62  ;;  %v11194_v53 = vld [vmem:[%s15489_s0 + $0x52] sm:$0xff] }
 0x2b4   : > { %4167 = vmatmul.bf16.vlgmr.msra.gmra.mxu3 %v4062_v55  ;;  %v1149_v46 = vpop.f32.mrf.mxu1  ;;  %v2716_v8 = vpop.f32.mrf.mxu0  ;;  %v3019_v57 = vpack.c.bf16 %v11194_v53, %v11193_v20 }
 0x2b5   : > { %v1240_v27 = vadd.f32 %v1149_v46, %v910_v2  ;;  %v1671_v7 = vpop.f32.mrf.mxu2  ;;  %2870 = vst [vmem:[#allocation3 + $0x90] sm:$0xff] %v2806_v3  ;;  %v2194_v11 = vpop.f32.mrf.mxu3  ;;  %v915_v2 = vld [vmem:[#allocation3 + $0x1c8] sm:$0xff] }
 0x2b7   : > { %v1762_v9 = vadd.f32 %v1671_v7, %v1240_v27  ;;  %3122 = vmatmul.bf16.vlgmr.msra.gmra.mxu1 %v3017_v4  ;;  %2755 = vmatmul.bf16.gmra.mxu0 %v2526_v43  ;;  %v11305_v4 = vld [vmem:[%s15489_s0 + $0x60] sm:$0xff]  ;;  %v11306_v27 = vld [vmem:[%s15489_s0 + $0x68] sm:$0xff] }
 0x2b8   : > { %3645 = vmatmul.bf16.vlgmr.msra.gmra.mxu2 %v3540_v45  ;;  %v11419_v7 = vld [vmem:[%s15489_s0 + $0x79] sm:$0xff]  ;;  %v3542_v15 = vpack.c.bf16 %v11306_v27, %v11305_v4 }
 0x2b9   : > { %v2285_v12 = vadd.f32 %v2194_v11, %v1762_v9 }
 0x2bb   : > { %v2807_v38 = vadd.f32 %v2716_v8, %v2285_v12  ;;  %v11420_v8 = vld [vmem:[%s15489_s0 + $0x81] sm:$0xff] }
 0x2bc   : > { %v1151_v18 = vpop.f32.mrf.mxu1  ;;  %v2718_v36 = vpop.f32.mrf.mxu0  ;;  %v4065_v11 = vpack.c.bf16 %v11420_v8, %v11419_v7  ;;  %v11199_v7 = vld [vmem:[%s15489_s0 + $0x92] sm:$0xff]  ;;  %v11200_v8 = vld [vmem:[%s15489_s0 + $0x9a] sm:$0xff] }
 0x2bd   : > { %v1241_v6 = vadd.f32 %v1151_v18, %v911_v13  ;;  %v1673_v50 = vpop.f32.mrf.mxu2  ;;  %2871 = vst [vmem:[#allocation3 + $0x1d8] sm:$0xff] %v2807_v38  ;;  %v2196_v21 = vpop.f32.mrf.mxu3 }
 0x2bf   : > { %v1763_v19 = vadd.f32 %v1673_v50, %v1241_v6 }
 0x2c1   : > { %v2286_v61 = vadd.f32 %v2196_v21, %v1763_v19  ;;  %v3020_v19 = vpack.c.bf16 %v11196_v58, %v11195_v17 }
 0x2c3   : > { %v2808_v29 = vadd.f32 %v2718_v36, %v2286_v61 }
 0x2c4   : > { %4172 = vmatmul.bf16.gmra.mxu3 %v4063_v28  ;;  %v1154_v24 = vpop.f32.mrf.mxu1  ;;  %v2721_v10 = vpop.f32.mrf.mxu0  ;;  %v916_v28 = vld [vmem:[#allocation3 + $0x170] sm:$0xff] }
 0x2c5   : > { %v1242_v31 = vadd.f32 %v1154_v24, %v912_v25  ;;  %v1676_v33 = vpop.f32.mrf.mxu2  ;;  %2872 = vst [vmem:[#allocation3 + $0xd0] sm:$0xff] %v2808_v29  ;;  %v2199_v34 = vpop.f32.mrf.mxu3  ;;  %v917_v24 = vld [vmem:[#allocation3 + $0x178] sm:$0xff] }
 0x2c6   : > { %v11307_v29 = vld [vmem:[%s15489_s0 + $0x78] sm:$0xff] }
 0x2c7   : > { %v1764_v47 = vadd.f32 %v1676_v33, %v1242_v31  ;;  %3127 = vmatmul.bf16.gmra.mxu1 %v3018_v32  ;;  %4689 = vmatmul.bf16.vlgmr.msra.gmra.mxu0 %v3018_v32  ;;  %v11308_v31 = vld [vmem:[%s15489_s0 + $0x80] sm:$0xff]  ;;  %v11421_v33 = vld [vmem:[%s15489_s0 + $0x91] sm:$0xff] }
 0x2c8   : > { %3650 = vmatmul.bf16.gmra.mxu2 %v3541_v22  ;;  %v3543_v16 = vpack.c.bf16 %v11308_v31, %v11307_v29 }
 0x2c9   : > { %v2287_v35 = vadd.f32 %v2199_v34, %v1764_v47 }
 0x2cb   : > { %v2809_v41 = vadd.f32 %v2721_v10, %v2287_v35  ;;  %v11422_v10 = vld [vmem:[%s15489_s0 + $0x99] sm:$0xff] }
 0x2cc   : > { %v1156_v39 = vpop.f32.mrf.mxu1  ;;  %v2723_v52 = vpop.f32.mrf.mxu0  ;;  %v4066_v34 = vpack.c.bf16 %v11422_v10, %v11421_v33  ;;  %v11201_v33 = vld [vmem:[%s15489_s0 + $0xaa] sm:$0xff]  ;;  %v11202_v10 = vld [vmem:[%s15489_s0 + $0xb2] sm:$0xff] }
 0x2cd   : > { %v1243_v48 = vadd.f32 %v1156_v39, %v913_v37  ;;  %v1678_v51 = vpop.f32.mrf.mxu2  ;;  %2873 = vst [vmem:[#allocation3 + $0xb8] sm:$0xff] %v2809_v41  ;;  %v2201_v26 = vpop.f32.mrf.mxu3 }
 0x2cf   : > { %v1765_v54 = vadd.f32 %v1678_v51, %v1243_v48 }
 0x2d1   : > { %v2288_v5 = vadd.f32 %v2201_v26, %v1765_v54  ;;  %v3021_v54 = vpack.c.bf16 %v11198_v59, %v11197_v44 }
 0x2d3   : > { %v2810_v30 = vadd.f32 %v2723_v52, %v2288_v5 }
 0x2d4   : > { %4177 = vmatmul.bf16.gmra.mxu3 %v4064_v49  ;;  %v1159_v55 = vpop.f32.mrf.mxu1  ;;  %v2726_v62 = vpop.f32.mrf.mxu0  ;;  %v918_v49 = vld [vmem:[#allocation3 + $0x68] sm:$0xff] }
 0x2d5   : > { %v1244_v0 = vadd.f32 %v1159_v55, %v914_v56  ;;  %v1681_v60 = vpop.f32.mrf.mxu2  ;;  %2874 = vst [vmem:[#allocation3 + $0x88] sm:$0xff] %v2810_v30  ;;  %v2204_v1 = vpop.f32.mrf.mxu3  ;;  %v919_v55 = vld [vmem:[#allocation3 + $0x190] sm:$0xff] }
 0x2d6   : > { %v11309_v30 = vld [vmem:[%s15489_s0 + $0x90] sm:$0xff] }
 0x2d7   : > { %v1766_v63 = vadd.f32 %v1681_v60, %v1244_v0  ;;  %3132 = vmatmul.bf16.gmra.mxu1 %v3019_v57  ;;  %4694 = vmatmul.bf16.gmra.mxu0 %v3019_v57  ;;  %v11310_v0 = vld [vmem:[%s15489_s0 + $0x98] sm:$0xff]  ;;  %v11423_v60 = vld [vmem:[%s15489_s0 + $0xa9] sm:$0xff] }
 0x2d8   : > { %3655 = vmatmul.bf16.gmra.mxu2 %v3542_v15  ;;  %v3544_v4 = vpack.c.bf16 %v11310_v0, %v11309_v30 }
 0x2d9   : > { %v2289_v46 = vadd.f32 %v2204_v1, %v1766_v63 }
 0x2db   : > { %v2811_v43 = vadd.f32 %v2726_v62, %v2289_v46  ;;  %v11424_v62 = vld [vmem:[%s15489_s0 + $0xb1] sm:$0xff] }
 0x2dc   : > { %v1161_v3 = vpop.f32.mrf.mxu1  ;;  %v2728_v13 = vpop.f32.mrf.mxu0  ;;  %v4067_v1 = vpack.c.bf16 %v11424_v62, %v11423_v60  ;;  %v11203_v60 = vld [vmem:[%s15489_s0 + $0xc2] sm:$0xff]  ;;  %v11204_v62 = vld [vmem:[%s15489_s0 + $0xca] sm:$0xff] }
 0x2dd   : > { %v1245_v9 = vadd.f32 %v1161_v3, %v915_v2  ;;  %v1683_v12 = vpop.f32.mrf.mxu2  ;;  %2875 = vst [vmem:[#allocation3 + $0xa8] sm:$0xff] %v2811_v43  ;;  %v2206_v42 = vpop.f32.mrf.mxu3 }
 0x2df   : > { %v1767_v18 = vadd.f32 %v1683_v12, %v1245_v9 }
 0x2e1   : > { %v2290_v38 = vadd.f32 %v2206_v42, %v1767_v18  ;;  %v3022_v18 = vpack.c.bf16 %v11200_v8, %v11199_v7 }
 0x2e3   : > { %v2812_v50 = vadd.f32 %v2728_v13, %v2290_v38 }
 0x2e4   : > { %4182 = vmatmul.bf16.gmra.mxu3 %v4065_v11  ;;  %v1164_v6 = vpop.f32.mrf.mxu1  ;;  %v2731_v21 = vpop.f32.mrf.mxu0  ;;  %v920_v11 = vld [vmem:[#allocation3 + $0x198] sm:$0xff] }
 0x2e5   : > { %v1246_v36 = vadd.f32 %v1164_v6, %v916_v28  ;;  %v1686_v45 = vpop.f32.mrf.mxu2  ;;  %2876 = vst [vmem:[#allocation3 + $0x1c8] sm:$0xff] %v2812_v50  ;;  %v2209_v23 = vpop.f32.mrf.mxu3  ;;  %v921_v6 = vld [vmem:[#allocation3 + $0x38] sm:$0xff]  ;;  %v11311_v50 = vld [vmem:[%s15489_s0 + $0xa8] sm:$0xff] }
 0x2e7   : > { %v1768_v61 = vadd.f32 %v1686_v45, %v1246_v36  ;;  %3137 = vmatmul.bf16.gmra.mxu1 %v3020_v19  ;;  %4699 = vmatmul.bf16.gmra.mxu0 %v3020_v19  ;;  %v11312_v36 = vld [vmem:[%s15489_s0 + $0xb0] sm:$0xff]  ;;  %v11425_v45 = vld [vmem:[%s15489_s0 + $0xc1] sm:$0xff] }
 0x2e8   : > { %3660 = vmatmul.bf16.gmra.mxu2 %v3543_v16  ;;  %v3545_v29 = vpack.c.bf16 %v11312_v36, %v11311_v50 }
 0x2e9   : > { %v2291_v14 = vadd.f32 %v2209_v23, %v1768_v61 }
 0x2eb   : > { %v2813_v32 = vadd.f32 %v2731_v21, %v2291_v14  ;;  %v11426_v21 = vld [vmem:[%s15489_s0 + $0xc9] sm:$0xff] }
 0x2ec   : > { %v1166_v25 = vpop.f32.mrf.mxu1  ;;  %v2733_v37 = vpop.f32.mrf.mxu0  ;;  %v4068_v23 = vpack.c.bf16 %v11426_v21, %v11425_v45  ;;  %v11205_v45 = vld [vmem:[%s15489_s0 + $0xda] sm:$0xff]  ;;  %v11206_v21 = vld [vmem:[%s15489_s0 + $0xe2] sm:$0xff] }
 0x2ed   : > { %v1247_v47 = vadd.f32 %v1166_v25, %v917_v24  ;;  %v1688_v35 = vpop.f32.mrf.mxu2  ;;  %2877 = vst [vmem:[#allocation3 + $0x170] sm:$0xff] %v2813_v32  ;;  %v2211_v40 = vpop.f32.mrf.mxu3 }
 0x2ef   : > { %v1769_v39 = vadd.f32 %v1688_v35, %v1247_v47 }
 0x2f1   : > { %v2292_v41 = vadd.f32 %v2211_v40, %v1769_v39  ;;  %v3023_v39 = vpack.c.bf16 %v11202_v10, %v11201_v33 }
 0x2f3   : > { %v2814_v51 = vadd.f32 %v2733_v37, %v2292_v41 }
 0x2f4   : > { %4187 = vmatmul.bf16.gmra.mxu3 %v4066_v34  ;;  %v1169_v48 = vpop.f32.mrf.mxu1  ;;  %v2736_v26 = vpop.f32.mrf.mxu0  ;;  %v922_v34 = vld [vmem:[#allocation3 + $0xc0] sm:$0xff] }
 0x2f5   : > { %v1248_v52 = vadd.f32 %v1169_v48, %v918_v49  ;;  %v1691_v22 = vpop.f32.mrf.mxu2  ;;  %2878 = vst [vmem:[#allocation3 + $0x178] sm:$0xff] %v2814_v51  ;;  %v2214_v20 = vpop.f32.mrf.mxu3  ;;  %v923_v48 = vld [vmem:[#allocation3 + $0x1c0] sm:$0xff] }
 0x2f6   : > { %v11313_v51 = vld [vmem:[%s15489_s0 + $0xc0] sm:$0xff] }
 0x2f7   : > { %v1770_v5 = vadd.f32 %v1691_v22, %v1248_v52  ;;  %3142 = vmatmul.bf16.gmra.mxu1 %v3021_v54  ;;  %4704 = vmatmul.bf16.gmra.mxu0 %v3021_v54  ;;  %v11314_v52 = vld [vmem:[%s15489_s0 + $0xc8] sm:$0xff]  ;;  %v11427_v22 = vld [vmem:[%s15489_s0 + $0xd9] sm:$0xff] }
 0x2f8   : > { %3665 = vmatmul.bf16.gmra.mxu2 %v3544_v4  ;;  %v3546_v30 = vpack.c.bf16 %v11314_v52, %v11313_v51 }
 0x2f9   : > { %v2293_v53 = vadd.f32 %v2214_v20, %v1770_v5 }
 0x2fb   : > { %v2815_v57 = vadd.f32 %v2736_v26, %v2293_v53  ;;  %v11428_v26 = vld [vmem:[%s15489_s0 + $0xe1] sm:$0xff] }
 0x2fc   : > { %v1171_v56 = vpop.f32.mrf.mxu1  ;;  %v2738_v2 = vpop.f32.mrf.mxu0  ;;  %v4069_v20 = vpack.c.bf16 %v11428_v26, %v11427_v22  ;;  %v11207_v22 = vld [vmem:[%s15489_s0 + $0xf2] sm:$0xff]  ;;  %v11208_v26 = vld [vmem:[%s15489_s0 + $0xfa] sm:$0xff] }
 0x2fd   : > { %v1249_v63 = vadd.f32 %v1171_v56, %v919_v55  ;;  %v1693_v46 = vpop.f32.mrf.mxu2  ;;  %2879 = vst [vmem:[#allocation3 + $0x68] sm:$0xff] %v2815_v57  ;;  %v2216_v27 = vpop.f32.mrf.mxu3 }
 0x2ff   : > { %v1771_v3 = vadd.f32 %v1693_v46, %v1249_v63 }
 0x301   : > { %v2294_v43 = vadd.f32 %v2216_v27, %v1771_v3  ;;  %v3024_v3 = vpack.c.bf16 %v11204_v62, %v11203_v60 }
 0x303   : > { %v2816_v12 = vadd.f32 %v2738_v2, %v2294_v43 }
 0x304   : > { %4192 = vmatmul.bf16.gmra.mxu3 %v4067_v1  ;;  %v1174_v9 = vpop.f32.mrf.mxu1  ;;  %v2741_v42 = vpop.f32.mrf.mxu0  ;;  %v924_v1 = vld [vmem:[#allocation3 + $0x158] sm:$0xff] }
 0x305   : > { %v1250_v13 = vadd.f32 %v1174_v9, %v920_v11  ;;  %v1696_v15 = vpop.f32.mrf.mxu2  ;;  %2880 = vst [vmem:[#allocation3 + $0x190] sm:$0xff] %v2816_v12  ;;  %v2219_v17 = vpop.f32.mrf.mxu3  ;;  %v925_v9 = vld [vmem:[#allocation3 + $0x10] sm:$0xff]  ;;  %v11315_v12 = vld [vmem:[%s15489_s0 + $0xd8] sm:$0xff] }
 0x307   : > { %v1772_v38 = vadd.f32 %v1696_v15, %v1250_v13  ;;  %3147 = vmatmul.bf16.gmra.mxu1 %v3022_v18  ;;  %4709 = vmatmul.bf16.gmra.mxu0 %v3022_v18  ;;  %v11316_v13 = vld [vmem:[%s15489_s0 + $0xe0] sm:$0xff]  ;;  %v11429_v15 = vld [vmem:[%s15489_s0 + $0xf1] sm:$0xff] }
 0x308   : > { %3670 = vmatmul.bf16.gmra.mxu2 %v3545_v29  ;;  %v3547_v50 = vpack.c.bf16 %v11316_v13, %v11315_v12 }
 0x309   : > { %v2295_v58 = vadd.f32 %v2219_v17, %v1772_v38 }
 0x30b   : > { %v2817_v19 = vadd.f32 %v2741_v42, %v2295_v58  ;;  %v11430_v42 = vld [vmem:[%s15489_s0 + $0xf9] sm:$0xff] }
 0x30c   : > { %v1176_v28 = vpop.f32.mrf.mxu1  ;;  %v2743_v24 = vpop.f32.mrf.mxu0  ;;  %v4070_v17 = vpack.c.bf16 %v11430_v42, %v11429_v15  ;;  %v11209_v15 = vld [vmem:[%s15489_s0 + $0x10a] sm:$0xff]  ;;  %v11210_v42 = vld [vmem:[%s15489_s0 + $0x112] sm:$0xff] }
 0x30d   : > { %v1251_v61 = vadd.f32 %v1176_v28, %v921_v6  ;;  %v1698_v14 = vpop.f32.mrf.mxu2  ;;  %2881 = vst [vmem:[#allocation3 + $0x198] sm:$0xff] %v2817_v19  ;;  %v2221_v31 = vpop.f32.mrf.mxu3 }
 0x30f   : > { %v1773_v25 = vadd.f32 %v1698_v14, %v1251_v61 }
 0x311   : > { %v2296_v32 = vadd.f32 %v2221_v31, %v1773_v25  ;;  %v3025_v25 = vpack.c.bf16 %v11206_v21, %v11205_v45 }
 0x313   : > { %v2818_v35 = vadd.f32 %v2743_v24, %v2296_v32 }
 0x314   : > { %4197 = vmatmul.bf16.gmra.mxu3 %v4068_v23  ;;  %v1179_v47 = vpop.f32.mrf.mxu1  ;;  %v2746_v40 = vpop.f32.mrf.mxu0  ;;  %v926_v23 = vld [vmem:[#allocation3 + $0x58] sm:$0xff] }
 0x315   : > { %v1252_v37 = vadd.f32 %v1179_v47, %v922_v34  ;;  %v1701_v16 = vpop.f32.mrf.mxu2  ;;  %2882 = vst [vmem:[#allocation3 + $0x38] sm:$0xff] %v2818_v35  ;;  %v2224_v44 = vpop.f32.mrf.mxu3  ;;  %v927_v47 = vld [vmem:[#allocation3 + $0xa0] sm:$0xff]  ;;  %v11317_v35 = vld [vmem:[%s15489_s0 + $0xf0] sm:$0xff] }
 0x317   : > { %v1774_v41 = vadd.f32 %v1701_v16, %v1252_v37  ;;  %3152 = vmatmul.bf16.gmra.mxu1 %v3023_v39  ;;  %4714 = vmatmul.bf16.gmra.mxu0 %v3023_v39  ;;  %v11318_v37 = vld [vmem:[%s15489_s0 + $0xf8] sm:$0xff]  ;;  %v11431_v16 = vld [vmem:[%s15489_s0 + $0x109] sm:$0xff] }
 0x318   : > { %3675 = vmatmul.bf16.gmra.mxu2 %v3546_v30  ;;  %v3548_v51 = vpack.c.bf16 %v11318_v37, %v11317_v35 }
 0x319   : > { %v2297_v59 = vadd.f32 %v2224_v44, %v1774_v41 }
 0x31b   : > { %v2819_v54 = vadd.f32 %v2746_v40, %v2297_v59  ;;  %v11432_v40 = vld [vmem:[%s15489_s0 + $0x111] sm:$0xff] }
 0x31c   : > { %v1181_v49 = vpop.f32.mrf.mxu1  ;;  %v2748_v55 = vpop.f32.mrf.mxu0  ;;  %v4071_v44 = vpack.c.bf16 %v11432_v40, %v11431_v16  ;;  %v11211_v16 = vld [vmem:[%s15489_s0 + $0x122] sm:$0xff]  ;;  %v11212_v40 = vld [vmem:[%s15489_s0 + $0x12a] sm:$0xff] }
 0x31d   : > { %v1253_v5 = vadd.f32 %v1181_v49, %v923_v48  ;;  %v1703_v53 = vpop.f32.mrf.mxu2  ;;  %2883 = vst [vmem:[#allocation3 + $0xc0] sm:$0xff] %v2819_v54  ;;  %v2226_v0 = vpop.f32.mrf.mxu3 }
 0x31f   : > { %v1775_v56 = vadd.f32 %v1703_v53, %v1253_v5 }
 0x321   : > { %v2298_v57 = vadd.f32 %v2226_v0, %v1775_v56  ;;  %v3026_v56 = vpack.c.bf16 %v11208_v26, %v11207_v22 }
 0x323   : > { %v2820_v46 = vadd.f32 %v2748_v55, %v2298_v57 }
 0x324   : > { %4202 = vmatmul.bf16.gmra.mxu3 %v4069_v20  ;;  %v1184_v63 = vpop.f32.mrf.mxu1  ;;  %v2751_v27 = vpop.f32.mrf.mxu0  ;;  %v2953_v20 = vld [vmem:[#allocation3 + $0xb0] sm:$0xff] }
 0x325   : > { %v1254_v2 = vadd.f32 %v1184_v63, %v924_v1  ;;  %v1706_v4 = vpop.f32.mrf.mxu2  ;;  %2884 = vst [vmem:[#allocation3 + $0x1c0] sm:$0xff] %v2820_v46  ;;  %v2229_v7 = vpop.f32.mrf.mxu3  ;;  %v2954_v63 = vld [vmem:[#allocation3 + $0x1b0] sm:$0xff]  ;;  %v11319_v46 = vld [vmem:[%s15489_s0 + $0x108] sm:$0xff] }
 0x327   : > { %v1776_v43 = vadd.f32 %v1706_v4, %v1254_v2  ;;  %3157 = vmatmul.bf16.gmra.mxu1 %v3024_v3  ;;  %4719 = vmatmul.bf16.gmra.mxu0 %v3024_v3  ;;  %v11320_v2 = vld [vmem:[%s15489_s0 + $0x110] sm:$0xff]  ;;  %v11433_v4 = vld [vmem:[%s15489_s0 + $0x121] sm:$0xff] }
 0x328   : > { %3680 = vmatmul.bf16.gmra.mxu2 %v3547_v50  ;;  %v3549_v12 = vpack.c.bf16 %v11320_v2, %v11319_v46 }
 0x329   : > { %v2299_v8 = vadd.f32 %v2229_v7, %v1776_v43 }
 0x32b   : > { %v2821_v18 = vadd.f32 %v2751_v27, %v2299_v8  ;;  %v11434_v27 = vld [vmem:[%s15489_s0 + $0x129] sm:$0xff] }
 0x32c   : > { %v1186_v11 = vpop.f32.mrf.mxu1  ;;  %v2753_v6 = vpop.f32.mrf.mxu0  ;;  %v4072_v7 = vpack.c.bf16 %v11434_v27, %v11433_v4  ;;  %v11213_v4 = vld [vmem:[%s15489_s0 + $0x13a] sm:$0xff]  ;;  %v11214_v27 = vld [vmem:[%s15489_s0 + $0x142] sm:$0xff] }
 0x32d   : > { %v1255_v38 = vadd.f32 %v1186_v11, %v925_v9  ;;  %v1708_v58 = vpop.f32.mrf.mxu2  ;;  %2885 = vst [vmem:[#allocation3 + $0x158] sm:$0xff] %v2821_v18  ;;  %v2231_v36 = vpop.f32.mrf.mxu3 }
 0x32f   : > { %v1777_v28 = vadd.f32 %v1708_v58, %v1255_v38 }
 0x331   : > { %v2300_v19 = vadd.f32 %v2231_v36, %v1777_v28  ;;  %v3027_v28 = vpack.c.bf16 %v11210_v42, %v11209_v15 }
 0x333   : > { %v2822_v14 = vadd.f32 %v2753_v6, %v2300_v19 }
 0x334   : > { %4207 = vmatmul.bf16.gmra.mxu3 %v4070_v17  ;;  %v1189_v61 = vpop.f32.mrf.mxu1  ;;  %v2756_v31 = vpop.f32.mrf.mxu0  ;;  %v2955_v17 = vld [vmem:[#allocation3 + $0xd8] sm:$0xff] }
 0x335   : > { %v1256_v24 = vadd.f32 %v1189_v61, %v926_v23  ;;  %v1711_v29 = vpop.f32.mrf.mxu2  ;;  %2886 = vst [vmem:[#allocation3 + $0x10] sm:$0xff] %v2822_v14  ;;  %v2234_v33 = vpop.f32.mrf.mxu3  ;;  %v2956_v61 = vld [vmem:[#allocation3 + $0x18] sm:$0xff]  ;;  %v11321_v14 = vld [vmem:[%s15489_s0 + $0x120] sm:$0xff] }
 0x337   : > { %v1778_v32 = vadd.f32 %v1711_v29, %v1256_v24  ;;  %3162 = vmatmul.bf16.gmra.mxu1 %v3025_v25  ;;  %4724 = vmatmul.bf16.gmra.mxu0 %v3025_v25  ;;  %v11322_v24 = vld [vmem:[%s15489_s0 + $0x128] sm:$0xff]  ;;  %v11435_v29 = vld [vmem:[%s15489_s0 + $0x139] sm:$0xff] }
 0x338   : > { %3685 = vmatmul.bf16.gmra.mxu2 %v3548_v51  ;;  %v3550_v35 = vpack.c.bf16 %v11322_v24, %v11321_v14 }
 0x339   : > { %v2301_v10 = vadd.f32 %v2234_v33, %v1778_v32 }
 0x33b   : > { %v2823_v39 = vadd.f32 %v2756_v31, %v2301_v10  ;;  %v11436_v31 = vld [vmem:[%s15489_s0 + $0x141] sm:$0xff] }
 0x33c   : > { %v1191_v34 = vpop.f32.mrf.mxu1  ;;  %v2758_v48 = vpop.f32.mrf.mxu0  ;;  %v4073_v33 = vpack.c.bf16 %v11436_v31, %v11435_v29  ;;  %v11215_v29 = vld [vmem:[%s15489_s0 + $0x152] sm:$0xff]  ;;  %v11216_v31 = vld [vmem:[%s15489_s0 + $0x15a] sm:$0xff] }
 0x33d   : > { %v1257_v41 = vadd.f32 %v1191_v34, %v927_v47  ;;  %v1713_v59 = vpop.f32.mrf.mxu2  ;;  %2887 = vst [vmem:[#allocation3 + $0x58] sm:$0xff] %v2823_v39  ;;  %v2236_v52 = vpop.f32.mrf.mxu3 }
 0x33f   : > { %v1779_v49 = vadd.f32 %v1713_v59, %v1257_v41 }
 0x341   : > { %v2302_v54 = vadd.f32 %v2236_v52, %v1779_v49  ;;  %v3028_v49 = vpack.c.bf16 %v11212_v40, %v11211_v16 }
 0x343   : > { %v2824_v53 = vadd.f32 %v2758_v48, %v2302_v54 }
 0x344   : > { %4212 = vmatmul.bf16.gmra.mxu3 %v4071_v44  ;;  %v3123_v5 = vpop.f32.mrf.mxu1  ;;  %v4690_v0 = vpop.f32.mrf.mxu0  ;;  %v2957_v44 = vld [vmem:[#allocation3 + $0x50] sm:$0xff] }
 0x345   : > { %v3283_v55 = vadd.f32 %v3123_v5, %v2953_v20  ;;  %v3646_v30 = vpop.f32.mrf.mxu2  ;;  %2888 = vst [vmem:[#allocation3 + $0xa0] sm:$0xff] %v2824_v53  ;;  %v4168_v60 = vpop.f32.mrf.mxu3  ;;  %v2958_v5 = vld [vmem:[#allocation3 + $0x168] sm:$0xff]  ;;  %v11323_v53 = vld [vmem:[%s15489_s0 + $0x138] sm:$0xff] }
 0x347   : > { %v3806_v57 = vadd.f32 %v3646_v30, %v3283_v55  ;;  %3167 = vmatmul.bf16.gmra.mxu1 %v3026_v56  ;;  %4729 = vmatmul.bf16.gmra.mxu0 %v3026_v56  ;;  %v11324_v55 = vld [vmem:[%s15489_s0 + $0x140] sm:$0xff]  ;;  %v11437_v30 = vld [vmem:[%s15489_s0 + $0x151] sm:$0xff] }
 0x348   : > { %3690 = vmatmul.bf16.gmra.mxu2 %v3549_v12  ;;  %v3551_v46 = vpack.c.bf16 %v11324_v55, %v11323_v53 }
 0x349   : > { %v4328_v62 = vadd.f32 %v4168_v60, %v3806_v57 }
 0x34b   : > { %v4850_v3 = vadd.f32 %v4690_v0, %v4328_v62  ;;  %v11438_v0 = vld [vmem:[%s15489_s0 + $0x159] sm:$0xff] }
 0x34c   : > { %v3125_v1 = vpop.f32.mrf.mxu1  ;;  %v4692_v9 = vpop.f32.mrf.mxu0  ;;  %v4074_v60 = vpack.c.bf16 %v11438_v0, %v11437_v30  ;;  %v11217_v30 = vld [vmem:[%s15489_s0 + $0x16a] sm:$0xff]  ;;  %v11218_v0 = vld [vmem:[%s15489_s0 + $0x172] sm:$0xff] }
 0x34d   : > { %v3284_v43 = vadd.f32 %v3125_v1, %v2954_v63  ;;  %v3648_v8 = vpop.f32.mrf.mxu2  ;;  %4914 = vst [vmem:[#allocation3 + $0xb0] sm:$0xff] %v4850_v3  ;;  %v4170_v13 = vpop.f32.mrf.mxu3 }
 0x34e   : > { %5042 = vst [vmem:[%s15493_s4] sm:$0xff] %v4850_v3 }
 0x34f   : > { %v3807_v11 = vadd.f32 %v3648_v8, %v3284_v43 }
 0x351   : > { %v4329_v18 = vadd.f32 %v4170_v13, %v3807_v11  ;;  %v3029_v11 = vpack.c.bf16 %v11214_v27, %v11213_v4 }
 0x353   : > { %v4851_v58 = vadd.f32 %v4692_v9, %v4329_v18 }
 0x354   : > { %4217 = vmatmul.bf16.gmra.mxu3 %v4072_v7  ;;  %v3128_v38 = vpop.f32.mrf.mxu1  ;;  %v4695_v36 = vpop.f32.mrf.mxu0  ;;  %v2959_v7 = vld [vmem:[#allocation3 + $0x130] sm:$0xff] }
 0x355   : > { %v3285_v6 = vadd.f32 %v3128_v38, %v2955_v17  ;;  %v3651_v50 = vpop.f32.mrf.mxu2  ;;  %4915 = vst [vmem:[#allocation3 + $0x1b0] sm:$0xff] %v4851_v58  ;;  %v4173_v45 = vpop.f32.mrf.mxu3  ;;  %v2960_v38 = vld [vmem:[#allocation3 + $0x48] sm:$0xff] }
 0x356   : > { %5043 = vst [vmem:[%s15493_s4 + $0x8] sm:$0xff] %v4851_v58  ;;  %v11325_v58 = vld [vmem:[%s15489_s0 + $0x150] sm:$0xff] }
 0x357   : > { %v3808_v19 = vadd.f32 %v3651_v50, %v3285_v6  ;;  %3172 = vmatmul.bf16.gmra.mxu1 %v3027_v28  ;;  %4734 = vmatmul.bf16.gmra.mxu0 %v3027_v28  ;;  %v11326_v6 = vld [vmem:[%s15489_s0 + $0x158] sm:$0xff]  ;;  %v11439_v50 = vld [vmem:[%s15489_s0 + $0x169] sm:$0xff] }
 0x358   : > { %3695 = vmatmul.bf16.gmra.mxu2 %v3550_v35  ;;  %v3552_v14 = vpack.c.bf16 %v11326_v6, %v11325_v58 }
 0x359   : > { %v4330_v21 = vadd.f32 %v4173_v45, %v3808_v19 }
 0x35b   : > { %v4852_v25 = vadd.f32 %v4695_v36, %v4330_v21  ;;  %v11440_v36 = vld [vmem:[%s15489_s0 + $0x171] sm:$0xff] }
 0x35c   : > { %v3130_v23 = vpop.f32.mrf.mxu1  ;;  %v4697_v47 = vpop.f32.mrf.mxu0  ;;  %v4075_v45 = vpack.c.bf16 %v11440_v36, %v11439_v50  ;;  %v11219_v50 = vld [vmem:[%s15489_s0 + $0x182] sm:$0xff]  ;;  %v11220_v36 = vld [vmem:[%s15489_s0 + $0x18a] sm:$0xff] }
 0x35d   : > { %v3286_v32 = vadd.f32 %v3130_v23, %v2956_v61  ;;  %v3653_v10 = vpop.f32.mrf.mxu2  ;;  %4916 = vst [vmem:[#allocation3 + $0xd8] sm:$0xff] %v4852_v25  ;;  %v4175_v37 = vpop.f32.mrf.mxu3 }
 0x35e   : > { %5044 = vst [vmem:[%s15493_s4 + $0x10] sm:$0xff] %v4852_v25 }
 0x35f   : > { %v3809_v34 = vadd.f32 %v3653_v10, %v3286_v32 }
 0x361   : > { %v4331_v39 = vadd.f32 %v4175_v37, %v3809_v34  ;;  %v3030_v34 = vpack.c.bf16 %v11216_v31, %v11215_v29 }
 0x363   : > { %v4853_v59 = vadd.f32 %v4697_v47, %v4331_v39 }
 0x364   : > { %4222 = vmatmul.bf16.gmra.mxu3 %v4073_v33  ;;  %v3133_v41 = vpop.f32.mrf.mxu1  ;;  %v4700_v52 = vpop.f32.mrf.mxu0  ;;  %v2961_v33 = vld [vmem:[#allocation3 + $0x180] sm:$0xff] }
 0x365   : > { %v3287_v48 = vadd.f32 %v3133_v41, %v2957_v44  ;;  %v3656_v51 = vpop.f32.mrf.mxu2  ;;  %4917 = vst [vmem:[#allocation3 + $0x18] sm:$0xff] %v4853_v59  ;;  %v4178_v22 = vpop.f32.mrf.mxu3  ;;  %v2962_v41 = vld [vmem:[#allocation3 + $0x110] sm:$0xff] }
 0x366   : > { %5045 = vst [vmem:[%s15493_s4 + $0x18] sm:$0xff] %v4853_v59  ;;  %v11327_v59 = vld [vmem:[%s15489_s0 + $0x168] sm:$0xff] }
 0x367   : > { %v3810_v54 = vadd.f32 %v3656_v51, %v3287_v48  ;;  %3177 = vmatmul.bf16.gmra.mxu1 %v3028_v49  ;;  %4739 = vmatmul.bf16.gmra.mxu0 %v3028_v49  ;;  %v11328_v48 = vld [vmem:[%s15489_s0 + $0x170] sm:$0xff]  ;;  %v11441_v51 = vld [vmem:[%s15489_s0 + $0x181] sm:$0xff] }
 0x368   : > { %3700 = vmatmul.bf16.gmra.mxu2 %v3551_v46  ;;  %v3553_v53 = vpack.c.bf16 %v11328_v48, %v11327_v59 }
 0x369   : > { %v4332_v26 = vadd.f32 %v4178_v22, %v3810_v54 }
 0x36b   : > { %v4854_v56 = vadd.f32 %v4700_v52, %v4332_v26  ;;  %v11442_v52 = vld [vmem:[%s15489_s0 + $0x189] sm:$0xff] }
 0x36c   : > { %v3135_v20 = vpop.f32.mrf.mxu1  ;;  %v4702_v63 = vpop.f32.mrf.mxu0  ;;  %v4076_v22 = vpack.c.bf16 %v11442_v52, %v11441_v51  ;;  %v11222_v51 = vld [vmem:[%s15489_s0 + $0x1d2] sm:$0xff] }
 0x36d   : > { %v3288_v57 = vadd.f32 %v3135_v20, %v2958_v5  ;;  %v3658_v62 = vpop.f32.mrf.mxu2  ;;  %4918 = vst [vmem:[#allocation3 + $0x50] sm:$0xff] %v4854_v56  ;;  %v4180_v2 = vpop.f32.mrf.mxu3 }
 0x36e   : > { %5046 = vst [vmem:[%s15493_s4 + $0x20] sm:$0xff] %v4854_v56 }
 0x36f   : > { %v3811_v1 = vadd.f32 %v3658_v62, %v3288_v57 }
 0x371   : > { %v4333_v3 = vadd.f32 %v4180_v2, %v3811_v1  ;;  %v3031_v1 = vpack.c.bf16 %v11218_v0, %v11217_v30 }
 0x373   : > { %v4855_v8 = vadd.f32 %v4702_v63, %v4333_v3 }
 0x374   : > { %4227 = vmatmul.bf16.gmra.mxu3 %v4074_v60  ;;  %v3138_v43 = vpop.f32.mrf.mxu1  ;;  %v4705_v13 = vpop.f32.mrf.mxu0  ;;  %v2963_v60 = vld [vmem:[#allocation3 + $0x118] sm:$0xff] }
 0x375   : > { %v3289_v9 = vadd.f32 %v3138_v43, %v2959_v7  ;;  %v3661_v12 = vpop.f32.mrf.mxu2  ;;  %4919 = vst [vmem:[#allocation3 + $0x168] sm:$0xff] %v4855_v8  ;;  %v4183_v15 = vpop.f32.mrf.mxu3  ;;  %v2964_v43 = vld [vmem:[#allocation3 + $0x98] sm:$0xff] }
 0x376   : > { %5047 = vst [vmem:[%s15493_s4 + $0x28] sm:$0xff] %v4855_v8  ;;  %v11329_v8 = vld [vmem:[%s15489_s0 + $0x180] sm:$0xff] }
 0x377   : > { %v3812_v18 = vadd.f32 %v3661_v12, %v3289_v9  ;;  %3182 = vmatmul.bf16.gmra.mxu1 %v3029_v11  ;;  %4744 = vmatmul.bf16.gmra.mxu0 %v3029_v11  ;;  %v11330_v9 = vld [vmem:[%s15489_s0 + $0x188] sm:$0xff]  ;;  %v11443_v12 = vld [vmem:[%s15489_s0 + $0x199] sm:$0xff] }
 0x378   : > { %3705 = vmatmul.bf16.gmra.mxu2 %v3552_v14  ;;  %v3554_v58 = vpack.c.bf16 %v11330_v9, %v11329_v8 }
 0x379   : > { %v4334_v42 = vadd.f32 %v4183_v15, %v3812_v18 }
 0x37b   : > { %v4856_v28 = vadd.f32 %v4705_v13, %v4334_v42  ;;  %v11444_v13 = vld [vmem:[%s15489_s0 + $0x1a1] sm:$0xff] }
 0x37c   : > { %v3140_v17 = vpop.f32.mrf.mxu1  ;;  %v4707_v61 = vpop.f32.mrf.mxu0  ;;  %v4077_v15 = vpack.c.bf16 %v11444_v13, %v11443_v12 }
 0x37d   : > { %v3290_v19 = vadd.f32 %v3140_v17, %v2960_v38  ;;  %v3663_v21 = vpop.f32.mrf.mxu2  ;;  %4920 = vst [vmem:[#allocation3 + $0x130] sm:$0xff] %v4856_v28  ;;  %v4185_v24 = vpop.f32.mrf.mxu3 }
 0x37e   : > { %5048 = vst [vmem:[%s15493_s4 + $0x30] sm:$0xff] %v4856_v28 }
 0x37f   : > { %v3813_v23 = vadd.f32 %v3663_v21, %v3290_v19 }
 0x381   : > { %v4335_v25 = vadd.f32 %v4185_v24, %v3813_v23  ;;  %v3032_v23 = vpack.c.bf16 %v11220_v36, %v11219_v50 }
 0x383   : > { %v4857_v10 = vadd.f32 %v4707_v61, %v4335_v25 }
 0x384   : > { %4232 = vmatmul.bf16.gmra.mxu3 %v4075_v45  ;;  %v3143_v32 = vpop.f32.mrf.mxu1  ;;  %v4710_v37 = vpop.f32.mrf.mxu0  ;;  %v2965_v45 = vld [vmem:[#allocation3 + $0x120] sm:$0xff] }
 0x385   : > { %v3291_v47 = vadd.f32 %v3143_v32, %v2961_v33  ;;  %v3666_v35 = vpop.f32.mrf.mxu2  ;;  %4921 = vst [vmem:[#allocation3 + $0x48] sm:$0xff] %v4857_v10  ;;  %v4188_v16 = vpop.f32.mrf.mxu3  ;;  %v2966_v32 = vld [vmem:[#allocation3 + $0x150] sm:$0xff] }
 0x386   : > { %5049 = vst [vmem:[%s15493_s4 + $0x38] sm:$0xff] %v4857_v10  ;;  %v11331_v10 = vld [vmem:[%s15489_s0 + $0x198] sm:$0xff] }
 0x387   : > { %v3814_v39 = vadd.f32 %v3666_v35, %v3291_v47  ;;  %3187 = vmatmul.bf16.gmra.mxu1 %v3030_v34  ;;  %4749 = vmatmul.bf16.gmra.mxu0 %v3030_v34  ;;  %v11332_v47 = vld [vmem:[%s15489_s0 + $0x1a0] sm:$0xff] }
 0x388   : > { %3710 = vmatmul.bf16.gmra.mxu2 %v3553_v53  ;;  %v11445_v35 = vld [vmem:[%s15489_s0 + $0x1e1] sm:$0xff]  ;;  %v3555_v59 = vpack.c.bf16 %v11332_v47, %v11331_v10 }
 0x389   : > { %v4336_v40 = vadd.f32 %v4188_v16, %v3814_v39 }
 0x38b   : > { %v4858_v49 = vadd.f32 %v4710_v37, %v4336_v40  ;;  %v11446_v37 = vld [vmem:[%s15489_s0 + $0x1e9] sm:$0xff] }
 0x38c   : > { %v3145_v44 = vpop.f32.mrf.mxu1  ;;  %v4712_v5 = vpop.f32.mrf.mxu0  ;;  %v4078_v16 = vpack.c.bf16 %v11446_v37, %v11445_v35 }
 0x38d   : > { %v3292_v54 = vadd.f32 %v3145_v44, %v2962_v41  ;;  %v3668_v26 = vpop.f32.mrf.mxu2  ;;  %4922 = vst [vmem:[#allocation3 + $0x180] sm:$0xff] %v4858_v49  ;;  %v4190_v55 = vpop.f32.mrf.mxu3 }
 0x38e   : > { %5050 = vst [vmem:[%s15493_s4 + $0x40] sm:$0xff] %v4858_v49  ;;  %v11221_v49 = vld [vmem:[%s15489_s0 + $0x1ca] sm:$0xff] }
 0x38f   : > { %v3815_v20 = vadd.f32 %v3668_v26, %v3292_v54  ;;  %v11555_v54 = vld [vmem:[%s15489_s0 + $0x19a] sm:$0xff]  ;;  %v3033_v53 = vpack.c.bf16 %v11222_v51, %v11221_v49 }
 0x391   : > { %v4337_v56 = vadd.f32 %v4190_v55, %v3815_v20 }
 0x393   : > { %v4859_v62 = vadd.f32 %v4712_v5, %v4337_v56  ;;  %v2967_v5 = vld [vmem:[#allocation3 + $0x108] sm:$0xff] }
 0x394   : > { %4237 = vmatmul.bf16.gmra.mxu3 %v4076_v22  ;;  %v3148_v57 = vpop.f32.mrf.mxu1  ;;  %v4715_v2 = vpop.f32.mrf.mxu0  ;;  %v11556_v22 = vld [vmem:[%s15489_s0 + $0x1a2] sm:$0xff] }
 0x395   : > { %v3293_v63 = vadd.f32 %v3148_v57, %v2963_v60  ;;  %v3671_v46 = vpop.f32.mrf.mxu2  ;;  %4923 = vst [vmem:[#allocation3 + $0x110] sm:$0xff] %v4859_v62  ;;  %v4193_v4 = vpop.f32.mrf.mxu3  ;;  %v4599_v56 = vpack.c.bf16 %v11556_v22, %v11555_v54 }
 0x396   : > { %5051 = vst [vmem:[%s15493_s4 + $0x48] sm:$0xff] %v4859_v62 }
 0x397   : > { %v3816_v3 = vadd.f32 %v3671_v46, %v3293_v63  ;;  %3192 = vmatmul.bf16.gmra.mxu1 %v3031_v1  ;;  %4754 = vmatmul.bf16.gmra.mxu0 %v3031_v1  ;;  %v2968_v63 = vld [vmem:[#allocation3 + $0x60] sm:$0xff] }
 0x398   : > { %3715 = vmatmul.bf16.gmra.mxu2 %v3554_v58  ;;  %v11333_v46 = vld [vmem:[%s15489_s0 + $0x1e0] sm:$0xff] }
 0x399   : > { %v4338_v27 = vadd.f32 %v4193_v4, %v3816_v3  ;;  %v11447_v4 = vld [vmem:[%s15489_s0 + $0x1f9] sm:$0xff] }
 0x39b   : > { %v4860_v11 = vadd.f32 %v4715_v2, %v4338_v27  ;;  %v11334_v2 = vld [vmem:[%s15489_s0 + $0x1e8] sm:$0xff] }
 0x39c   : > { %v3150_v7 = vpop.f32.mrf.mxu1  ;;  %v4717_v38 = vpop.f32.mrf.mxu0  ;;  %v11448_v27 = vld [vmem:[%s15489_s0 + $0x201] sm:$0xff]  ;;  %v3556_v12 = vpack.c.bf16 %v11334_v2, %v11333_v46 }
 0x39d   : > { %v3294_v18 = vadd.f32 %v3150_v7, %v2964_v43  ;;  %v3673_v42 = vpop.f32.mrf.mxu2  ;;  %4924 = vst [vmem:[#allocation3 + $0x118] sm:$0xff] %v4860_v11  ;;  %v4195_v6 = vpop.f32.mrf.mxu3  ;;  %v4079_v7 = vpack.c.bf16 %v11448_v27, %v11447_v4  ;;  %v11227_v4 = vld [vmem:[%s15489_s0 + $0x212] sm:$0xff]  ;;  %v11228_v27 = vld [vmem:[%s15489_s0 + $0x21a] sm:$0xff] }
 0x39e   : > { %5052 = vst [vmem:[%s15493_s4 + $0x50] sm:$0xff] %v4860_v11 }
 0x39f   : > { %v3817_v17 = vadd.f32 %v3673_v42, %v3294_v18  ;;  %v11224_v42 = vld [vmem:[%s15489_s0 + $0x1ea] sm:$0xff] }
 0x3a1   : > { %v4339_v28 = vadd.f32 %v4195_v6, %v3817_v17  ;;  %v2969_v17 = vld [vmem:[#allocation3 + $0xe0] sm:$0xff] }
 0x3a3   : > { %v4861_v21 = vadd.f32 %v4717_v38, %v4339_v28 }
 0x3a4   : > { %4242 = vmatmul.bf16.gmra.mxu3 %v4077_v15  ;;  %v3153_v19 = vpop.f32.mrf.mxu1  ;;  %v4720_v24 = vpop.f32.mrf.mxu0  ;;  %v11223_v15 = vld [vmem:[%s15489_s0 + $0x1e2] sm:$0xff] }
 0x3a5   : > { %v3295_v61 = vadd.f32 %v3153_v19, %v2965_v45  ;;  %v3676_v14 = vpop.f32.mrf.mxu2  ;;  %4925 = vst [vmem:[#allocation3 + $0x98] sm:$0xff] %v4861_v21  ;;  %v4198_v29 = vpop.f32.mrf.mxu3  ;;  %v3034_v28 = vpack.c.bf16 %v11224_v42, %v11223_v15 }
 0x3a6   : > { %5053 = vst [vmem:[%s15493_s4 + $0x58] sm:$0xff] %v4861_v21 }
 0x3a7   : > { %v3818_v25 = vadd.f32 %v3676_v14, %v3295_v61  ;;  %3197 = vmatmul.bf16.gmra.mxu1 %v3032_v23  ;;  %4759 = vmatmul.bf16.gmra.mxu0 %v3032_v23  ;;  %v2970_v61 = vld [vmem:[#allocation3 + $0x188] sm:$0xff]  ;;  %v11335_v14 = vld [vmem:[%s15489_s0 + $0x1f8] sm:$0xff] }
 0x3a8   : > { %3720 = vmatmul.bf16.gmra.mxu2 %v3555_v59 }
 0x3a9   : > { %v4340_v31 = vadd.f32 %v4198_v29, %v3818_v25  ;;  %v11449_v29 = vld [vmem:[%s15489_s0 + $0x211] sm:$0xff] }
 0x3ab   : > { %v4862_v34 = vadd.f32 %v4720_v24, %v4340_v31  ;;  %v11336_v24 = vld [vmem:[%s15489_s0 + $0x200] sm:$0xff] }
 0x3ac   : > { %v3155_v33 = vpop.f32.mrf.mxu1  ;;  %v4722_v41 = vpop.f32.mrf.mxu0  ;;  %v11450_v31 = vld [vmem:[%s15489_s0 + $0x219] sm:$0xff]  ;;  %v3557_v35 = vpack.c.bf16 %v11336_v24, %v11335_v14 }
 0x3ad   : > { %v3296_v39 = vadd.f32 %v3155_v33, %v2966_v32  ;;  %v3678_v40 = vpop.f32.mrf.mxu2  ;;  %4926 = vst [vmem:[#allocation3 + $0x120] sm:$0xff] %v4862_v34  ;;  %v4200_v48 = vpop.f32.mrf.mxu3  ;;  %v4080_v33 = vpack.c.bf16 %v11450_v31, %v11449_v29  ;;  %v11229_v29 = vld [vmem:[%s15489_s0 + $0x22a] sm:$0xff]  ;;  %v11230_v31 = vld [vmem:[%s15489_s0 + $0x232] sm:$0xff] }
 0x3ae   : > { %5054 = vst [vmem:[%s15493_s4 + $0x60] sm:$0xff] %v4862_v34 }
 0x3af   : > { %v3819_v44 = vadd.f32 %v3678_v40, %v3296_v39  ;;  %v11226_v40 = vld [vmem:[%s15489_s0 + $0x202] sm:$0xff] }
 0x3b1   : > { %v4341_v52 = vadd.f32 %v4200_v48, %v3819_v44  ;;  %v2971_v44 = vld [vmem:[#allocation3 + $0x138] sm:$0xff] }
 0x3b3   : > { %v4863_v20 = vadd.f32 %v4722_v41, %v4341_v52 }
 0x3b4   : > { %4247 = vmatmul.bf16.gmra.mxu3 %v4078_v16  ;;  %v3158_v26 = vpop.f32.mrf.mxu1  ;;  %v4725_v0 = vpop.f32.mrf.mxu0  ;;  %v11225_v16 = vld [vmem:[%s15489_s0 + $0x1fa] sm:$0xff] }
 0x3b5   : > { %v3297_v55 = vadd.f32 %v3158_v26, %v2967_v5  ;;  %v3681_v30 = vpop.f32.mrf.mxu2  ;;  %4927 = vst [vmem:[#allocation3 + $0x150] sm:$0xff] %v4863_v20  ;;  %v4203_v60 = vpop.f32.mrf.mxu3  ;;  %v3035_v49 = vpack.c.bf16 %v11226_v40, %v11225_v16  ;;  %v2972_v5 = vld [vmem:[#allocation3 + $0x140] sm:$0xff] }
 0x3b6   : > { %5055 = vst [vmem:[%s15493_s4 + $0x68] sm:$0xff] %v4863_v20 }
 0x3b7   : > { %v3820_v57 = vadd.f32 %v3681_v30, %v3297_v55  ;;  %3202 = vmatmul.bf16.gmra.mxu1 %v3033_v53  ;;  %4764 = vmatmul.bf16.gmra.mxu0 %v4599_v56  ;;  %v11337_v53 = vld [vmem:[%s15489_s0 + $0x210] sm:$0xff]  ;;  %v11338_v55 = vld [vmem:[%s15489_s0 + $0x218] sm:$0xff] }
 0x3b8   : > { %3725 = vmatmul.bf16.gmra.mxu2 %v3556_v12  ;;  %v11451_v30 = vld [vmem:[%s15489_s0 + $0x229] sm:$0xff]  ;;  %v3558_v46 = vpack.c.bf16 %v11338_v55, %v11337_v53 }
 0x3b9   : > { %v4342_v62 = vadd.f32 %v4203_v60, %v3820_v57 }
 0x3bb   : > { %v4864_v3 = vadd.f32 %v4725_v0, %v4342_v62  ;;  %v11452_v0 = vld [vmem:[%s15489_s0 + $0x231] sm:$0xff] }
 0x3bc   : > { %v3160_v1 = vpop.f32.mrf.mxu1  ;;  %v4727_v9 = vpop.f32.mrf.mxu0  ;;  %v4081_v60 = vpack.c.bf16 %v11452_v0, %v11451_v30  ;;  %v11231_v30 = vld [vmem:[%s15489_s0 + $0x242] sm:$0xff]  ;;  %v11232_v0 = vld [vmem:[%s15489_s0 + $0x24a] sm:$0xff] }
 0x3bd   : > { %v3298_v43 = vadd.f32 %v3160_v1, %v2968_v63  ;;  %v3683_v8 = vpop.f32.mrf.mxu2  ;;  %4928 = vst [vmem:[#allocation3 + $0x108] sm:$0xff] %v4864_v3  ;;  %v4205_v13 = vpop.f32.mrf.mxu3 }
 0x3be   : > { %5056 = vst [vmem:[%s15493_s4 + $0x70] sm:$0xff] %v4864_v3 }
 0x3bf   : > { %v3821_v11 = vadd.f32 %v3683_v8, %v3298_v43 }
 0x3c1   : > { %v4343_v18 = vadd.f32 %v4205_v13, %v3821_v11  ;;  %v3036_v11 = vpack.c.bf16 %v11228_v27, %v11227_v4 }
 0x3c3   : > { %v4865_v58 = vadd.f32 %v4727_v9, %v4343_v18 }
 0x3c4   : > { %4252 = vmatmul.bf16.gmra.mxu3 %v4079_v7  ;;  %v3163_v38 = vpop.f32.mrf.mxu1  ;;  %v4730_v36 = vpop.f32.mrf.mxu0  ;;  %v2973_v7 = vld [vmem:[#allocation3 + $0x80] sm:$0xff] }
 0x3c5   : > { %v3299_v6 = vadd.f32 %v3163_v38, %v2969_v17  ;;  %v3686_v50 = vpop.f32.mrf.mxu2  ;;  %4929 = vst [vmem:[#allocation3 + $0x60] sm:$0xff] %v4865_v58  ;;  %v4208_v45 = vpop.f32.mrf.mxu3  ;;  %v2974_v38 = vld [vmem:[#allocation3 + $0x1a8] sm:$0xff] }
 0x3c6   : > { %5057 = vst [vmem:[%s15493_s4 + $0x78] sm:$0xff] %v4865_v58  ;;  %v11339_v58 = vld [vmem:[%s15489_s0 + $0x228] sm:$0xff] }
 0x3c7   : > { %v3822_v19 = vadd.f32 %v3686_v50, %v3299_v6  ;;  %3207 = vmatmul.bf16.gmra.mxu1 %v3034_v28  ;;  %4769 = vmatmul.bf16.gmra.mxu0 %v3034_v28  ;;  %v11340_v6 = vld [vmem:[%s15489_s0 + $0x230] sm:$0xff]  ;;  %v11453_v50 = vld [vmem:[%s15489_s0 + $0x241] sm:$0xff] }
 0x3c8   : > { %3730 = vmatmul.bf16.gmra.mxu2 %v3557_v35  ;;  %v3559_v14 = vpack.c.bf16 %v11340_v6, %v11339_v58 }
 0x3c9   : > { %v4344_v21 = vadd.f32 %v4208_v45, %v3822_v19 }
 0x3cb   : > { %v4866_v25 = vadd.f32 %v4730_v36, %v4344_v21  ;;  %v11454_v36 = vld [vmem:[%s15489_s0 + $0x249] sm:$0xff] }
 0x3cc   : > { %v3165_v23 = vpop.f32.mrf.mxu1  ;;  %v4732_v47 = vpop.f32.mrf.mxu0  ;;  %v4082_v45 = vpack.c.bf16 %v11454_v36, %v11453_v50  ;;  %v11233_v50 = vld [vmem:[%s15489_s0 + $0x25a] sm:$0xff]  ;;  %v11234_v36 = vld [vmem:[%s15489_s0 + $0x262] sm:$0xff] }
 0x3cd   : > { %v3300_v32 = vadd.f32 %v3165_v23, %v2970_v61  ;;  %v3688_v10 = vpop.f32.mrf.mxu2  ;;  %4930 = vst [vmem:[#allocation3 + $0xe0] sm:$0xff] %v4866_v25  ;;  %v4210_v37 = vpop.f32.mrf.mxu3 }
 0x3ce   : > { %5058 = vst [vmem:[%s15493_s4 + $0x80] sm:$0xff] %v4866_v25 }
 0x3cf   : > { %v3823_v34 = vadd.f32 %v3688_v10, %v3300_v32 }
 0x3d1   : > { %v4345_v39 = vadd.f32 %v4210_v37, %v3823_v34  ;;  %v3037_v34 = vpack.c.bf16 %v11230_v31, %v11229_v29 }
 0x3d3   : > { %v4867_v59 = vadd.f32 %v4732_v47, %v4345_v39 }
 0x3d4   : > { %4257 = vmatmul.bf16.gmra.mxu3 %v4080_v33  ;;  %v3168_v41 = vpop.f32.mrf.mxu1  ;;  %v4735_v52 = vpop.f32.mrf.mxu0  ;;  %v2975_v33 = vld [vmem:[#allocation3 + $0x1b8] sm:$0xff] }
 0x3d5   : > { %v3301_v48 = vadd.f32 %v3168_v41, %v2971_v44  ;;  %v3691_v51 = vpop.f32.mrf.mxu2  ;;  %4931 = vst [vmem:[#allocation3 + $0x188] sm:$0xff] %v4867_v59  ;;  %v4213_v22 = vpop.f32.mrf.mxu3  ;;  %v2976_v41 = vld [vmem:[#allocation3 + $0x28] sm:$0xff] }
 0x3d6   : > { %5059 = vst [vmem:[%s15493_s4 + $0x88] sm:$0xff] %v4867_v59  ;;  %v11341_v59 = vld [vmem:[%s15489_s0 + $0x240] sm:$0xff] }
 0x3d7   : > { %v3824_v54 = vadd.f32 %v3691_v51, %v3301_v48  ;;  %3212 = vmatmul.bf16.gmra.mxu1 %v3035_v49  ;;  %4774 = vmatmul.bf16.gmra.mxu0 %v3035_v49  ;;  %v11342_v48 = vld [vmem:[%s15489_s0 + $0x248] sm:$0xff]  ;;  %v11455_v51 = vld [vmem:[%s15489_s0 + $0x259] sm:$0xff] }
 0x3d8   : > { %3735 = vmatmul.bf16.gmra.mxu2 %v3558_v46  ;;  %v3560_v53 = vpack.c.bf16 %v11342_v48, %v11341_v59 }
 0x3d9   : > { %v4346_v26 = vadd.f32 %v4213_v22, %v3824_v54 }
 0x3db   : > { %v4868_v56 = vadd.f32 %v4735_v52, %v4346_v26  ;;  %v11456_v52 = vld [vmem:[%s15489_s0 + $0x261] sm:$0xff] }
 0x3dc   : > { %v3170_v20 = vpop.f32.mrf.mxu1  ;;  %v4737_v63 = vpop.f32.mrf.mxu0  ;;  %v4083_v22 = vpack.c.bf16 %v11456_v52, %v11455_v51  ;;  %v11235_v51 = vld [vmem:[%s15489_s0 + $0x272] sm:$0xff]  ;;  %v11236_v52 = vld [vmem:[%s15489_s0 + $0x27a] sm:$0xff] }
 0x3dd   : > { %v3302_v57 = vadd.f32 %v3170_v20, %v2972_v5  ;;  %v3693_v62 = vpop.f32.mrf.mxu2  ;;  %4932 = vst [vmem:[#allocation3 + $0x138] sm:$0xff] %v4868_v56  ;;  %v4215_v2 = vpop.f32.mrf.mxu3 }
 0x3de   : > { %5060 = vst [vmem:[%s15493_s4 + $0x90] sm:$0xff] %v4868_v56 }
 0x3df   : > { %v3825_v1 = vadd.f32 %v3693_v62, %v3302_v57 }
 0x3e1   : > { %v4347_v3 = vadd.f32 %v4215_v2, %v3825_v1  ;;  %v3038_v1 = vpack.c.bf16 %v11232_v0, %v11231_v30 }
 0x3e3   : > { %v4869_v8 = vadd.f32 %v4737_v63, %v4347_v3 }
 0x3e4   : > { %4262 = vmatmul.bf16.gmra.mxu3 %v4081_v60  ;;  %v3173_v43 = vpop.f32.mrf.mxu1  ;;  %v4740_v13 = vpop.f32.mrf.mxu0  ;;  %v2977_v60 = vld [vmem:[#allocation3 + $0x1e8] sm:$0xff] }
 0x3e5   : > { %v3303_v9 = vadd.f32 %v3173_v43, %v2973_v7  ;;  %v3696_v12 = vpop.f32.mrf.mxu2  ;;  %4933 = vst [vmem:[#allocation3 + $0x140] sm:$0xff] %v4869_v8  ;;  %v4218_v15 = vpop.f32.mrf.mxu3  ;;  %v2978_v43 = vld [vmem:[#allocation3 + $0xf8] sm:$0xff] }
 0x3e6   : > { %5061 = vst [vmem:[%s15493_s4 + $0x98] sm:$0xff] %v4869_v8  ;;  %v11343_v8 = vld [vmem:[%s15489_s0 + $0x258] sm:$0xff] }
 0x3e7   : > { %v3826_v18 = vadd.f32 %v3696_v12, %v3303_v9  ;;  %3217 = vmatmul.bf16.gmra.mxu1 %v3036_v11  ;;  %4779 = vmatmul.bf16.gmra.mxu0 %v3036_v11  ;;  %v11344_v9 = vld [vmem:[%s15489_s0 + $0x260] sm:$0xff]  ;;  %v11457_v12 = vld [vmem:[%s15489_s0 + $0x271] sm:$0xff] }
 0x3e8   : > { %3740 = vmatmul.bf16.gmra.mxu2 %v3559_v14  ;;  %v3561_v58 = vpack.c.bf16 %v11344_v9, %v11343_v8 }
 0x3e9   : > { %v4348_v42 = vadd.f32 %v4218_v15, %v3826_v18 }
 0x3eb   : > { %v4870_v28 = vadd.f32 %v4740_v13, %v4348_v42  ;;  %v11458_v13 = vld [vmem:[%s15489_s0 + $0x279] sm:$0xff] }
 0x3ec   : > { %v3175_v17 = vpop.f32.mrf.mxu1  ;;  %v4742_v61 = vpop.f32.mrf.mxu0  ;;  %v4084_v15 = vpack.c.bf16 %v11458_v13, %v11457_v12  ;;  %v11237_v12 = vld [vmem:[%s15489_s0 + $0x28a] sm:$0xff]  ;;  %v11238_v13 = vld [vmem:[%s15489_s0 + $0x292] sm:$0xff] }
 0x3ed   : > { %v3304_v19 = vadd.f32 %v3175_v17, %v2974_v38  ;;  %v3698_v21 = vpop.f32.mrf.mxu2  ;;  %4934 = vst [vmem:[#allocation3 + $0x80] sm:$0xff] %v4870_v28  ;;  %v4220_v24 = vpop.f32.mrf.mxu3 }
 0x3ee   : > { %5062 = vst [vmem:[%s15493_s4 + $0xa0] sm:$0xff] %v4870_v28 }
 0x3ef   : > { %v3827_v23 = vadd.f32 %v3698_v21, %v3304_v19 }
 0x3f1   : > { %v4349_v25 = vadd.f32 %v4220_v24, %v3827_v23  ;;  %v3039_v23 = vpack.c.bf16 %v11234_v36, %v11233_v50 }
 0x3f3   : > { %v4871_v10 = vadd.f32 %v4742_v61, %v4349_v25 }
 0x3f4   : > { %4267 = vmatmul.bf16.gmra.mxu3 %v4082_v45  ;;  %v3178_v32 = vpop.f32.mrf.mxu1  ;;  %v4745_v37 = vpop.f32.mrf.mxu0  ;;  %v2979_v45 = vld [vmem:[#allocation3 + $0x160] sm:$0xff] }
 0x3f5   : > { %v3305_v47 = vadd.f32 %v3178_v32, %v2975_v33  ;;  %v3701_v35 = vpop.f32.mrf.mxu2  ;;  %4935 = vst [vmem:[#allocation3 + $0x1a8] sm:$0xff] %v4871_v10  ;;  %v4223_v16 = vpop.f32.mrf.mxu3  ;;  %v2980_v32 = vld [vmem:[#allocation3 + $0x30] sm:$0xff] }
 0x3f6   : > { %5063 = vst [vmem:[%s15493_s4 + $0xa8] sm:$0xff] %v4871_v10  ;;  %v11345_v10 = vld [vmem:[%s15489_s0 + $0x270] sm:$0xff] }
 0x3f7   : > { %v3828_v39 = vadd.f32 %v3701_v35, %v3305_v47  ;;  %3222 = vmatmul.bf16.gmra.mxu1 %v3037_v34  ;;  %4784 = vmatmul.bf16.gmra.mxu0 %v3037_v34  ;;  %v11346_v47 = vld [vmem:[%s15489_s0 + $0x278] sm:$0xff]  ;;  %v11459_v35 = vld [vmem:[%s15489_s0 + $0x289] sm:$0xff] }
 0x3f8   : > { %3745 = vmatmul.bf16.gmra.mxu2 %v3560_v53  ;;  %v3562_v59 = vpack.c.bf16 %v11346_v47, %v11345_v10 }
 0x3f9   : > { %v4350_v40 = vadd.f32 %v4223_v16, %v3828_v39 }
 0x3fb   : > { %v4872_v49 = vadd.f32 %v4745_v37, %v4350_v40  ;;  %v11460_v37 = vld [vmem:[%s15489_s0 + $0x291] sm:$0xff] }
 0x3fc   : > { %v3180_v44 = vpop.f32.mrf.mxu1  ;;  %v4747_v5 = vpop.f32.mrf.mxu0  ;;  %v4085_v16 = vpack.c.bf16 %v11460_v37, %v11459_v35  ;;  %v11239_v35 = vld [vmem:[%s15489_s0 + $0x2a2] sm:$0xff]  ;;  %v11240_v37 = vld [vmem:[%s15489_s0 + $0x2aa] sm:$0xff] }
 0x3fd   : > { %v3306_v54 = vadd.f32 %v3180_v44, %v2976_v41  ;;  %v3703_v26 = vpop.f32.mrf.mxu2  ;;  %4936 = vst [vmem:[#allocation3 + $0x1b8] sm:$0xff] %v4872_v49  ;;  %v4225_v55 = vpop.f32.mrf.mxu3 }
 0x3fe   : > { %5064 = vst [vmem:[%s15493_s4 + $0xb0] sm:$0xff] %v4872_v49 }
 0x3ff   : > { %v3829_v20 = vadd.f32 %v3703_v26, %v3306_v54 }
 0x401   : > { %v4351_v56 = vadd.f32 %v4225_v55, %v3829_v20  ;;  %v3040_v20 = vpack.c.bf16 %v11236_v52, %v11235_v51 }
 0x403   : > { %v4873_v62 = vadd.f32 %v4747_v5, %v4351_v56 }
 0x404   : > { %4272 = vmatmul.bf16.gmra.mxu3 %v4083_v22  ;;  %v3183_v57 = vpop.f32.mrf.mxu1  ;;  %v4750_v2 = vpop.f32.mrf.mxu0  ;;  %v2981_v22 = vld [vmem:[#allocation3 + $0x1e0] sm:$0xff] }
 0x405   : > { %v3307_v63 = vadd.f32 %v3183_v57, %v2977_v60  ;;  %v3706_v46 = vpop.f32.mrf.mxu2  ;;  %4937 = vst [vmem:[#allocation3 + $0x28] sm:$0xff] %v4873_v62  ;;  %v4228_v4 = vpop.f32.mrf.mxu3  ;;  %v2982_v57 = vld [vmem:[#allocation3] sm:$0xff] }
 0x406   : > { %5065 = vst [vmem:[%s15493_s4 + $0xb8] sm:$0xff] %v4873_v62  ;;  %v11347_v62 = vld [vmem:[%s15489_s0 + $0x288] sm:$0xff] }
 0x407   : > { %v3830_v3 = vadd.f32 %v3706_v46, %v3307_v63  ;;  %3227 = vmatmul.bf16.gmra.mxu1 %v3038_v1  ;;  %4789 = vmatmul.bf16.gmra.mxu0 %v3038_v1  ;;  %v11348_v63 = vld [vmem:[%s15489_s0 + $0x290] sm:$0xff]  ;;  %v11461_v46 = vld [vmem:[%s15489_s0 + $0x2a1] sm:$0xff] }
 0x408   : > { %3750 = vmatmul.bf16.gmra.mxu2 %v3561_v58  ;;  %v3563_v8 = vpack.c.bf16 %v11348_v63, %v11347_v62 }
 0x409   : > { %v4352_v27 = vadd.f32 %v4228_v4, %v3830_v3 }
 0x40b   : > { %v4874_v11 = vadd.f32 %v4750_v2, %v4352_v27  ;;  %v11462_v2 = vld [vmem:[%s15489_s0 + $0x2a9] sm:$0xff] }
 0x40c   : > { %v3185_v7 = vpop.f32.mrf.mxu1  ;;  %v4752_v38 = vpop.f32.mrf.mxu0  ;;  %v4086_v4 = vpack.c.bf16 %v11462_v2, %v11461_v46  ;;  %v11241_v46 = vld [vmem:[%s15489_s0 + $0x2ba] sm:$0xff]  ;;  %v11242_v2 = vld [vmem:[%s15489_s0 + $0x2c2] sm:$0xff] }
 0x40d   : > { %v3308_v18 = vadd.f32 %v3185_v7, %v2978_v43  ;;  %v3708_v42 = vpop.f32.mrf.mxu2  ;;  %4938 = vst [vmem:[#allocation3 + $0x1e8] sm:$0xff] %v4874_v11  ;;  %v4230_v6 = vpop.f32.mrf.mxu3 }
 0x40e   : > { %5066 = vst [vmem:[%s15493_s4 + $0xc0] sm:$0xff] %v4874_v11 }
 0x40f   : > { %v3831_v17 = vadd.f32 %v3708_v42, %v3308_v18 }
 0x411   : > { %v4353_v28 = vadd.f32 %v4230_v6, %v3831_v17  ;;  %v3041_v17 = vpack.c.bf16 %v11238_v13, %v11237_v12 }
 0x413   : > { %v4875_v21 = vadd.f32 %v4752_v38, %v4353_v28 }
 0x414   : > { %4277 = vmatmul.bf16.gmra.mxu3 %v4084_v15  ;;  %v3188_v19 = vpop.f32.mrf.mxu1  ;;  %v4755_v24 = vpop.f32.mrf.mxu0  ;;  %v2983_v15 = vld [vmem:[#allocation3 + $0xf0] sm:$0xff] }
 0x415   : > { %v3309_v61 = vadd.f32 %v3188_v19, %v2979_v45  ;;  %v3711_v14 = vpop.f32.mrf.mxu2  ;;  %4939 = vst [vmem:[#allocation3 + $0xf8] sm:$0xff] %v4875_v21  ;;  %v4233_v29 = vpop.f32.mrf.mxu3  ;;  %v2984_v19 = vld [vmem:[#allocation3 + $0x8] sm:$0xff] }
 0x416   : > { %5067 = vst [vmem:[%s15493_s4 + $0xc8] sm:$0xff] %v4875_v21  ;;  %v11349_v21 = vld [vmem:[%s15489_s0 + $0x2a0] sm:$0xff] }
 0x417   : > { %v3832_v25 = vadd.f32 %v3711_v14, %v3309_v61  ;;  %3232 = vmatmul.bf16.gmra.mxu1 %v3039_v23  ;;  %4794 = vmatmul.bf16.gmra.mxu0 %v3039_v23  ;;  %v11350_v61 = vld [vmem:[%s15489_s0 + $0x2a8] sm:$0xff]  ;;  %v11463_v14 = vld [vmem:[%s15489_s0 + $0x2b9] sm:$0xff] }
 0x418   : > { %3755 = vmatmul.bf16.gmra.mxu2 %v3562_v59  ;;  %v3564_v10 = vpack.c.bf16 %v11350_v61, %v11349_v21 }
 0x419   : > { %v4354_v31 = vadd.f32 %v4233_v29, %v3832_v25 }
 0x41b   : > { %v4876_v34 = vadd.f32 %v4755_v24, %v4354_v31  ;;  %v11464_v24 = vld [vmem:[%s15489_s0 + $0x2c1] sm:$0xff] }
 0x41c   : > { %v3190_v33 = vpop.f32.mrf.mxu1  ;;  %v4757_v41 = vpop.f32.mrf.mxu0  ;;  %v4087_v29 = vpack.c.bf16 %v11464_v24, %v11463_v14  ;;  %v11243_v14 = vld [vmem:[%s15489_s0 + $0x2d2] sm:$0xff]  ;;  %v11244_v24 = vld [vmem:[%s15489_s0 + $0x2da] sm:$0xff] }
 0x41d   : > { %v3310_v39 = vadd.f32 %v3190_v33, %v2980_v32  ;;  %v3713_v40 = vpop.f32.mrf.mxu2  ;;  %4940 = vst [vmem:[#allocation3 + $0x160] sm:$0xff] %v4876_v34  ;;  %v4235_v48 = vpop.f32.mrf.mxu3 }
 0x41e   : > { %5068 = vst [vmem:[%s15493_s4 + $0xd0] sm:$0xff] %v4876_v34 }
 0x41f   : > { %v3833_v44 = vadd.f32 %v3713_v40, %v3310_v39 }
 0x421   : > { %v4355_v49 = vadd.f32 %v4235_v48, %v3833_v44  ;;  %v3042_v44 = vpack.c.bf16 %v11240_v37, %v11239_v35 }
 0x423   : > { %v4877_v26 = vadd.f32 %v4757_v41, %v4355_v49 }
 0x424   : > { %4282 = vmatmul.bf16.gmra.mxu3 %v4085_v16  ;;  %v3193_v54 = vpop.f32.mrf.mxu1  ;;  %v4760_v55 = vpop.f32.mrf.mxu0  ;;  %v2985_v16 = vld [vmem:[#allocation3 + $0x148] sm:$0xff] }
 0x425   : > { %v3311_v5 = vadd.f32 %v3193_v54, %v2981_v22  ;;  %v3716_v53 = vpop.f32.mrf.mxu2  ;;  %4941 = vst [vmem:[#allocation3 + $0x30] sm:$0xff] %v4877_v26  ;;  %v4238_v30 = vpop.f32.mrf.mxu3  ;;  %v2986_v54 = vld [vmem:[#allocation3 + $0x1d0] sm:$0xff] }
 0x426   : > { %5069 = vst [vmem:[%s15493_s4 + $0xd8] sm:$0xff] %v4877_v26  ;;  %v11351_v26 = vld [vmem:[%s15489_s0 + $0x2b8] sm:$0xff] }
 0x427   : > { %v3834_v56 = vadd.f32 %v3716_v53, %v3311_v5  ;;  %3237 = vmatmul.bf16.gmra.mxu1 %v3040_v20  ;;  %4799 = vmatmul.bf16.gmra.mxu0 %v3040_v20  ;;  %v11352_v5 = vld [vmem:[%s15489_s0 + $0x2c0] sm:$0xff]  ;;  %v11465_v53 = vld [vmem:[%s15489_s0 + $0x2d1] sm:$0xff] }
 0x428   : > { %3760 = vmatmul.bf16.gmra.mxu2 %v3563_v8  ;;  %v3565_v62 = vpack.c.bf16 %v11352_v5, %v11351_v26 }
 0x429   : > { %v4356_v0 = vadd.f32 %v4238_v30, %v3834_v56 }
 0x42b   : > { %v4878_v1 = vadd.f32 %v4760_v55, %v4356_v0  ;;  %v11466_v55 = vld [vmem:[%s15489_s0 + $0x2d9] sm:$0xff] }
 0x42c   : > { %v3195_v60 = vpop.f32.mrf.mxu1  ;;  %v4762_v43 = vpop.f32.mrf.mxu0  ;;  %v4088_v30 = vpack.c.bf16 %v11466_v55, %v11465_v53  ;;  %v11245_v53 = vld [vmem:[%s15489_s0 + $0x2ea] sm:$0xff]  ;;  %v11246_v55 = vld [vmem:[%s15489_s0 + $0x2f2] sm:$0xff] }
 0x42d   : > { %v3312_v3 = vadd.f32 %v3195_v60, %v2982_v57  ;;  %v3718_v27 = vpop.f32.mrf.mxu2  ;;  %4942 = vst [vmem:[#allocation3 + $0x1e0] sm:$0xff] %v4878_v1  ;;  %v4240_v9 = vpop.f32.mrf.mxu3 }
 0x42e   : > { %5070 = vst [vmem:[%s15493_s4 + $0xe0] sm:$0xff] %v4878_v1 }
 0x42f   : > { %v3835_v7 = vadd.f32 %v3718_v27, %v3312_v3 }
 0x431   : > { %v4357_v11 = vadd.f32 %v4240_v9, %v3835_v7  ;;  %v3043_v7 = vpack.c.bf16 %v11242_v2, %v11241_v46 }
 0x433   : > { %v4879_v42 = vadd.f32 %v4762_v43, %v4357_v11 }
 0x434   : > { %4287 = vmatmul.bf16.gmra.mxu3 %v4086_v4  ;;  %v3198_v18 = vpop.f32.mrf.mxu1  ;;  %v4765_v6 = vpop.f32.mrf.mxu0  ;;  %v2987_v4 = vld [vmem:[#allocation3 + $0x100] sm:$0xff] }
 0x435   : > { %v3313_v38 = vadd.f32 %v3198_v18, %v2983_v15  ;;  %v3721_v58 = vpop.f32.mrf.mxu2  ;;  %4943 = vst [vmem:[#allocation3] sm:$0xff] %v4879_v42  ;;  %v4243_v50 = vpop.f32.mrf.mxu3  ;;  %v2988_v18 = vld [vmem:[#allocation3 + $0xc8] sm:$0xff] }
 0x436   : > { %5071 = vst [vmem:[%s15493_s4 + $0xe8] sm:$0xff] %v4879_v42  ;;  %v11353_v42 = vld [vmem:[%s15489_s0 + $0x2d0] sm:$0xff] }
 0x437   : > { %v3836_v28 = vadd.f32 %v3721_v58, %v3313_v38  ;;  %3242 = vmatmul.bf16.gmra.mxu1 %v3041_v17  ;;  %4804 = vmatmul.bf16.gmra.mxu0 %v3041_v17  ;;  %v11354_v38 = vld [vmem:[%s15489_s0 + $0x2d8] sm:$0xff]  ;;  %v11467_v58 = vld [vmem:[%s15489_s0 + $0x2e9] sm:$0xff] }
 0x438   : > { %3765 = vmatmul.bf16.gmra.mxu2 %v3564_v10  ;;  %v3566_v21 = vpack.c.bf16 %v11354_v38, %v11353_v42 }
 0x439   : > { %v4358_v36 = vadd.f32 %v4243_v50, %v3836_v28 }
 0x43b   : > { %v4880_v23 = vadd.f32 %v4765_v6, %v4358_v36  ;;  %v11468_v6 = vld [vmem:[%s15489_s0 + $0x2f1] sm:$0xff] }
 0x43c   : > { %v3200_v45 = vpop.f32.mrf.mxu1  ;;  %v4767_v32 = vpop.f32.mrf.mxu0  ;;  %v4089_v50 = vpack.c.bf16 %v11468_v6, %v11467_v58  ;;  %v11247_v58 = vld [vmem:[%s15489_s0 + $0x302] sm:$0xff]  ;;  %v11248_v6 = vld [vmem:[%s15489_s0 + $0x30a] sm:$0xff] }
 0x43d   : > { %v3314_v25 = vadd.f32 %v3200_v45, %v2984_v19  ;;  %v3723_v31 = vpop.f32.mrf.mxu2  ;;  %4944 = vst [vmem:[#allocation3 + $0xf0] sm:$0xff] %v4880_v23  ;;  %v4245_v47 = vpop.f32.mrf.mxu3 }
 0x43e   : > { %5072 = vst [vmem:[%s15493_s4 + $0xf0] sm:$0xff] %v4880_v23 }
 0x43f   : > { %v3837_v33 = vadd.f32 %v3723_v31, %v3314_v25 }
 0x441   : > { %v4359_v34 = vadd.f32 %v4245_v47, %v3837_v33  ;;  %v3044_v33 = vpack.c.bf16 %v11244_v24, %v11243_v14 }
 0x443   : > { %v4881_v40 = vadd.f32 %v4767_v32, %v4359_v34 }
 0x444   : > { %4292 = vmatmul.bf16.gmra.mxu3 %v4087_v29  ;;  %v3203_v39 = vpop.f32.mrf.mxu1  ;;  %v4770_v48 = vpop.f32.mrf.mxu0  ;;  %v2989_v29 = vld [vmem:[#allocation3 + $0x40] sm:$0xff] }
 0x445   : > { %v3315_v41 = vadd.f32 %v3203_v39, %v2985_v16  ;;  %v3726_v59 = vpop.f32.mrf.mxu2  ;;  %4945 = vst [vmem:[#allocation3 + $0x8] sm:$0xff] %v4881_v40  ;;  %v4248_v51 = vpop.f32.mrf.mxu3  ;;  %v2990_v39 = vld [vmem:[#allocation3 + $0x1f8] sm:$0xff] }
 0x446   : > { %5073 = vst [vmem:[%s15493_s4 + $0xf8] sm:$0xff] %v4881_v40  ;;  %v11355_v40 = vld [vmem:[%s15489_s0 + $0x2e8] sm:$0xff] }
 0x447   : > { %v3838_v49 = vadd.f32 %v3726_v59, %v3315_v41  ;;  %3247 = vmatmul.bf16.gmra.mxu1 %v3042_v44  ;;  %4809 = vmatmul.bf16.gmra.mxu0 %v3042_v44  ;;  %v11356_v41 = vld [vmem:[%s15489_s0 + $0x2f0] sm:$0xff]  ;;  %v11469_v59 = vld [vmem:[%s15489_s0 + $0x301] sm:$0xff] }
 0x448   : > { %3770 = vmatmul.bf16.gmra.mxu2 %v3565_v62  ;;  %v3567_v26 = vpack.c.bf16 %v11356_v41, %v11355_v40 }
 0x449   : > { %v4360_v52 = vadd.f32 %v4248_v51, %v3838_v49 }
 0x44b   : > { %v4882_v20 = vadd.f32 %v4770_v48, %v4360_v52  ;;  %v11470_v48 = vld [vmem:[%s15489_s0 + $0x309] sm:$0xff] }
 0x44c   : > { %v3205_v22 = vpop.f32.mrf.mxu1  ;;  %v4772_v57 = vpop.f32.mrf.mxu0  ;;  %v4090_v51 = vpack.c.bf16 %v11470_v48, %v11469_v59  ;;  %v11249_v59 = vld [vmem:[%s15489_s0 + $0x31a] sm:$0xff]  ;;  %v11250_v48 = vld [vmem:[%s15489_s0 + $0x322] sm:$0xff] }
 0x44d   : > { %v3316_v56 = vadd.f32 %v3205_v22, %v2986_v54  ;;  %v3728_v0 = vpop.f32.mrf.mxu2  ;;  %4946 = vst [vmem:[#allocation3 + $0x148] sm:$0xff] %v4882_v20  ;;  %v4250_v63 = vpop.f32.mrf.mxu3 }
 0x44e   : > { %5074 = vst [vmem:[%s15493_s4 + $0x100] sm:$0xff] %v4882_v20 }
 0x44f   : > { %v3839_v60 = vadd.f32 %v3728_v0, %v3316_v56 }
 0x451   : > { %v4361_v1 = vadd.f32 %v4250_v63, %v3839_v60  ;;  %v3045_v60 = vpack.c.bf16 %v11246_v55, %v11245_v53 }
 0x453   : > { %v4883_v27 = vadd.f32 %v4772_v57, %v4361_v1 }
 0x454   : > { %4297 = vmatmul.bf16.gmra.mxu3 %v4088_v30  ;;  %v3208_v3 = vpop.f32.mrf.mxu1  ;;  %v4775_v9 = vpop.f32.mrf.mxu0  ;;  %v2991_v30 = vld [vmem:[#allocation3 + $0x20] sm:$0xff] }
 0x455   : > { %v3317_v43 = vadd.f32 %v3208_v3, %v2987_v4  ;;  %v3731_v8 = vpop.f32.mrf.mxu2  ;;  %4947 = vst [vmem:[#allocation3 + $0x1d0] sm:$0xff] %v4883_v27  ;;  %v4253_v12 = vpop.f32.mrf.mxu3  ;;  %v2992_v3 = vld [vmem:[#allocation3 + $0x128] sm:$0xff] }
 0x456   : > { %5075 = vst [vmem:[%s15493_s4 + $0x108] sm:$0xff] %v4883_v27  ;;  %v11357_v27 = vld [vmem:[%s15489_s0 + $0x300] sm:$0xff] }
 0x457   : > { %v3840_v11 = vadd.f32 %v3731_v8, %v3317_v43  ;;  %3252 = vmatmul.bf16.gmra.mxu1 %v3043_v7  ;;  %4814 = vmatmul.bf16.gmra.mxu0 %v3043_v7  ;;  %v11358_v43 = vld [vmem:[%s15489_s0 + $0x308] sm:$0xff]  ;;  %v11471_v8 = vld [vmem:[%s15489_s0 + $0x319] sm:$0xff] }
 0x458   : > { %3775 = vmatmul.bf16.gmra.mxu2 %v3566_v21  ;;  %v3568_v42 = vpack.c.bf16 %v11358_v43, %v11357_v27 }
 0x459   : > { %v4362_v13 = vadd.f32 %v4253_v12, %v3840_v11 }
 0x45b   : > { %v4884_v17 = vadd.f32 %v4775_v9, %v4362_v13  ;;  %v11472_v9 = vld [vmem:[%s15489_s0 + $0x321] sm:$0xff] }
 0x45c   : > { %v3210_v15 = vpop.f32.mrf.mxu1  ;;  %v4777_v19 = vpop.f32.mrf.mxu0  ;;  %v4091_v12 = vpack.c.bf16 %v11472_v9, %v11471_v8  ;;  %v11251_v8 = vld [vmem:[%s15489_s0 + $0x332] sm:$0xff]  ;;  %v11252_v9 = vld [vmem:[%s15489_s0 + $0x33a] sm:$0xff] }
 0x45d   : > { %v3318_v28 = vadd.f32 %v3210_v15, %v2988_v18  ;;  %v3733_v36 = vpop.f32.mrf.mxu2  ;;  %4948 = vst [vmem:[#allocation3 + $0x100] sm:$0xff] %v4884_v17  ;;  %v4255_v61 = vpop.f32.mrf.mxu3 }
 0x45e   : > { %5076 = vst [vmem:[%s15493_s4 + $0x110] sm:$0xff] %v4884_v17 }
 0x45f   : > { %v3841_v45 = vadd.f32 %v3733_v36, %v3318_v28 }
 0x461   : > { %v4363_v23 = vadd.f32 %v4255_v61, %v3841_v45  ;;  %v3046_v45 = vpack.c.bf16 %v11248_v6, %v11247_v58 }
 0x463   : > { %v4885_v31 = vadd.f32 %v4777_v19, %v4363_v23 }
 0x464   : > { %4302 = vmatmul.bf16.gmra.mxu3 %v4089_v50  ;;  %v3213_v25 = vpop.f32.mrf.mxu1  ;;  %v4780_v47 = vpop.f32.mrf.mxu0  ;;  %v2993_v50 = vld [vmem:[#allocation3 + $0x1a0] sm:$0xff] }
 0x465   : > { %v3319_v32 = vadd.f32 %v3213_v25, %v2989_v29  ;;  %v3736_v10 = vpop.f32.mrf.mxu2  ;;  %4949 = vst [vmem:[#allocation3 + $0xc8] sm:$0xff] %v4885_v31  ;;  %v4258_v35 = vpop.f32.mrf.mxu3  ;;  %v2994_v25 = vld [vmem:[#allocation3 + $0x1f0] sm:$0xff] }
 0x466   : > { %5077 = vst [vmem:[%s15493_s4 + $0x118] sm:$0xff] %v4885_v31  ;;  %v11359_v31 = vld [vmem:[%s15489_s0 + $0x318] sm:$0xff] }
 0x467   : > { %v3842_v34 = vadd.f32 %v3736_v10, %v3319_v32  ;;  %3257 = vmatmul.bf16.gmra.mxu1 %v3044_v33  ;;  %4819 = vmatmul.bf16.gmra.mxu0 %v3044_v33  ;;  %v11360_v32 = vld [vmem:[%s15489_s0 + $0x320] sm:$0xff]  ;;  %v11473_v10 = vld [vmem:[%s15489_s0 + $0x331] sm:$0xff] }
 0x468   : > { %3780 = vmatmul.bf16.gmra.mxu2 %v3567_v26  ;;  %v3569_v40 = vpack.c.bf16 %v11360_v32, %v11359_v31  ;;  %v11587_v31 = vld [vmem:[%s15489_s0 + $0x34a] sm:$0xff]  ;;  %v11588_v32 = vld [vmem:[%s15489_s0 + $0x352] sm:$0xff] }
 0x469   : > { %v4364_v37 = vadd.f32 %v4258_v35, %v3842_v34 }
 0x46b   : > { %v4886_v44 = vadd.f32 %v4780_v47, %v4364_v37  ;;  %v11474_v47 = vld [vmem:[%s15489_s0 + $0x339] sm:$0xff] }
 0x46c   : > { %v3215_v16 = vpop.f32.mrf.mxu1  ;;  %v4782_v54 = vpop.f32.mrf.mxu0  ;;  %v4092_v35 = vpack.c.bf16 %v11474_v47, %v11473_v10  ;;  %v2999_v10 = vld [vmem:[#allocation3 + $0x1d8] sm:$0xff] }
 0x46d   : > { %v3320_v49 = vadd.f32 %v3215_v16, %v2990_v39  ;;  %v3738_v52 = vpop.f32.mrf.mxu2  ;;  %4950 = vst [vmem:[#allocation3 + $0x40] sm:$0xff] %v4886_v44  ;;  %v4260_v5 = vpop.f32.mrf.mxu3 }
 0x46e   : > { %5078 = vst [vmem:[%s15493_s4 + $0x120] sm:$0xff] %v4886_v44 }
 0x46f   : > { %v3843_v22 = vadd.f32 %v3738_v52, %v3320_v49 }
 0x471   : > { %v4365_v20 = vadd.f32 %v4260_v5, %v3843_v22  ;;  %v3047_v22 = vpack.c.bf16 %v11250_v48, %v11249_v59  ;;  %v3000_v59 = vld [vmem:[#allocation3 + $0xd0] sm:$0xff] }
 0x473   : > { %v4887_v0 = vadd.f32 %v4782_v54, %v4365_v20 }
 0x474   : > { %4307 = vmatmul.bf16.gmra.mxu3 %v4090_v51  ;;  %v3218_v56 = vpop.f32.mrf.mxu1  ;;  %v4785_v63 = vpop.f32.mrf.mxu0  ;;  %v2995_v51 = vld [vmem:[#allocation3 + $0xe8] sm:$0xff] }
 0x475   : > { %v3321_v57 = vadd.f32 %v3218_v56, %v2991_v30  ;;  %v3741_v62 = vpop.f32.mrf.mxu2  ;;  %4951 = vst [vmem:[#allocation3 + $0x1f8] sm:$0xff] %v4887_v0  ;;  %v4263_v46 = vpop.f32.mrf.mxu3  ;;  %v2996_v56 = vld [vmem:[#allocation3 + $0x78] sm:$0xff] }
 0x476   : > { %5079 = vst [vmem:[%s15493_s4 + $0x128] sm:$0xff] %v4887_v0  ;;  %v11361_v0 = vld [vmem:[%s15489_s0 + $0x330] sm:$0xff] }
 0x477   : > { %v3844_v1 = vadd.f32 %v3741_v62, %v3321_v57  ;;  %3262 = vmatmul.bf16.gmra.mxu1 %v3045_v60  ;;  %4824 = vmatmul.bf16.gmra.mxu0 %v3045_v60  ;;  %v11362_v57 = vld [vmem:[%s15489_s0 + $0x338] sm:$0xff]  ;;  %v11475_v62 = vld [vmem:[%s15489_s0 + $0x349] sm:$0xff] }
 0x478   : > { %3785 = vmatmul.bf16.gmra.mxu2 %v3568_v42  ;;  %v3570_v27 = vpack.c.bf16 %v11362_v57, %v11361_v0 }
 0x479   : > { %v4366_v2 = vadd.f32 %v4263_v46, %v3844_v1 }
 0x47b   : > { %v4888_v7 = vadd.f32 %v4785_v63, %v4366_v2  ;;  %v11476_v63 = vld [vmem:[%s15489_s0 + $0x351] sm:$0xff] }
 0x47c   : > { %v3220_v4 = vpop.f32.mrf.mxu1  ;;  %v4787_v18 = vpop.f32.mrf.mxu0  ;;  %v4093_v46 = vpack.c.bf16 %v11476_v63, %v11475_v62  ;;  %v3002_v63 = vld [vmem:[#allocation3 + $0x88] sm:$0xff] }
 0x47d   : > { %v3322_v11 = vadd.f32 %v3220_v4, %v2992_v3  ;;  %v3743_v13 = vpop.f32.mrf.mxu2  ;;  %4952 = vst [vmem:[#allocation3 + $0x20] sm:$0xff] %v4888_v7  ;;  %v4265_v38 = vpop.f32.mrf.mxu3 }
 0x47e   : > { %5080 = vst [vmem:[%s15493_s4 + $0x130] sm:$0xff] %v4888_v7 }
 0x47f   : > { %v3845_v15 = vadd.f32 %v3743_v13, %v3322_v11 }
 0x481   : > { %v4367_v17 = vadd.f32 %v4265_v38, %v3845_v15  ;;  %v3048_v15 = vpack.c.bf16 %v11252_v9, %v11251_v8  ;;  %v3003_v8 = vld [vmem:[#allocation3 + $0xa8] sm:$0xff] }
 0x483   : > { %v4889_v36 = vadd.f32 %v4787_v18, %v4367_v17 }
 0x484   : > { %4312 = vmatmul.bf16.gmra.mxu3 %v4091_v12  ;;  %v3223_v28 = vpop.f32.mrf.mxu1  ;;  %v4790_v61 = vpop.f32.mrf.mxu0  ;;  %v2997_v12 = vld [vmem:[#allocation3 + $0x70] sm:$0xff] }
 0x485   : > { %v3323_v19 = vadd.f32 %v3223_v28, %v2993_v50  ;;  %v3746_v21 = vpop.f32.mrf.mxu2  ;;  %4953 = vst [vmem:[#allocation3 + $0x128] sm:$0xff] %v4889_v36  ;;  %v4268_v14 = vpop.f32.mrf.mxu3  ;;  %v2998_v50 = vld [vmem:[#allocation3 + $0x90] sm:$0xff] }
 0x486   : > { %5081 = vst [vmem:[%s15493_s4 + $0x138] sm:$0xff] %v4889_v36  ;;  %v11363_v36 = vld [vmem:[%s15489_s0 + $0x348] sm:$0xff] }
 0x487   : > { %v3846_v23 = vadd.f32 %v3746_v21, %v3323_v19  ;;  %3267 = vmatmul.bf16.gmra.mxu1 %v3046_v45  ;;  %4829 = vmatmul.bf16.gmra.mxu0 %v3046_v45  ;;  %v11364_v19 = vld [vmem:[%s15489_s0 + $0x350] sm:$0xff] }
 0x488   : > { %3790 = vmatmul.bf16.gmra.mxu2 %v3569_v40 }
 0x489   : > { %v4368_v24 = vadd.f32 %v4268_v14, %v3846_v23 }
 0x48b   : > { %v4890_v33 = vadd.f32 %v4790_v61, %v4368_v24  ;;  %v3571_v24 = vpack.c.bf16 %v11364_v19, %v11363_v36 }
 0x48c   : > { %v3225_v29 = vpop.f32.mrf.mxu1  ;;  %v4792_v39 = vpop.f32.mrf.mxu0 }
 0x48d   : > { %v3324_v34 = vadd.f32 %v3225_v29, %v2994_v25  ;;  %v3748_v37 = vpop.f32.mrf.mxu2  ;;  %4954 = vst [vmem:[#allocation3 + $0x1a0] sm:$0xff] %v4890_v33  ;;  %v4270_v41 = vpop.f32.mrf.mxu3 }
 0x48e   : > { %5082 = vst [vmem:[%s15493_s4 + $0x140] sm:$0xff] %v4890_v33 }
 0x48f   : > { %v3847_v16 = vadd.f32 %v3748_v37, %v3324_v34 }
 0x491   : > { %v4369_v44 = vadd.f32 %v4270_v41, %v3847_v16 }
 0x493   : > { %v4891_v52 = vadd.f32 %v4792_v39, %v4369_v44 }
 0x494   : > { %4317 = vmatmul.bf16.gmra.mxu3 %v4092_v35  ;;  %v3228_v49 = vpop.f32.mrf.mxu1  ;;  %v4795_v5 = vpop.f32.mrf.mxu0  ;;  %v4615_v35 = vpack.c.bf16 %v11588_v32, %v11587_v31 }
 0x495   : > { %v3325_v54 = vadd.f32 %v3228_v49, %v2995_v51  ;;  %v3751_v26 = vpop.f32.mrf.mxu2  ;;  %4955 = vst [vmem:[#allocation3 + $0x1f0] sm:$0xff] %v4891_v52  ;;  %v4273_v53 = vpop.f32.mrf.mxu3 }
 0x496   : > { %5083 = vst [vmem:[%s15493_s4 + $0x148] sm:$0xff] %v4891_v52 }
 0x497   : > { %v3848_v20 = vadd.f32 %v3751_v26, %v3325_v54  ;;  %3272 = vmatmul.bf16.gmra.mxu1 %v3047_v22  ;;  %4834 = vmatmul.bf16.gmra.mxu0 %v3047_v22 }
 0x498   : > { %3795 = vmatmul.bf16.gmra.mxu2 %v3570_v27 }
 0x499   : > { %v4370_v55 = vadd.f32 %v4273_v53, %v3848_v20  ;;  %v3001_v20 = vld [vmem:[#allocation3 + $0xb8] sm:$0xff] }
 0x49b   : > { %v4892_v60 = vadd.f32 %v4795_v5, %v4370_v55 }
 0x49c   : > { %v3230_v30 = vpop.f32.mrf.mxu1  ;;  %v4797_v3 = vpop.f32.mrf.mxu0 }
 0x49d   : > { %v3326_v1 = vadd.f32 %v3230_v30, %v2996_v56  ;;  %v3753_v2 = vpop.f32.mrf.mxu2  ;;  %4956 = vst [vmem:[#allocation3 + $0xe8] sm:$0xff] %v4892_v60  ;;  %v4275_v43 = vpop.f32.mrf.mxu3 }
 0x49e   : > { %5084 = vst [vmem:[%s15493_s4 + $0x150] sm:$0xff] %v4892_v60 }
 0x49f   : > { %v3849_v4 = vadd.f32 %v3753_v2, %v3326_v1 }
 0x4a1   : > { %v4371_v7 = vadd.f32 %v4275_v43, %v3849_v4 }
 0x4a3   : > { %v4893_v13 = vadd.f32 %v4797_v3, %v4371_v7 }
 0x4a4   : > { %4322 = vmatmul.bf16.gmra.mxu3 %v4093_v46  ;;  %v3233_v11 = vpop.f32.mrf.mxu1  ;;  %v4800_v38 = vpop.f32.mrf.mxu0 }
 0x4a5   : > { %v3327_v18 = vadd.f32 %v3233_v11, %v2997_v12  ;;  %v3756_v42 = vpop.f32.mrf.mxu2  ;;  %4957 = vst [vmem:[#allocation3 + $0x78] sm:$0xff] %v4893_v13  ;;  %v4278_v58 = vpop.f32.mrf.mxu3 }
 0x4a6   : > { %5085 = vst [vmem:[%s15493_s4 + $0x158] sm:$0xff] %v4893_v13 }
 0x4a7   : > { %v3850_v17 = vadd.f32 %v3756_v42, %v3327_v18  ;;  %3277 = vmatmul.bf16.gmra.mxu1 %v3048_v15  ;;  %4839 = vmatmul.bf16.gmra.mxu0 %v3048_v15 }
 0x4a8   : > { %3800 = vmatmul.bf16.gmra.mxu2 %v3571_v24 }
 0x4a9   : > { %v4372_v6 = vadd.f32 %v4278_v58, %v3850_v17  ;;  %v3004_v17 = vld [vmem:[#allocation3 + $0x1c8] sm:$0xff] }
 0x4ab   : > { %v4894_v45 = vadd.f32 %v4800_v38, %v4372_v6 }
 0x4ac   : > { %v3235_v28 = vpop.f32.mrf.mxu1  ;;  %v4802_v23 = vpop.f32.mrf.mxu0 }
 0x4ad   : > { %v3328_v21 = vadd.f32 %v3235_v28, %v2998_v50  ;;  %v3758_v61 = vpop.f32.mrf.mxu2  ;;  %4958 = vst [vmem:[#allocation3 + $0x70] sm:$0xff] %v4894_v45  ;;  %v4280_v25 = vpop.f32.mrf.mxu3 }
 0x4ae   : > { %5086 = vst [vmem:[%s15493_s4 + $0x160] sm:$0xff] %v4894_v45 }
 0x4af   : > { %v3851_v14 = vadd.f32 %v3758_v61, %v3328_v21  ;;  %v3005_v61 = vld [vmem:[#allocation3 + $0x170] sm:$0xff] }
 0x4b1   : > { %v4373_v29 = vadd.f32 %v4280_v25, %v3851_v14 }
 0x4b3   : > { %v4895_v47 = vadd.f32 %v4802_v23, %v4373_v29 }
 0x4b4   : > { %v3238_v33 = vpop.f32.mrf.mxu1  ;;  %v4805_v39 = vpop.f32.mrf.mxu0 }
 0x4b5   : > { %v3329_v34 = vadd.f32 %v3238_v33, %v2999_v10  ;;  %v3761_v37 = vpop.f32.mrf.mxu2  ;;  %4959 = vst [vmem:[#allocation3 + $0x90] sm:$0xff] %v4895_v47  ;;  %v4283_v40 = vpop.f32.mrf.mxu3  ;;  %v3006_v10 = vld [vmem:[#allocation3 + $0x178] sm:$0xff] }
 0x4b6   : > { %5087 = vst [vmem:[%s15493_s4 + $0x168] sm:$0xff] %v4895_v47 }
 0x4b7   : > { %v3852_v16 = vadd.f32 %v3761_v37, %v3329_v34  ;;  %4844 = vmatmul.bf16.gmra.mxu0 %v4615_v35 }
 0x4b9   : > { %v4374_v41 = vadd.f32 %v4283_v40, %v3852_v16 }
 0x4bb   : > { %v4896_v48 = vadd.f32 %v4805_v39, %v4374_v41 }
 0x4bc   : > { %v3240_v44 = vpop.f32.mrf.mxu1  ;;  %v4807_v52 = vpop.f32.mrf.mxu0 }
 0x4bd   : > { %v3330_v49 = vadd.f32 %v3240_v44, %v3000_v59  ;;  %v3763_v51 = vpop.f32.mrf.mxu2  ;;  %4960 = vst [vmem:[#allocation3 + $0x1d8] sm:$0xff] %v4896_v48  ;;  %v4285_v22 = vpop.f32.mrf.mxu3  ;;  %v3007_v44 = vld [vmem:[#allocation3 + $0x68] sm:$0xff] }
 0x4be   : > { %5088 = vst [vmem:[%s15493_s4 + $0x170] sm:$0xff] %v4896_v48 }
 0x4bf   : > { %v3853_v54 = vadd.f32 %v3763_v51, %v3330_v49 }
 0x4c1   : > { %v4375_v26 = vadd.f32 %v4285_v22, %v3853_v54 }
 0x4c3   : > { %v4897_v53 = vadd.f32 %v4807_v52, %v4375_v26 }
 0x4c4   : > { %v3243_v5 = vpop.f32.mrf.mxu1  ;;  %v4810_v30 = vpop.f32.mrf.mxu0 }
 0x4c5   : > { %v3331_v55 = vadd.f32 %v3243_v5, %v3001_v20  ;;  %v3766_v56 = vpop.f32.mrf.mxu2  ;;  %4961 = vst [vmem:[#allocation3 + $0xd0] sm:$0xff] %v4897_v53  ;;  %v4288_v57 = vpop.f32.mrf.mxu3  ;;  %v3008_v5 = vld [vmem:[#allocation3 + $0x190] sm:$0xff] }
 0x4c6   : > { %5089 = vst [vmem:[%s15493_s4 + $0x178] sm:$0xff] %v4897_v53 }
 0x4c7   : > { %v3854_v0 = vadd.f32 %v3766_v56, %v3331_v55 }
 0x4c9   : > { %v4376_v60 = vadd.f32 %v4288_v57, %v3854_v0 }
 0x4cb   : > { %v4898_v1 = vadd.f32 %v4810_v30, %v4376_v60 }
 0x4cc   : > { %v3245_v62 = vpop.f32.mrf.mxu1  ;;  %v4812_v3 = vpop.f32.mrf.mxu0 }
 0x4cd   : > { %v3332_v46 = vadd.f32 %v3245_v62, %v3002_v63  ;;  %v3768_v2 = vpop.f32.mrf.mxu2  ;;  %4962 = vst [vmem:[#allocation3 + $0xb8] sm:$0xff] %v4898_v1  ;;  %v4290_v27 = vpop.f32.mrf.mxu3  ;;  %v3009_v62 = vld [vmem:[#allocation3 + $0x198] sm:$0xff] }
 0x4ce   : > { %5090 = vst [vmem:[%s15493_s4 + $0x180] sm:$0xff] %v4898_v1 }
 0x4cf   : > { %v3855_v4 = vadd.f32 %v3768_v2, %v3332_v46 }
 0x4d1   : > { %v4377_v43 = vadd.f32 %v4290_v27, %v3855_v4 }
 0x4d3   : > { %v4899_v9 = vadd.f32 %v4812_v3, %v4377_v43 }
 0x4d4   : > { %v3248_v7 = vpop.f32.mrf.mxu1  ;;  %v4815_v13 = vpop.f32.mrf.mxu0 }
 0x4d5   : > { %v3333_v11 = vadd.f32 %v3248_v7, %v3003_v8  ;;  %v3771_v12 = vpop.f32.mrf.mxu2  ;;  %4963 = vst [vmem:[#allocation3 + $0x88] sm:$0xff] %v4899_v9  ;;  %v4293_v15 = vpop.f32.mrf.mxu3  ;;  %v3010_v7 = vld [vmem:[#allocation3 + $0x38] sm:$0xff] }
 0x4d6   : > { %5091 = vst [vmem:[%s15493_s4 + $0x188] sm:$0xff] %v4899_v9 }
 0x4d7   : > { %v3856_v18 = vadd.f32 %v3771_v12, %v3333_v11 }
 0x4d9   : > { %v4378_v42 = vadd.f32 %v4293_v15, %v3856_v18 }
 0x4db   : > { %v4900_v58 = vadd.f32 %v4815_v13, %v4378_v42 }
 0x4dc   : > { %v3250_v38 = vpop.f32.mrf.mxu1  ;;  %v4817_v50 = vpop.f32.mrf.mxu0 }
 0x4dd   : > { %v3334_v6 = vadd.f32 %v3250_v38, %v3004_v17  ;;  %v3773_v28 = vpop.f32.mrf.mxu2  ;;  %4964 = vst [vmem:[#allocation3 + $0xa8] sm:$0xff] %v4900_v58  ;;  %v4295_v19 = vpop.f32.mrf.mxu3  ;;  %v3011_v38 = vld [vmem:[#allocation3 + $0xc0] sm:$0xff] }
 0x4de   : > { %5092 = vst [vmem:[%s15493_s4 + $0x190] sm:$0xff] %v4900_v58 }
 0x4df   : > { %v3857_v36 = vadd.f32 %v3773_v28, %v3334_v6 }
 0x4e1   : > { %v4379_v45 = vadd.f32 %v4295_v19, %v3857_v36 }
 0x4e3   : > { %v4901_v23 = vadd.f32 %v4817_v50, %v4379_v45 }
 0x4e4   : > { %v3253_v21 = vpop.f32.mrf.mxu1  ;;  %v4820_v25 = vpop.f32.mrf.mxu0 }
 0x4e5   : > { %v3335_v14 = vadd.f32 %v3253_v21, %v3005_v61  ;;  %v3776_v24 = vpop.f32.mrf.mxu2  ;;  %4965 = vst [vmem:[#allocation3 + $0x1c8] sm:$0xff] %v4901_v23  ;;  %v4298_v31 = vpop.f32.mrf.mxu3  ;;  %v3012_v21 = vld [vmem:[#allocation3 + $0x1c0] sm:$0xff] }
 0x4e6   : > { %5093 = vst [vmem:[%s15493_s4 + $0x198] sm:$0xff] %v4901_v23 }
 0x4e7   : > { %v3858_v29 = vadd.f32 %v3776_v24, %v3335_v14 }
 0x4e9   : > { %v4380_v32 = vadd.f32 %v4298_v31, %v3858_v29 }
 0x4eb   : > { %v4902_v47 = vadd.f32 %v4820_v25, %v4380_v32 }
 0x4ec   : > { %v3255_v33 = vpop.f32.mrf.mxu1  ;;  %v4822_v37 = vpop.f32.mrf.mxu0 }
 0x4ed   : > { %v3336_v34 = vadd.f32 %v3255_v33, %v3006_v10  ;;  %v3778_v35 = vpop.f32.mrf.mxu2  ;;  %4966 = vst [vmem:[#allocation3 + $0x170] sm:$0xff] %v4902_v47  ;;  %v4300_v16 = vpop.f32.mrf.mxu3  ;;  %v3013_v33 = vld [vmem:[#allocation3 + $0x158] sm:$0xff] }
 0x4ee   : > { %5094 = vst [vmem:[%s15493_s4 + $0x1a0] sm:$0xff] %v4902_v47 }
 0x4ef   : > { %v3859_v39 = vadd.f32 %v3778_v35, %v3336_v34 }
 0x4f1   : > { %v4381_v40 = vadd.f32 %v4300_v16, %v3859_v39 }
 0x4f3   : > { %v4903_v59 = vadd.f32 %v4822_v37, %v4381_v40 }
 0x4f4   : > { %v3258_v41 = vpop.f32.mrf.mxu1  ;;  %v4825_v51 = vpop.f32.mrf.mxu0 }
 0x4f5   : > { %v3337_v48 = vadd.f32 %v3258_v41, %v3007_v44  ;;  %v3781_v49 = vpop.f32.mrf.mxu2  ;;  %4967 = vst [vmem:[#allocation3 + $0x178] sm:$0xff] %v4903_v59  ;;  %v4303_v54 = vpop.f32.mrf.mxu3  ;;  %v3014_v41 = vld [vmem:[#allocation3 + $0x10] sm:$0xff] }
 0x4f6   : > { %5095 = vst [vmem:[%s15493_s4 + $0x1a8] sm:$0xff] %v4903_v59 }
 0x4f7   : > { %v3860_v52 = vadd.f32 %v3781_v49, %v3337_v48 }
 0x4f9   : > { %v4382_v22 = vadd.f32 %v4303_v54, %v3860_v52 }
 0x4fb   : > { %v4904_v20 = vadd.f32 %v4825_v51, %v4382_v22 }
 0x4fc   : > { %v3260_v26 = vpop.f32.mrf.mxu1  ;;  %v4827_v56 = vpop.f32.mrf.mxu0 }
 0x4fd   : > { %v3338_v53 = vadd.f32 %v3260_v26, %v3008_v5  ;;  %v3783_v55 = vpop.f32.mrf.mxu2  ;;  %4968 = vst [vmem:[#allocation3 + $0x68] sm:$0xff] %v4904_v20  ;;  %v4305_v0 = vpop.f32.mrf.mxu3  ;;  %v3015_v26 = vld [vmem:[#allocation3 + $0x58] sm:$0xff] }
 0x4fe   : > { %5096 = vst [vmem:[%s15493_s4 + $0x1b0] sm:$0xff] %v4904_v20 }
 0x4ff   : > { %v3861_v30 = vadd.f32 %v3783_v55, %v3338_v53 }
 0x501   : > { %v4383_v57 = vadd.f32 %v4305_v0, %v3861_v30 }
 0x503   : > { %v4905_v63 = vadd.f32 %v4827_v56, %v4383_v57 }
 0x504   : > { %v3263_v60 = vpop.f32.mrf.mxu1  ;;  %v4830_v2 = vpop.f32.mrf.mxu0 }
 0x505   : > { %v3339_v1 = vadd.f32 %v3263_v60, %v3009_v62  ;;  %v3786_v46 = vpop.f32.mrf.mxu2  ;;  %4969 = vst [vmem:[#allocation3 + $0x190] sm:$0xff] %v4905_v63  ;;  %v4308_v4 = vpop.f32.mrf.mxu3  ;;  %v3016_v60 = vld [vmem:[#allocation3 + $0xa0] sm:$0xff] }
 0x506   : > { %5097 = vst [vmem:[%s15493_s4 + $0x1b8] sm:$0xff] %v4905_v63 }
 0x507   : > { %v3862_v3 = vadd.f32 %v3786_v46, %v3339_v1 }
 0x509   : > { %v4384_v27 = vadd.f32 %v4308_v4, %v3862_v3 }
 0x50b   : > { %v4906_v8 = vadd.f32 %v4830_v2, %v4384_v27 }
 0x50c   : > { %v3265_v43 = vpop.f32.mrf.mxu1  ;;  %v4832_v12 = vpop.f32.mrf.mxu0 }
 0x50d   : > { %v3340_v9 = vadd.f32 %v3265_v43, %v3010_v7  ;;  %v3788_v11 = vpop.f32.mrf.mxu2  ;;  %4970 = vst [vmem:[#allocation3 + $0x198] sm:$0xff] %v4906_v8  ;;  %v4310_v18 = vpop.f32.mrf.mxu3 }
 0x50e   : > { %5098 = vst [vmem:[%s15493_s4 + $0x1c0] sm:$0xff] %v4906_v8 }
 0x50f   : > { %v3863_v13 = vadd.f32 %v3788_v11, %v3340_v9 }
 0x511   : > { %v4385_v15 = vadd.f32 %v4310_v18, %v3863_v13 }
 0x513   : > { %v4907_v17 = vadd.f32 %v4832_v12, %v4385_v15 }
 0x514   : > { %v3268_v42 = vpop.f32.mrf.mxu1  ;;  %v4835_v28 = vpop.f32.mrf.mxu0 }
 0x515   : > { %v3341_v58 = vadd.f32 %v3268_v42, %v3011_v38  ;;  %v3791_v6 = vpop.f32.mrf.mxu2  ;;  %4971 = vst [vmem:[#allocation3 + $0x38] sm:$0xff] %v4907_v17  ;;  %v4313_v36 = vpop.f32.mrf.mxu3 }
 0x516   : > { %5099 = vst [vmem:[%s15493_s4 + $0x1c8] sm:$0xff] %v4907_v17 }
 0x517   : > { %v3864_v50 = vadd.f32 %v3791_v6, %v3341_v58 }
 0x519   : > { %v4386_v19 = vadd.f32 %v4313_v36, %v3864_v50 }
 0x51b   : > { %v4908_v61 = vadd.f32 %v4835_v28, %v4386_v19 }
 0x51c   : > { %v3270_v45 = vpop.f32.mrf.mxu1  ;;  %v4837_v24 = vpop.f32.mrf.mxu0 }
 0x51d   : > { %v3342_v23 = vadd.f32 %v3270_v45, %v3012_v21  ;;  %v3793_v14 = vpop.f32.mrf.mxu2  ;;  %4972 = vst [vmem:[#allocation3 + $0xc0] sm:$0xff] %v4908_v61  ;;  %v4315_v29 = vpop.f32.mrf.mxu3 }
 0x51e   : > { %5100 = vst [vmem:[%s15493_s4 + $0x1d0] sm:$0xff] %v4908_v61 }
 0x51f   : > { %v3865_v25 = vadd.f32 %v3793_v14, %v3342_v23 }
 0x521   : > { %v4387_v31 = vadd.f32 %v4315_v29, %v3865_v25 }
 0x523   : > { %v4909_v10 = vadd.f32 %v4837_v24, %v4387_v31 }
 0x524   : > { %v3273_v32 = vpop.f32.mrf.mxu1  ;;  %v4840_v35 = vpop.f32.mrf.mxu0 }
 0x525   : > { %v3343_v47 = vadd.f32 %v3273_v32, %v3013_v33  ;;  %v3796_v34 = vpop.f32.mrf.mxu2  ;;  %4973 = vst [vmem:[#allocation3 + $0x1c0] sm:$0xff] %v4909_v10  ;;  %v4318_v39 = vpop.f32.mrf.mxu3 }
 0x526   : > { %5101 = vst [vmem:[%s15493_s4 + $0x1d8] sm:$0xff] %v4909_v10 }
 0x527   : > { %v3866_v37 = vadd.f32 %v3796_v34, %v3343_v47 }
 0x529   : > { %v4388_v16 = vadd.f32 %v4318_v39, %v3866_v37 }
 0x52b   : > { %v4910_v44 = vadd.f32 %v4840_v35, %v4388_v16 }
 0x52c   : > { %v3275_v40 = vpop.f32.mrf.mxu1  ;;  %v4842_v51 = vpop.f32.mrf.mxu0 }
 0x52d   : > { %v3344_v59 = vadd.f32 %v3275_v40, %v3014_v41  ;;  %v3798_v48 = vpop.f32.mrf.mxu2  ;;  %4974 = vst [vmem:[#allocation3 + $0x158] sm:$0xff] %v4910_v44  ;;  %v4320_v52 = vpop.f32.mrf.mxu3 }
 0x52e   : > { %5102 = vst [vmem:[%s15493_s4 + $0x1e0] sm:$0xff] %v4910_v44 }
 0x52f   : > { %v3867_v49 = vadd.f32 %v3798_v48, %v3344_v59 }
 0x531   : > { %v4389_v54 = vadd.f32 %v4320_v52, %v3867_v49 }
 0x533   : > { %v4911_v5 = vadd.f32 %v4842_v51, %v4389_v54 }
 0x534   : > { %v3278_v22 = vpop.f32.mrf.mxu1  ;;  %v4845_v30 = vpop.f32.mrf.mxu0 }
 0x535   : > { %v3345_v20 = vadd.f32 %v3278_v22, %v3015_v26  ;;  %v3801_v53 = vpop.f32.mrf.mxu2  ;;  %4975 = vst [vmem:[#allocation3 + $0x10] sm:$0xff] %v4911_v5  ;;  %v4323_v56 = vpop.f32.mrf.mxu3 }
 0x536   : > { %5103 = vst [vmem:[%s15493_s4 + $0x1e8] sm:$0xff] %v4911_v5 }
 0x537   : > { %v3868_v55 = vadd.f32 %v3801_v53, %v3345_v20 }
 0x539   : > { %v4390_v0 = vadd.f32 %v4323_v56, %v3868_v55 }
 0x53b   : > { %v4912_v62 = vadd.f32 %v4845_v30, %v4390_v0 }
 0x53c   : > { %v3280_v57 = vpop.f32.mrf.mxu1  ;;  %v4847_v4 = vpop.f32.mrf.mxu0 }
 0x53d   : > { %v3346_v63 = vadd.f32 %v3280_v57, %v3016_v60  ;;  %v3803_v1 = vpop.f32.mrf.mxu2  ;;  %4976 = vst [vmem:[#allocation3 + $0x58] sm:$0xff] %v4912_v62  ;;  %v4325_v2 = vpop.f32.mrf.mxu3 }
 0x53e   : > { %5104 = vst [vmem:[%s15493_s4 + $0x1f0] sm:$0xff] %v4912_v62 }
 0x53f   : > { %v3869_v46 = vadd.f32 %v3803_v1, %v3346_v63 }
 0x541   : > { %v4391_v3 = vadd.f32 %v4325_v2, %v3869_v46 }
 0x543   : > { %v4913_v27 = vadd.f32 %v4847_v4, %v4391_v3 }
 0x545   : > { %4977 = vst [vmem:[#allocation3 + $0xa0] sm:$0xff] %v4913_v27 }
 0x546   : > { %5105 = vst [vmem:[%s15493_s4 + $0x1f8] sm:$0xff] %v4913_v27 }
 0x547 PF: > { %p11637_p5 = scmp.le.s32.totalorder %s12314_s16, 0 }
 0x549   : > { %5217 = sbr.rel (%p11637_p5) target bundleno = 2832 (0xb10), region = 44 }
 0x54e   : > { %v12135_v43 = vld [vmem:[%s12334_s27 + $0x38] sm:$0xff]  ;;  %v12134_v7 = vld [vmem:[%s12334_s27 + $0x30] sm:$0xff]  ;;  %v14151_v8 = vld [vmem:[%s15493_s4] sm:$0xff] }
 0x54f   : > { %12225 = vmatpush.bf16.msra.mxu2 %v12135_v43  ;;  %12224 = vmatpush.bf16.msra.mxu1 %v12135_v43  ;;  %v14156_v9 = vld [vmem:[%s15493_s4 + $0x8] sm:$0xff]  ;;  %v14161_v11 = vld [vmem:[%s15493_s4 + $0x10] sm:$0xff]  ;;  %v14168_v13 = vld [vmem:[%s15493_s4 + $0x18] sm:$0xff]  ;;  %v5352_v38 = vmul.f32 %v14151_v8, %v14151_v8 }
 0x550   : > { %12226 = vmatpush.bf16.msra.mxu3 %v12135_v43  ;;  %6055 = vmatpush.bf16.msra.mxu0 %v12135_v43  ;;  %v5282_v12 = vadd.f32 %v14156_v9, %v14151_v8  ;;  %v12133_v18 = vld [vmem:[%s12334_s27 + $0x28] sm:$0xff]  ;;  %v14175_v42 = vld [vmem:[%s15493_s4 + $0x20] sm:$0xff]  ;;  %v5353_v17 = vmul.f32 %v14156_v9, %v14156_v9  ;;  %v5354_v28 = vmul.f32 %v14161_v11, %v14161_v11  ;;  %v14194_v19 = vld [vmem:[%s15493_s4 + $0x30] sm:$0xff] }
 0x551   : > { %v14185_v6 = vld [vmem:[%s15493_s4 + $0x28] sm:$0xff]  ;;  %v12132_v50 = vld [vmem:[%s12334_s27 + $0x20] sm:$0xff]  ;;  %v5355_v45 = vmul.f32 %v14168_v13, %v14168_v13  ;;  %v14202_v23 = vld [vmem:[%s15493_s4 + $0x38] sm:$0xff]  ;;  %v5356_v14 = vmul.f32 %v14175_v42, %v14175_v42  ;;  %v5358_v34 = vmul.f32 %v14194_v19, %v14194_v19 }
 0x552   : > { %v5283_v15 = vadd.f32 %v5282_v12, %v14161_v11  ;;  %v5416_v21 = vadd.f32 %v5353_v17, %v5352_v38  ;;  %v12131_v25 = vld [vmem:[%s12334_s27 + $0x18] sm:$0xff]  ;;  %v5226_v31 = vld [vmem:[%s15493_s4 + $0x40] sm:$0xff]  ;;  %v5357_v32 = vmul.f32 %v14185_v6, %v14185_v6  ;;  %v5227_v47 = vld [vmem:[%s15493_s4 + $0x48] sm:$0xff]  ;;  %v5359_v40 = vmul.f32 %v14202_v23, %v14202_v23 }
 0x553   : > { %12228 = vmatpush.bf16.msra.mxu2 %v12134_v7  ;;  %12227 = vmatpush.bf16.msra.mxu1 %v12134_v7  ;;  %v12130_v37 = vld [vmem:[%s12334_s27 + $0x10] sm:$0xff]  ;;  %v5229_v59 = vld [vmem:[%s15493_s4 + $0x58] sm:$0xff]  ;;  %v5360_v48 = vmul.f32 %v5226_v31, %v5226_v31  ;;  %v12129_v51 = vld [vmem:[%s12334_s27 + $0x8] sm:$0xff]  ;;  %v5361_v22 = vmul.f32 %v5227_v47, %v5227_v47 }
 0x554   : > { %12229 = vmatpush.bf16.msra.mxu3 %v12134_v7  ;;  %6056 = vmatpush.bf16.msra.mxu0 %v12134_v7  ;;  %v5284_v58 = vadd.f32 %v5283_v15, %v14168_v13  ;;  %v5417_v24 = vadd.f32 %v5416_v21, %v5354_v28  ;;  %v5228_v16 = vld [vmem:[%s15493_s4 + $0x50] sm:$0xff]  ;;  %v5230_v54 = vld [vmem:[%s15493_s4 + $0x60] sm:$0xff]  ;;  %v5231_v20 = vld [vmem:[%s15493_s4 + $0x68] sm:$0xff]  ;;  %v5363_v62 = vmul.f32 %v5229_v59, %v5229_v59 }
 0x555   : > { %v5362_v53 = vmul.f32 %v5228_v16, %v5228_v16  ;;  %v12128_v56 = vld [vmem:[%s12334_s27] sm:$0xff]  ;;  %v5863_v30 = vld [vmem:[#allocation2 + $0x1b0] sm:$0xff]  ;;  %v5864_v0 = vld [vmem:[#allocation2 + $0x1b8] sm:$0xff]  ;;  %v5364_v3 = vmul.f32 %v5230_v54, %v5230_v54  ;;  %v5365_v7 = vmul.f32 %v5231_v20, %v5231_v20 }
 0x556   : > { %v5285_v36 = vadd.f32 %v5284_v58, %v14175_v42  ;;  %v5418_v33 = vadd.f32 %v5417_v24, %v5355_v45  ;;  %v14239_v60 = vld [vmem:[%s15493_s4 + $0x70] sm:$0xff]  ;;  %v5975_v46 = vpack.c.bf16 %v5864_v0, %v5863_v30  ;;  %v14244_v2 = vld [vmem:[%s15493_s4 + $0x78] sm:$0xff]  ;;  %v14250_v43 = vld [vmem:[%s15493_s4 + $0x80] sm:$0xff] }
 0x557   : > { %12231 = vmatpush.bf16.msra.mxu2 %v12133_v18  ;;  %12230 = vmatpush.bf16.msra.mxu1 %v12133_v18  ;;  %v14256_v15 = vld [vmem:[%s15493_s4 + $0x88] sm:$0xff]  ;;  %v5366_v38 = vmul.f32 %v14239_v60, %v14239_v60  ;;  %v14264_v28 = vld [vmem:[%s15493_s4 + $0x90] sm:$0xff]  ;;  %v14272_v21 = vld [vmem:[%s15493_s4 + $0x98] sm:$0xff] }
 0x558   : > { %12232 = vmatpush.bf16.msra.mxu3 %v12133_v18  ;;  %6057 = vmatpush.bf16.msra.mxu0 %v12133_v18  ;;  %v5286_v61 = vadd.f32 %v5285_v36, %v14185_v6  ;;  %v5419_v35 = vadd.f32 %v5418_v33, %v5356_v14  ;;  %v14288_v33 = vld [vmem:[%s15493_s4 + $0xa8] sm:$0xff]  ;;  %v14336_v30 = vld [vmem:[%s15493_s4 + $0xd8] sm:$0xff] }
 0x559   : > { %15510 = vst [vmem:[#allocation7_spill] sm:$0xff] %v14336_v30 }
 0x55a   : > { %v5287_v29 = vadd.f32 %v5286_v61, %v14194_v19  ;;  %v5420_v41 = vadd.f32 %v5419_v35, %v5357_v32  ;;  %v5368_v61 = vmul.f32 %v14250_v43, %v14250_v43  ;;  %v14296_v35 = vld [vmem:[%s15493_s4 + $0xb0] sm:$0xff] }
 0x55b   : > { %12234 = vmatpush.bf16.msra.mxu2 %v12132_v50  ;;  %12233 = vmatpush.bf16.msra.mxu1 %v12132_v50 }
 0x55c   : > { %12235 = vmatpush.bf16.msra.mxu3 %v12132_v50  ;;  %6058 = vmatpush.bf16.msra.mxu0 %v12132_v50  ;;  %v5288_v10 = vadd.f32 %v5287_v29, %v14202_v23  ;;  %v5421_v49 = vadd.f32 %v5420_v41, %v5358_v34  ;;  %v5367_v50 = vmul.f32 %v14244_v2, %v14244_v2 }
 0x55d   : > { %v5369_v29 = vmul.f32 %v14256_v15, %v14256_v15 }
 0x55e   : > { %v5289_v39 = vadd.f32 %v5288_v10, %v5226_v31  ;;  %v5422_v26 = vadd.f32 %v5421_v49, %v5359_v40  ;;  %v5370_v10 = vmul.f32 %v14264_v28, %v14264_v28  ;;  %v14304_v40 = vld [vmem:[%s15493_s4 + $0xb8] sm:$0xff]  ;;  %v5373_v49 = vmul.f32 %v14288_v33, %v14288_v33 }
 0x55f   : > { %12237 = vmatpush.bf16.msra.mxu2 %v12131_v25  ;;  %12236 = vmatpush.bf16.msra.mxu1 %v12131_v25 }
 0x560   : > { %12238 = vmatpush.bf16.msra.mxu3 %v12131_v25  ;;  %6059 = vmatpush.bf16.msra.mxu0 %v12131_v25  ;;  %v5290_v44 = vadd.f32 %v5289_v39, %v5227_v47  ;;  %v5423_v55 = vadd.f32 %v5422_v26, %v5360_v48  ;;  %v14280_v25 = vld [vmem:[%s15493_s4 + $0xa0] sm:$0xff] }
 0x561   : > { %v5372_v41 = vmul.f32 %v14280_v25, %v14280_v25  ;;  %v14312_v48 = vld [vmem:[%s15493_s4 + $0xc0] sm:$0xff] }
 0x562   : > { %v5291_v52 = vadd.f32 %v5290_v44, %v5228_v16  ;;  %v5424_v63 = vadd.f32 %v5423_v55, %v5361_v22  ;;  %15507 = vst [vmem:[#allocation4_spill] sm:$0xff] %v14312_v48  ;;  %v5374_v22 = vmul.f32 %v14296_v35, %v14296_v35  ;;  %v5376_v0 = vmul.f32 %v14312_v48, %v14312_v48 }
 0x563   : > { %12240 = vmatpush.bf16.msra.mxu2 %v12130_v37  ;;  %12239 = vmatpush.bf16.msra.mxu1 %v12130_v37 }
 0x564   : > { %12241 = vmatpush.bf16.msra.mxu3 %v12130_v37  ;;  %6060 = vmatpush.bf16.msra.mxu0 %v12130_v37  ;;  %v5292_v5 = vadd.f32 %v5291_v52, %v5229_v59  ;;  %v5425_v4 = vadd.f32 %v5424_v63, %v5362_v53  ;;  %v5371_v37 = vmul.f32 %v14272_v21, %v14272_v21  ;;  %v5246_v63 = vld [vmem:[%s15493_s4 + $0xe0] sm:$0xff] }
 0x565   : > { %v5375_v53 = vmul.f32 %v14304_v40, %v14304_v40 }
 0x566   : > { %v5293_v57 = vadd.f32 %v5292_v5, %v5230_v54  ;;  %v5426_v12 = vadd.f32 %v5425_v4, %v5363_v62  ;;  %v14320_v54 = vld [vmem:[%s15493_s4 + $0xc8] sm:$0xff] }
 0x567   : > { %12243 = vmatpush.bf16.msra.mxu2 %v12129_v51  ;;  %12242 = vmatpush.bf16.msra.mxu1 %v12129_v51  ;;  %15508 = vst [vmem:[#allocation5_spill] sm:$0xff] %v14320_v54  ;;  %v5247_v4 = vld [vmem:[%s15493_s4 + $0xe8] sm:$0xff] }
 0x568   : > { %12244 = vmatpush.bf16.msra.mxu3 %v12129_v51  ;;  %6061 = vmatpush.bf16.msra.mxu0 %v12129_v51  ;;  %v5294_v1 = vadd.f32 %v5293_v57, %v5231_v20  ;;  %v5427_v17 = vadd.f32 %v5426_v12, %v5364_v3  ;;  %v14328_v20 = vld [vmem:[%s15493_s4 + $0xd0] sm:$0xff] }
 0x569   : > { %15509 = vst [vmem:[#allocation6_spill] sm:$0xff] %v14328_v20 }
 0x56a   : > { %v5295_v27 = vadd.f32 %v5294_v1, %v14239_v60  ;;  %v5428_v36 = vadd.f32 %v5427_v17, %v5365_v7  ;;  %v5377_v1 = vmul.f32 %v14320_v54, %v14320_v54 }
 0x56b   : > { %12246 = vmatpush.bf16.msra.mxu2 %v12128_v56  ;;  %12245 = vmatpush.bf16.msra.mxu1 %v12128_v56 }
 0x56c   : > { %12247 = vmatpush.bf16.msra.mxu3 %v12128_v56  ;;  %6062 = vmatpush.bf16.msra.mxu0 %v12128_v56  ;;  %v5296_v18 = vadd.f32 %v5295_v27, %v14244_v2  ;;  %v5429_v14 = vadd.f32 %v5428_v36, %v5366_v38  ;;  %v5378_v27 = vmul.f32 %v14328_v20, %v14328_v20 }
 0x56d   : > { %v5379_v38 = vmul.f32 %v14336_v30, %v14336_v30  ;;  %v5380_v36 = vmul.f32 %v5246_v63, %v5246_v63 }
 0x56e   : > { %6143 = vmatmul.bf16.vlgmr.msra.gmra.mxu2 %v5975_v46  ;;  %v5297_v58 = vadd.f32 %v5296_v18, %v14250_v43  ;;  %v5430_v31 = vadd.f32 %v5429_v14, %v5367_v50  ;;  %v5248_v18 = vld [vmem:[%s15493_s4 + $0xf0] sm:$0xff]  ;;  %v5249_v50 = vld [vmem:[%s15493_s4 + $0xf8] sm:$0xff]  ;;  %v14363_v14 = vld [vmem:[%s15493_s4 + $0x100] sm:$0xff] }
 0x570   : > { %v5298_v45 = vadd.f32 %v5297_v58, %v14256_v15  ;;  %v5431_v47 = vadd.f32 %v5430_v31, %v5368_v61 }
 0x572   : > { %v5299_v24 = vadd.f32 %v5298_v45, %v14264_v28  ;;  %v5432_v39 = vadd.f32 %v5431_v47, %v5369_v29 }
 0x574   : > { %v5300_v32 = vadd.f32 %v5299_v24, %v14272_v21  ;;  %v5433_v44 = vadd.f32 %v5432_v39, %v5370_v10  ;;  %v5381_v24 = vmul.f32 %v5247_v4, %v5247_v4  ;;  %v5382_v10 = vmul.f32 %v5248_v18, %v5248_v18 }
 0x575   : > { %v5383_v39 = vmul.f32 %v5249_v50, %v5249_v50 }
 0x576   : > { %v5301_v34 = vadd.f32 %v5300_v32, %v14280_v25  ;;  %v5434_v51 = vadd.f32 %v5433_v44, %v5371_v37  ;;  %v14368_v32 = vld [vmem:[%s15493_s4 + $0x108] sm:$0xff]  ;;  %v14374_v37 = vld [vmem:[%s15493_s4 + $0x110] sm:$0xff]  ;;  %v14380_v44 = vld [vmem:[%s15493_s4 + $0x118] sm:$0xff] }
 0x578   : > { %v5302_v16 = vadd.f32 %v5301_v34, %v14288_v33  ;;  %v5435_v26 = vadd.f32 %v5434_v51, %v5372_v41 }
 0x57a   : > { %v5303_v59 = vadd.f32 %v5302_v16, %v14296_v35  ;;  %v5436_v55 = vadd.f32 %v5435_v26, %v5373_v49 }
 0x57c   : > { %v5304_v52 = vadd.f32 %v5303_v59, %v14304_v40  ;;  %v5437_v57 = vadd.f32 %v5436_v55, %v5374_v22  ;;  %v5384_v59 = vmul.f32 %v14363_v14, %v14363_v14  ;;  %v5385_v22 = vmul.f32 %v14368_v32, %v14368_v32 }
 0x57d   : > { %v5386_v55 = vmul.f32 %v14374_v37, %v14374_v37 }
 0x57e   : > { %v5305_v5 = vadd.f32 %v5304_v52, %v14312_v48  ;;  %v5438_v46 = vadd.f32 %v5437_v57, %v5375_v53  ;;  %v14388_v52 = vld [vmem:[%s15493_s4 + $0x120] sm:$0xff]  ;;  %v14396_v53 = vld [vmem:[%s15493_s4 + $0x128] sm:$0xff]  ;;  %v14404_v57 = vld [vmem:[%s15493_s4 + $0x130] sm:$0xff] }
 0x580   : > { %v5306_v56 = vadd.f32 %v5305_v5, %v14320_v54  ;;  %v5439_v7 = vadd.f32 %v5438_v46, %v5376_v0  ;;  %v14412_v46 = vld [vmem:[%s15493_s4 + $0x138] sm:$0xff] }
 0x582   : > { %v5307_v62 = vadd.f32 %v5306_v56, %v14328_v20  ;;  %v5440_v17 = vadd.f32 %v5439_v7, %v5377_v1  ;;  %v14420_v7 = vld [vmem:[%s15493_s4 + $0x140] sm:$0xff] }
 0x584   : > { %v5308_v3 = vadd.f32 %v5307_v62, %v14336_v30  ;;  %v5441_v45 = vadd.f32 %v5440_v17, %v5378_v27  ;;  %v5387_v62 = vmul.f32 %v14380_v44, %v14380_v44  ;;  %v14428_v17 = vld [vmem:[%s15493_s4 + $0x148] sm:$0xff] }
 0x586   : > { %v5309_v12 = vadd.f32 %v5308_v3, %v5246_v63  ;;  %v5442_v29 = vadd.f32 %v5441_v45, %v5379_v38  ;;  %v5388_v3 = vmul.f32 %v14388_v52, %v14388_v52  ;;  %v14436_v45 = vld [vmem:[%s15493_s4 + $0x150] sm:$0xff] }
 0x587   : > { %15511 = vst [vmem:[#allocation8_spill] sm:$0xff] %v14436_v45 }
 0x588   : > { %v5310_v58 = vadd.f32 %v5309_v12, %v5247_v4  ;;  %v5443_v47 = vadd.f32 %v5442_v29, %v5380_v36  ;;  %v5389_v12 = vmul.f32 %v14396_v53, %v14396_v53 }
 0x58a   : > { %v5311_v61 = vadd.f32 %v5310_v58, %v5248_v18  ;;  %v5444_v16 = vadd.f32 %v5443_v47, %v5381_v24  ;;  %v5390_v58 = vmul.f32 %v14404_v57, %v14404_v57 }
 0x58c   : > { %v5312_v31 = vadd.f32 %v5311_v61, %v5249_v50  ;;  %v5445_v49 = vadd.f32 %v5444_v16, %v5382_v10  ;;  %v5391_v61 = vmul.f32 %v14412_v46, %v14412_v46  ;;  %v5392_v10 = vmul.f32 %v14420_v7, %v14420_v7 }
 0x58d   : > { %v5393_v16 = vmul.f32 %v14428_v17, %v14428_v17 }
 0x58e   : > { %v5313_v34 = vadd.f32 %v5312_v31, %v14363_v14  ;;  %v5446_v26 = vadd.f32 %v5445_v49, %v5383_v39  ;;  %v14444_v31 = vld [vmem:[%s15493_s4 + $0x158] sm:$0xff]  ;;  %v14452_v39 = vld [vmem:[%s15493_s4 + $0x160] sm:$0xff]  ;;  %v14460_v49 = vld [vmem:[%s15493_s4 + $0x168] sm:$0xff] }
 0x58f   : > { %15512 = vst [vmem:[#allocation9_spill] sm:$0xff] %v14444_v31 }
 0x590   : > { %v5314_v41 = vadd.f32 %v5313_v34, %v14368_v32  ;;  %v5447_v56 = vadd.f32 %v5446_v26, %v5384_v59  ;;  %15513 = vst [vmem:[#allocation10_spill] sm:$0xff] %v14452_v39 }
 0x591   : > { %15514 = vst [vmem:[#allocation11_spill] sm:$0xff] %v14460_v49 }
 0x592   : > { %v5315_v51 = vadd.f32 %v5314_v41, %v14374_v37  ;;  %v5448_v63 = vadd.f32 %v5447_v56, %v5385_v22 }
 0x594   : > { %v5316_v5 = vadd.f32 %v5315_v51, %v14380_v44  ;;  %v5449_v4 = vadd.f32 %v5448_v63, %v5386_v55  ;;  %v5394_v51 = vmul.f32 %v14436_v45, %v14436_v45  ;;  %v5395_v55 = vmul.f32 %v14444_v31, %v14444_v31 }
 0x595   : > { %v5396_v63 = vmul.f32 %v14452_v39, %v14452_v39 }
 0x596   : > { %v5317_v0 = vadd.f32 %v5316_v5, %v14388_v52  ;;  %v5450_v18 = vadd.f32 %v5449_v4, %v5387_v62  ;;  %v14468_v5 = vld [vmem:[%s15493_s4 + $0x170] sm:$0xff]  ;;  %v14476_v62 = vld [vmem:[%s15493_s4 + $0x178] sm:$0xff]  ;;  %v14484_v4 = vld [vmem:[%s15493_s4 + $0x180] sm:$0xff] }
 0x598   : > { %v5318_v1 = vadd.f32 %v5317_v0, %v14396_v53  ;;  %v5451_v50 = vadd.f32 %v5450_v18, %v5388_v3 }
 0x59a   : > { %v5319_v27 = vadd.f32 %v5318_v1, %v14404_v57  ;;  %v5452_v24 = vadd.f32 %v5451_v50, %v5389_v12 }
 0x59c   : > { %v5320_v38 = vadd.f32 %v5319_v27, %v14412_v46  ;;  %v5453_v47 = vadd.f32 %v5452_v24, %v5390_v58  ;;  %v5397_v27 = vmul.f32 %v14460_v49, %v14460_v49  ;;  %v5398_v58 = vmul.f32 %v14468_v5, %v14468_v5 }
 0x59d   : > { %v5399_v24 = vmul.f32 %v14476_v62, %v14476_v62 }
 0x59e   : > { %v5321_v36 = vadd.f32 %v5320_v38, %v14420_v7  ;;  %v5454_v41 = vadd.f32 %v5453_v47, %v5391_v61  ;;  %v14492_v38 = vld [vmem:[%s15493_s4 + $0x188] sm:$0xff]  ;;  %v14500_v61 = vld [vmem:[%s15493_s4 + $0x190] sm:$0xff]  ;;  %v14508_v47 = vld [vmem:[%s15493_s4 + $0x198] sm:$0xff] }
 0x5a0   : > { %v5322_v29 = vadd.f32 %v5321_v36, %v14428_v17  ;;  %v5455_v22 = vadd.f32 %v5454_v41, %v5392_v10 }
 0x5a2   : > { %v5323_v34 = vadd.f32 %v5322_v29, %v14436_v45  ;;  %v5456_v56 = vadd.f32 %v5455_v22, %v5393_v16 }
 0x5a4   : > { %v5324_v59 = vadd.f32 %v5323_v34, %v14444_v31  ;;  %v5457_v1 = vadd.f32 %v5456_v56, %v5394_v51  ;;  %v5400_v34 = vmul.f32 %v14484_v4, %v14484_v4  ;;  %v5401_v51 = vmul.f32 %v14492_v38, %v14492_v38 }
 0x5a5   : > { %v5402_v56 = vmul.f32 %v14500_v61, %v14500_v61 }
 0x5a6   : > { %v5325_v26 = vadd.f32 %v5324_v59, %v14452_v39  ;;  %v5458_v12 = vadd.f32 %v5457_v1, %v5395_v55  ;;  %v14516_v59 = vld [vmem:[%s15493_s4 + $0x1a0] sm:$0xff]  ;;  %v14524_v55 = vld [vmem:[%s15493_s4 + $0x1a8] sm:$0xff]  ;;  %v14532_v1 = vld [vmem:[%s15493_s4 + $0x1b0] sm:$0xff] }
 0x5a8   : > { %v5326_v0 = vadd.f32 %v5325_v26, %v14460_v49  ;;  %v5459_v50 = vadd.f32 %v5458_v12, %v5396_v63 }
 0x5aa   : > { %v5327_v3 = vadd.f32 %v5326_v0, %v14468_v5  ;;  %v5460_v29 = vadd.f32 %v5459_v50, %v5397_v27 }
 0x5ac   : > { %v5328_v18 = vadd.f32 %v5327_v3, %v14476_v62  ;;  %v5461_v16 = vadd.f32 %v5460_v29, %v5398_v58  ;;  %v5403_v3 = vmul.f32 %v14508_v47, %v14508_v47  ;;  %v5404_v58 = vmul.f32 %v14516_v59, %v14516_v59 }
 0x5ad   : > { %v5405_v29 = vmul.f32 %v14524_v55, %v14524_v55 }
 0x5ae   : > { %v5329_v36 = vadd.f32 %v5328_v18, %v14484_v4  ;;  %v5462_v22 = vadd.f32 %v5461_v16, %v5399_v24  ;;  %v14540_v18 = vld [vmem:[%s15493_s4 + $0x1b8] sm:$0xff]  ;;  %v14548_v24 = vld [vmem:[%s15493_s4 + $0x1c0] sm:$0xff]  ;;  %v14556_v16 = vld [vmem:[%s15493_s4 + $0x1c8] sm:$0xff] }
 0x5af   : > { %15515 = vst [vmem:[#allocation12_spill] sm:$0xff] %v14548_v24 }
 0x5b0   : > { %v5330_v10 = vadd.f32 %v5329_v36, %v14492_v38  ;;  %v5463_v0 = vadd.f32 %v5462_v22, %v5400_v34  ;;  %15516 = vst [vmem:[#allocation13_spill] sm:$0xff] %v14556_v16 }
 0x5b2   : > { %v5331_v41 = vadd.f32 %v5330_v10, %v14500_v61  ;;  %v5464_v27 = vadd.f32 %v5463_v0, %v5401_v51 }
 0x5b4   : > { %v5332_v26 = vadd.f32 %v5331_v41, %v14508_v47  ;;  %v5465_v50 = vadd.f32 %v5464_v27, %v5402_v56  ;;  %v5406_v41 = vmul.f32 %v14532_v1, %v14532_v1  ;;  %v5407_v56 = vmul.f32 %v14540_v18, %v14540_v18 }
 0x5b5   : > { %v5408_v27 = vmul.f32 %v14548_v24, %v14548_v24 }
 0x5b6   : > { %v5333_v63 = vadd.f32 %v5332_v26, %v14516_v59  ;;  %v5466_v10 = vadd.f32 %v5465_v50, %v5403_v3  ;;  %v14564_v26 = vld [vmem:[%s15493_s4 + $0x1d0] sm:$0xff]  ;;  %v14572_v3 = vld [vmem:[%s15493_s4 + $0x1d8] sm:$0xff]  ;;  %v14580_v50 = vld [vmem:[%s15493_s4 + $0x1e0] sm:$0xff] }
 0x5b7   : > { %15517 = vst [vmem:[#allocation14_spill] sm:$0xff] %v14564_v26  ;;  %v5412_v49 = vmul.f32 %v14580_v50, %v14580_v50 }
 0x5b8   : > { %v5334_v12 = vadd.f32 %v5333_v63, %v14524_v55  ;;  %v5467_v51 = vadd.f32 %v5466_v10, %v5404_v58  ;;  %15518 = vst [vmem:[#allocation15_spill] sm:$0xff] %v14572_v3 }
 0x5b9   : > { %15519 = vst [vmem:[#allocation16_spill] sm:$0xff] %v14580_v50 }
 0x5ba   : > { %v5335_v36 = vadd.f32 %v5334_v12, %v14532_v1  ;;  %v5468_v0 = vadd.f32 %v5467_v51, %v5405_v29 }
 0x5bc   : > { %v5336_v34 = vadd.f32 %v5335_v36, %v14540_v18  ;;  %v5469_v12 = vadd.f32 %v5468_v0, %v5406_v41  ;;  %v5409_v36 = vmul.f32 %v14556_v16, %v14556_v16  ;;  %v5410_v41 = vmul.f32 %v14564_v26, %v14564_v26  ;;  %v5280_v0 = vld [vmem:[%s15493_s4 + $0x1f0] sm:$0xff] }
 0x5bd   : > { %v5414_v30 = vmul.f32 %v5280_v0, %v5280_v0 }
 0x5be   : > { %v5337_v22 = vadd.f32 %v5336_v34, %v14548_v24  ;;  %v5470_v29 = vadd.f32 %v5469_v12, %v5407_v56  ;;  %v14588_v34 = vld [vmem:[%s15493_s4 + $0x1e8] sm:$0xff]  ;;  %v5411_v56 = vmul.f32 %v14572_v3, %v14572_v3 }
 0x5c0   : > { %v5338_v63 = vadd.f32 %v5337_v22, %v14556_v16  ;;  %v5471_v51 = vadd.f32 %v5470_v29, %v5408_v27 }
 0x5c2   : > { %v5339_v58 = vadd.f32 %v5338_v63, %v14564_v26  ;;  %v5472_v63 = vadd.f32 %v5471_v51, %v5409_v36 }
 0x5c4   : > { %v5340_v10 = vadd.f32 %v5339_v58, %v14572_v3  ;;  %v5281_v58 = vld [vmem:[%s15493_s4 + $0x1f8] sm:$0xff]  ;;  %v5473_v27 = vadd.f32 %v5472_v63, %v5410_v41 }
 0x5c5   : > { %v5415_v36 = vmul.f32 %v5281_v58, %v5281_v58 }
 0x5c6   : > { %v5341_v22 = vadd.f32 %v5340_v10, %v14580_v50  ;;  %v5413_v10 = vmul.f32 %v14588_v34, %v14588_v34  ;;  %v5474_v39 = vadd.f32 %v5473_v27, %v5411_v56 }
 0x5c8   : > { %v5342_v12 = vadd.f32 %v5341_v22, %v14588_v34  ;;  %v5475_v20 = vadd.f32 %v5474_v39, %v5412_v49 }
 0x5ca   : > { %v5343_v29 = vadd.f32 %v5342_v12, %v5280_v0  ;;  %v5476_v51 = vadd.f32 %v5475_v20, %v5413_v10  ;;  %v5488_v10 = vld [vmem:[%s207_s21] sm:$0x1] }
 0x5cc   : > { %v5344_v26 = vadd.f32 %v5343_v29, %v5281_v58  ;;  %v5477_v31 = vadd.f32 %v5476_v51, %v5414_v30  ;;  %v12159_v29 = vld [vmem:[%s12334_s27 + $0xf8] sm:$0xff] }
 0x5cd   : > { %7621 = vmatpush.bf16.msrb.mxu3 %v12159_v29 }
 0x5ce   : > { %v5345_v3 = vrot.slane %v5344_v26, 4  ;;  %v5478_v16 = vadd.f32 %v5477_v31, %v5415_v36 }
 0x5d0   : > { %v5346_v22 = vadd.f32 %v5345_v3, %v5344_v26  ;;  %v5479_v54 = vrot.slane %v5478_v16, 4  ;;  %v5832_v26 = vld [vmem:[#allocation2 + $0x8] sm:$0xff] }
 0x5d2   : > { %v5347_v45 = vrot.slane %v5346_v22, 2  ;;  %v5480_v50 = vadd.f32 %v5479_v54, %v5478_v16 }
 0x5d4   : > { %v5348_v24 = vadd.f32 %v5347_v45, %v5346_v22  ;;  %v5481_v63 = vrot.slane %v5480_v50, 2  ;;  %v5831_v45 = vld [vmem:[#allocation2] sm:$0xff] }
 0x5d5   : > { %v5959_v16 = vpack.c.bf16 %v5832_v26, %v5831_v45  ;;  %v12150_v45 = vld [vmem:[%s12334_s27 + $0xb0] sm:$0xff] }
 0x5d6   : > { %v5349_v48 = vrot.slane %v5348_v24, 1  ;;  %v5482_v56 = vadd.f32 %v5481_v63, %v5480_v50 }
 0x5d7   : > { %6063 = vmatmul.bf16.vlgmr.msra.gmra.mxu0 %v5959_v16 }
 0x5d8   : > { %v5350_v41 = vadd.f32 %v5349_v48, %v5348_v24  ;;  %v5483_v27 = vrot.slane %v5482_v56, 1  ;;  %v12143_v48 = vld [vmem:[%s12334_s27 + $0x78] sm:$0xff] }
 0x5d9   : > { %v12151_v24 = vld [vmem:[%s12334_s27 + $0xb8] sm:$0xff]  ;;  %6577 = vmatpush.bf16.msrb.mxu1 %v12143_v48 }
 0x5da   : > { %v5351_v12 = vmul.f32 0.001953125, %v5350_v41  ;;  %v5484_v0 = vadd.f32 %v5483_v27, %v5482_v56  ;;  %7099 = vmatpush.bf16.msrb.mxu2 %v12151_v24  ;;  %v5501_v41 = vld [vmem:[%s210_s24] sm:$0x1] }
 0x5dc   : > { %v5486_v39 = vmul.f32 %v5351_v12, %v5351_v12  ;;  %v5485_v49 = vmul.f32 0.001953125, %v5484_v0 }
 0x5de   : > { %v5487_v58 = vsub.f32 %v5485_v49, %v5486_v39  ;;  %7100 = vmatpush.bf16.msrb.mxu2 %v12150_v45 }
 0x5e0   : > { %v5489_v20 = vadd.f32 1e-05, %v5487_v58 }
 0x5e2   : > { %12260 = vrsqrt.f32 %v5489_v20  ;;  %vm5496_vm0 = vweird.f32 %v5489_v20 }
 0x5e8   : > { %v12261_v30 = vpop.eup %12260 }
 0x5e9   : > { %v5491_v31 = vmul.f32 %v12261_v30, %v5489_v20  ;;  %vm5497_vm1 = vweird.f32 %v12261_v30 }
 0x5ea   : > { %vm5498_vm2 = vmor %vm5496_vm0, %vm5497_vm1 }
 0x5eb   : > { %v5492_v54 = vmul.f32 %v12261_v30, %v5491_v31  ;;  %v12142_v31 = vld [vmem:[%s12334_s27 + $0x70] sm:$0xff] }
 0x5ec   : > { %6578 = vmatpush.bf16.msrb.mxu1 %v12142_v31 }
 0x5ed   : > { %v5493_v3 = vmul.f32 0.5, %v5492_v54 }
 0x5ef   : > { %v5494_v50 = vsub.f32 1.5, %v5493_v3 }
 0x5f1   : > { %v5495_v36 = vmul.f32 %v12261_v30, %v5494_v50 }
 0x5f3   : > { %v5499_v51 = vsel %vm5498_vm2, %v12261_v30, %v5495_v36  ;;  %v12158_v36 = vld [vmem:[%s12334_s27 + $0xf0] sm:$0xff] }
 0x5f4   : > { %v5500_v22 = vmul.f32 %v5499_v51, %v5488_v10  ;;  %v12167_v51 = vld [vmem:[%s12334_s27 + $0x138] sm:$0xff]  ;;  %7622 = vmatpush.bf16.msrb.mxu3 %v12158_v36 }
 0x5f5   : > { %8143 = vmatpush.bf16.msrb.mxu0 %v12167_v51 }
 0x5f6   : > { %v5502_v63 = vmul.f32 %v5500_v22, %v5351_v12  ;;  %v14619_v56 = vperm.slane %v5500_v22, 0 }
 0x5f8   : > { %v5503_v27 = vsub.f32 %v5501_v41, %v5502_v63  ;;  %v5521_v0 = vmul.f32 %v14619_v56, %v14239_v60  ;;  %v5522_v39 = vmul.f32 %v14619_v56, %v14244_v2  ;;  %v5553_v49 = vmul.f32 %v14619_v56, %v14468_v5 }
 0x5f9   : > { %v5554_v58 = vmul.f32 %v14619_v56, %v14476_v62  ;;  %v5539_v20 = vmul.f32 %v14619_v56, %v14363_v14  ;;  %v5540_v12 = vmul.f32 %v14619_v56, %v14368_v32  ;;  %v5523_v60 = vmul.f32 %v14619_v56, %v14250_v43 }
 0x5fa   : > { %v14633_v30 = vperm.slane %v5503_v27, 0  ;;  %v5524_v2 = vmul.f32 %v14619_v56, %v14256_v15  ;;  %v5555_v5 = vmul.f32 %v14619_v56, %v14484_v4  ;;  %v5556_v15 = vmul.f32 %v14619_v56, %v14492_v38 }
 0x5fb   : > { %v5541_v4 = vmul.f32 %v14619_v56, %v14374_v37  ;;  %v5542_v10 = vmul.f32 %v14619_v56, %v14380_v44  ;;  %v5525_v63 = vmul.f32 %v14619_v56, %v14264_v28  ;;  %v5526_v27 = vmul.f32 %v14619_v56, %v14272_v21 }
 0x5fc   : > { %v5588_v62 = vadd.f32 %v14633_v30, %v5521_v0  ;;  %v5589_v14 = vadd.f32 %v14633_v30, %v5522_v39  ;;  %v5620_v32 = vadd.f32 %v14633_v30, %v5553_v49  ;;  %v5621_v26 = vadd.f32 %v14633_v30, %v5554_v58 }
 0x5fd   : > { %v5606_v43 = vadd.f32 %v14633_v30, %v5539_v20  ;;  %v5607_v54 = vadd.f32 %v14633_v30, %v5540_v12  ;;  %v5590_v3 = vadd.f32 %v14633_v30, %v5523_v60  ;;  %v5591_v29 = vadd.f32 %v14633_v30, %v5524_v2 }
 0x5fe   : > { %v5652_v48 = vmax.f32 %v5588_v62, 0.0  ;;  %v5653_v24 = vmax.f32 %v5589_v14, 0.0  ;;  %v5684_v16 = vmax.f32 %v5620_v32, 0.0  ;;  %v5685_v50 = vmax.f32 %v5621_v26, 0.0 }
 0x5ff   : > { %v5670_v22 = vmax.f32 %v5606_v43, 0.0  ;;  %v5671_v38 = vmax.f32 %v5607_v54, 0.0  ;;  %v5622_v41 = vadd.f32 %v14633_v30, %v5555_v5  ;;  %v5623_v37 = vadd.f32 %v14633_v30, %v5556_v15 }
 0x600   : > { %5717 = vst [vmem:[#allocation2 + $0xc1] sm:$0xff] %v5652_v48  ;;  %v5654_v44 = vmax.f32 %v5590_v3, 0.0  ;;  %v5608_v0 = vadd.f32 %v14633_v30, %v5541_v4  ;;  %v5507_v39 = vmul.f32 %v14619_v56, %v14151_v8  ;;  %v5655_v49 = vmax.f32 %v5591_v29, 0.0  ;;  %v12149_v29 = vld [vmem:[%s12334_s27 + $0xa8] sm:$0xff] }
 0x601   : > { %5718 = vst [vmem:[#allocation2 + $0xc9] sm:$0xff] %v5653_v24  ;;  %v5609_v58 = vadd.f32 %v14633_v30, %v5542_v10  ;;  %v5508_v20 = vmul.f32 %v14619_v56, %v14156_v9  ;;  %v5686_v12 = vmax.f32 %v5622_v41, 0.0  ;;  %v5592_v28 = vadd.f32 %v14633_v30, %v5525_v63  ;;  %7101 = vmatpush.bf16.msrb.mxu2 %v12149_v29 }
 0x602   : > { %5749 = vst [vmem:[#allocation2 + $0x271] sm:$0xff] %v5684_v16  ;;  %v5557_v21 = vmul.f32 %v14619_v56, %v14500_v61  ;;  %v5558_v60 = vmul.f32 %v14619_v56, %v14508_v47  ;;  %v5687_v2 = vmax.f32 %v5623_v37, 0.0  ;;  %v5593_v8 = vadd.f32 %v14633_v30, %v5526_v27 }
 0x603   : > { %5750 = vst [vmem:[#allocation2 + $0x279] sm:$0xff] %v5685_v50  ;;  %v5672_v31 = vmax.f32 %v5608_v0, 0.0  ;;  %v14678_v45 = vadd.f32 %v14633_v30, %v5507_v39  ;;  %v5543_v9 = vmul.f32 %v14619_v56, %v14388_v52  ;;  %v5673_v62 = vmax.f32 %v5609_v58, 0.0  ;;  %v12141_v50 = vld [vmem:[%s12334_s27 + $0x68] sm:$0xff]  ;;  %v12166_v39 = vld [vmem:[%s12334_s27 + $0x130] sm:$0xff] }
 0x604   : > { %5735 = vst [vmem:[#allocation2 + $0x1c9] sm:$0xff] %v5670_v22  ;;  %v14683_v61 = vadd.f32 %v14633_v30, %v5508_v20  ;;  %v5544_v47 = vmul.f32 %v14619_v56, %v14396_v53  ;;  %v5656_v32 = vmax.f32 %v5592_v28, 0.0  ;;  %v5624_v26 = vadd.f32 %v14633_v30, %v5557_v21  ;;  %6579 = vmatpush.bf16.msrb.mxu1 %v12141_v50 }
 0x605   : > { %5736 = vst [vmem:[#allocation2 + $0x1d1] sm:$0xff] %v5671_v38  ;;  %v5625_v43 = vadd.f32 %v14633_v30, %v5558_v60  ;;  %v5657_v15 = vmax.f32 %v5593_v8, 0.0  ;;  %v5638_v48 = vmax.f32 %v14678_v45, 0.0  ;;  %v5610_v24 = vadd.f32 %v14633_v30, %v5543_v9  ;;  %8144 = vmatpush.bf16.msrb.mxu0 %v12166_v39 }
 0x606   : > { %5719 = vst [vmem:[#allocation2 + $0xd9] sm:$0xff] %v5654_v44  ;;  %v5509_v53 = vmul.f32 %v14619_v56, %v14161_v11  ;;  %v5639_v10 = vmax.f32 %v14683_v61, 0.0  ;;  %v5611_v36 = vadd.f32 %v14633_v30, %v5544_v47  ;;  %v5510_v51 = vmul.f32 %v14619_v56, %v14168_v13 }
 0x607   : > { %v5847_v5 = vld [vmem:[#allocation2 + $0xc0] sm:$0xff]  ;;  %5720 = vst [vmem:[#allocation2 + $0xe1] sm:$0xff] %v5655_v49  ;;  %v5688_v38 = vmax.f32 %v5624_v26, 0.0  ;;  %v5689_v41 = vmax.f32 %v5625_v43, 0.0  ;;  %v5527_v37 = vmul.f32 %v14619_v56, %v14280_v25  ;;  %v5528_v63 = vmul.f32 %v14619_v56, %v14288_v33  ;;  %v12157_v33 = vld [vmem:[%s12334_s27 + $0xe8] sm:$0xff] }
 0x608   : > { %v5848_v14 = vld [vmem:[#allocation2 + $0xc8] sm:$0xff]  ;;  %5751 = vst [vmem:[#allocation2 + $0x289] sm:$0xff] %v5686_v12  ;;  %v5674_v13 = vmax.f32 %v5610_v24, 0.0  ;;  %v14706_v27 = vadd.f32 %v14633_v30, %v5509_v53  ;;  %v5559_v44 = vmul.f32 %v14619_v56, %v14516_v59  ;;  %v5560_v0 = vmul.f32 %v14619_v56, %v14524_v55  ;;  %7623 = vmatpush.bf16.msrb.mxu3 %v12157_v33 }
 0x609   : > { %v5967_v54 = vpack.c.bf16 %v5848_v14, %v5847_v5  ;;  %v5879_v52 = vld [vmem:[#allocation2 + $0x270] sm:$0xff]  ;;  %5752 = vst [vmem:[#allocation2 + $0x291] sm:$0xff] %v5687_v2  ;;  %v5675_v25 = vmax.f32 %v5611_v36, 0.0  ;;  %v5594_v49 = vadd.f32 %v14633_v30, %v5527_v37  ;;  %v5595_v58 = vadd.f32 %v14633_v30, %v5528_v63 }
 0x60a   : > { %v5880_v4 = vld [vmem:[#allocation2 + $0x278] sm:$0xff]  ;;  %5737 = vst [vmem:[#allocation2 + $0x1e1] sm:$0xff] %v5672_v31  ;;  %v14719_v20 = vadd.f32 %v14633_v30, %v5510_v51  ;;  %v5626_v59 = vadd.f32 %v14633_v30, %v5559_v44  ;;  %v5511_v55 = vmul.f32 %v14619_v56, %v14175_v42  ;;  %v5627_v21 = vadd.f32 %v14633_v30, %v5560_v0  ;;  %v12140_v51 = vld [vmem:[%s12334_s27 + $0x60] sm:$0xff]  ;;  %v12165_v44 = vld [vmem:[%s12334_s27 + $0x128] sm:$0xff] }
 0x60b   : > { %6103 = vmatmul.bf16.vlgmr.msra.gmra.mxu1 %v5967_v54  ;;  %v5983_v16 = vpack.c.bf16 %v5880_v4, %v5879_v52  ;;  %v5865_v3 = vld [vmem:[#allocation2 + $0x1c8] sm:$0xff]  ;;  %5738 = vst [vmem:[#allocation2 + $0x1e9] sm:$0xff] %v5673_v62  ;;  %v5658_v12 = vmax.f32 %v5594_v49, 0.0  ;;  %v5659_v28 = vmax.f32 %v5595_v58, 0.0  ;;  %v5512_v60 = vmul.f32 %v14619_v56, %v14185_v6  ;;  %8145 = vmatpush.bf16.msrb.mxu0 %v12165_v44 }
 0x60c   : > { %v5866_v22 = vld [vmem:[#allocation2 + $0x1d0] sm:$0xff]  ;;  %5721 = vst [vmem:[#allocation2 + $0xf1] sm:$0xff] %v5656_v32  ;;  %v5640_v2 = vmax.f32 %v14706_v27, 0.0  ;;  %v5641_v8 = vmax.f32 %v14719_v20, 0.0  ;;  %v5545_v31 = vmul.f32 %v14619_v56, %v14404_v57  ;;  %v5546_v42 = vmul.f32 %v14619_v56, %v14412_v46  ;;  %6580 = vmatpush.bf16.msrb.mxu1 %v12140_v51  ;;  %v15523_v51 = vld [vmem:[#allocation13_spill] sm:$0xff] }
 0x60d   : > { %6183 = vmatmul.bf16.vlgmr.msra.gmra.mxu3 %v5983_v16  ;;  %v5976_v11 = vpack.c.bf16 %v5866_v22, %v5865_v3  ;;  %5722 = vst [vmem:[#allocation2 + $0xf9] sm:$0xff] %v5657_v15  ;;  %v5849_v9 = vld [vmem:[#allocation2 + $0xd8] sm:$0xff]  ;;  %v5690_v62 = vmax.f32 %v5626_v59, 0.0  ;;  %v14734_v47 = vadd.f32 %v14633_v30, %v5511_v55  ;;  %v5691_v14 = vmax.f32 %v5627_v21, 0.0  ;;  %v12148_v22 = vld [vmem:[%s12334_s27 + $0xa0] sm:$0xff] }
 0x60e   : > { %5703 = vst [vmem:[#allocation2 + $0x19] sm:$0xff] %v5638_v48  ;;  %v5850_v5 = vld [vmem:[#allocation2 + $0xe0] sm:$0xff]  ;;  %v5612_v32 = vadd.f32 %v14633_v30, %v5545_v31  ;;  %v5613_v26 = vadd.f32 %v14633_v30, %v5546_v42  ;;  %v14739_v43 = vadd.f32 %v14633_v30, %v5512_v60  ;;  %7102 = vmatpush.bf16.msrb.mxu2 %v12148_v22 }
 0x60f   : > { %6148 = vmatmul.bf16.gmra.mxu2 %v5976_v11  ;;  %5704 = vst [vmem:[#allocation2 + $0x21] sm:$0xff] %v5639_v10  ;;  %v5881_v57 = vld [vmem:[#allocation2 + $0x288] sm:$0xff]  ;;  %v5968_v52 = vpack.c.bf16 %v5850_v5, %v5849_v9  ;;  %v5642_v3 = vmax.f32 %v14734_v47, 0.0  ;;  %v5561_v11 = vmul.f32 %v14619_v56, %v14532_v1  ;;  %v5562_v37 = vmul.f32 %v14619_v56, %v14540_v18 }
 0x610   : > { %5753 = vst [vmem:[#allocation2 + $0x2a1] sm:$0xff] %v5688_v38  ;;  %v5882_v54 = vld [vmem:[#allocation2 + $0x290] sm:$0xff]  ;;  %v5676_v4 = vmax.f32 %v5612_v32, 0.0  ;;  %v5677_v24 = vmax.f32 %v5613_v26, 0.0  ;;  %v5643_v29 = vmax.f32 %v14739_v43, 0.0  ;;  %v5529_v38 = vmul.f32 %v14619_v56, %v14296_v35  ;;  %v12156_v35 = vld [vmem:[%s12334_s27 + $0xe0] sm:$0xff] }
 0x611   : > { %5754 = vst [vmem:[#allocation2 + $0x2a9] sm:$0xff] %v5689_v41  ;;  %v5867_v53 = vld [vmem:[#allocation2 + $0x1e0] sm:$0xff]  ;;  %v5984_v50 = vpack.c.bf16 %v5882_v54, %v5881_v57  ;;  %v5530_v41 = vmul.f32 %v14619_v56, %v14304_v40  ;;  %v5513_v63 = vmul.f32 %v14619_v56, %v14194_v19  ;;  %v5629_v1 = vadd.f32 %v14633_v30, %v5562_v37 }
 0x612   : > { %5739 = vst [vmem:[#allocation2 + $0x1f9] sm:$0xff] %v5674_v13  ;;  %v5868_v16 = vld [vmem:[#allocation2 + $0x1e8] sm:$0xff]  ;;  %v5514_v13 = vmul.f32 %v14619_v56, %v14202_v23  ;;  %v5596_v40 = vadd.f32 %v14633_v30, %v5529_v38  ;;  %7624 = vmatpush.bf16.msrb.mxu3 %v12156_v35  ;;  %v5547_v55 = vmul.f32 %v14619_v56, %v14420_v7  ;;  %v12262_v38 = vld [vmem:[%s15493_s4 + $0x40] sm:$0xff] }
 0x613   : > { %5740 = vst [vmem:[#allocation2 + $0x201] sm:$0xff] %v5675_v25  ;;  %v5977_v36 = vpack.c.bf16 %v5868_v16, %v5867_v53  ;;  %v5597_v0 = vadd.f32 %v14633_v30, %v5530_v41  ;;  %v5628_v25 = vadd.f32 %v14633_v30, %v5561_v11  ;;  %v14775_v33 = vadd.f32 %v14633_v30, %v5513_v63  ;;  %v5851_v21 = vld [vmem:[#allocation2 + $0xf0] sm:$0xff]  ;;  %v15521_v53 = vld [vmem:[#allocation5_spill] sm:$0xff]  ;;  %v12155_v63 = vld [vmem:[%s12334_s27 + $0xd8] sm:$0xff] }
 0x614   : > { %5723 = vst [vmem:[#allocation2 + $0x109] sm:$0xff] %v5658_v12  ;;  %v14778_v18 = vadd.f32 %v14633_v30, %v5514_v13  ;;  %v5660_v19 = vmax.f32 %v5596_v40, 0.0  ;;  %v5693_v59 = vmax.f32 %v5629_v1, 0.0  ;;  %v5548_v12 = vmul.f32 %v14619_v56, %v14428_v17  ;;  %v5852_v60 = vld [vmem:[#allocation2 + $0xf8] sm:$0xff]  ;;  %v12263_v11 = vld [vmem:[%s15493_s4 + $0x48] sm:$0xff]  ;;  %v12164_v13 = vld [vmem:[%s12334_s27 + $0x120] sm:$0xff] }
 0x615   : > { %v5833_v6 = vld [vmem:[#allocation2 + $0x18] sm:$0xff]  ;;  %5724 = vst [vmem:[#allocation2 + $0x111] sm:$0xff] %v5659_v28  ;;  %v5661_v23 = vmax.f32 %v5597_v0, 0.0  ;;  %v5692_v58 = vmax.f32 %v5628_v25, 0.0  ;;  %v5644_v28 = vmax.f32 %v14775_v33, 0.0  ;;  %v5614_v9 = vadd.f32 %v14633_v30, %v5547_v55  ;;  %8146 = vmatpush.bf16.msrb.mxu0 %v12164_v13  ;;  %v15524_v55 = vld [vmem:[#allocation8_spill] sm:$0xff] }
 0x616   : > { %v5834_v46 = vld [vmem:[#allocation2 + $0x20] sm:$0xff]  ;;  %5705 = vst [vmem:[#allocation2 + $0x31] sm:$0xff] %v5640_v2  ;;  %v5645_v31 = vmax.f32 %v14778_v18, 0.0  ;;  %v5615_v5 = vadd.f32 %v14633_v30, %v5548_v12  ;;  %v5969_v17 = vpack.c.bf16 %v5852_v60, %v5851_v21  ;;  %v5532_v16 = vmul.f32 %v14619_v56, %v15521_v53  ;;  %7625 = vmatpush.bf16.msrb.mxu3 %v12155_v63  ;;  %v15525_v21 = vld [vmem:[#allocation9_spill] sm:$0xff]  ;;  %v12264_v13 = vld [vmem:[%s15493_s4 + $0x50] sm:$0xff] }
 0x617   : > { %v14743_v15 = vpack.c.bf16 %v5834_v46, %v5833_v6  ;;  %5706 = vst [vmem:[#allocation2 + $0x39] sm:$0xff] %v5641_v8  ;;  %v5678_v6 = vmax.f32 %v5614_v9, 0.0  ;;  %v12139_v46 = vld [vmem:[%s12334_s27 + $0x58] sm:$0xff]  ;;  %v5564_v22 = vmul.f32 %v14619_v56, %v15523_v51  ;;  %v5515_v41 = vmul.f32 %v12262_v38, %v14619_v56 }
 0x618   : > { %5755 = vst [vmem:[#allocation2 + $0x2b9] sm:$0xff] %v5690_v62  ;;  %v5883_v62 = vld [vmem:[#allocation2 + $0x2a0] sm:$0xff]  ;;  %v5884_v7 = vld [vmem:[#allocation2 + $0x2a8] sm:$0xff]  ;;  %6581 = vmatpush.bf16.msrb.mxu1 %v12139_v46  ;;  %v5516_v37 = vmul.f32 %v12263_v11, %v14619_v56  ;;  %v5599_v44 = vadd.f32 %v14633_v30, %v5532_v16  ;;  %v5549_v12 = vmul.f32 %v14619_v56, %v15524_v55  ;;  %v12138_v16 = vld [vmem:[%s12334_s27 + $0x50] sm:$0xff] }
 0x619   : > { %6068 = vmatmul.bf16.gmra.mxu0 %v14743_v15  ;;  %5756 = vst [vmem:[#allocation2 + $0x2c1] sm:$0xff] %v5691_v14  ;;  %v5679_v14 = vmax.f32 %v5615_v5, 0.0  ;;  %v5869_v32 = vld [vmem:[#allocation2 + $0x1f8] sm:$0xff]  ;;  %v5985_v57 = vpack.c.bf16 %v5884_v7, %v5883_v62  ;;  %v5631_v0 = vadd.f32 %v14633_v30, %v5564_v22  ;;  %v14820_v25 = vadd.f32 %v14633_v30, %v5515_v41  ;;  %v15528_v41 = vld [vmem:[#allocation14_spill] sm:$0xff] }
 0x61a   : > { %5741 = vst [vmem:[#allocation2 + $0x211] sm:$0xff] %v5676_v4  ;;  %v5870_v26 = vld [vmem:[#allocation2 + $0x200] sm:$0xff]  ;;  %v14823_v1 = vadd.f32 %v14633_v30, %v5516_v37  ;;  %v5550_v60 = vmul.f32 %v14619_v56, %v15525_v21  ;;  %v15527_v22 = vld [vmem:[#allocation7_spill] sm:$0xff]  ;;  %v5565_v11 = vmul.f32 %v14619_v56, %v15528_v41  ;;  %v6482_v61 = vpack.c.bf16 %v5641_v8, %v5640_v2 }
 0x61b   : > { %6108 = vmatmul.bf16.gmra.mxu1 %v5968_v52  ;;  %5742 = vst [vmem:[#allocation2 + $0x219] sm:$0xff] %v5677_v24  ;;  %v5978_v54 = vpack.c.bf16 %v5870_v26, %v5869_v32  ;;  %v12147_v52 = vld [vmem:[%s12334_s27 + $0x98] sm:$0xff]  ;;  %v15520_v4 = vld [vmem:[#allocation4_spill] sm:$0xff]  ;;  %v5646_v9 = vmax.f32 %v14820_v25, 0.0  ;;  %v5853_v5 = vld [vmem:[#allocation2 + $0x108] sm:$0xff]  ;;  %v5534_v38 = vmul.f32 %v14619_v56, %v15527_v22  ;;  %v6483_v8 = vpack.c.bf16 %v5643_v29, %v5642_v3 }
 0x61c   : > { %5707 = vst [vmem:[#allocation2 + $0x49] sm:$0xff] %v5642_v3  ;;  %v5531_v24 = vmul.f32 %v14619_v56, %v15520_v4  ;;  %7103 = vmatpush.bf16.msrb.mxu2 %v12147_v52  ;;  %v5854_v62 = vld [vmem:[#allocation2 + $0x110] sm:$0xff]  ;;  %v5647_v7 = vmax.f32 %v14823_v1, 0.0  ;;  %6582 = vmatpush.bf16.msrb.mxu1 %v12138_v16  ;;  %v15529_v37 = vld [vmem:[#allocation15_spill] sm:$0xff] }
 0x61d   : > { %6188 = vmatmul.bf16.gmra.mxu3 %v5984_v50  ;;  %5708 = vst [vmem:[#allocation2 + $0x51] sm:$0xff] %v5643_v29  ;;  %v5835_v39 = vld [vmem:[#allocation2 + $0x30] sm:$0xff]  ;;  %v15522_v50 = vld [vmem:[#allocation12_spill] sm:$0xff]  ;;  %v5566_v63 = vmul.f32 %v14619_v56, %v15529_v37 }
 0x61e   : > { %v5836_v49 = vld [vmem:[#allocation2 + $0x38] sm:$0xff]  ;;  %5725 = vst [vmem:[#allocation2 + $0x121] sm:$0xff] %v5660_v19  ;;  %v5598_v35 = vadd.f32 %v14633_v30, %v5531_v24 }
 0x61f   : > { %6153 = vmatmul.bf16.gmra.mxu2 %v5977_v36  ;;  %5726 = vst [vmem:[#allocation2 + $0x129] sm:$0xff] %v5661_v23  ;;  %v14786_v42 = vpack.c.bf16 %v5836_v49, %v5835_v39  ;;  %v5563_v36 = vmul.f32 %v14619_v56, %v15522_v50  ;;  %v5663_v23 = vmax.f32 %v5599_v44, 0.0  ;;  %v5885_v32 = vld [vmem:[#allocation2 + $0x2b8] sm:$0xff]  ;;  %v12146_v50 = vld [vmem:[%s12334_s27 + $0x90] sm:$0xff] }
 0x620   : > { %5757 = vst [vmem:[#allocation2 + $0x2d1] sm:$0xff] %v5692_v58  ;;  %v5662_v19 = vmax.f32 %v5598_v35, 0.0  ;;  %v5886_v26 = vld [vmem:[#allocation2 + $0x2c0] sm:$0xff]  ;;  %7104 = vmatpush.bf16.msrb.mxu2 %v12146_v50  ;;  %v5517_v35 = vmul.f32 %v12264_v13, %v14619_v56  ;;  %v12265_v44 = vld [vmem:[%s15493_s4 + $0x58] sm:$0xff]  ;;  %v12137_v13 = vld [vmem:[%s12334_s27 + $0x48] sm:$0xff] }
 0x621   : > { %5758 = vst [vmem:[#allocation2 + $0x2d9] sm:$0xff] %v5693_v59  ;;  %v5630_v40 = vadd.f32 %v14633_v30, %v5563_v36  ;;  %v5695_v59 = vmax.f32 %v5631_v0, 0.0  ;;  %v5871_v52 = vld [vmem:[#allocation2 + $0x210] sm:$0xff]  ;;  %v5986_v24 = vpack.c.bf16 %v5886_v26, %v5885_v32  ;;  %v15531_v26 = vld [vmem:[#allocation11_spill] sm:$0xff]  ;;  %6583 = vmatpush.bf16.msrb.mxu1 %v12137_v13 }
 0x622   : > { %5709 = vst [vmem:[#allocation2 + $0x61] sm:$0xff] %v5644_v28  ;;  %v5872_v4 = vld [vmem:[#allocation2 + $0x218] sm:$0xff]  ;;  %v15526_v36 = vld [vmem:[#allocation6_spill] sm:$0xff] }
 0x623   : > { %5710 = vst [vmem:[#allocation2 + $0x69] sm:$0xff] %v5645_v31  ;;  %v5694_v39 = vmax.f32 %v5630_v40, 0.0  ;;  %v5837_v49 = vld [vmem:[#allocation2 + $0x48] sm:$0xff]  ;;  %v5979_v53 = vpack.c.bf16 %v5872_v4, %v5871_v52  ;;  %v5533_v51 = vmul.f32 %v14619_v56, %v15526_v36  ;;  %v5518_v40 = vmul.f32 %v12265_v44, %v14619_v56  ;;  %v12154_v0 = vld [vmem:[%s12334_s27 + $0xd0] sm:$0xff]  ;;  %v12266_v44 = vld [vmem:[%s15493_s4 + $0xe0] sm:$0xff] }
 0x624   : > { %5743 = vst [vmem:[#allocation2 + $0x229] sm:$0xff] %v5678_v6  ;;  %v5838_v58 = vld [vmem:[#allocation2 + $0x50] sm:$0xff]  ;;  %v5616_v6 = vadd.f32 %v14633_v30, %v5549_v12  ;;  %7626 = vmatpush.bf16.msrb.mxu3 %v12154_v0  ;;  %v12267_v0 = vld [vmem:[%s15493_s4 + $0xe8] sm:$0xff] }
 0x625   : > { %5744 = vst [vmem:[#allocation2 + $0x231] sm:$0xff] %v5679_v14  ;;  %v5617_v14 = vadd.f32 %v14633_v30, %v5550_v60  ;;  %v14868_v55 = vadd.f32 %v14633_v30, %v5518_v40  ;;  %v5535_v40 = vmul.f32 %v12266_v44, %v14619_v56 }
 0x626   : > { %5727 = vst [vmem:[#allocation2 + $0x139] sm:$0xff] %v5662_v19  ;;  %v12163_v19 = vld [vmem:[%s12334_s27 + $0x118] sm:$0xff]  ;;  %v5856_v52 = vld [vmem:[#allocation2 + $0x128] sm:$0xff] }
 0x627   : > { %5728 = vst [vmem:[#allocation2 + $0x141] sm:$0xff] %v5663_v23  ;;  %v5681_v46 = vmax.f32 %v5617_v14, 0.0  ;;  %v5600_v23 = vadd.f32 %v14633_v30, %v5533_v51  ;;  %8147 = vmatpush.bf16.msrb.mxu0 %v12163_v19  ;;  %v15530_v14 = vld [vmem:[#allocation10_spill] sm:$0xff]  ;;  %v5649_v4 = vmax.f32 %v14868_v55, 0.0  ;;  %v5536_v19 = vmul.f32 %v12267_v0, %v14619_v56 }
 0x628   : > { %5759 = vst [vmem:[#allocation2 + $0x2e9] sm:$0xff] %v5694_v39  ;;  %v5601_v39 = vadd.f32 %v14633_v30, %v5534_v38  ;;  %v5551_v32 = vmul.f32 %v14619_v56, %v15530_v14  ;;  %v5887_v50 = vld [vmem:[#allocation2 + $0x2d0] sm:$0xff]  ;;  %v5888_v36 = vld [vmem:[#allocation2 + $0x2d8] sm:$0xff] }
 0x629   : > { %6073 = vmatmul.bf16.gmra.mxu0 %v14786_v42  ;;  %5760 = vst [vmem:[#allocation2 + $0x2f1] sm:$0xff] %v5695_v59  ;;  %v14865_v59 = vadd.f32 %v14633_v30, %v5517_v35  ;;  %v5664_v12 = vmax.f32 %v5600_v23, 0.0  ;;  %v5987_v37 = vpack.c.bf16 %v5888_v36, %v5887_v50  ;;  %v12145_v35 = vld [vmem:[%s12334_s27 + $0x88] sm:$0xff]  ;;  %v15532_v23 = vld [vmem:[#allocation16_spill] sm:$0xff]  ;;  %v5603_v14 = vadd.f32 %v14633_v30, %v5536_v19 }
 0x62a   : > { %5711 = vst [vmem:[#allocation2 + $0x79] sm:$0xff] %v5646_v9  ;;  %v5665_v21 = vmax.f32 %v5601_v39, 0.0  ;;  %v5567_v39 = vmul.f32 %v14619_v56, %v15532_v23  ;;  %7105 = vmatpush.bf16.msrb.mxu2 %v12145_v35  ;;  %v12136_v19 = vld [vmem:[%s12334_s27 + $0x40] sm:$0xff] }
 0x62b   : > { %6113 = vmatmul.bf16.gmra.mxu1 %v5969_v17  ;;  %v14831_v17 = vpack.c.bf16 %v5838_v58, %v5837_v49  ;;  %5712 = vst [vmem:[#allocation2 + $0x81] sm:$0xff] %v5647_v7  ;;  %v5632_v49 = vadd.f32 %v14633_v30, %v5565_v11  ;;  %v5633_v58 = vadd.f32 %v14633_v30, %v5566_v63  ;;  %v5873_v41 = vld [vmem:[#allocation2 + $0x228] sm:$0xff]  ;;  %v12144_v23 = vld [vmem:[%s12334_s27 + $0x80] sm:$0xff] }
 0x62c   : > { %5746 = vst [vmem:[#allocation2 + $0x249] sm:$0xff] %v5681_v46  ;;  %v5855_v46 = vld [vmem:[#allocation2 + $0x120] sm:$0xff]  ;;  %v5874_v11 = vld [vmem:[#allocation2 + $0x230] sm:$0xff]  ;;  %6584 = vmatpush.bf16.msrb.mxu1 %v12136_v19 }
 0x62d   : > { %6193 = vmatmul.bf16.gmra.mxu3 %v5985_v57  ;;  %v5970_v57 = vpack.c.bf16 %v5854_v62, %v5853_v5  ;;  %v5696_v60 = vmax.f32 %v5632_v49, 0.0  ;;  %v5839_v5 = vld [vmem:[#allocation2 + $0x60] sm:$0xff]  ;;  %v5840_v62 = vld [vmem:[#allocation2 + $0x68] sm:$0xff]  ;;  %5729 = vst [vmem:[#allocation2 + $0x151] sm:$0xff] %v5664_v12  ;;  %v5971_v51 = vpack.c.bf16 %v5856_v52, %v5855_v46  ;;  %v5980_v63 = vpack.c.bf16 %v5874_v11, %v5873_v41 }
 0x62e   : > { %5730 = vst [vmem:[#allocation2 + $0x159] sm:$0xff] %v5665_v21  ;;  %v5568_v49 = vmul.f32 %v14619_v56, %v14588_v34  ;;  %v12269_v21 = vld [vmem:[%s15493_s4 + $0x68] sm:$0xff]  ;;  %v5634_v34 = vadd.f32 %v14633_v30, %v5567_v39  ;;  %v5667_v52 = vmax.f32 %v5603_v14, 0.0  ;;  %7106 = vmatpush.bf16.msrb.mxu2 %v12144_v23 }
 0x62f   : > { %6158 = vmatmul.bf16.gmra.mxu2 %v5978_v54  ;;  %v5680_v54 = vmax.f32 %v5616_v6, 0.0  ;;  %v5697_v6 = vmax.f32 %v5633_v58, 0.0  ;;  %5761 = vst [vmem:[#allocation2 + $0x301] sm:$0xff] %v5696_v60  ;;  %v12268_v58 = vld [vmem:[%s15493_s4 + $0x60] sm:$0xff]  ;;  %v5520_v60 = vmul.f32 %v12269_v21, %v14619_v56  ;;  %v12161_v21 = vld [vmem:[%s12334_s27 + $0x108] sm:$0xff] }
 0x630   : > { %5714 = vst [vmem:[#allocation2 + $0x99] sm:$0xff] %v5649_v4  ;;  %v5519_v12 = vmul.f32 %v12268_v58, %v14619_v56  ;;  %v6874_v19 = vld [vmem:[#allocation2 + $0x2] sm:$0xff]  ;;  %v6875_v23 = vld [vmem:[#allocation2 + $0xa] sm:$0xff] }
 0x631   : > { %5745 = vst [vmem:[#allocation2 + $0x241] sm:$0xff] %v5680_v54  ;;  %v5648_v54 = vmax.f32 %v14865_v59, 0.0 }
 0x632   : > { %5762 = vst [vmem:[#allocation2 + $0x309] sm:$0xff] %v5697_v6  ;;  %v5602_v6 = vadd.f32 %v14633_v30, %v5535_v40  ;;  %v5842_v50 = vld [vmem:[#allocation2 + $0x80] sm:$0xff] }
 0x633   : > { %5713 = vst [vmem:[#allocation2 + $0x91] sm:$0xff] %v5648_v54 }
 0x634   : > { %v5666_v46 = vmax.f32 %v5602_v6, 0.0  ;;  %5732 = vst [vmem:[#allocation2 + $0x171] sm:$0xff] %v5667_v52  ;;  %v5859_v58 = vld [vmem:[#allocation2 + $0x150] sm:$0xff]  ;;  %v6144_v6 = vpop.f32.mrf.mxu2 }
 0x635   : > { %6320 = vst [vmem:[#allocation3 + $0x148] sm:$0xff] %v6144_v6 }
 0x636   : > { %5731 = vst [vmem:[#allocation2 + $0x169] sm:$0xff] %v5666_v46  ;;  %v12152_v46 = vld [vmem:[%s12334_s27 + $0xc0] sm:$0xff] }
 0x638   : > { %v5875_v35 = vld [vmem:[#allocation2 + $0x240] sm:$0xff]  ;;  %v5876_v44 = vld [vmem:[#allocation2 + $0x248] sm:$0xff] }
 0x639   : > { %6078 = vmatmul.bf16.gmra.mxu0 %v14831_v17  ;;  %v5981_v0 = vpack.c.bf16 %v5876_v44, %v5875_v35 }
 0x63a   : > { %v5843_v39 = vld [vmem:[#allocation2 + $0x90] sm:$0xff] }
 0x63b   : > { %6118 = vmatmul.bf16.gmra.mxu1 %v5970_v57  ;;  %v5552_v57 = vmul.f32 %v14619_v56, %v15531_v26  ;;  %v14914_v26 = vadd.f32 %v14633_v30, %v5519_v12  ;;  %v5860_v12 = vld [vmem:[#allocation2 + $0x158] sm:$0xff] }
 0x63c   : > { %v5973_v14 = vpack.c.bf16 %v5860_v12, %v5859_v58  ;;  %v12191_v58 = vld [vmem:[%s12334_s27 + $0x1f8] sm:$0xff] }
 0x63d   : > { %6198 = vmatmul.bf16.gmra.mxu3 %v5986_v24  ;;  %v14876_v24 = vpack.c.bf16 %v5840_v62, %v5839_v5  ;;  %v5619_v16 = vadd.f32 %v14633_v30, %v5552_v57  ;;  %v12153_v5 = vld [vmem:[%s12334_s27 + $0xc8] sm:$0xff]  ;;  %v12162_v62 = vld [vmem:[%s12334_s27 + $0x110] sm:$0xff]  ;;  %v14917_v57 = vadd.f32 %v14633_v30, %v5520_v60 }
 0x63e   : > { %7627 = vmatpush.bf16.msrb.mxu3 %v12153_v5  ;;  %8148 = vmatpush.bf16.msrb.mxu0 %v12162_v62  ;;  %v5891_v5 = vld [vmem:[#allocation2 + $0x300] sm:$0xff]  ;;  %v5892_v62 = vld [vmem:[#allocation2 + $0x308] sm:$0xff] }
 0x63f   : > { %6163 = vmatmul.bf16.gmra.mxu2 %v5979_v53  ;;  %v5618_v53 = vadd.f32 %v14633_v30, %v5551_v32  ;;  %v5683_v38 = vmax.f32 %v5619_v16, 0.0  ;;  %v5635_v32 = vadd.f32 %v14633_v30, %v5568_v49  ;;  %v5841_v16 = vld [vmem:[#allocation2 + $0x78] sm:$0xff]  ;;  %v5651_v41 = vmax.f32 %v14917_v57, 0.0 }
 0x640   : > { %v14921_v11 = vpack.c.bf16 %v5842_v50, %v5841_v16  ;;  %v5844_v49 = vld [vmem:[#allocation2 + $0x98] sm:$0xff]  ;;  %v5989_v52 = vpack.c.bf16 %v5892_v62, %v5891_v5  ;;  %v6353_v5 = vld [vmem:[#allocation2 + $0x9] sm:$0xff]  ;;  %v6481_v62 = vpack.c.bf16 %v5639_v10, %v5638_v48 }
 0x641   : > { %v5682_v22 = vmax.f32 %v5618_v53, 0.0  ;;  %5748 = vst [vmem:[#allocation2 + $0x261] sm:$0xff] %v5683_v38  ;;  %v5698_v53 = vmax.f32 %v5634_v34, 0.0  ;;  %v5699_v36 = vmax.f32 %v5635_v32, 0.0  ;;  %v5858_v38 = vld [vmem:[#allocation2 + $0x140] sm:$0xff]  ;;  %v14931_v60 = vpack.c.bf16 %v5844_v49, %v5843_v39  ;;  %v12175_v50 = vld [vmem:[%s12334_s27 + $0x178] sm:$0xff] }
 0x642   : > { %5716 = vst [vmem:[#allocation2 + $0xb1] sm:$0xff] %v5651_v41  ;;  %8149 = vmatpush.bf16.msrb.mxu0 %v12161_v21  ;;  %7628 = vmatpush.bf16.msrb.mxu3 %v12152_v46  ;;  %v7002_v49 = vpack.c.bf16 %v6875_v23, %v6874_v19  ;;  %v6352_v21 = vld [vmem:[#allocation2 + $0x1] sm:$0xff] }
 0x643   : > { %5747 = vst [vmem:[#allocation2 + $0x259] sm:$0xff] %v5682_v22  ;;  %v5857_v22 = vld [vmem:[#allocation2 + $0x138] sm:$0xff]  ;;  %8665 = vmatpush.bf16.msra.mxu1 %v12175_v50  ;;  %v6480_v6 = vpack.c.bf16 %v6353_v5, %v6352_v21 }
 0x644   : > { %5763 = vst [vmem:[#allocation2 + $0x319] sm:$0xff] %v5698_v53  ;;  %v5972_v13 = vpack.c.bf16 %v5858_v38, %v5857_v22  ;;  %v12160_v53 = vld [vmem:[%s12334_s27 + $0x100] sm:$0xff]  ;;  %v6146_v22 = vpop.f32.mrf.mxu2 }
 0x645   : > { %5764 = vst [vmem:[#allocation2 + $0x321] sm:$0xff] %v5699_v36  ;;  %v12183_v36 = vld [vmem:[%s12334_s27 + $0x1b8] sm:$0xff] }
 0x646   : > { %8150 = vmatpush.bf16.msrb.mxu0 %v12160_v53  ;;  %9188 = vmatpush.bf16.msra.mxu2 %v12183_v36  ;;  %6321 = vst [vmem:[#allocation3 + $0x1d0] sm:$0xff] %v6146_v22  ;;  %v6878_v22 = vld [vmem:[#allocation2 + $0x32] sm:$0xff] }
 0x647   : > { %9710 = vmatpush.bf16.msra.mxu3 %v12191_v58  ;;  %v6484_v58 = vpack.c.bf16 %v5645_v31, %v5644_v28 }
 0x649   : > { %6083 = vmatmul.bf16.gmra.mxu0 %v14876_v24 }
 0x64a   : > { %v5877_v34 = vld [vmem:[#allocation2 + $0x258] sm:$0xff]  ;;  %v5878_v32 = vld [vmem:[#allocation2 + $0x260] sm:$0xff] }
 0x64b   : > { %6123 = vmatmul.bf16.gmra.mxu1 %v5971_v51  ;;  %v5650_v51 = vmax.f32 %v14914_v26, 0.0  ;;  %v5982_v16 = vpack.c.bf16 %v5878_v32, %v5877_v34  ;;  %v5893_v44 = vld [vmem:[#allocation2 + $0x318] sm:$0xff]  ;;  %v6877_v32 = vld [vmem:[#allocation2 + $0x22] sm:$0xff] }
 0x64c   : > { %v6876_v34 = vld [vmem:[#allocation2 + $0x1a] sm:$0xff] }
 0x64d   : > { %6203 = vmatmul.bf16.gmra.mxu3 %v5987_v37  ;;  %v5889_v37 = vld [vmem:[#allocation2 + $0x2e8] sm:$0xff]  ;;  %5715 = vst [vmem:[#allocation2 + $0xa9] sm:$0xff] %v5650_v51  ;;  %v7003_v46 = vpack.c.bf16 %v6877_v32, %v6876_v34  ;;  %v12190_v32 = vld [vmem:[%s12334_s27 + $0x1f0] sm:$0xff] }
 0x64e   : > { %9711 = vmatpush.bf16.msra.mxu3 %v12190_v32  ;;  %v12189_v32 = vld [vmem:[%s12334_s27 + $0x1e8] sm:$0xff] }
 0x64f   : > { %6168 = vmatmul.bf16.gmra.mxu2 %v5980_v63  ;;  %v5890_v63 = vld [vmem:[#allocation2 + $0x2f0] sm:$0xff] }
 0x650   : > { %v5988_v40 = vpack.c.bf16 %v5890_v63, %v5889_v37  ;;  %v5861_v63 = vld [vmem:[#allocation2 + $0x168] sm:$0xff] }
 0x652   : > { %9712 = vmatpush.bf16.msra.mxu3 %v12189_v32 }
 0x654   : > { %v5845_v38 = vld [vmem:[#allocation2 + $0xa8] sm:$0xff]  ;;  %v5846_v37 = vld [vmem:[#allocation2 + $0xb0] sm:$0xff]  ;;  %v14942_v12 = vpop.f32.mrf.mxu0 }
 0x655   : > { %v14938_v35 = vpack.c.bf16 %v5846_v37, %v5845_v38  ;;  %v6879_v38 = vld [vmem:[#allocation2 + $0x3a] sm:$0xff] }
 0x656   : > { %v7004_v37 = vpack.c.bf16 %v6879_v38, %v6878_v22  ;;  %v6486_v22 = vpack.c.bf16 %v5649_v4, %v5648_v54  ;;  %v6487_v4 = vpack.c.bf16 %v5651_v41, %v5650_v51 }
 0x659   : > { %6088 = vmatmul.bf16.gmra.mxu0 %v14921_v11 }
 0x65b   : > { %6128 = vmatmul.bf16.gmra.mxu1 %v5972_v13  ;;  %v5862_v13 = vld [vmem:[#allocation2 + $0x170] sm:$0xff] }
 0x65c   : > { %v14949_v53 = vpop.f32.mrf.mxu0 }
 0x65d   : > { %6208 = vmatmul.bf16.gmra.mxu3 %v5988_v40  ;;  %v5894_v40 = vld [vmem:[#allocation2 + $0x320] sm:$0xff] }
 0x65e   : > { %v5990_v39 = vpack.c.bf16 %v5894_v40, %v5893_v44  ;;  %v6880_v40 = vld [vmem:[#allocation2 + $0x4a] sm:$0xff] }
 0x65f   : > { %6173 = vmatmul.bf16.gmra.mxu2 %v5981_v0  ;;  %v5974_v0 = vpack.c.bf16 %v5862_v13, %v5861_v63 }
 0x669   : > { %6093 = vmatmul.bf16.gmra.mxu0 %v14931_v60 }
 0x66b   : > { %6133 = vmatmul.bf16.gmra.mxu1 %v5973_v14 }
 0x66d   : > { %6213 = vmatmul.bf16.gmra.mxu3 %v5989_v52  ;;  %v12199_v52 = vld [vmem:[%s12334_s27 + $0x238] sm:$0xff] }
 0x66e   : > { %10232 = vmatpush.bf16.msra.mxu0 %v12199_v52 }
 0x66f   : > { %6178 = vmatmul.bf16.gmra.mxu2 %v5982_v16 }
 0x679   : > { %6098 = vmatmul.bf16.gmra.mxu0 %v14938_v35 }
 0x67b   : > { %6138 = vmatmul.bf16.gmra.mxu1 %v5974_v0  ;;  %v6881_v0 = vld [vmem:[#allocation2 + $0x52] sm:$0xff] }
 0x67c   : > { %v7005_v23 = vpack.c.bf16 %v6881_v0, %v6880_v40  ;;  %v6888_v40 = vld [vmem:[#allocation2 + $0xaa] sm:$0xff]  ;;  %v6889_v0 = vld [vmem:[#allocation2 + $0xb2] sm:$0xff] }
 0x67d   : > { %6218 = vmatmul.bf16.gmra.mxu3 %v5990_v39  ;;  %v12174_v39 = vld [vmem:[%s12334_s27 + $0x170] sm:$0xff] }
 0x67e   : > { %8666 = vmatpush.bf16.msra.mxu1 %v12174_v39  ;;  %v12173_v39 = vld [vmem:[%s12334_s27 + $0x168] sm:$0xff] }
 0x67f   : > { %7107 = vmatmul.bf16.vlgmr.msrb.gmra.mxu2 %v7002_v49  ;;  %v12182_v49 = vld [vmem:[%s12334_s27 + $0x1b0] sm:$0xff] }
 0x680   : > { %9189 = vmatpush.bf16.msra.mxu2 %v12182_v49  ;;  %v12181_v49 = vld [vmem:[%s12334_s27 + $0x1a8] sm:$0xff] }
 0x682   : > { %8667 = vmatpush.bf16.msra.mxu1 %v12173_v39 }
 0x684   : > { %9190 = vmatpush.bf16.msra.mxu2 %v12181_v49  ;;  %v7415_v49 = vld [vmem:[#allocation2 + $0xf8] sm:$0xff] }
 0x688   : > { %v6104_v14 = vpop.f32.mrf.mxu1 }
 0x689   : > { %8151 = vmatmul.bf16.vlgmr.msrb.gmra.mxu0 %v6481_v62  ;;  %6304 = vst [vmem:[#allocation3 + $0xe0] sm:$0xff] %v6104_v14 }
 0x68b   : > { %6585 = vmatmul.bf16.vlgmr.msrb.gmra.mxu1 %v6480_v6  ;;  %v6883_v6 = vld [vmem:[#allocation2 + $0x6a] sm:$0xff] }
 0x68d   : > { %7629 = vmatmul.bf16.vlgmr.msrb.gmra.mxu3 %v14743_v15 }
 0x68f   : > { %7112 = vmatmul.bf16.gmra.mxu2 %v7003_v46  ;;  %v6485_v46 = vpack.c.bf16 %v5647_v7, %v5646_v9 }
 0x690   : > { %v6106_v16 = vpop.f32.mrf.mxu1  ;;  %v6184_v45 = vpop.f32.mrf.mxu3 }
 0x691   : > { %6305 = vst [vmem:[#allocation3 + $0x188] sm:$0xff] %v6106_v16 }
 0x692   : > { %v6149_v50 = vpop.f32.mrf.mxu2  ;;  %6336 = vst [vmem:[#allocation3 + $0xb8] sm:$0xff] %v6184_v45  ;;  %v6884_v45 = vld [vmem:[#allocation2 + $0x7a] sm:$0xff] }
 0x693   : > { %6322 = vst [vmem:[#allocation3 + $0x100] sm:$0xff] %v6149_v50  ;;  %v6885_v50 = vld [vmem:[#allocation2 + $0x82] sm:$0xff] }
 0x696   : > { %v14956_v48 = vpop.f32.mrf.mxu0 }
 0x698   : > { %v6109_v10 = vpop.f32.mrf.mxu1  ;;  %v6186_v36 = vpop.f32.mrf.mxu3 }
 0x699   : > { %8156 = vmatmul.bf16.gmra.mxu0 %v6482_v61  ;;  %6306 = vst [vmem:[#allocation3 + $0x138] sm:$0xff] %v6109_v10  ;;  %v7007_v10 = vpack.c.bf16 %v6885_v50, %v6884_v45  ;;  %v6370_v45 = vld [vmem:[#allocation2 + $0xd9] sm:$0xff]  ;;  %v6371_v50 = vld [vmem:[#allocation2 + $0xe1] sm:$0xff] }
 0x69a   : > { %v6151_v15 = vpop.f32.mrf.mxu2  ;;  %6337 = vst [vmem:[#allocation3 + $0x88] sm:$0xff] %v6186_v36  ;;  %v12198_v36 = vld [vmem:[%s12334_s27 + $0x230] sm:$0xff] }
 0x69b   : > { %6590 = vmatmul.bf16.gmra.mxu1 %v6481_v62  ;;  %6323 = vst [vmem:[#allocation3 + $0xc8] sm:$0xff] %v6151_v15  ;;  %v6882_v62 = vld [vmem:[#allocation2 + $0x62] sm:$0xff]  ;;  %10233 = vmatpush.bf16.msra.mxu0 %v12198_v36 }
 0x69c   : > { %v7006_v34 = vpack.c.bf16 %v6883_v6, %v6882_v62  ;;  %v6890_v6 = vld [vmem:[#allocation2 + $0xc2] sm:$0xff] }
 0x69d   : > { %7634 = vmatmul.bf16.gmra.mxu3 %v14786_v42  ;;  %v7413_v36 = vld [vmem:[#allocation2 + $0xe0] sm:$0xff] }
 0x69e   : > { %v14959_v63 = vpop.f32.mrf.mxu0 }
 0x69f   : > { %7117 = vmatmul.bf16.gmra.mxu2 %v7004_v37  ;;  %v6886_v37 = vld [vmem:[#allocation2 + $0x92] sm:$0xff] }
 0x6a0   : > { %v6111_v27 = vpop.f32.mrf.mxu1  ;;  %v6189_v20 = vpop.f32.mrf.mxu3 }
 0x6a1   : > { %6307 = vst [vmem:[#allocation3 + $0x140] sm:$0xff] %v6111_v27  ;;  %v6887_v27 = vld [vmem:[#allocation2 + $0x9a] sm:$0xff] }
 0x6a2   : > { %v6154_v2 = vpop.f32.mrf.mxu2  ;;  %6338 = vst [vmem:[#allocation3 + $0xa8] sm:$0xff] %v6189_v20 }
 0x6a3   : > { %6324 = vst [vmem:[#allocation3 + $0x40] sm:$0xff] %v6154_v2  ;;  %v7008_v2 = vpack.c.bf16 %v6887_v27, %v6886_v37  ;;  %v12197_v37 = vld [vmem:[%s12334_s27 + $0x228] sm:$0xff] }
 0x6a4   : > { %10234 = vmatpush.bf16.msra.mxu0 %v12197_v37 }
 0x6a6   : > { %v14965_v13 = vpop.f32.mrf.mxu0 }
 0x6a8   : > { %v6114_v42 = vpop.f32.mrf.mxu1  ;;  %v6191_v44 = vpop.f32.mrf.mxu3 }
 0x6a9   : > { %8161 = vmatmul.bf16.gmra.mxu0 %v6483_v8  ;;  %6308 = vst [vmem:[#allocation3 + $0x80] sm:$0xff] %v6114_v42 }
 0x6aa   : > { %v6156_v19 = vpop.f32.mrf.mxu2  ;;  %6339 = vst [vmem:[#allocation3 + $0x1c8] sm:$0xff] %v6191_v44 }
 0x6ab   : > { %6595 = vmatmul.bf16.gmra.mxu1 %v6482_v61  ;;  %6325 = vst [vmem:[#allocation3 + $0x1f8] sm:$0xff] %v6156_v19 }
 0x6ad   : > { %7639 = vmatmul.bf16.gmra.mxu3 %v14831_v17 }
 0x6ae   : > { %v14970_v47 = vpop.f32.mrf.mxu0 }
 0x6af   : > { %7122 = vmatmul.bf16.gmra.mxu2 %v7005_v23  ;;  %v7009_v23 = vpack.c.bf16 %v6889_v0, %v6888_v40  ;;  %v6372_v40 = vld [vmem:[#allocation2 + $0xf1] sm:$0xff]  ;;  %v6373_v0 = vld [vmem:[#allocation2 + $0xf9] sm:$0xff] }
 0x6b0   : > { %v6116_v43 = vpop.f32.mrf.mxu1  ;;  %v6194_v3 = vpop.f32.mrf.mxu3  ;;  %v6490_v39 = vpack.c.bf16 %v6373_v0, %v6372_v40 }
 0x6b1   : > { %6309 = vst [vmem:[#allocation3 + $0x1a8] sm:$0xff] %v6116_v43  ;;  %v6368_v43 = vld [vmem:[#allocation2 + $0xc1] sm:$0xff] }
 0x6b2   : > { %v6159_v29 = vpop.f32.mrf.mxu2  ;;  %6340 = vst [vmem:[#allocation3 + $0x170] sm:$0xff] %v6194_v3  ;;  %v6369_v3 = vld [vmem:[#allocation2 + $0xc9] sm:$0xff] }
 0x6b3   : > { %6326 = vst [vmem:[#allocation3 + $0x20] sm:$0xff] %v6159_v29  ;;  %v6488_v29 = vpack.c.bf16 %v6369_v3, %v6368_v43  ;;  %v6894_v3 = vld [vmem:[#allocation2 + $0xf2] sm:$0xff] }
 0x6b6   : > { %v14976_v21 = vpop.f32.mrf.mxu0 }
 0x6b8   : > { %v6119_v17 = vpop.f32.mrf.mxu1  ;;  %v6196_v5 = vpop.f32.mrf.mxu3 }
 0x6b9   : > { %8166 = vmatmul.bf16.gmra.mxu0 %v6484_v58  ;;  %6310 = vst [vmem:[#allocation3 + $0x1b8] sm:$0xff] %v6119_v17  ;;  %v7411_v17 = vld [vmem:[#allocation2 + $0xc8] sm:$0xff] }
 0x6ba   : > { %v6161_v14 = vpop.f32.mrf.mxu2  ;;  %6341 = vst [vmem:[#allocation3 + $0x178] sm:$0xff] %v6196_v5 }
 0x6bb   : > { %6600 = vmatmul.bf16.gmra.mxu1 %v6483_v8  ;;  %6327 = vst [vmem:[#allocation3 + $0x128] sm:$0xff] %v6161_v14  ;;  %v6891_v14 = vld [vmem:[#allocation2 + $0xca] sm:$0xff] }
 0x6bd   : > { %7644 = vmatmul.bf16.gmra.mxu3 %v14876_v24 }
 0x6be   : > { %v14980_v33 = vpop.f32.mrf.mxu0 }
 0x6bf   : > { %7127 = vmatmul.bf16.gmra.mxu2 %v7006_v34 }
 0x6c0   : > { %v6121_v18 = vpop.f32.mrf.mxu1  ;;  %v6199_v28 = vpop.f32.mrf.mxu3 }
 0x6c1   : > { %6311 = vst [vmem:[#allocation3 + $0x28] sm:$0xff] %v6121_v18 }
 0x6c2   : > { %v6164_v31 = vpop.f32.mrf.mxu2  ;;  %6342 = vst [vmem:[#allocation3 + $0x68] sm:$0xff] %v6199_v28  ;;  %v7010_v28 = vpack.c.bf16 %v6891_v14, %v6890_v6 }
 0x6c3   : > { %6328 = vst [vmem:[#allocation3 + $0x1a0] sm:$0xff] %v6164_v31 }
 0x6c6   : > { %v14986_v52 = vpop.f32.mrf.mxu0 }
 0x6c8   : > { %v6124_v24 = vpop.f32.mrf.mxu1  ;;  %v6201_v16 = vpop.f32.mrf.mxu3 }
 0x6c9   : > { %8171 = vmatmul.bf16.gmra.mxu0 %v6485_v46  ;;  %6312 = vst [vmem:[#allocation3 + $0x1e8] sm:$0xff] %v6124_v24 }
 0x6ca   : > { %v6166_v61 = vpop.f32.mrf.mxu2  ;;  %6343 = vst [vmem:[#allocation3 + $0x190] sm:$0xff] %v6201_v16 }
 0x6cb   : > { %6605 = vmatmul.bf16.gmra.mxu1 %v6484_v58  ;;  %6329 = vst [vmem:[#allocation3 + $0x1f0] sm:$0xff] %v6166_v61  ;;  %v7410_v58 = vld [vmem:[#allocation2 + $0xc0] sm:$0xff]  ;;  %v6489_v61 = vpack.c.bf16 %v6371_v50, %v6370_v45 }
 0x6cc   : > { %v7531_v34 = vpack.c.bf16 %v7411_v17, %v7410_v58 }
 0x6cd   : > { %7649 = vmatmul.bf16.gmra.mxu3 %v14921_v11 }
 0x6ce   : > { %v14990_v25 = vpop.f32.mrf.mxu0 }
 0x6cf   : > { %7132 = vmatmul.bf16.gmra.mxu2 %v7007_v10  ;;  %v7412_v10 = vld [vmem:[#allocation2 + $0xd8] sm:$0xff] }
 0x6d0   : > { %v6126_v1 = vpop.f32.mrf.mxu1  ;;  %v6204_v9 = vpop.f32.mrf.mxu3 }
 0x6d1   : > { %6313 = vst [vmem:[#allocation3 + $0xf8] sm:$0xff] %v6126_v1 }
 0x6d2   : > { %v6169_v7 = vpop.f32.mrf.mxu2  ;;  %6344 = vst [vmem:[#allocation3 + $0x198] sm:$0xff] %v6204_v9 }
 0x6d3   : > { %6330 = vst [vmem:[#allocation3 + $0xe8] sm:$0xff] %v6169_v7 }
 0x6d6   : > { %v14996_v38 = vpop.f32.mrf.mxu0 }
 0x6d8   : > { %v6129_v15 = vpop.f32.mrf.mxu1  ;;  %v6206_v11 = vpop.f32.mrf.mxu3 }
 0x6d9   : > { %8176 = vmatmul.bf16.gmra.mxu0 %v6486_v22  ;;  %6314 = vst [vmem:[#allocation3 + $0x160] sm:$0xff] %v6129_v15  ;;  %v6893_v15 = vld [vmem:[#allocation2 + $0xe2] sm:$0xff] }
 0x6da   : > { %v6171_v20 = vpop.f32.mrf.mxu2  ;;  %6345 = vst [vmem:[#allocation3 + $0x38] sm:$0xff] %v6206_v11  ;;  %v7532_v11 = vpack.c.bf16 %v7413_v36, %v7412_v10 }
 0x6db   : > { %6610 = vmatmul.bf16.gmra.mxu1 %v6485_v46  ;;  %6331 = vst [vmem:[#allocation3 + $0x78] sm:$0xff] %v6171_v20 }
 0x6dd   : > { %7654 = vmatmul.bf16.gmra.mxu3 %v14931_v60 }
 0x6de   : > { %v14999_v8 = vpop.f32.mrf.mxu0 }
 0x6df   : > { %7137 = vmatmul.bf16.gmra.mxu2 %v7008_v2 }
 0x6e0   : > { %v6131_v59 = vpop.f32.mrf.mxu1  ;;  %v6209_v55 = vpop.f32.mrf.mxu3 }
 0x6e1   : > { %6315 = vst [vmem:[#allocation3 + $0x30] sm:$0xff] %v6131_v59 }
 0x6e2   : > { %v6174_v54 = vpop.f32.mrf.mxu2  ;;  %6346 = vst [vmem:[#allocation3 + $0xc0] sm:$0xff] %v6209_v55 }
 0x6e3   : > { %6332 = vst [vmem:[#allocation3 + $0x70] sm:$0xff] %v6174_v54 }
 0x6e6   : > { %v15005_v42 = vpop.f32.mrf.mxu0 }
 0x6e8   : > { %v6134_v60 = vpop.f32.mrf.mxu1  ;;  %v6211_v44 = vpop.f32.mrf.mxu3 }
 0x6e9   : > { %8181 = vmatmul.bf16.gmra.mxu0 %v6487_v4  ;;  %6316 = vst [vmem:[#allocation3 + $0x1e0] sm:$0xff] %v6134_v60 }
 0x6ea   : > { %v6176_v19 = vpop.f32.mrf.mxu2  ;;  %6347 = vst [vmem:[#allocation3 + $0x1c0] sm:$0xff] %v6211_v44 }
 0x6eb   : > { %6615 = vmatmul.bf16.gmra.mxu1 %v6486_v22  ;;  %6333 = vst [vmem:[#allocation3 + $0x90] sm:$0xff] %v6176_v19  ;;  %v6892_v22 = vld [vmem:[#allocation2 + $0xda] sm:$0xff] }
 0x6ec   : > { %v7011_v2 = vpack.c.bf16 %v6893_v15, %v6892_v22  ;;  %v6896_v22 = vld [vmem:[#allocation2 + $0x10a] sm:$0xff]  ;;  %v6897_v15 = vld [vmem:[#allocation2 + $0x112] sm:$0xff] }
 0x6ed   : > { %7659 = vmatmul.bf16.gmra.mxu3 %v14938_v35 }
 0x6ee   : > { %v15010_v26 = vpop.f32.mrf.mxu0 }
 0x6ef   : > { %7142 = vmatmul.bf16.gmra.mxu2 %v7009_v23 }
 0x6f0   : > { %v6136_v57 = vpop.f32.mrf.mxu1  ;;  %v6214_v51 = vpop.f32.mrf.mxu3 }
 0x6f1   : > { %6317 = vst [vmem:[#allocation3] sm:$0xff] %v6136_v57 }
 0x6f2   : > { %v6179_v41 = vpop.f32.mrf.mxu2  ;;  %6348 = vst [vmem:[#allocation3 + $0x158] sm:$0xff] %v6214_v51 }
 0x6f3   : > { %6334 = vst [vmem:[#allocation3 + $0x1d8] sm:$0xff] %v6179_v41 }
 0x6f6   : > { %v15012_v5 = vpop.f32.mrf.mxu0 }
 0x6f8   : > { %v6139_v35 = vpop.f32.mrf.mxu1  ;;  %v6216_v62 = vpop.f32.mrf.mxu3 }
 0x6f9   : > { %8186 = vmatmul.bf16.gmra.mxu0 %v6488_v29  ;;  %6318 = vst [vmem:[#allocation3 + $0xf0] sm:$0xff] %v6139_v35 }
 0x6fa   : > { %v6181_v18 = vpop.f32.mrf.mxu2  ;;  %6349 = vst [vmem:[#allocation3 + $0x10] sm:$0xff] %v6216_v62 }
 0x6fb   : > { %6620 = vmatmul.bf16.gmra.mxu1 %v6487_v4  ;;  %6335 = vst [vmem:[#allocation3 + $0xd0] sm:$0xff] %v6181_v18 }
 0x6fd   : > { %7664 = vmatmul.bf16.gmra.mxu3 %v7531_v34 }
 0x6fe   : > { %v15015_v31 = vpop.f32.mrf.mxu0 }
 0x6ff   : > { %7147 = vmatmul.bf16.gmra.mxu2 %v7010_v28 }
 0x700   : > { %v6141_v46 = vpop.f32.mrf.mxu1  ;;  %v6219_v24 = vpop.f32.mrf.mxu3 }
 0x701   : > { %6319 = vst [vmem:[#allocation3 + $0x8] sm:$0xff] %v6141_v46 }
 0x702   : > { %v7108_v16 = vpop.f32.mrf.mxu2  ;;  %6350 = vst [vmem:[#allocation3 + $0x58] sm:$0xff] %v6219_v24  ;;  %v6374_v24 = vld [vmem:[#allocation2 + $0x109] sm:$0xff] }
 0x706   : > { %v8152_v1 = vpop.f32.mrf.mxu0 }
 0x708   : > { %v6586_v9 = vpop.f32.mrf.mxu1  ;;  %v6221_v7 = vpop.f32.mrf.mxu3 }
 0x709   : > { %8191 = vmatmul.bf16.gmra.mxu0 %v6489_v61  ;;  %v6746_v20 = vadd.f32 %v6586_v9, %v14942_v12  ;;  %6351 = vst [vmem:[#allocation3 + $0xa0] sm:$0xff] %v6221_v7  ;;  %v7414_v12 = vld [vmem:[#allocation2 + $0xf0] sm:$0xff] }
 0x70a   : > { %v7110_v27 = vpop.f32.mrf.mxu2  ;;  %v7533_v17 = vpack.c.bf16 %v7415_v49, %v7414_v12  ;;  %v7418_v49 = vld [vmem:[#allocation2 + $0x120] sm:$0xff] }
 0x70b   : > { %6625 = vmatmul.bf16.gmra.mxu1 %v6488_v29  ;;  %v7268_v55 = vadd.f32 %v7108_v16, %v6746_v20  ;;  %v6895_v29 = vld [vmem:[#allocation2 + $0xfa] sm:$0xff]  ;;  %v6375_v16 = vld [vmem:[#allocation2 + $0x111] sm:$0xff] }
 0x70c   : > { %v6491_v10 = vpack.c.bf16 %v6375_v16, %v6374_v24  ;;  %v6378_v16 = vld [vmem:[#allocation2 + $0x139] sm:$0xff] }
 0x70d   : > { %7669 = vmatmul.bf16.gmra.mxu3 %v7532_v11 }
 0x70e   : > { %v8154_v59 = vpop.f32.mrf.mxu0 }
 0x70f   : > { %7152 = vmatmul.bf16.gmra.mxu2 %v7011_v2  ;;  %v7013_v2 = vpack.c.bf16 %v6897_v15, %v6896_v22  ;;  %v6900_v22 = vld [vmem:[#allocation2 + $0x13a] sm:$0xff]  ;;  %v6901_v15 = vld [vmem:[#allocation2 + $0x142] sm:$0xff] }
 0x710   : > { %v6588_v54 = vpop.f32.mrf.mxu1  ;;  %v7630_v4 = vpop.f32.mrf.mxu3 }
 0x711   : > { %v7790_v60 = vadd.f32 %v7630_v4, %v7268_v55  ;;  %v6747_v19 = vadd.f32 %v6588_v54, %v14949_v53  ;;  %v7012_v53 = vpack.c.bf16 %v6895_v29, %v6894_v3  ;;  %v12180_v55 = vld [vmem:[%s12334_s27 + $0x1a0] sm:$0xff] }
 0x712   : > { %v7113_v44 = vpop.f32.mrf.mxu2  ;;  %9191 = vmatpush.bf16.msra.mxu2 %v12180_v55  ;;  %v6898_v29 = vld [vmem:[#allocation2 + $0x122] sm:$0xff]  ;;  %v12270_v55 = vld [vmem:[%s15493_s4 + $0xf0] sm:$0xff] }
 0x713   : > { %v8312_v23 = vadd.f32 %v8152_v1, %v7790_v60  ;;  %v7269_v51 = vadd.f32 %v7110_v27, %v6747_v19  ;;  %v6376_v19 = vld [vmem:[#allocation2 + $0x121] sm:$0xff] }
 0x715   : > { %8376 = vst [vmem:[#allocation3 + $0xb0] sm:$0xff] %v8312_v23  ;;  %v6377_v23 = vld [vmem:[#allocation2 + $0x129] sm:$0xff] }
 0x716   : > { %v8157_v57 = vpop.f32.mrf.mxu0  ;;  %v6492_v12 = vpack.c.bf16 %v6377_v23, %v6376_v19 }
 0x718   : > { %v6591_v41 = vpop.f32.mrf.mxu1  ;;  %v7632_v43 = vpop.f32.mrf.mxu3 }
 0x719   : > { %v7791_v58 = vadd.f32 %v7632_v43, %v7269_v51  ;;  %8196 = vmatmul.bf16.gmra.mxu0 %v6490_v39  ;;  %v6748_v62 = vadd.f32 %v6591_v41, %v14956_v48  ;;  %v7416_v48 = vld [vmem:[#allocation2 + $0x108] sm:$0xff] }
 0x71a   : > { %v7115_v35 = vpop.f32.mrf.mxu2 }
 0x71b   : > { %6630 = vmatmul.bf16.gmra.mxu1 %v6489_v61  ;;  %v8313_v6 = vadd.f32 %v8154_v59, %v7791_v58  ;;  %v7270_v34 = vadd.f32 %v7113_v44, %v6748_v62  ;;  %v7417_v61 = vld [vmem:[#allocation2 + $0x110] sm:$0xff]  ;;  %v12172_v59 = vld [vmem:[%s12334_s27 + $0x160] sm:$0xff] }
 0x71c   : > { %v7534_v37 = vpack.c.bf16 %v7417_v61, %v7416_v48  ;;  %8668 = vmatpush.bf16.msra.mxu1 %v12172_v59  ;;  %v6899_v58 = vld [vmem:[#allocation2 + $0x12a] sm:$0xff]  ;;  %v12188_v62 = vld [vmem:[%s12334_s27 + $0x1e0] sm:$0xff] }
 0x71d   : > { %7674 = vmatmul.bf16.gmra.mxu3 %v7533_v17  ;;  %8377 = vst [vmem:[#allocation3 + $0x1b0] sm:$0xff] %v8313_v6  ;;  %v7421_v61 = vld [vmem:[#allocation2 + $0x140] sm:$0xff] }
 0x71e   : > { %v8159_v14 = vpop.f32.mrf.mxu0  ;;  %9713 = vmatpush.bf16.msra.mxu3 %v12188_v62 }
 0x71f   : > { %7157 = vmatmul.bf16.gmra.mxu2 %v7012_v53 }
 0x720   : > { %v6593_v32 = vpop.f32.mrf.mxu1  ;;  %v7635_v18 = vpop.f32.mrf.mxu3 }
 0x721   : > { %v7792_v28 = vadd.f32 %v7635_v18, %v7270_v34  ;;  %v6749_v45 = vadd.f32 %v6593_v32, %v14959_v63 }
 0x722   : > { %v7118_v46 = vpop.f32.mrf.mxu2 }
 0x723   : > { %v8314_v50 = vadd.f32 %v8157_v57, %v7792_v28  ;;  %v7271_v1 = vadd.f32 %v7115_v35, %v6749_v45  ;;  %v7419_v57 = vld [vmem:[#allocation2 + $0x128] sm:$0xff] }
 0x724   : > { %v7535_v35 = vpack.c.bf16 %v7419_v57, %v7418_v49  ;;  %v6379_v45 = vld [vmem:[#allocation2 + $0x141] sm:$0xff] }
 0x725   : > { %8378 = vst [vmem:[#allocation3 + $0xd8] sm:$0xff] %v8314_v50 }
 0x726   : > { %v8162_v36 = vpop.f32.mrf.mxu0 }
 0x728   : > { %v6596_v9 = vpop.f32.mrf.mxu1  ;;  %v7637_v7 = vpop.f32.mrf.mxu3 }
 0x729   : > { %v7793_v11 = vadd.f32 %v7637_v7, %v7271_v1  ;;  %8201 = vmatmul.bf16.gmra.mxu0 %v6491_v10  ;;  %v6750_v20 = vadd.f32 %v6596_v9, %v14965_v13 }
 0x72a   : > { %v7120_v27 = vpop.f32.mrf.mxu2 }
 0x72b   : > { %6635 = vmatmul.bf16.gmra.mxu1 %v6490_v39  ;;  %v8315_v63 = vadd.f32 %v8159_v14, %v7793_v11  ;;  %v7272_v4 = vadd.f32 %v7118_v46, %v6750_v20  ;;  %v7014_v14 = vpack.c.bf16 %v6899_v58, %v6898_v29  ;;  %v7423_v29 = vld [vmem:[#allocation2 + $0x158] sm:$0xff] }
 0x72d   : > { %7679 = vmatmul.bf16.gmra.mxu3 %v7534_v37  ;;  %8379 = vst [vmem:[#allocation3 + $0x18] sm:$0xff] %v8315_v63 }
 0x72e   : > { %v8164_v54 = vpop.f32.mrf.mxu0 }
 0x72f   : > { %7162 = vmatmul.bf16.gmra.mxu2 %v7013_v2  ;;  %v7015_v2 = vpack.c.bf16 %v6901_v15, %v6900_v22 }
 0x730   : > { %v6598_v60 = vpop.f32.mrf.mxu1  ;;  %v7640_v44 = vpop.f32.mrf.mxu3 }
 0x731   : > { %v7794_v40 = vadd.f32 %v7640_v44, %v7272_v4  ;;  %v6751_v13 = vadd.f32 %v6598_v60, %v14970_v47  ;;  %v12271_v4 = vld [vmem:[%s15493_s4 + $0xf8] sm:$0xff] }
 0x732   : > { %v7123_v0 = vpop.f32.mrf.mxu2  ;;  %v5538_v60 = vmul.f32 %v12271_v4, %v14619_v56 }
 0x733   : > { %v8316_v39 = vadd.f32 %v8162_v36, %v7794_v40  ;;  %v7273_v41 = vadd.f32 %v7120_v27, %v6751_v13  ;;  %v12196_v27 = vld [vmem:[%s12334_s27 + $0x220] sm:$0xff] }
 0x734   : > { %10235 = vmatpush.bf16.msra.mxu0 %v12196_v27  ;;  %v15043_v19 = vadd.f32 %v14633_v30, %v5538_v60 }
 0x735   : > { %8380 = vst [vmem:[#allocation3 + $0x50] sm:$0xff] %v8316_v39  ;;  %v6380_v39 = vld [vmem:[#allocation2 + $0x151] sm:$0xff] }
 0x736   : > { %v8167_v51 = vpop.f32.mrf.mxu0  ;;  %v5669_v57 = vmax.f32 %v15043_v19, 0.0 }
 0x738   : > { %v6601_v43 = vpop.f32.mrf.mxu1  ;;  %v7642_v3 = vpop.f32.mrf.mxu3  ;;  %5734 = vst [vmem:[#allocation2 + $0x189] sm:$0xff] %v5669_v57 }
 0x739   : > { %v7795_v17 = vadd.f32 %v7642_v3, %v7273_v41  ;;  %8206 = vmatmul.bf16.gmra.mxu0 %v6492_v12  ;;  %v6752_v53 = vadd.f32 %v6601_v43, %v14976_v21  ;;  %v6493_v21 = vpack.c.bf16 %v6379_v45, %v6378_v16  ;;  %v7422_v3 = vld [vmem:[#allocation2 + $0x150] sm:$0xff] }
 0x73a   : > { %v7125_v6 = vpop.f32.mrf.mxu2 }
 0x73b   : > { %6640 = vmatmul.bf16.gmra.mxu1 %v6491_v10  ;;  %v8317_v47 = vadd.f32 %v8164_v54, %v7795_v17  ;;  %v7274_v32 = vadd.f32 %v7123_v0, %v6752_v53  ;;  %v7420_v10 = vld [vmem:[#allocation2 + $0x138] sm:$0xff]  ;;  %v5537_v54 = vmul.f32 %v12270_v55, %v14619_v56 }
 0x73c   : > { %v7536_v37 = vpack.c.bf16 %v7421_v61, %v7420_v10  ;;  %v6903_v53 = vld [vmem:[#allocation2 + $0x15a] sm:$0xff]  ;;  %v6383_v10 = vld [vmem:[#allocation2 + $0x171] sm:$0xff] }
 0x73d   : > { %7684 = vmatmul.bf16.gmra.mxu3 %v7535_v35  ;;  %8381 = vst [vmem:[#allocation3 + $0x168] sm:$0xff] %v8317_v47  ;;  %v15040_v0 = vadd.f32 %v14633_v30, %v5537_v54  ;;  %v12179_v55 = vld [vmem:[%s12334_s27 + $0x198] sm:$0xff] }
 0x73e   : > { %v8169_v34 = vpop.f32.mrf.mxu0  ;;  %9192 = vmatpush.bf16.msra.mxu2 %v12179_v55  ;;  %v6388_v55 = vld [vmem:[#allocation2 + $0x1e1] sm:$0xff] }
 0x73f   : > { %7167 = vmatmul.bf16.gmra.mxu2 %v7014_v14  ;;  %v5668_v49 = vmax.f32 %v15040_v0, 0.0  ;;  %v7537_v14 = vpack.c.bf16 %v7423_v29, %v7422_v3  ;;  %v6906_v29 = vld [vmem:[#allocation2 + $0x1b2] sm:$0xff] }
 0x740   : > { %v6603_v18 = vpop.f32.mrf.mxu1  ;;  %v7645_v28 = vpop.f32.mrf.mxu3 }
 0x741   : > { %v7796_v46 = vadd.f32 %v7645_v28, %v7274_v32  ;;  %v6753_v50 = vadd.f32 %v6603_v18, %v14980_v33  ;;  %5733 = vst [vmem:[#allocation2 + $0x181] sm:$0xff] %v5668_v49 }
 0x742   : > { %v7128_v24 = vpop.f32.mrf.mxu2 }
 0x743   : > { %v8318_v48 = vadd.f32 %v8167_v51, %v7796_v46  ;;  %v7275_v1 = vadd.f32 %v7125_v6, %v6753_v50  ;;  %v6902_v6 = vld [vmem:[#allocation2 + $0x152] sm:$0xff] }
 0x744   : > { %v7016_v18 = vpack.c.bf16 %v6903_v53, %v6902_v6 }
 0x745   : > { %8382 = vst [vmem:[#allocation3 + $0x130] sm:$0xff] %v8318_v48  ;;  %v6382_v48 = vld [vmem:[#allocation2 + $0x169] sm:$0xff] }
 0x746   : > { %v8172_v36 = vpop.f32.mrf.mxu0 }
 0x748   : > { %v6606_v9 = vpop.f32.mrf.mxu1  ;;  %v7647_v7 = vpop.f32.mrf.mxu3 }
 0x749   : > { %v7797_v11 = vadd.f32 %v7647_v7, %v7275_v1  ;;  %8211 = vmatmul.bf16.gmra.mxu0 %v6493_v21  ;;  %v6754_v63 = vadd.f32 %v6606_v9, %v14986_v52  ;;  %v6495_v1 = vpack.c.bf16 %v6383_v10, %v6382_v48 }
 0x74a   : > { %v7130_v20 = vpop.f32.mrf.mxu2 }
 0x74b   : > { %6645 = vmatmul.bf16.gmra.mxu1 %v6492_v12  ;;  %v8319_v33 = vadd.f32 %v8169_v34, %v7797_v11  ;;  %v7276_v52 = vadd.f32 %v7128_v24, %v6754_v63  ;;  %v6381_v12 = vld [vmem:[#allocation2 + $0x159] sm:$0xff]  ;;  %v6904_v11 = vld [vmem:[#allocation2 + $0x16a] sm:$0xff] }
 0x74c   : > { %v6494_v43 = vpack.c.bf16 %v6381_v12, %v6380_v39  ;;  %v7426_v39 = vld [vmem:[#allocation2 + $0x180] sm:$0xff]  ;;  %v7427_v12 = vld [vmem:[#allocation2 + $0x188] sm:$0xff] }
 0x74d   : > { %7689 = vmatmul.bf16.gmra.mxu3 %v7536_v37  ;;  %8383 = vst [vmem:[#allocation3 + $0x48] sm:$0xff] %v8319_v33  ;;  %v6905_v37 = vld [vmem:[#allocation2 + $0x172] sm:$0xff] }
 0x74e   : > { %v8174_v59 = vpop.f32.mrf.mxu0 }
 0x74f   : > { %7172 = vmatmul.bf16.gmra.mxu2 %v7015_v2  ;;  %v7017_v2 = vpack.c.bf16 %v6905_v37, %v6904_v11 }
 0x750   : > { %v6608_v44 = vpop.f32.mrf.mxu1  ;;  %v7650_v40 = vpop.f32.mrf.mxu3 }
 0x751   : > { %v7798_v23 = vadd.f32 %v7650_v40, %v7276_v52  ;;  %v6755_v51 = vadd.f32 %v6608_v44, %v14990_v25 }
 0x752   : > { %v7133_v13 = vpop.f32.mrf.mxu2 }
 0x753   : > { %v8320_v41 = vadd.f32 %v8172_v36, %v7798_v23  ;;  %v7277_v17 = vadd.f32 %v7130_v20, %v6755_v51 }
 0x755   : > { %8384 = vst [vmem:[#allocation3 + $0x180] sm:$0xff] %v8320_v41 }
 0x756   : > { %v8177_v58 = vpop.f32.mrf.mxu0 }
 0x758   : > { %v6611_v35 = vpop.f32.mrf.mxu1  ;;  %v7652_v62 = vpop.f32.mrf.mxu3 }
 0x759   : > { %v7799_v47 = vadd.f32 %v7652_v62, %v7277_v17  ;;  %8216 = vmatmul.bf16.gmra.mxu0 %v6494_v43  ;;  %v6756_v34 = vadd.f32 %v6611_v35, %v14996_v38  ;;  %v7424_v38 = vld [vmem:[#allocation2 + $0x168] sm:$0xff]  ;;  %v7539_v35 = vpack.c.bf16 %v7427_v12, %v7426_v39  ;;  %v12187_v62 = vld [vmem:[%s12334_s27 + $0x1d8] sm:$0xff] }
 0x75a   : > { %v7135_v25 = vpop.f32.mrf.mxu2  ;;  %9714 = vmatpush.bf16.msra.mxu3 %v12187_v62  ;;  %v6910_v12 = vld [vmem:[#allocation2 + $0x1e2] sm:$0xff] }
 0x75b   : > { %6650 = vmatmul.bf16.gmra.mxu1 %v6493_v21  ;;  %v8321_v32 = vadd.f32 %v8174_v59, %v7799_v47  ;;  %v7278_v46 = vadd.f32 %v7133_v13, %v6756_v34  ;;  %v7425_v21 = vld [vmem:[#allocation2 + $0x170] sm:$0xff]  ;;  %v12171_v59 = vld [vmem:[%s12334_s27 + $0x158] sm:$0xff]  ;;  %v8061_v13 = vpack.c.bf16 %v5669_v57, %v5668_v49 }
 0x75c   : > { %v7538_v20 = vpack.c.bf16 %v7425_v21, %v7424_v38  ;;  %8669 = vmatpush.bf16.msra.mxu1 %v12171_v59  ;;  %v6386_v34 = vld [vmem:[#allocation2 + $0x1c9] sm:$0xff]  ;;  %v6909_v38 = vld [vmem:[#allocation2 + $0x1d2] sm:$0xff] }
 0x75d   : > { %7694 = vmatmul.bf16.gmra.mxu3 %v7537_v14  ;;  %8385 = vst [vmem:[#allocation3 + $0x110] sm:$0xff] %v8321_v32  ;;  %v6387_v32 = vld [vmem:[#allocation2 + $0x1d1] sm:$0xff] }
 0x75e   : > { %v8179_v28 = vpop.f32.mrf.mxu0 }
 0x75f   : > { %7177 = vmatmul.bf16.gmra.mxu2 %v7016_v18 }
 0x760   : > { %v6613_v24 = vpop.f32.mrf.mxu1  ;;  %v7655_v16 = vpop.f32.mrf.mxu3 }
 0x761   : > { %v7800_v45 = vadd.f32 %v7655_v16, %v7278_v46  ;;  %v6757_v61 = vadd.f32 %v6613_v24, %v14999_v8  ;;  %v6384_v46 = vld [vmem:[#allocation2 + $0x1b1] sm:$0xff]  ;;  %v6497_v24 = vpack.c.bf16 %v6387_v32, %v6386_v34  ;;  %v7428_v16 = vld [vmem:[#allocation2 + $0x1c8] sm:$0xff] }
 0x762   : > { %v7138_v50 = vpop.f32.mrf.mxu2  ;;  %v7432_v32 = vld [vmem:[#allocation2 + $0x1f8] sm:$0xff] }
 0x763   : > { %v8322_v36 = vadd.f32 %v8177_v58, %v7800_v45  ;;  %v7279_v7 = vadd.f32 %v7135_v25, %v6757_v61  ;;  %v6907_v58 = vld [vmem:[#allocation2 + $0x1ba] sm:$0xff]  ;;  %v7429_v45 = vld [vmem:[#allocation2 + $0x1d0] sm:$0xff] }
 0x764   : > { %v7018_v53 = vpack.c.bf16 %v6907_v58, %v6906_v29 }
 0x765   : > { %8386 = vst [vmem:[#allocation3 + $0x118] sm:$0xff] %v8322_v36 }
 0x766   : > { %v8182_v9 = vpop.f32.mrf.mxu0 }
 0x768   : > { %v6616_v22 = vpop.f32.mrf.mxu1  ;;  %v7657_v15 = vpop.f32.mrf.mxu3 }
 0x769   : > { %v7801_v27 = vadd.f32 %v7657_v15, %v7279_v7  ;;  %8221 = vmatmul.bf16.gmra.mxu0 %v6495_v1  ;;  %v6758_v33 = vadd.f32 %v6616_v22, %v15005_v42  ;;  %v12195_v7 = vld [vmem:[%s12334_s27 + $0x218] sm:$0xff] }
 0x76a   : > { %v7140_v63 = vpop.f32.mrf.mxu2  ;;  %10236 = vmatpush.bf16.msra.mxu0 %v12195_v7 }
 0x76b   : > { %6655 = vmatmul.bf16.gmra.mxu1 %v6494_v43  ;;  %v8323_v8 = vadd.f32 %v8179_v28, %v7801_v27  ;;  %v7280_v4 = vadd.f32 %v7138_v50, %v6758_v33 }
 0x76d   : > { %7699 = vmatmul.bf16.gmra.mxu3 %v7538_v20  ;;  %8387 = vst [vmem:[#allocation3 + $0x98] sm:$0xff] %v8323_v8 }
 0x76e   : > { %v8184_v54 = vpop.f32.mrf.mxu0 }
 0x76f   : > { %7182 = vmatmul.bf16.gmra.mxu2 %v7017_v2  ;;  %v6433_v2 = vld [vmem:[#allocation3 + $0x188] sm:$0xff] }
 0x770   : > { %v6618_v60 = vpop.f32.mrf.mxu1  ;;  %v7660_v52 = vpop.f32.mrf.mxu3 }
 0x771   : > { %v7802_v44 = vadd.f32 %v7660_v52, %v7280_v4  ;;  %v6759_v23 = vadd.f32 %v6618_v60, %v15010_v26 }
 0x772   : > { %v7143_v40 = vpop.f32.mrf.mxu2 }
 0x773   : > { %v8324_v42 = vadd.f32 %v8182_v9, %v7802_v44  ;;  %v7281_v41 = vadd.f32 %v7140_v63, %v6759_v23  ;;  %v7540_v9 = vpack.c.bf16 %v7429_v45, %v7428_v16  ;;  %v7430_v44 = vld [vmem:[#allocation2 + $0x1e0] sm:$0xff] }
 0x774   : > { %v6912_v16 = vld [vmem:[#allocation2 + $0x1fa] sm:$0xff]  ;;  %v6913_v45 = vld [vmem:[#allocation2 + $0x202] sm:$0xff] }
 0x775   : > { %8388 = vst [vmem:[#allocation3 + $0x120] sm:$0xff] %v8324_v42 }
 0x776   : > { %v8187_v51 = vpop.f32.mrf.mxu0 }
 0x778   : > { %v6621_v43 = vpop.f32.mrf.mxu1  ;;  %v7662_v3 = vpop.f32.mrf.mxu3 }
 0x779   : > { %v7803_v17 = vadd.f32 %v7662_v3, %v7281_v41  ;;  %8226 = vmatmul.bf16.gmra.mxu0 %v8061_v13  ;;  %v6760_v6 = vadd.f32 %v6621_v43, %v15012_v5  ;;  %v6385_v5 = vld [vmem:[#allocation2 + $0x1b9] sm:$0xff] }
 0x77a   : > { %v7145_v26 = vpop.f32.mrf.mxu2  ;;  %v6496_v10 = vpack.c.bf16 %v6385_v5, %v6384_v46  ;;  %v6434_v3 = vld [vmem:[#allocation3 + $0x138] sm:$0xff] }
 0x77b   : > { %6660 = vmatmul.bf16.gmra.mxu1 %v6495_v1  ;;  %v8325_v0 = vadd.f32 %v8184_v54, %v7803_v17  ;;  %v7282_v49 = vadd.f32 %v7143_v40, %v6760_v6  ;;  %v6908_v1 = vld [vmem:[#allocation2 + $0x1ca] sm:$0xff] }
 0x77c   : > { %v7019_v37 = vpack.c.bf16 %v6909_v38, %v6908_v1  ;;  %v6389_v54 = vld [vmem:[#allocation2 + $0x1e9] sm:$0xff]  ;;  %v7021_v38 = vpack.c.bf16 %v6913_v45, %v6912_v16 }
 0x77d   : > { %7704 = vmatmul.bf16.gmra.mxu3 %v7539_v35  ;;  %8389 = vst [vmem:[#allocation3 + $0x150] sm:$0xff] %v8325_v0  ;;  %v6498_v52 = vpack.c.bf16 %v6389_v54, %v6388_v55  ;;  %v7431_v40 = vld [vmem:[#allocation2 + $0x1e8] sm:$0xff]  ;;  %v7435_v55 = vld [vmem:[#allocation2 + $0x218] sm:$0xff] }
 0x77e   : > { %v8189_v19 = vpop.f32.mrf.mxu0  ;;  %v7541_v43 = vpack.c.bf16 %v7431_v40, %v7430_v44  ;;  %v6914_v44 = vld [vmem:[#allocation2 + $0x212] sm:$0xff]  ;;  %v6915_v40 = vld [vmem:[#allocation2 + $0x21a] sm:$0xff]  ;;  %v6440_v16 = vld [vmem:[#allocation3 + $0x1e8] sm:$0xff] }
 0x77f   : > { %7187 = vmatmul.bf16.gmra.mxu2 %v7018_v53 }
 0x780   : > { %v6623_v57 = vpop.f32.mrf.mxu1  ;;  %v7665_v47 = vpop.f32.mrf.mxu3 }
 0x781   : > { %v7804_v14 = vadd.f32 %v7665_v47, %v7282_v49  ;;  %v6761_v18 = vadd.f32 %v6623_v57, %v15015_v31  ;;  %v6432_v31 = vld [vmem:[#allocation3 + $0xe0] sm:$0xff] }
 0x782   : > { %v7148_v25 = vpop.f32.mrf.mxu2  ;;  %v6390_v57 = vld [vmem:[#allocation2 + $0x1f9] sm:$0xff]  ;;  %v6391_v47 = vld [vmem:[#allocation2 + $0x201] sm:$0xff] }
 0x783   : > { %v8326_v28 = vadd.f32 %v8187_v51, %v7804_v14  ;;  %v7283_v48 = vadd.f32 %v7145_v26, %v6761_v18  ;;  %v6911_v51 = vld [vmem:[#allocation2 + $0x1ea] sm:$0xff]  ;;  %v6499_v34 = vpack.c.bf16 %v6391_v47, %v6390_v57  ;;  %v7433_v18 = vld [vmem:[#allocation2 + $0x200] sm:$0xff] }
 0x784   : > { %v7020_v35 = vpack.c.bf16 %v6911_v51, %v6910_v12  ;;  %v7436_v57 = vld [vmem:[#allocation2 + $0x228] sm:$0xff]  ;;  %v7437_v47 = vld [vmem:[#allocation2 + $0x230] sm:$0xff] }
 0x785   : > { %8390 = vst [vmem:[#allocation3 + $0x108] sm:$0xff] %v8326_v28 }
 0x786   : > { %v8192_v50 = vpop.f32.mrf.mxu0 }
 0x788   : > { %v6626_v61 = vpop.f32.mrf.mxu1  ;;  %v7667_v36 = vpop.f32.mrf.mxu3 }
 0x789   : > { %v7805_v21 = vadd.f32 %v7667_v36, %v7283_v48  ;;  %8231 = vmatmul.bf16.gmra.mxu0 %v6497_v24  ;;  %v6762_v15 = vadd.f32 %v6626_v61, %v6432_v31  ;;  %v7542_v48 = vpack.c.bf16 %v7433_v18, %v7432_v32  ;;  %v6916_v18 = vld [vmem:[#allocation2 + $0x22a] sm:$0xff] }
 0x78a   : > { %v7150_v22 = vpop.f32.mrf.mxu2 }
 0x78b   : > { %6665 = vmatmul.bf16.gmra.mxu1 %v6496_v10  ;;  %v8327_v11 = vadd.f32 %v8189_v19, %v7805_v21  ;;  %v7284_v20 = vadd.f32 %v7148_v25, %v6762_v15  ;;  %v6435_v19 = vld [vmem:[#allocation3 + $0x140] sm:$0xff]  ;;  %v12170_v21 = vld [vmem:[%s12334_s27 + $0x150] sm:$0xff] }
 0x78c   : > { %v6436_v10 = vld [vmem:[#allocation3 + $0x80] sm:$0xff]  ;;  %8670 = vmatpush.bf16.msra.mxu1 %v12170_v21 }
 0x78d   : > { %7709 = vmatmul.bf16.gmra.mxu3 %v7540_v9  ;;  %8391 = vst [vmem:[#allocation3 + $0x60] sm:$0xff] %v8327_v11  ;;  %v12178_v9 = vld [vmem:[%s12334_s27 + $0x190] sm:$0xff] }
 0x78e   : > { %v8194_v27 = vpop.f32.mrf.mxu0  ;;  %9193 = vmatpush.bf16.msra.mxu2 %v12178_v9  ;;  %v6441_v9 = vld [vmem:[#allocation3 + $0xf8] sm:$0xff] }
 0x78f   : > { %7192 = vmatmul.bf16.gmra.mxu2 %v7019_v37  ;;  %v6437_v37 = vld [vmem:[#allocation3 + $0x1a8] sm:$0xff] }
 0x790   : > { %v6628_v63 = vpop.f32.mrf.mxu1  ;;  %v7670_v33 = vpop.f32.mrf.mxu3 }
 0x791   : > { %v7806_v8 = vadd.f32 %v7670_v33, %v7284_v20  ;;  %v6763_v4 = vadd.f32 %v6628_v63, %v6433_v2  ;;  %v6392_v20 = vld [vmem:[#allocation2 + $0x211] sm:$0xff]  ;;  %v6393_v63 = vld [vmem:[#allocation2 + $0x219] sm:$0xff] }
 0x792   : > { %v7153_v59 = vpop.f32.mrf.mxu2  ;;  %v6500_v2 = vpack.c.bf16 %v6393_v63, %v6392_v20  ;;  %v7439_v20 = vld [vmem:[#allocation2 + $0x248] sm:$0xff] }
 0x793   : > { %v8328_v60 = vadd.f32 %v8192_v50, %v7806_v8  ;;  %v7285_v42 = vadd.f32 %v7150_v22, %v6763_v4 }
 0x795   : > { %8392 = vst [vmem:[#allocation3 + $0xe0] sm:$0xff] %v8328_v60 }
 0x796   : > { %v8197_v23 = vpop.f32.mrf.mxu0 }
 0x798   : > { %v6631_v13 = vpop.f32.mrf.mxu1  ;;  %v7672_v39 = vpop.f32.mrf.mxu3 }
 0x799   : > { %v7807_v41 = vadd.f32 %v7672_v39, %v7285_v42  ;;  %8236 = vmatmul.bf16.gmra.mxu0 %v6498_v52  ;;  %v6764_v58 = vadd.f32 %v6631_v13, %v6434_v3  ;;  %v12186_v13 = vld [vmem:[%s12334_s27 + $0x1d0] sm:$0xff]  ;;  %v6438_v39 = vld [vmem:[#allocation3 + $0x1b8] sm:$0xff] }
 0x79a   : > { %v7155_v29 = vpop.f32.mrf.mxu2  ;;  %9715 = vmatpush.bf16.msra.mxu3 %v12186_v13 }
 0x79b   : > { %6670 = vmatmul.bf16.gmra.mxu1 %v6497_v24  ;;  %v8329_v17 = vadd.f32 %v8194_v27, %v7807_v41  ;;  %v7286_v26 = vadd.f32 %v7153_v59, %v6764_v58  ;;  %v7434_v59 = vld [vmem:[#allocation2 + $0x210] sm:$0xff] }
 0x79c   : > { %v7543_v42 = vpack.c.bf16 %v7435_v55, %v7434_v59  ;;  %v6918_v59 = vld [vmem:[#allocation2 + $0x242] sm:$0xff]  ;;  %v6919_v55 = vld [vmem:[#allocation2 + $0x24a] sm:$0xff] }
 0x79d   : > { %7714 = vmatmul.bf16.gmra.mxu3 %v7541_v43  ;;  %8393 = vst [vmem:[#allocation3 + $0x188] sm:$0xff] %v8329_v17  ;;  %v7022_v43 = vpack.c.bf16 %v6915_v40, %v6914_v44 }
 0x79e   : > { %v8199_v62 = vpop.f32.mrf.mxu0 }
 0x79f   : > { %7197 = vmatmul.bf16.gmra.mxu2 %v7020_v35 }
 0x7a0   : > { %v6633_v6 = vpop.f32.mrf.mxu1  ;;  %v7675_v0 = vpop.f32.mrf.mxu3 }
 0x7a1   : > { %v7808_v53 = vadd.f32 %v7675_v0, %v7286_v26  ;;  %v6765_v14 = vadd.f32 %v6633_v6, %v6435_v19  ;;  %v6394_v6 = vld [vmem:[#allocation2 + $0x229] sm:$0xff]  ;;  %v6395_v0 = vld [vmem:[#allocation2 + $0x231] sm:$0xff] }
 0x7a2   : > { %v7158_v49 = vpop.f32.mrf.mxu2 }
 0x7a3   : > { %v8330_v25 = vadd.f32 %v8197_v23, %v7808_v53  ;;  %v7287_v46 = vadd.f32 %v7155_v29, %v6765_v14 }
 0x7a5   : > { %8394 = vst [vmem:[#allocation3 + $0x138] sm:$0xff] %v8330_v25 }
 0x7a6   : > { %v8202_v28 = vpop.f32.mrf.mxu0 }
 0x7a8   : > { %v6636_v5 = vpop.f32.mrf.mxu1  ;;  %v7677_v24 = vpop.f32.mrf.mxu3 }
 0x7a9   : > { %v7809_v50 = vadd.f32 %v7677_v24, %v7287_v46  ;;  %8241 = vmatmul.bf16.gmra.mxu0 %v6499_v34  ;;  %v6766_v36 = vadd.f32 %v6636_v5, %v6436_v10  ;;  %v7544_v5 = vpack.c.bf16 %v7437_v47, %v7436_v57  ;;  %v12194_v24 = vld [vmem:[%s12334_s27 + $0x210] sm:$0xff]  ;;  %v6921_v57 = vld [vmem:[#allocation2 + $0x262] sm:$0xff] }
 0x7aa   : > { %v7160_v61 = vpop.f32.mrf.mxu2  ;;  %10237 = vmatpush.bf16.msra.mxu0 %v12194_v24 }
 0x7ab   : > { %6675 = vmatmul.bf16.gmra.mxu1 %v6498_v52  ;;  %v8331_v1 = vadd.f32 %v8199_v62, %v7809_v50  ;;  %v7288_v31 = vadd.f32 %v7158_v49, %v6766_v36  ;;  %v6439_v62 = vld [vmem:[#allocation3 + $0x28] sm:$0xff]  ;;  %v6501_v49 = vpack.c.bf16 %v6395_v0, %v6394_v6 }
 0x7ad   : > { %7719 = vmatmul.bf16.gmra.mxu3 %v7542_v48  ;;  %8395 = vst [vmem:[#allocation3 + $0x140] sm:$0xff] %v8331_v1 }
 0x7ae   : > { %v8204_v7 = vpop.f32.mrf.mxu0 }
 0x7af   : > { %7202 = vmatmul.bf16.gmra.mxu2 %v7021_v38 }
 0x7b0   : > { %v6638_v22 = vpop.f32.mrf.mxu1  ;;  %v7680_v15 = vpop.f32.mrf.mxu3 }
 0x7b1   : > { %v7810_v11 = vadd.f32 %v7680_v15, %v7288_v31  ;;  %v6767_v33 = vadd.f32 %v6638_v22, %v6437_v37  ;;  %v6396_v31 = vld [vmem:[#allocation2 + $0x241] sm:$0xff]  ;;  %v6397_v22 = vld [vmem:[#allocation2 + $0x249] sm:$0xff] }
 0x7b2   : > { %v7163_v27 = vpop.f32.mrf.mxu2  ;;  %v6502_v37 = vpack.c.bf16 %v6397_v22, %v6396_v31  ;;  %v7443_v31 = vld [vmem:[#allocation2 + $0x278] sm:$0xff] }
 0x7b3   : > { %v8332_v8 = vadd.f32 %v8202_v28, %v7810_v11  ;;  %v7289_v4 = vadd.f32 %v7160_v61, %v6767_v33  ;;  %v6917_v28 = vld [vmem:[#allocation2 + $0x232] sm:$0xff] }
 0x7b4   : > { %v7023_v10 = vpack.c.bf16 %v6917_v28, %v6916_v18 }
 0x7b5   : > { %8396 = vst [vmem:[#allocation3 + $0x80] sm:$0xff] %v8332_v8 }
 0x7b6   : > { %v8207_v54 = vpop.f32.mrf.mxu0 }
 0x7b8   : > { %v6641_v60 = vpop.f32.mrf.mxu1  ;;  %v7682_v52 = vpop.f32.mrf.mxu3 }
 0x7b9   : > { %v7811_v23 = vadd.f32 %v7682_v52, %v7289_v4  ;;  %8246 = vmatmul.bf16.gmra.mxu0 %v6500_v2  ;;  %v6768_v51 = vadd.f32 %v6641_v60, %v6438_v39  ;;  %v6442_v60 = vld [vmem:[#allocation3 + $0x160] sm:$0xff] }
 0x7ba   : > { %v7165_v12 = vpop.f32.mrf.mxu2 }
 0x7bb   : > { %6680 = vmatmul.bf16.gmra.mxu1 %v6499_v34  ;;  %v8333_v41 = vadd.f32 %v8204_v7, %v7811_v23  ;;  %v7290_v29 = vadd.f32 %v7163_v27, %v6768_v51  ;;  %v7438_v27 = vld [vmem:[#allocation2 + $0x240] sm:$0xff]  ;;  %v7024_v23 = vpack.c.bf16 %v6919_v55, %v6918_v59 }
 0x7bc   : > { %v7545_v4 = vpack.c.bf16 %v7439_v20, %v7438_v27  ;;  %v6922_v27 = vld [vmem:[#allocation2 + $0x272] sm:$0xff]  ;;  %v6923_v20 = vld [vmem:[#allocation2 + $0x27a] sm:$0xff] }
 0x7bd   : > { %7724 = vmatmul.bf16.gmra.mxu3 %v7543_v42  ;;  %8397 = vst [vmem:[#allocation3 + $0x1a8] sm:$0xff] %v8333_v41  ;;  %v6443_v41 = vld [vmem:[#allocation3 + $0x30] sm:$0xff] }
 0x7be   : > { %v8209_v3 = vpop.f32.mrf.mxu0 }
 0x7bf   : > { %7207 = vmatmul.bf16.gmra.mxu2 %v7022_v43 }
 0x7c0   : > { %v6643_v58 = vpop.f32.mrf.mxu1  ;;  %v7685_v17 = vpop.f32.mrf.mxu3 }
 0x7c1   : > { %v7812_v35 = vadd.f32 %v7685_v17, %v7290_v29  ;;  %v6769_v53 = vadd.f32 %v6643_v58, %v6439_v62  ;;  %v6399_v29 = vld [vmem:[#allocation2 + $0x261] sm:$0xff]  ;;  %v7440_v62 = vld [vmem:[#allocation2 + $0x258] sm:$0xff] }
 0x7c2   : > { %v7168_v26 = vpop.f32.mrf.mxu2 }
 0x7c3   : > { %v8334_v19 = vadd.f32 %v8207_v54, %v7812_v35  ;;  %v7291_v25 = vadd.f32 %v7165_v12, %v6769_v53 }
 0x7c5   : > { %8398 = vst [vmem:[#allocation3 + $0x1b8] sm:$0xff] %v8334_v19 }
 0x7c6   : > { %v8212_v14 = vpop.f32.mrf.mxu0 }
 0x7c8   : > { %v6646_v34 = vpop.f32.mrf.mxu1  ;;  %v7687_v32 = vpop.f32.mrf.mxu3 }
 0x7c9   : > { %v7813_v46 = vadd.f32 %v7687_v32, %v7291_v25  ;;  %8251 = vmatmul.bf16.gmra.mxu0 %v6501_v49  ;;  %v6770_v50 = vadd.f32 %v6646_v34, %v6440_v16  ;;  %v6444_v25 = vld [vmem:[#allocation3 + $0x1e0] sm:$0xff] }
 0x7ca   : > { %v7170_v45 = vpop.f32.mrf.mxu2 }
 0x7cb   : > { %6685 = vmatmul.bf16.gmra.mxu1 %v6500_v2  ;;  %v8335_v48 = vadd.f32 %v8209_v3, %v7813_v46  ;;  %v7292_v36 = vadd.f32 %v7168_v26, %v6770_v50  ;;  %v6398_v3 = vld [vmem:[#allocation2 + $0x259] sm:$0xff]  ;;  %v12169_v46 = vld [vmem:[%s12334_s27 + $0x148] sm:$0xff] }
 0x7cc   : > { %v6503_v35 = vpack.c.bf16 %v6399_v29, %v6398_v3  ;;  %v7441_v26 = vld [vmem:[#allocation2 + $0x260] sm:$0xff]  ;;  %8671 = vmatpush.bf16.msra.mxu1 %v12169_v46  ;;  %v7444_v3 = vld [vmem:[#allocation2 + $0x288] sm:$0xff]  ;;  %v7445_v29 = vld [vmem:[#allocation2 + $0x290] sm:$0xff] }
 0x7cd   : > { %7729 = vmatmul.bf16.gmra.mxu3 %v7544_v5  ;;  %8399 = vst [vmem:[#allocation3 + $0x28] sm:$0xff] %v8335_v48  ;;  %v12177_v5 = vld [vmem:[%s12334_s27 + $0x188] sm:$0xff] }
 0x7ce   : > { %v8214_v61 = vpop.f32.mrf.mxu0  ;;  %9194 = vmatpush.bf16.msra.mxu2 %v12177_v5  ;;  %v6449_v5 = vld [vmem:[#allocation3 + $0x1d0] sm:$0xff] }
 0x7cf   : > { %7212 = vmatmul.bf16.gmra.mxu2 %v7023_v10  ;;  %v6445_v10 = vld [vmem:[#allocation3] sm:$0xff] }
 0x7d0   : > { %v6648_v1 = vpop.f32.mrf.mxu1  ;;  %v7690_v38 = vpop.f32.mrf.mxu3 }
 0x7d1   : > { %v7814_v21 = vadd.f32 %v7690_v38, %v7292_v36  ;;  %v6771_v15 = vadd.f32 %v6648_v1, %v6441_v9  ;;  %v6400_v36 = vld [vmem:[#allocation2 + $0x271] sm:$0xff]  ;;  %v6401_v1 = vld [vmem:[#allocation2 + $0x279] sm:$0xff] }
 0x7d2   : > { %v7173_v7 = vpop.f32.mrf.mxu2  ;;  %v6504_v9 = vpack.c.bf16 %v6401_v1, %v6400_v36  ;;  %v7447_v36 = vld [vmem:[#allocation2 + $0x2a8] sm:$0xff] }
 0x7d3   : > { %v8336_v11 = vadd.f32 %v8212_v14, %v7814_v21  ;;  %v7293_v33 = vadd.f32 %v7170_v45, %v6771_v15  ;;  %v7546_v14 = vpack.c.bf16 %v7441_v26, %v7440_v62  ;;  %v6924_v26 = vld [vmem:[#allocation2 + $0x28a] sm:$0xff] }
 0x7d5   : > { %8400 = vst [vmem:[#allocation3 + $0x1e8] sm:$0xff] %v8336_v11 }
 0x7d6   : > { %v8217_v63 = vpop.f32.mrf.mxu0 }
 0x7d8   : > { %v6651_v8 = vpop.f32.mrf.mxu1  ;;  %v7692_v2 = vpop.f32.mrf.mxu3 }
 0x7d9   : > { %v7815_v54 = vadd.f32 %v7692_v2, %v7293_v33  ;;  %8256 = vmatmul.bf16.gmra.mxu0 %v6502_v37  ;;  %v6772_v44 = vadd.f32 %v6651_v8, %v6442_v60  ;;  %v12185_v8 = vld [vmem:[%s12334_s27 + $0x1c8] sm:$0xff]  ;;  %v6446_v2 = vld [vmem:[#allocation3 + $0xf0] sm:$0xff] }
 0x7da   : > { %v7175_v52 = vpop.f32.mrf.mxu2  ;;  %9716 = vmatpush.bf16.msra.mxu3 %v12185_v8 }
 0x7db   : > { %6690 = vmatmul.bf16.gmra.mxu1 %v6501_v49  ;;  %v8337_v40 = vadd.f32 %v8214_v61, %v7815_v54  ;;  %v7294_v13 = vadd.f32 %v7173_v7, %v6772_v44  ;;  %v6920_v49 = vld [vmem:[#allocation2 + $0x25a] sm:$0xff]  ;;  %v7442_v7 = vld [vmem:[#allocation2 + $0x270] sm:$0xff] }
 0x7dc   : > { %v7025_v28 = vpack.c.bf16 %v6921_v57, %v6920_v49  ;;  %v7547_v33 = vpack.c.bf16 %v7443_v31, %v7442_v7  ;;  %v6448_v49 = vld [vmem:[#allocation3 + $0x148] sm:$0xff] }
 0x7dd   : > { %7734 = vmatmul.bf16.gmra.mxu3 %v7545_v4  ;;  %8401 = vst [vmem:[#allocation3 + $0xf8] sm:$0xff] %v8337_v40  ;;  %v7026_v4 = vpack.c.bf16 %v6923_v20, %v6922_v27  ;;  %v6926_v7 = vld [vmem:[#allocation2 + $0x2a2] sm:$0xff]  ;;  %v6927_v31 = vld [vmem:[#allocation2 + $0x2aa] sm:$0xff] }
 0x7de   : > { %v8219_v42 = vpop.f32.mrf.mxu0 }
 0x7df   : > { %7217 = vmatmul.bf16.gmra.mxu2 %v7024_v23 }
 0x7e0   : > { %v6653_v39 = vpop.f32.mrf.mxu1  ;;  %v7695_v12 = vpop.f32.mrf.mxu3 }
 0x7e1   : > { %v7816_v51 = vadd.f32 %v7695_v12, %v7294_v13  ;;  %v6773_v58 = vadd.f32 %v6653_v39, %v6443_v41  ;;  %v6402_v39 = vld [vmem:[#allocation2 + $0x289] sm:$0xff]  ;;  %v6403_v12 = vld [vmem:[#allocation2 + $0x291] sm:$0xff] }
 0x7e2   : > { %v7178_v43 = vpop.f32.mrf.mxu2 }
 0x7e3   : > { %v8338_v17 = vadd.f32 %v8217_v63, %v7816_v51  ;;  %v7295_v0 = vadd.f32 %v7175_v52, %v6773_v58 }
 0x7e5   : > { %8402 = vst [vmem:[#allocation3 + $0x160] sm:$0xff] %v8338_v17 }
 0x7e6   : > { %v8222_v6 = vpop.f32.mrf.mxu0 }
 0x7e8   : > { %v6656_v53 = vpop.f32.mrf.mxu1  ;;  %v7697_v19 = vpop.f32.mrf.mxu3 }
 0x7e9   : > { %v7817_v47 = vadd.f32 %v7697_v19, %v7295_v0  ;;  %8261 = vmatmul.bf16.gmra.mxu0 %v6503_v35  ;;  %v6774_v32 = vadd.f32 %v6656_v53, %v6444_v25  ;;  %v7548_v53 = vpack.c.bf16 %v7445_v29, %v7444_v3  ;;  %v12193_v19 = vld [vmem:[%s12334_s27 + $0x208] sm:$0xff] }
 0x7ea   : > { %v7180_v34 = vpop.f32.mrf.mxu2  ;;  %10238 = vmatpush.bf16.msra.mxu0 %v12193_v19  ;;  %v6929_v3 = vld [vmem:[#allocation2 + $0x2c2] sm:$0xff] }
 0x7eb   : > { %6695 = vmatmul.bf16.gmra.mxu1 %v6502_v37  ;;  %v8339_v18 = vadd.f32 %v8219_v42, %v7817_v47  ;;  %v7296_v16 = vadd.f32 %v7178_v43, %v6774_v32  ;;  %v6447_v42 = vld [vmem:[#allocation3 + $0x8] sm:$0xff]  ;;  %v6505_v43 = vpack.c.bf16 %v6403_v12, %v6402_v39 }
 0x7ed   : > { %7739 = vmatmul.bf16.gmra.mxu3 %v7546_v14  ;;  %8403 = vst [vmem:[#allocation3 + $0x30] sm:$0xff] %v8339_v18 }
 0x7ee   : > { %v8224_v24 = vpop.f32.mrf.mxu0 }
 0x7ef   : > { %7222 = vmatmul.bf16.gmra.mxu2 %v7025_v28 }
 0x7f0   : > { %v6658_v45 = vpop.f32.mrf.mxu1  ;;  %v7700_v50 = vpop.f32.mrf.mxu3 }
 0x7f1   : > { %v7818_v48 = vadd.f32 %v7700_v50, %v7296_v16  ;;  %v6775_v38 = vadd.f32 %v6658_v45, %v6445_v10  ;;  %v6404_v16 = vld [vmem:[#allocation2 + $0x2a1] sm:$0xff]  ;;  %v6405_v45 = vld [vmem:[#allocation2 + $0x2a9] sm:$0xff] }
 0x7f2   : > { %v7183_v61 = vpop.f32.mrf.mxu2  ;;  %v6506_v10 = vpack.c.bf16 %v6405_v45, %v6404_v16  ;;  %v7451_v16 = vld [vmem:[#allocation2 + $0x2d8] sm:$0xff] }
 0x7f3   : > { %v8340_v21 = vadd.f32 %v8222_v6, %v7818_v48  ;;  %v7297_v15 = vadd.f32 %v7180_v34, %v6775_v38  ;;  %v6925_v6 = vld [vmem:[#allocation2 + $0x292] sm:$0xff] }
 0x7f4   : > { %v7027_v25 = vpack.c.bf16 %v6925_v6, %v6924_v26 }
 0x7f5   : > { %8404 = vst [vmem:[#allocation3 + $0x1e0] sm:$0xff] %v8340_v21 }
 0x7f6   : > { %v8227_v22 = vpop.f32.mrf.mxu0 }
 0x7f8   : > { %v6661_v11 = vpop.f32.mrf.mxu1  ;;  %v7702_v37 = vpop.f32.mrf.mxu3 }
 0x7f9   : > { %v7819_v63 = vadd.f32 %v7702_v37, %v7297_v15  ;;  %8266 = vmatmul.bf16.gmra.mxu0 %v6504_v9  ;;  %v6776_v55 = vadd.f32 %v6661_v11, %v6446_v2  ;;  %v6450_v11 = vld [vmem:[#allocation3 + $0x100] sm:$0xff] }
 0x7fa   : > { %v7185_v59 = vpop.f32.mrf.mxu2 }
 0x7fb   : > { %6700 = vmatmul.bf16.gmra.mxu1 %v6503_v35  ;;  %v8341_v54 = vadd.f32 %v8224_v24, %v7819_v63  ;;  %v7298_v52 = vadd.f32 %v7183_v61, %v6776_v55  ;;  %v7446_v61 = vld [vmem:[#allocation2 + $0x2a0] sm:$0xff]  ;;  %v7028_v63 = vpack.c.bf16 %v6927_v31, %v6926_v7 }
 0x7fc   : > { %v7549_v15 = vpack.c.bf16 %v7447_v36, %v7446_v61  ;;  %v6930_v61 = vld [vmem:[#allocation2 + $0x2d2] sm:$0xff]  ;;  %v6931_v36 = vld [vmem:[#allocation2 + $0x2da] sm:$0xff] }
 0x7fd   : > { %7744 = vmatmul.bf16.gmra.mxu3 %v7547_v33  ;;  %8405 = vst [vmem:[#allocation3] sm:$0xff] %v8341_v54  ;;  %v6451_v54 = vld [vmem:[#allocation3 + $0xc8] sm:$0xff] }
 0x7fe   : > { %v8229_v60 = vpop.f32.mrf.mxu0 }
 0x7ff   : > { %7227 = vmatmul.bf16.gmra.mxu2 %v7026_v4 }
 0x800   : > { %v6663_v44 = vpop.f32.mrf.mxu1  ;;  %v7705_v40 = vpop.f32.mrf.mxu3 }
 0x801   : > { %v7820_v23 = vadd.f32 %v7705_v40, %v7298_v52  ;;  %v6777_v51 = vadd.f32 %v6663_v44, %v6447_v42  ;;  %v6407_v52 = vld [vmem:[#allocation2 + $0x2c1] sm:$0xff]  ;;  %v7448_v42 = vld [vmem:[#allocation2 + $0x2b8] sm:$0xff] }
 0x802   : > { %v7188_v13 = vpop.f32.mrf.mxu2 }
 0x803   : > { %v8342_v41 = vadd.f32 %v8227_v22, %v7820_v23  ;;  %v7299_v17 = vadd.f32 %v7185_v59, %v6777_v51 }
 0x805   : > { %8406 = vst [vmem:[#allocation3 + $0xf0] sm:$0xff] %v8342_v41 }
 0x806   : > { %v8232_v58 = vpop.f32.mrf.mxu0 }
 0x808   : > { %v6666_v35 = vpop.f32.mrf.mxu1  ;;  %v7707_v62 = vpop.f32.mrf.mxu3 }
 0x809   : > { %v7821_v0 = vadd.f32 %v7707_v62, %v7299_v17  ;;  %8271 = vmatmul.bf16.gmra.mxu0 %v6505_v43  ;;  %v6778_v47 = vadd.f32 %v6666_v35, %v6448_v49  ;;  %v6452_v17 = vld [vmem:[#allocation3 + $0x40] sm:$0xff] }
 0x80a   : > { %v7190_v57 = vpop.f32.mrf.mxu2 }
 0x80b   : > { %6705 = vmatmul.bf16.gmra.mxu1 %v6504_v9  ;;  %v8343_v14 = vadd.f32 %v8229_v60, %v7821_v0  ;;  %v7300_v32 = vadd.f32 %v7188_v13, %v6778_v47  ;;  %v6406_v60 = vld [vmem:[#allocation2 + $0x2b9] sm:$0xff] }
 0x80c   : > { %v6507_v23 = vpack.c.bf16 %v6407_v52, %v6406_v60  ;;  %v7449_v13 = vld [vmem:[#allocation2 + $0x2c0] sm:$0xff]  ;;  %v7452_v60 = vld [vmem:[#allocation2 + $0x2e8] sm:$0xff]  ;;  %v7453_v52 = vld [vmem:[#allocation2 + $0x2f0] sm:$0xff] }
 0x80d   : > { %7749 = vmatmul.bf16.gmra.mxu3 %v7548_v53  ;;  %8407 = vst [vmem:[#allocation3 + $0x8] sm:$0xff] %v8343_v14  ;;  %v12168_v0 = vld [vmem:[%s12334_s27 + $0x140] sm:$0xff] }
 0x80e   : > { %v8234_v34 = vpop.f32.mrf.mxu0  ;;  %v12176_v53 = vld [vmem:[%s12334_s27 + $0x180] sm:$0xff]  ;;  %8672 = vmatpush.bf16.msra.mxu1 %v12168_v0 }
 0x80f   : > { %7232 = vmatmul.bf16.gmra.mxu2 %v7027_v25  ;;  %v6453_v25 = vld [vmem:[#allocation3 + $0x1f8] sm:$0xff] }
 0x810   : > { %v6668_v18 = vpop.f32.mrf.mxu1  ;;  %v7710_v28 = vpop.f32.mrf.mxu3  ;;  %9195 = vmatpush.bf16.msra.mxu2 %v12176_v53 }
 0x811   : > { %v7822_v46 = vadd.f32 %v7710_v28, %v7300_v32  ;;  %v6779_v50 = vadd.f32 %v6668_v18, %v6449_v5  ;;  %v6408_v32 = vld [vmem:[#allocation2 + $0x2d1] sm:$0xff]  ;;  %v6409_v18 = vld [vmem:[#allocation2 + $0x2d9] sm:$0xff] }
 0x812   : > { %v7193_v24 = vpop.f32.mrf.mxu2  ;;  %v6508_v5 = vpack.c.bf16 %v6409_v18, %v6408_v32  ;;  %v6412_v32 = vld [vmem:[#allocation2 + $0x301] sm:$0xff]  ;;  %v6413_v18 = vld [vmem:[#allocation2 + $0x309] sm:$0xff] }
 0x813   : > { %v8344_v48 = vadd.f32 %v8232_v58, %v7822_v46  ;;  %v7301_v38 = vadd.f32 %v7190_v57, %v6779_v50  ;;  %v7550_v58 = vpack.c.bf16 %v7449_v13, %v7448_v42  ;;  %v6932_v13 = vld [vmem:[#allocation2 + $0x2ea] sm:$0xff] }
 0x815   : > { %8408 = vst [vmem:[#allocation3 + $0x148] sm:$0xff] %v8344_v48 }
 0x816   : > { %v8237_v1 = vpop.f32.mrf.mxu0 }
 0x818   : > { %v6671_v21 = vpop.f32.mrf.mxu1  ;;  %v7712_v9 = vpop.f32.mrf.mxu3 }
 0x819   : > { %v7823_v22 = vadd.f32 %v7712_v9, %v7301_v38  ;;  %8276 = vmatmul.bf16.gmra.mxu0 %v6506_v10  ;;  %v6780_v27 = vadd.f32 %v6671_v21, %v6450_v11  ;;  %v12184_v21 = vld [vmem:[%s12334_s27 + $0x1c0] sm:$0xff] }
 0x81a   : > { %v7195_v37 = vpop.f32.mrf.mxu2  ;;  %v6454_v9 = vld [vmem:[#allocation3 + $0x20] sm:$0xff]  ;;  %9717 = vmatpush.bf16.msra.mxu3 %v12184_v21  ;;  %v6458_v21 = vld [vmem:[#allocation3 + $0xe8] sm:$0xff] }
 0x81b   : > { %6710 = vmatmul.bf16.gmra.mxu1 %v6505_v43  ;;  %v8345_v20 = vadd.f32 %v8234_v34, %v7823_v22  ;;  %v7302_v8 = vadd.f32 %v7193_v24, %v6780_v27  ;;  %v6928_v43 = vld [vmem:[#allocation2 + $0x2ba] sm:$0xff]  ;;  %v7450_v24 = vld [vmem:[#allocation2 + $0x2d0] sm:$0xff] }
 0x81c   : > { %v7029_v6 = vpack.c.bf16 %v6929_v3, %v6928_v43  ;;  %v7551_v38 = vpack.c.bf16 %v7451_v16, %v7450_v24  ;;  %v6456_v43 = vld [vmem:[#allocation3 + $0x1a0] sm:$0xff]  ;;  %v6510_v24 = vpack.c.bf16 %v6413_v18, %v6412_v32 }
 0x81d   : > { %7754 = vmatmul.bf16.gmra.mxu3 %v7549_v15  ;;  %8409 = vst [vmem:[#allocation3 + $0x1d0] sm:$0xff] %v8345_v20  ;;  %v7030_v15 = vpack.c.bf16 %v6931_v36, %v6930_v61  ;;  %v7454_v16 = vld [vmem:[#allocation2 + $0x300] sm:$0xff]  ;;  %v6935_v36 = vld [vmem:[#allocation2 + $0x30a] sm:$0xff] }
 0x81e   : > { %v8239_v33 = vpop.f32.mrf.mxu0  ;;  %v6934_v61 = vld [vmem:[#allocation2 + $0x302] sm:$0xff] }
 0x81f   : > { %7237 = vmatmul.bf16.gmra.mxu2 %v7028_v63 }
 0x820   : > { %v6673_v2 = vpop.f32.mrf.mxu1  ;;  %v7715_v59 = vpop.f32.mrf.mxu3 }
 0x821   : > { %v7824_v55 = vadd.f32 %v7715_v59, %v7302_v8  ;;  %v6781_v44 = vadd.f32 %v6673_v2, %v6451_v54  ;;  %v6410_v2 = vld [vmem:[#allocation2 + $0x2e9] sm:$0xff]  ;;  %v6411_v59 = vld [vmem:[#allocation2 + $0x2f1] sm:$0xff] }
 0x822   : > { %v7198_v4 = vpop.f32.mrf.mxu2 }
 0x823   : > { %v8346_v40 = vadd.f32 %v8237_v1, %v7824_v55  ;;  %v7303_v12 = vadd.f32 %v7195_v37, %v6781_v44 }
 0x825   : > { %8410 = vst [vmem:[#allocation3 + $0x100] sm:$0xff] %v8346_v40 }
 0x826   : > { %v8242_v39 = vpop.f32.mrf.mxu0 }
 0x828   : > { %v6676_v51 = vpop.f32.mrf.mxu1  ;;  %v7717_v41 = vpop.f32.mrf.mxu3 }
 0x829   : > { %v7825_v29 = vadd.f32 %v7717_v41, %v7303_v12  ;;  %8281 = vmatmul.bf16.gmra.mxu0 %v6507_v23  ;;  %v6782_v62 = vadd.f32 %v6676_v51, %v6452_v17  ;;  %v7552_v51 = vpack.c.bf16 %v7453_v52, %v7452_v60  ;;  %v12192_v41 = vld [vmem:[%s12334_s27 + $0x200] sm:$0xff]  ;;  %v7456_v60 = vld [vmem:[#allocation2 + $0x318] sm:$0xff] }
 0x82a   : > { %v7200_v35 = vpop.f32.mrf.mxu2  ;;  %10239 = vmatpush.bf16.msra.mxu0 %v12192_v41 }
 0x82b   : > { %6715 = vmatmul.bf16.gmra.mxu1 %v6506_v10  ;;  %v8347_v26 = vadd.f32 %v8239_v33, %v7825_v29  ;;  %v7304_v49 = vadd.f32 %v7198_v4, %v6782_v62  ;;  %v6455_v33 = vld [vmem:[#allocation3 + $0x128] sm:$0xff]  ;;  %v6509_v4 = vpack.c.bf16 %v6411_v59, %v6410_v2  ;;  %v12272_v62 = vld [vmem:[%s15493_s4 + $0x1f0] sm:$0xff] }
 0x82c   : > { %v6415_v2 = vld [vmem:[#allocation2 + $0x321] sm:$0xff] }
 0x82d   : > { %7759 = vmatmul.bf16.gmra.mxu3 %v7550_v58  ;;  %8411 = vst [vmem:[#allocation3 + $0xc8] sm:$0xff] %v8347_v26  ;;  %v5569_v26 = vmul.f32 %v12272_v62, %v14619_v56 }
 0x82e   : > { %v8244_v19 = vpop.f32.mrf.mxu0 }
 0x82f   : > { %7242 = vmatmul.bf16.gmra.mxu2 %v7029_v6  ;;  %v12273_v6 = vld [vmem:[%s15493_s4 + $0x1f8] sm:$0xff] }
 0x830   : > { %v6678_v57 = vpop.f32.mrf.mxu1  ;;  %v7720_v47 = vpop.f32.mrf.mxu3  ;;  %v5570_v0 = vmul.f32 %v12273_v6, %v14619_v56  ;;  %v6461_v6 = vld [vmem:[#allocation3 + $0x90] sm:$0xff] }
 0x831   : > { %v7826_v14 = vadd.f32 %v7720_v47, %v7304_v49  ;;  %v6783_v28 = vadd.f32 %v6678_v57, %v6453_v25  ;;  %v15087_v57 = vadd.f32 %v14633_v30, %v5569_v26  ;;  %v6457_v25 = vld [vmem:[#allocation3 + $0x1f0] sm:$0xff] }
 0x832   : > { %v7203_v34 = vpop.f32.mrf.mxu2  ;;  %v15090_v47 = vadd.f32 %v14633_v30, %v5570_v0 }
 0x833   : > { %v8348_v46 = vadd.f32 %v8242_v39, %v7826_v14  ;;  %v7305_v50 = vadd.f32 %v7200_v35, %v6783_v28  ;;  %v6933_v39 = vld [vmem:[#allocation2 + $0x2f2] sm:$0xff]  ;;  %v5700_v28 = vmax.f32 %v15087_v57, 0.0 }
 0x834   : > { %v7031_v17 = vpack.c.bf16 %v6933_v39, %v6932_v13  ;;  %v6937_v13 = vld [vmem:[#allocation2 + $0x322] sm:$0xff] }
 0x835   : > { %8412 = vst [vmem:[#allocation3 + $0x40] sm:$0xff] %v8348_v46  ;;  %v5701_v46 = vmax.f32 %v15090_v47, 0.0 }
 0x836   : > { %v8247_v45 = vpop.f32.mrf.mxu0  ;;  %5765 = vst [vmem:[#allocation2 + $0x331] sm:$0xff] %v5700_v28 }
 0x837   : > { %5766 = vst [vmem:[#allocation2 + $0x339] sm:$0xff] %v5701_v46 }
 0x838   : > { %v6681_v48 = vpop.f32.mrf.mxu1  ;;  %v7722_v10 = vpop.f32.mrf.mxu3 }
 0x839   : > { %v7827_v1 = vadd.f32 %v7722_v10, %v7305_v50  ;;  %8286 = vmatmul.bf16.gmra.mxu0 %v6508_v5  ;;  %v6784_v31 = vadd.f32 %v6681_v48, %v6454_v9 }
 0x83a   : > { %v7205_v7 = vpop.f32.mrf.mxu2 }
 0x83b   : > { %6720 = vmatmul.bf16.gmra.mxu1 %v6507_v23  ;;  %v8349_v22 = vadd.f32 %v8244_v19, %v7827_v1  ;;  %v7306_v37 = vadd.f32 %v7203_v34, %v6784_v31 }
 0x83d   : > { %7764 = vmatmul.bf16.gmra.mxu3 %v7551_v38  ;;  %8413 = vst [vmem:[#allocation3 + $0x1f8] sm:$0xff] %v8349_v22  ;;  %v7032_v22 = vpack.c.bf16 %v6935_v36, %v6934_v61 }
 0x83e   : > { %v8249_v11 = vpop.f32.mrf.mxu0 }
 0x83f   : > { %7247 = vmatmul.bf16.gmra.mxu2 %v7030_v15 }
 0x840   : > { %v6683_v27 = vpop.f32.mrf.mxu1  ;;  %v7725_v20 = vpop.f32.mrf.mxu3 }
 0x841   : > { %v7828_v63 = vadd.f32 %v7725_v20, %v7306_v37  ;;  %v6785_v55 = vadd.f32 %v6683_v27, %v6455_v33 }
 0x842   : > { %v7208_v8 = vpop.f32.mrf.mxu2 }
 0x843   : > { %v8350_v54 = vadd.f32 %v8247_v45, %v7828_v63  ;;  %v7307_v40 = vadd.f32 %v7205_v7, %v6785_v55  ;;  %v7455_v45 = vld [vmem:[#allocation2 + $0x308] sm:$0xff]  ;;  %v6459_v63 = vld [vmem:[#allocation3 + $0x78] sm:$0xff] }
 0x844   : > { %v7553_v38 = vpack.c.bf16 %v7455_v45, %v7454_v16 }
 0x845   : > { %8414 = vst [vmem:[#allocation3 + $0x20] sm:$0xff] %v8350_v54 }
 0x846   : > { %v8252_v44 = vpop.f32.mrf.mxu0 }
 0x848   : > { %v6686_v23 = vpop.f32.mrf.mxu1  ;;  %v7727_v42 = vpop.f32.mrf.mxu3 }
 0x849   : > { %v7829_v12 = vadd.f32 %v7727_v42, %v7307_v40  ;;  %8291 = vmatmul.bf16.gmra.mxu0 %v6509_v4  ;;  %v6786_v29 = vadd.f32 %v6686_v23, %v6456_v43  ;;  %v6936_v42 = vld [vmem:[#allocation2 + $0x31a] sm:$0xff] }
 0x84a   : > { %v7210_v3 = vpop.f32.mrf.mxu2 }
 0x84b   : > { %6725 = vmatmul.bf16.gmra.mxu1 %v6508_v5  ;;  %v8351_v58 = vadd.f32 %v8249_v11, %v7829_v12  ;;  %v7308_v53 = vadd.f32 %v7208_v8, %v6786_v29  ;;  %v6414_v8 = vld [vmem:[#allocation2 + $0x319] sm:$0xff]  ;;  %v7033_v29 = vpack.c.bf16 %v6937_v13, %v6936_v42 }
 0x84c   : > { %v6511_v54 = vpack.c.bf16 %v6415_v2, %v6414_v8 }
 0x84d   : > { %7769 = vmatmul.bf16.gmra.mxu3 %v7552_v51  ;;  %8415 = vst [vmem:[#allocation3 + $0x128] sm:$0xff] %v8351_v58  ;;  %v6460_v51 = vld [vmem:[#allocation3 + $0x70] sm:$0xff] }
 0x84e   : > { %v8254_v35 = vpop.f32.mrf.mxu0 }
 0x84f   : > { %7252 = vmatmul.bf16.gmra.mxu2 %v7031_v17 }
 0x850   : > { %v6688_v19 = vpop.f32.mrf.mxu1  ;;  %v7730_v49 = vpop.f32.mrf.mxu3 }
 0x851   : > { %v7830_v14 = vadd.f32 %v7730_v49, %v7308_v53  ;;  %v6787_v56 = vadd.f32 %v6688_v19, %v6457_v25  ;;  %v8077_v49 = vpack.c.bf16 %v5701_v46, %v5700_v28  ;;  %v7459_v25 = vld [vmem:[#allocation2 + $0x338] sm:$0xff] }
 0x852   : > { %v7213_v34 = vpop.f32.mrf.mxu2 }
 0x853   : > { %v8352_v5 = vadd.f32 %v8252_v44, %v7830_v14  ;;  %v7309_v50 = vadd.f32 %v7210_v3, %v6787_v56  ;;  %v7458_v14 = vld [vmem:[#allocation2 + $0x330] sm:$0xff] }
 0x854   : > { %v7555_v45 = vpack.c.bf16 %v7459_v25, %v7458_v14  ;;  %v8968_v14 = vld [vmem:[#allocation2 + $0x68] sm:$0xff] }
 0x855   : > { %8416 = vst [vmem:[#allocation3 + $0x1a0] sm:$0xff] %v8352_v5  ;;  %v8963_v5 = vld [vmem:[#allocation2 + $0x30] sm:$0xff] }
 0x856   : > { %v8257_v30 = vpop.f32.mrf.mxu0 }
 0x858   : > { %v6691_v48 = vpop.f32.mrf.mxu1  ;;  %v7732_v10 = vpop.f32.mrf.mxu3 }
 0x859   : > { %v7831_v1 = vadd.f32 %v7732_v10, %v7309_v50  ;;  %8296 = vmatmul.bf16.gmra.mxu0 %v6510_v24  ;;  %v6788_v7 = vadd.f32 %v6691_v48, %v6458_v21  ;;  %v8442_v21 = vld [vmem:[#allocation2 + $0x32] sm:$0xff] }
 0x85a   : > { %v7215_v9 = vpop.f32.mrf.mxu2 }
 0x85b   : > { %6730 = vmatmul.bf16.gmra.mxu1 %v6509_v4  ;;  %v8353_v31 = vadd.f32 %v8254_v35, %v7831_v1  ;;  %v7310_v11 = vadd.f32 %v7213_v34, %v6788_v7  ;;  %v7457_v4 = vld [vmem:[#allocation2 + $0x320] sm:$0xff]  ;;  %v6463_v1 = vld [vmem:[#allocation3 + $0xd0] sm:$0xff] }
 0x85c   : > { %v7554_v12 = vpack.c.bf16 %v7457_v4, %v7456_v60  ;;  %v6464_v4 = vld [vmem:[#allocation3 + $0xb8] sm:$0xff] }
 0x85d   : > { %7774 = vmatmul.bf16.gmra.mxu3 %v7553_v38  ;;  %8417 = vst [vmem:[#allocation3 + $0x1f0] sm:$0xff] %v8353_v31 }
 0x85e   : > { %v8259_v15 = vpop.f32.mrf.mxu0 }
 0x85f   : > { %7257 = vmatmul.bf16.gmra.mxu2 %v7032_v22  ;;  %v8440_v22 = vld [vmem:[#allocation2 + $0x1a] sm:$0xff] }
 0x860   : > { %v6693_v37 = vpop.f32.mrf.mxu1  ;;  %v7735_v27 = vpop.f32.mrf.mxu3 }
 0x861   : > { %v7832_v20 = vadd.f32 %v7735_v27, %v7310_v11  ;;  %v6789_v59 = vadd.f32 %v6693_v37, %v6459_v63  ;;  %v9485_v37 = vld [vmem:[#allocation2 + $0x31] sm:$0xff]  ;;  %v9486_v27 = vld [vmem:[#allocation2 + $0x39] sm:$0xff] }
 0x862   : > { %v7218_v33 = vpop.f32.mrf.mxu2  ;;  %v9613_v60 = vpack.c.bf16 %v9486_v27, %v9485_v37  ;;  %v6468_v27 = vld [vmem:[#allocation3 + $0x170] sm:$0xff] }
 0x863   : > { %v8354_v55 = vadd.f32 %v8257_v30, %v7832_v20  ;;  %v7311_v44 = vadd.f32 %v7215_v9, %v6789_v59  ;;  %v6462_v30 = vld [vmem:[#allocation3 + $0x1d8] sm:$0xff]  ;;  %v8965_v59 = vld [vmem:[#allocation2 + $0x48] sm:$0xff] }
 0x864   : > { %v8443_v9 = vld [vmem:[#allocation2 + $0x3a] sm:$0xff] }
 0x865   : > { %8418 = vst [vmem:[#allocation3 + $0xe8] sm:$0xff] %v8354_v55  ;;  %v8569_v11 = vpack.c.bf16 %v8443_v9, %v8442_v21  ;;  %v8966_v55 = vld [vmem:[#allocation2 + $0x50] sm:$0xff] }
 0x866   : > { %v8262_v52 = vpop.f32.mrf.mxu0 }
 0x868   : > { %v6696_v40 = vpop.f32.mrf.mxu1  ;;  %v7737_v23 = vpop.f32.mrf.mxu3 }
 0x869   : > { %v7833_v39 = vadd.f32 %v7737_v23, %v7311_v44  ;;  %8301 = vmatmul.bf16.gmra.mxu0 %v6511_v54  ;;  %v6790_v43 = vadd.f32 %v6696_v40, %v6460_v51  ;;  %v9092_v23 = vpack.c.bf16 %v8966_v55, %v8965_v59 }
 0x86a   : > { %v7220_v41 = vpop.f32.mrf.mxu2 }
 0x86b   : > { %6735 = vmatmul.bf16.gmra.mxu1 %v6510_v24  ;;  %v8355_v3 = vadd.f32 %v8259_v15, %v7833_v39  ;;  %v7312_v17 = vadd.f32 %v7218_v33, %v6790_v43  ;;  %v8964_v24 = vld [vmem:[#allocation2 + $0x38] sm:$0xff]  ;;  %v8441_v15 = vld [vmem:[#allocation2 + $0x22] sm:$0xff] }
 0x86c   : > { %v9091_v57 = vpack.c.bf16 %v8964_v24, %v8963_v5  ;;  %v8568_v33 = vpack.c.bf16 %v8441_v15, %v8440_v22  ;;  %v8969_v22 = vld [vmem:[#allocation2 + $0x78] sm:$0xff]  ;;  %v8970_v15 = vld [vmem:[#allocation2 + $0x80] sm:$0xff] }
 0x86d   : > { %7779 = vmatmul.bf16.gmra.mxu3 %v7554_v12  ;;  %8419 = vst [vmem:[#allocation3 + $0x78] sm:$0xff] %v8355_v3  ;;  %v8444_v3 = vld [vmem:[#allocation2 + $0x4a] sm:$0xff] }
 0x86e   : > { %v8264_v58 = vpop.f32.mrf.mxu0 }
 0x86f   : > { %7262 = vmatmul.bf16.gmra.mxu2 %v7033_v29  ;;  %v8445_v29 = vld [vmem:[#allocation2 + $0x52] sm:$0xff] }
 0x870   : > { %v6698_v35 = vpop.f32.mrf.mxu1  ;;  %v7740_v62 = vpop.f32.mrf.mxu3 }
 0x871   : > { %v7834_v26 = vadd.f32 %v7740_v62, %v7312_v17  ;;  %v6791_v53 = vadd.f32 %v6698_v35, %v6461_v6  ;;  %v8570_v35 = vpack.c.bf16 %v8445_v29, %v8444_v3  ;;  %v9487_v62 = vld [vmem:[#allocation2 + $0x49] sm:$0xff] }
 0x872   : > { %v7223_v0 = vpop.f32.mrf.mxu2  ;;  %v8971_v29 = vld [vmem:[#allocation2 + $0x90] sm:$0xff] }
 0x873   : > { %v8356_v19 = vadd.f32 %v8262_v52, %v7834_v26  ;;  %v7313_v32 = vadd.f32 %v7220_v41, %v6791_v53  ;;  %v6465_v41 = vld [vmem:[#allocation3 + $0x88] sm:$0xff]  ;;  %v9488_v26 = vld [vmem:[#allocation2 + $0x51] sm:$0xff] }
 0x875   : > { %8420 = vst [vmem:[#allocation3 + $0x70] sm:$0xff] %v8356_v19 }
 0x876   : > { %v8267_v34 = vpop.f32.mrf.mxu0 }
 0x878   : > { %v6701_v18 = vpop.f32.mrf.mxu1  ;;  %v7742_v56 = vpop.f32.mrf.mxu3 }
 0x879   : > { %v7835_v16 = vadd.f32 %v7742_v56, %v7313_v32  ;;  %8306 = vmatmul.bf16.gmra.mxu0 %v8077_v49  ;;  %v6792_v48 = vadd.f32 %v6701_v18, %v6462_v30  ;;  %v8967_v49 = vld [vmem:[#allocation2 + $0x60] sm:$0xff]  ;;  %v6466_v32 = vld [vmem:[#allocation3 + $0xa8] sm:$0xff] }
 0x87a   : > { %v7225_v50 = vpop.f32.mrf.mxu2  ;;  %v9093_v24 = vpack.c.bf16 %v8968_v14, %v8967_v49 }
 0x87b   : > { %6740 = vmatmul.bf16.gmra.mxu1 %v6511_v54  ;;  %v8357_v10 = vadd.f32 %v8264_v58, %v7835_v16  ;;  %v7314_v28 = vadd.f32 %v7223_v0, %v6792_v48 }
 0x87d   : > { %7784 = vmatmul.bf16.gmra.mxu3 %v7555_v45  ;;  %8421 = vst [vmem:[#allocation3 + $0x90] sm:$0xff] %v8357_v10  ;;  %v6467_v10 = vld [vmem:[#allocation3 + $0x1c8] sm:$0xff] }
 0x87e   : > { %v8269_v47 = vpop.f32.mrf.mxu0 }
 0x87f   : > { %9196 = vmatmul.bf16.vlgmr.msra.gmra.mxu2 %v9091_v57 }
 0x880   : > { %v6703_v46 = vpop.f32.mrf.mxu1  ;;  %v7745_v61 = vpop.f32.mrf.mxu3 }
 0x881   : > { %v7836_v36 = vadd.f32 %v7745_v61, %v7314_v28  ;;  %v6793_v7 = vadd.f32 %v6703_v46, %v6463_v1  ;;  %v8447_v28 = vld [vmem:[#allocation2 + $0x6a] sm:$0xff]  ;;  %v9489_v1 = vld [vmem:[#allocation2 + $0x61] sm:$0xff] }
 0x882   : > { %v7228_v38 = vpop.f32.mrf.mxu2 }
 0x883   : > { %v8358_v31 = vadd.f32 %v8267_v34, %v7836_v36  ;;  %v7315_v63 = vadd.f32 %v7225_v50, %v6793_v7  ;;  %v9614_v34 = vpack.c.bf16 %v9488_v26, %v9487_v62  ;;  %v6470_v62 = vld [vmem:[#allocation3 + $0x68] sm:$0xff] }
 0x885   : > { %8422 = vst [vmem:[#allocation3 + $0x1d8] sm:$0xff] %v8358_v31 }
 0x886   : > { %v8272_v20 = vpop.f32.mrf.mxu0 }
 0x888   : > { %v6706_v8 = vpop.f32.mrf.mxu1  ;;  %v7747_v2 = vpop.f32.mrf.mxu3 }
 0x889   : > { %v7837_v54 = vadd.f32 %v7747_v2, %v7315_v63  ;;  %10240 = vmatmul.bf16.vlgmr.msra.gmra.mxu0 %v8569_v11  ;;  %v6794_v44 = vadd.f32 %v6706_v8, %v6464_v4  ;;  %v9094_v8 = vpack.c.bf16 %v8970_v15, %v8969_v22  ;;  %v6469_v4 = vld [vmem:[#allocation3 + $0x178] sm:$0xff] }
 0x88a   : > { %v7230_v52 = vpop.f32.mrf.mxu2 }
 0x88b   : > { %8673 = vmatmul.bf16.vlgmr.msra.gmra.mxu1 %v8568_v33  ;;  %v8359_v40 = vadd.f32 %v8269_v47, %v7837_v54  ;;  %v7316_v13 = vadd.f32 %v7228_v38, %v6794_v44  ;;  %v8446_v47 = vld [vmem:[#allocation2 + $0x62] sm:$0xff]  ;;  %v8448_v44 = vld [vmem:[#allocation2 + $0x7a] sm:$0xff] }
 0x88c   : > { %v8571_v36 = vpack.c.bf16 %v8447_v28, %v8446_v47  ;;  %v9490_v38 = vld [vmem:[#allocation2 + $0x69] sm:$0xff] }
 0x88d   : > { %9718 = vmatmul.bf16.vlgmr.msra.gmra.mxu3 %v9613_v60  ;;  %8423 = vst [vmem:[#allocation3 + $0xd0] sm:$0xff] %v8359_v40  ;;  %v9615_v37 = vpack.c.bf16 %v9490_v38, %v9489_v1  ;;  %v8449_v40 = vld [vmem:[#allocation2 + $0x82] sm:$0xff]  ;;  %v6472_v1 = vld [vmem:[#allocation3 + $0x198] sm:$0xff] }
 0x88e   : > { %v8274_v42 = vpop.f32.mrf.mxu0  ;;  %v8973_v28 = vld [vmem:[#allocation2 + $0xa8] sm:$0xff] }
 0x88f   : > { %9201 = vmatmul.bf16.gmra.mxu2 %v9092_v23 }
 0x890   : > { %v6708_v39 = vpop.f32.mrf.mxu1  ;;  %v7750_v12 = vpop.f32.mrf.mxu3 }
 0x891   : > { %v7838_v51 = vadd.f32 %v7750_v12, %v7316_v13  ;;  %v6795_v58 = vadd.f32 %v6708_v39, %v6465_v41  ;;  %v8572_v13 = vpack.c.bf16 %v8449_v40, %v8448_v44  ;;  %v9491_v39 = vld [vmem:[#allocation2 + $0x79] sm:$0xff]  ;;  %v9492_v12 = vld [vmem:[#allocation2 + $0x81] sm:$0xff] }
 0x892   : > { %v7233_v43 = vpop.f32.mrf.mxu2  ;;  %v8975_v40 = vld [vmem:[#allocation2 + $0xc0] sm:$0xff] }
 0x893   : > { %v8360_v17 = vadd.f32 %v8272_v20, %v7838_v51  ;;  %v7317_v0 = vadd.f32 %v7230_v52, %v6795_v58  ;;  %v8972_v58 = vld [vmem:[#allocation2 + $0x98] sm:$0xff] }
 0x895   : > { %8424 = vst [vmem:[#allocation3 + $0xb8] sm:$0xff] %v8360_v17 }
 0x896   : > { %v8277_v6 = vpop.f32.mrf.mxu0 }
 0x898   : > { %v6711_v53 = vpop.f32.mrf.mxu1  ;;  %v7752_v19 = vpop.f32.mrf.mxu3 }
 0x899   : > { %v7839_v25 = vadd.f32 %v7752_v19, %v7317_v0  ;;  %10245 = vmatmul.bf16.gmra.mxu0 %v8570_v35  ;;  %v6796_v56 = vadd.f32 %v6711_v53, %v6466_v32  ;;  %v9095_v53 = vpack.c.bf16 %v8972_v58, %v8971_v29  ;;  %v6471_v32 = vld [vmem:[#allocation3 + $0x190] sm:$0xff] }
 0x89a   : > { %v7235_v18 = vpop.f32.mrf.mxu2 }
 0x89b   : > { %8678 = vmatmul.bf16.gmra.mxu1 %v8569_v11  ;;  %v8361_v5 = vadd.f32 %v8274_v42, %v7839_v25  ;;  %v7318_v45 = vadd.f32 %v7233_v43, %v6796_v56  ;;  %v8450_v56 = vld [vmem:[#allocation2 + $0x92] sm:$0xff] }
 0x89d   : > { %9723 = vmatmul.bf16.gmra.mxu3 %v9614_v34  ;;  %8425 = vst [vmem:[#allocation3 + $0x88] sm:$0xff] %v8361_v5  ;;  %v8451_v5 = vld [vmem:[#allocation2 + $0x9a] sm:$0xff] }
 0x89e   : > { %v8279_v16 = vpop.f32.mrf.mxu0 }
 0x89f   : > { %9206 = vmatmul.bf16.gmra.mxu2 %v9093_v24 }
 0x8a0   : > { %v6713_v30 = vpop.f32.mrf.mxu1  ;;  %v7755_v50 = vpop.f32.mrf.mxu3 }
 0x8a1   : > { %v7840_v48 = vadd.f32 %v7755_v50, %v7318_v45  ;;  %v6797_v46 = vadd.f32 %v6713_v30, %v6467_v10  ;;  %v8573_v45 = vpack.c.bf16 %v8451_v5, %v8450_v56  ;;  %v9493_v30 = vld [vmem:[#allocation2 + $0x91] sm:$0xff]  ;;  %v9494_v50 = vld [vmem:[#allocation2 + $0x99] sm:$0xff] }
 0x8a2   : > { %v7238_v57 = vpop.f32.mrf.mxu2  ;;  %v8977_v5 = vld [vmem:[#allocation2 + $0xd8] sm:$0xff] }
 0x8a3   : > { %v8362_v61 = vadd.f32 %v8277_v6, %v7840_v48  ;;  %v7319_v9 = vadd.f32 %v7235_v18, %v6797_v46  ;;  %v8974_v46 = vld [vmem:[#allocation2 + $0xb0] sm:$0xff] }
 0x8a5   : > { %8426 = vst [vmem:[#allocation3 + $0xa8] sm:$0xff] %v8362_v61 }
 0x8a6   : > { %v8282_v21 = vpop.f32.mrf.mxu0 }
 0x8a8   : > { %v6716_v7 = vpop.f32.mrf.mxu1  ;;  %v7757_v31 = vpop.f32.mrf.mxu3 }
 0x8a9   : > { %v7841_v11 = vadd.f32 %v7757_v31, %v7319_v9  ;;  %10250 = vmatmul.bf16.gmra.mxu0 %v8571_v36  ;;  %v6798_v63 = vadd.f32 %v6716_v7, %v6468_v27  ;;  %v9096_v7 = vpack.c.bf16 %v8974_v46, %v8973_v28  ;;  %v6473_v27 = vld [vmem:[#allocation3 + $0x38] sm:$0xff] }
 0x8aa   : > { %v7240_v20 = vpop.f32.mrf.mxu2 }
 0x8ab   : > { %8683 = vmatmul.bf16.gmra.mxu1 %v8570_v35  ;;  %v8363_v33 = vadd.f32 %v8279_v16, %v7841_v11  ;;  %v7320_v59 = vadd.f32 %v7238_v57, %v6798_v63  ;;  %v9616_v35 = vpack.c.bf16 %v9492_v12, %v9491_v39  ;;  %v8452_v63 = vld [vmem:[#allocation2 + $0xaa] sm:$0xff]  ;;  %v6474_v39 = vld [vmem:[#allocation3 + $0xc0] sm:$0xff] }
 0x8ad   : > { %9728 = vmatmul.bf16.gmra.mxu3 %v9615_v37  ;;  %8427 = vst [vmem:[#allocation3 + $0x1c8] sm:$0xff] %v8363_v33  ;;  %v8453_v33 = vld [vmem:[#allocation2 + $0xb2] sm:$0xff] }
 0x8ae   : > { %v8284_v2 = vpop.f32.mrf.mxu0 }
 0x8af   : > { %9211 = vmatmul.bf16.gmra.mxu2 %v9094_v8 }
 0x8b0   : > { %v6718_v55 = vpop.f32.mrf.mxu1  ;;  %v7760_v54 = vpop.f32.mrf.mxu3 }
 0x8b1   : > { %v7842_v60 = vadd.f32 %v7760_v54, %v7320_v59  ;;  %v6799_v23 = vadd.f32 %v6718_v55, %v6469_v4  ;;  %v8574_v59 = vpack.c.bf16 %v8453_v33, %v8452_v63  ;;  %v9495_v55 = vld [vmem:[#allocation2 + $0xa9] sm:$0xff]  ;;  %v9496_v54 = vld [vmem:[#allocation2 + $0xb1] sm:$0xff] }
 0x8b2   : > { %v7243_v52 = vpop.f32.mrf.mxu2  ;;  %v8979_v33 = vld [vmem:[#allocation2 + $0xf0] sm:$0xff] }
 0x8b3   : > { %v8364_v42 = vadd.f32 %v8282_v21, %v7842_v60  ;;  %v7321_v41 = vadd.f32 %v7240_v20, %v6799_v23  ;;  %v8976_v23 = vld [vmem:[#allocation2 + $0xc8] sm:$0xff] }
 0x8b5   : > { %8428 = vst [vmem:[#allocation3 + $0x170] sm:$0xff] %v8364_v42 }
 0x8b6   : > { %v8287_v51 = vpop.f32.mrf.mxu0 }
 0x8b8   : > { %v6721_v43 = vpop.f32.mrf.mxu1  ;;  %v7762_v3 = vpop.f32.mrf.mxu3 }
 0x8b9   : > { %v7843_v17 = vadd.f32 %v7762_v3, %v7321_v41  ;;  %10255 = vmatmul.bf16.gmra.mxu0 %v8572_v13  ;;  %v6800_v6 = vadd.f32 %v6721_v43, %v6470_v62  ;;  %v9097_v43 = vpack.c.bf16 %v8976_v23, %v8975_v40  ;;  %v6475_v62 = vld [vmem:[#allocation3 + $0x1c0] sm:$0xff] }
 0x8ba   : > { %v7245_v26 = vpop.f32.mrf.mxu2 }
 0x8bb   : > { %8688 = vmatmul.bf16.gmra.mxu1 %v8571_v36  ;;  %v8365_v0 = vadd.f32 %v8284_v2, %v7843_v17  ;;  %v7322_v49 = vadd.f32 %v7243_v52, %v6800_v6  ;;  %v9617_v36 = vpack.c.bf16 %v9494_v50, %v9493_v30  ;;  %v8454_v6 = vld [vmem:[#allocation2 + $0xc2] sm:$0xff]  ;;  %v6476_v30 = vld [vmem:[#allocation3 + $0x158] sm:$0xff] }
 0x8bd   : > { %9733 = vmatmul.bf16.gmra.mxu3 %v9616_v35  ;;  %8429 = vst [vmem:[#allocation3 + $0x178] sm:$0xff] %v8365_v0  ;;  %v8455_v0 = vld [vmem:[#allocation2 + $0xca] sm:$0xff] }
 0x8be   : > { %v8289_v19 = vpop.f32.mrf.mxu0 }
 0x8bf   : > { %9216 = vmatmul.bf16.gmra.mxu2 %v9095_v53 }
 0x8c0   : > { %v6723_v14 = vpop.f32.mrf.mxu1  ;;  %v7765_v25 = vpop.f32.mrf.mxu3 }
 0x8c1   : > { %v7844_v34 = vadd.f32 %v7765_v25, %v7322_v49  ;;  %v6801_v24 = vadd.f32 %v6723_v14, %v6471_v32  ;;  %v8575_v49 = vpack.c.bf16 %v8455_v0, %v8454_v6  ;;  %v9497_v14 = vld [vmem:[#allocation2 + $0xc1] sm:$0xff]  ;;  %v9498_v25 = vld [vmem:[#allocation2 + $0xc9] sm:$0xff] }
 0x8c2   : > { %v7248_v18 = vpop.f32.mrf.mxu2  ;;  %v8981_v0 = vld [vmem:[#allocation2 + $0x108] sm:$0xff] }
 0x8c3   : > { %v8366_v16 = vadd.f32 %v8287_v51, %v7844_v34  ;;  %v7323_v10 = vadd.f32 %v7245_v26, %v6801_v24  ;;  %v8978_v24 = vld [vmem:[#allocation2 + $0xe0] sm:$0xff] }
 0x8c5   : > { %8430 = vst [vmem:[#allocation3 + $0x68] sm:$0xff] %v8366_v16 }
 0x8c6   : > { %v8292_v48 = vpop.f32.mrf.mxu0 }
 0x8c8   : > { %v6726_v57 = vpop.f32.mrf.mxu1  ;;  %v7767_v47 = vpop.f32.mrf.mxu3 }
 0x8c9   : > { %v7845_v61 = vadd.f32 %v7767_v47, %v7323_v10  ;;  %10260 = vmatmul.bf16.gmra.mxu0 %v8573_v45  ;;  %v6802_v21 = vadd.f32 %v6726_v57, %v6472_v1  ;;  %v9098_v57 = vpack.c.bf16 %v8978_v24, %v8977_v5  ;;  %v6477_v1 = vld [vmem:[#allocation3 + $0x10] sm:$0xff] }
 0x8ca   : > { %v7250_v38 = vpop.f32.mrf.mxu2 }
 0x8cb   : > { %8693 = vmatmul.bf16.gmra.mxu1 %v8572_v13  ;;  %v8367_v9 = vadd.f32 %v8289_v19, %v7845_v61  ;;  %v7324_v22 = vadd.f32 %v7248_v18, %v6802_v21  ;;  %v9618_v13 = vpack.c.bf16 %v9496_v54, %v9495_v55  ;;  %v8456_v21 = vld [vmem:[#allocation2 + $0xda] sm:$0xff] }
 0x8cc   : > { %v6478_v55 = vld [vmem:[#allocation3 + $0x58] sm:$0xff] }
 0x8cd   : > { %9738 = vmatmul.bf16.gmra.mxu3 %v9617_v36  ;;  %8431 = vst [vmem:[#allocation3 + $0x190] sm:$0xff] %v8367_v9  ;;  %v8457_v9 = vld [vmem:[#allocation2 + $0xe2] sm:$0xff] }
 0x8ce   : > { %v8294_v31 = vpop.f32.mrf.mxu0 }
 0x8cf   : > { %9221 = vmatmul.bf16.gmra.mxu2 %v9096_v7 }
 0x8d0   : > { %v6728_v15 = vpop.f32.mrf.mxu1  ;;  %v7770_v11 = vpop.f32.mrf.mxu3 }
 0x8d1   : > { %v7846_v37 = vadd.f32 %v7770_v11, %v7324_v22  ;;  %v6803_v8 = vadd.f32 %v6728_v15, %v6473_v27  ;;  %v8576_v22 = vpack.c.bf16 %v8457_v9, %v8456_v21  ;;  %v9499_v15 = vld [vmem:[#allocation2 + $0xd9] sm:$0xff]  ;;  %v9500_v11 = vld [vmem:[#allocation2 + $0xe1] sm:$0xff] }
 0x8d2   : > { %v7253_v20 = vpop.f32.mrf.mxu2 }
 0x8d3   : > { %v8368_v2 = vadd.f32 %v8292_v48, %v7846_v37  ;;  %v7325_v4 = vadd.f32 %v7250_v38, %v6803_v8  ;;  %v8980_v8 = vld [vmem:[#allocation2 + $0xf8] sm:$0xff] }
 0x8d5   : > { %8432 = vst [vmem:[#allocation3 + $0x198] sm:$0xff] %v8368_v2 }
 0x8d6   : > { %v8297_v60 = vpop.f32.mrf.mxu0 }
 0x8d8   : > { %v6731_v52 = vpop.f32.mrf.mxu1  ;;  %v7772_v44 = vpop.f32.mrf.mxu3 }
 0x8d9   : > { %v7847_v42 = vadd.f32 %v7772_v44, %v7325_v4  ;;  %10265 = vmatmul.bf16.gmra.mxu0 %v8574_v59  ;;  %v6804_v51 = vadd.f32 %v6731_v52, %v6474_v39  ;;  %v9099_v52 = vpack.c.bf16 %v8980_v8, %v8979_v33  ;;  %v6479_v39 = vld [vmem:[#allocation3 + $0xa0] sm:$0xff] }
 0x8da   : > { %v7255_v12 = vpop.f32.mrf.mxu2 }
 0x8db   : > { %8698 = vmatmul.bf16.gmra.mxu1 %v8573_v45  ;;  %v8369_v41 = vadd.f32 %v8294_v31, %v7847_v42  ;;  %v7326_v29 = vadd.f32 %v7253_v20, %v6804_v51  ;;  %v9619_v45 = vpack.c.bf16 %v9498_v25, %v9497_v14  ;;  %v8458_v51 = vld [vmem:[#allocation2 + $0xf2] sm:$0xff] }
 0x8dc   : > { %v8504_v14 = vld [vmem:[#allocation3 + $0xb0] sm:$0xff] }
 0x8dd   : > { %9743 = vmatmul.bf16.gmra.mxu3 %v9618_v13  ;;  %8433 = vst [vmem:[#allocation3 + $0x38] sm:$0xff] %v8369_v41  ;;  %v8459_v41 = vld [vmem:[#allocation2 + $0xfa] sm:$0xff] }
 0x8de   : > { %v8299_v3 = vpop.f32.mrf.mxu0 }
 0x8df   : > { %9226 = vmatmul.bf16.gmra.mxu2 %v9097_v43 }
 0x8e0   : > { %v6733_v58 = vpop.f32.mrf.mxu1  ;;  %v7775_v17 = vpop.f32.mrf.mxu3 }
 0x8e1   : > { %v7848_v35 = vadd.f32 %v7775_v17, %v7326_v29  ;;  %v6805_v53 = vadd.f32 %v6733_v58, %v6475_v62  ;;  %v8577_v29 = vpack.c.bf16 %v8459_v41, %v8458_v51  ;;  %v9501_v58 = vld [vmem:[#allocation2 + $0xf1] sm:$0xff]  ;;  %v9502_v17 = vld [vmem:[#allocation2 + $0xf9] sm:$0xff]  ;;  %v9505_v41 = vld [vmem:[#allocation2 + $0x121] sm:$0xff] }
 0x8e2   : > { %v7258_v26 = vpop.f32.mrf.mxu2 }
 0x8e3   : > { %v8370_v19 = vadd.f32 %v8297_v60, %v7848_v35  ;;  %v7327_v32 = vadd.f32 %v7255_v12, %v6805_v53  ;;  %v8982_v53 = vld [vmem:[#allocation2 + $0x110] sm:$0xff] }
 0x8e5   : > { %8434 = vst [vmem:[#allocation3 + $0xc0] sm:$0xff] %v8370_v19 }
 0x8e6   : > { %v8302_v34 = vpop.f32.mrf.mxu0 }
 0x8e8   : > { %v6736_v18 = vpop.f32.mrf.mxu1  ;;  %v7777_v56 = vpop.f32.mrf.mxu3 }
 0x8e9   : > { %v7849_v16 = vadd.f32 %v7777_v56, %v7327_v32  ;;  %10270 = vmatmul.bf16.gmra.mxu0 %v8575_v49  ;;  %v6806_v48 = vadd.f32 %v6736_v18, %v6476_v30  ;;  %v9100_v18 = vpack.c.bf16 %v8982_v53, %v8981_v0  ;;  %v8508_v0 = vld [vmem:[#allocation3 + $0x50] sm:$0xff] }
 0x8ea   : > { %v7260_v50 = vpop.f32.mrf.mxu2 }
 0x8eb   : > { %8703 = vmatmul.bf16.gmra.mxu1 %v8574_v59  ;;  %v8371_v10 = vadd.f32 %v8299_v3, %v7849_v16  ;;  %v7328_v28 = vadd.f32 %v7258_v26, %v6806_v48  ;;  %v9620_v59 = vpack.c.bf16 %v9500_v11, %v9499_v15  ;;  %v10529_v48 = vld [vmem:[%s15493_s4] sm:$0xff] }
 0x8ed   : > { %9748 = vmatmul.bf16.gmra.mxu3 %v9619_v45  ;;  %8435 = vst [vmem:[#allocation3 + $0x1c0] sm:$0xff] %v8371_v10  ;;  %v8505_v45 = vld [vmem:[#allocation3 + $0x1b0] sm:$0xff] }
 0x8ee   : > { %v8304_v47 = vpop.f32.mrf.mxu0  ;;  %v8460_v10 = vld [vmem:[#allocation2 + $0x10a] sm:$0xff] }
 0x8ef   : > { %9231 = vmatmul.bf16.gmra.mxu2 %v9098_v57  ;;  %v8461_v57 = vld [vmem:[#allocation2 + $0x112] sm:$0xff] }
 0x8f0   : > { %v6738_v46 = vpop.f32.mrf.mxu1  ;;  %v7780_v61 = vpop.f32.mrf.mxu3 }
 0x8f1   : > { %v7850_v36 = vadd.f32 %v7780_v61, %v7328_v28  ;;  %v6807_v7 = vadd.f32 %v6738_v46, %v6477_v1  ;;  %v8578_v61 = vpack.c.bf16 %v8461_v57, %v8460_v10  ;;  %v9504_v1 = vld [vmem:[#allocation2 + $0x111] sm:$0xff] }
 0x8f2   : > { %v7263_v38 = vpop.f32.mrf.mxu2 }
 0x8f3   : > { %v8372_v31 = vadd.f32 %v8302_v34, %v7850_v36  ;;  %v7329_v27 = vadd.f32 %v7260_v50, %v6807_v7  ;;  %v9503_v36 = vld [vmem:[#allocation2 + $0x109] sm:$0xff] }
 0x8f4   : > { %v9622_v11 = vpack.c.bf16 %v9504_v1, %v9503_v36 }
 0x8f5   : > { %8436 = vst [vmem:[#allocation3 + $0x158] sm:$0xff] %v8372_v31  ;;  %v8983_v31 = vld [vmem:[#allocation2 + $0x120] sm:$0xff] }
 0x8f6   : > { %v8307_v37 = vpop.f32.mrf.mxu0 }
 0x8f8   : > { %v6741_v20 = vpop.f32.mrf.mxu1  ;;  %v7782_v63 = vpop.f32.mrf.mxu3 }
 0x8f9   : > { %v7851_v2 = vadd.f32 %v7782_v63, %v7329_v27  ;;  %10275 = vmatmul.bf16.gmra.mxu0 %v8576_v22  ;;  %v6808_v60 = vadd.f32 %v6741_v20, %v6478_v55  ;;  %v10530_v20 = vld [vmem:[%s15493_s4 + $0x8] sm:$0xff] }
 0x8fa   : > { %v7265_v54 = vpop.f32.mrf.mxu2 }
 0x8fb   : > { %8708 = vmatmul.bf16.gmra.mxu1 %v8575_v49  ;;  %v8373_v4 = vadd.f32 %v8304_v47, %v7851_v2  ;;  %v7330_v40 = vadd.f32 %v7263_v38, %v6808_v60  ;;  %v9621_v49 = vpack.c.bf16 %v9502_v17, %v9501_v58 }
 0x8fd   : > { %9753 = vmatmul.bf16.gmra.mxu3 %v9620_v59  ;;  %8437 = vst [vmem:[#allocation3 + $0x10] sm:$0xff] %v8373_v4  ;;  %v8507_v4 = vld [vmem:[#allocation3 + $0x18] sm:$0xff] }
 0x8fe   : > { %v8309_v44 = vpop.f32.mrf.mxu0 }
 0x8ff   : > { %9236 = vmatmul.bf16.gmra.mxu2 %v9099_v52 }
 0x900   : > { %v6743_v23 = vpop.f32.mrf.mxu1  ;;  %v7785_v42 = vpop.f32.mrf.mxu3 }
 0x901   : > { %v7852_v13 = vadd.f32 %v7785_v42, %v7330_v40  ;;  %v6809_v43 = vadd.f32 %v6743_v23, %v6479_v39  ;;  %v10531_v40 = vld [vmem:[%s15493_s4 + $0x10] sm:$0xff]  ;;  %v8462_v23 = vld [vmem:[#allocation2 + $0x122] sm:$0xff] }
 0x902   : > { %v9197_v12 = vpop.f32.mrf.mxu2  ;;  %v8463_v42 = vld [vmem:[#allocation2 + $0x12a] sm:$0xff] }
 0x903   : > { %v8374_v3 = vadd.f32 %v8307_v37, %v7852_v13  ;;  %v7331_v62 = vadd.f32 %v7265_v54, %v6809_v43  ;;  %v8506_v37 = vld [vmem:[#allocation3 + $0xd8] sm:$0xff]  ;;  %v8579_v51 = vpack.c.bf16 %v8463_v42, %v8462_v23  ;;  %v9506_v43 = vld [vmem:[#allocation2 + $0x129] sm:$0xff] }
 0x905   : > { %8438 = vst [vmem:[#allocation3 + $0x58] sm:$0xff] %v8374_v3 }
 0x906   : > { %v10241_v35 = vpop.f32.mrf.mxu0 }
 0x908   : > { %v8674_v26 = vpop.f32.mrf.mxu1  ;;  %v7787_v6 = vpop.f32.mrf.mxu3 }
 0x909   : > { %v7853_v19 = vadd.f32 %v7787_v6, %v7331_v62  ;;  %10280 = vmatmul.bf16.gmra.mxu0 %v8577_v29  ;;  %v8834_v34 = vadd.f32 %v8674_v26, %v8504_v14  ;;  %v8986_v62 = vld [vmem:[#allocation2 + $0x140] sm:$0xff]  ;;  %v9623_v6 = vpack.c.bf16 %v9506_v43, %v9505_v41 }
 0x90a   : > { %v9199_v25 = vpop.f32.mrf.mxu2 }
 0x90b   : > { %8713 = vmatmul.bf16.gmra.mxu1 %v8576_v22  ;;  %v8375_v32 = vadd.f32 %v8309_v44, %v7853_v19  ;;  %v9357_v5 = vadd.f32 %v9197_v12, %v8834_v34  ;;  %v8984_v22 = vld [vmem:[#allocation2 + $0x128] sm:$0xff]  ;;  %v10532_v19 = vld [vmem:[%s15493_s4 + $0x18] sm:$0xff] }
 0x90c   : > { %v9101_v8 = vpack.c.bf16 %v8984_v22, %v8983_v31 }
 0x90d   : > { %9758 = vmatmul.bf16.gmra.mxu3 %v9621_v49  ;;  %8439 = vst [vmem:[#allocation3 + $0xa0] sm:$0xff] %v8375_v32 }
 0x90e   : > { %v10243_v56 = vpop.f32.mrf.mxu0 }
 0x90f   : > { %9241 = vmatmul.bf16.gmra.mxu2 %v9100_v18 }
 0x910   : > { %v8676_v24 = vpop.f32.mrf.mxu1  ;;  %v9719_v16 = vpop.f32.mrf.mxu3 }
 0x911   : > { %v9879_v30 = vadd.f32 %v9719_v16, %v9357_v5  ;;  %v8835_v47 = vadd.f32 %v8676_v24, %v8505_v45  ;;  %v8509_v24 = vld [vmem:[#allocation3 + $0x168] sm:$0xff] }
 0x912   : > { %v9202_v50 = vpop.f32.mrf.mxu2 }
 0x913   : > { %v10401_v28 = vadd.f32 %v10241_v35, %v9879_v30  ;;  %v9358_v21 = vadd.f32 %v9199_v25, %v8835_v47  ;;  %v8985_v35 = vld [vmem:[#allocation2 + $0x138] sm:$0xff]  ;;  %v10533_v30 = vld [vmem:[%s15493_s4 + $0x20] sm:$0xff] }
 0x914   : > { %v9102_v25 = vpack.c.bf16 %v8986_v62, %v8985_v35 }
 0x915   : > { %10465 = vst [vmem:[#allocation3 + $0xb0] sm:$0xff] %v10401_v28  ;;  %v10657_v46 = vadd.f32 %v10529_v48, %v10401_v28  ;;  %v8465_v48 = vld [vmem:[#allocation2 + $0x142] sm:$0xff] }
 0x916   : > { %v10246_v38 = vpop.f32.mrf.mxu0 }
 0x917   : > { %10721 = vst [vmem:[%s15493_s4] sm:$0xff] %v10657_v46  ;;  %v9507_v46 = vld [vmem:[#allocation2 + $0x139] sm:$0xff] }
 0x918   : > { %v8679_v9 = vpop.f32.mrf.mxu1  ;;  %v9721_v7 = vpop.f32.mrf.mxu3 }
 0x919   : > { %v9880_v15 = vadd.f32 %v9721_v7, %v9358_v21  ;;  %10285 = vmatmul.bf16.gmra.mxu0 %v8578_v61  ;;  %v8836_v63 = vadd.f32 %v8679_v9, %v8506_v37  ;;  %v8987_v9 = vld [vmem:[#allocation2 + $0x150] sm:$0xff]  ;;  %v8988_v7 = vld [vmem:[#allocation2 + $0x158] sm:$0xff]  ;;  %v10534_v37 = vld [vmem:[%s15493_s4 + $0x28] sm:$0xff] }
 0x91a   : > { %v9204_v27 = vpop.f32.mrf.mxu2 }
 0x91b   : > { %8718 = vmatmul.bf16.gmra.mxu1 %v8577_v29  ;;  %v10402_v33 = vadd.f32 %v10243_v56, %v9880_v15  ;;  %v9359_v55 = vadd.f32 %v9202_v50, %v8836_v63  ;;  %v8464_v50 = vld [vmem:[#allocation2 + $0x13a] sm:$0xff]  ;;  %v8510_v15 = vld [vmem:[#allocation3 + $0x130] sm:$0xff]  ;;  %v9103_v63 = vpack.c.bf16 %v8988_v7, %v8987_v9 }
 0x91c   : > { %v8580_v28 = vpack.c.bf16 %v8465_v48, %v8464_v50 }
 0x91d   : > { %9763 = vmatmul.bf16.gmra.mxu3 %v9622_v11  ;;  %10466 = vst [vmem:[#allocation3 + $0x1b0] sm:$0xff] %v10402_v33  ;;  %v10658_v2 = vadd.f32 %v10530_v20, %v10402_v33 }
 0x91e   : > { %v10248_v59 = vpop.f32.mrf.mxu0 }
 0x91f   : > { %10722 = vst [vmem:[%s15493_s4 + $0x8] sm:$0xff] %v10658_v2  ;;  %9246 = vmatmul.bf16.gmra.mxu2 %v9101_v8 }
 0x920   : > { %v8681_v54 = vpop.f32.mrf.mxu1  ;;  %v9724_v60 = vpop.f32.mrf.mxu3 }
 0x921   : > { %v9881_v52 = vadd.f32 %v9724_v60, %v9359_v55  ;;  %v8837_v13 = vadd.f32 %v8681_v54, %v8507_v4  ;;  %v8511_v54 = vld [vmem:[#allocation3 + $0x48] sm:$0xff] }
 0x922   : > { %v9207_v44 = vpop.f32.mrf.mxu2 }
 0x923   : > { %v10403_v39 = vadd.f32 %v10246_v38, %v9881_v52  ;;  %v9360_v29 = vadd.f32 %v9204_v27, %v8837_v13  ;;  %v10535_v52 = vld [vmem:[%s15493_s4 + $0x30] sm:$0xff] }
 0x925   : > { %10467 = vst [vmem:[#allocation3 + $0xd8] sm:$0xff] %v10403_v39  ;;  %v10659_v12 = vadd.f32 %v10531_v40, %v10403_v39  ;;  %v8467_v40 = vld [vmem:[#allocation2 + $0x15a] sm:$0xff] }
 0x926   : > { %v10251_v3 = vpop.f32.mrf.mxu0 }
 0x927   : > { %10723 = vst [vmem:[%s15493_s4 + $0x10] sm:$0xff] %v10659_v12  ;;  %v9509_v12 = vld [vmem:[#allocation2 + $0x151] sm:$0xff] }
 0x928   : > { %v8684_v58 = vpop.f32.mrf.mxu1  ;;  %v9726_v17 = vpop.f32.mrf.mxu3 }
 0x929   : > { %v9882_v26 = vadd.f32 %v9726_v17, %v9360_v29  ;;  %10290 = vmatmul.bf16.gmra.mxu0 %v8579_v51  ;;  %v8838_v49 = vadd.f32 %v8684_v58, %v8508_v0  ;;  %v8989_v58 = vld [vmem:[#allocation2 + $0x168] sm:$0xff]  ;;  %v8990_v17 = vld [vmem:[#allocation2 + $0x170] sm:$0xff]  ;;  %v10536_v0 = vld [vmem:[%s15493_s4 + $0x38] sm:$0xff] }
 0x92a   : > { %v9209_v53 = vpop.f32.mrf.mxu2 }
 0x92b   : > { %8723 = vmatmul.bf16.gmra.mxu1 %v8578_v61  ;;  %v10404_v14 = vadd.f32 %v10248_v59, %v9882_v26  ;;  %v9361_v18 = vadd.f32 %v9207_v44, %v8838_v49  ;;  %v9508_v61 = vld [vmem:[#allocation2 + $0x141] sm:$0xff]  ;;  %v8466_v44 = vld [vmem:[#allocation2 + $0x152] sm:$0xff]  ;;  %v9104_v49 = vpack.c.bf16 %v8990_v17, %v8989_v58 }
 0x92c   : > { %v9624_v22 = vpack.c.bf16 %v9508_v61, %v9507_v46  ;;  %v8581_v39 = vpack.c.bf16 %v8467_v40, %v8466_v44  ;;  %v8512_v26 = vld [vmem:[#allocation3 + $0x180] sm:$0xff] }
 0x92d   : > { %9768 = vmatmul.bf16.gmra.mxu3 %v9623_v6  ;;  %10468 = vst [vmem:[#allocation3 + $0x18] sm:$0xff] %v10404_v14  ;;  %v10660_v34 = vadd.f32 %v10532_v19, %v10404_v14 }
 0x92e   : > { %v10253_v32 = vpop.f32.mrf.mxu0 }
 0x92f   : > { %10724 = vst [vmem:[%s15493_s4 + $0x18] sm:$0xff] %v10660_v34  ;;  %9251 = vmatmul.bf16.gmra.mxu2 %v9102_v25 }
 0x930   : > { %v8686_v56 = vpop.f32.mrf.mxu1  ;;  %v9729_v5 = vpop.f32.mrf.mxu3 }
 0x931   : > { %v9883_v16 = vadd.f32 %v9729_v5, %v9361_v18  ;;  %v8839_v10 = vadd.f32 %v8686_v56, %v8509_v24  ;;  %v8513_v56 = vld [vmem:[#allocation3 + $0x110] sm:$0xff] }
 0x932   : > { %v9212_v45 = vpop.f32.mrf.mxu2 }
 0x933   : > { %v10405_v57 = vadd.f32 %v10251_v3, %v9883_v16  ;;  %v9362_v1 = vadd.f32 %v9209_v53, %v8839_v10  ;;  %v10537_v16 = vld [vmem:[%s15493_s4 + $0x40] sm:$0xff] }
 0x935   : > { %10469 = vst [vmem:[#allocation3 + $0x50] sm:$0xff] %v10405_v57  ;;  %v10661_v47 = vadd.f32 %v10533_v30, %v10405_v57  ;;  %v8469_v30 = vld [vmem:[#allocation2 + $0x172] sm:$0xff] }
 0x936   : > { %v10256_v36 = vpop.f32.mrf.mxu0 }
 0x937   : > { %10725 = vst [vmem:[%s15493_s4 + $0x20] sm:$0xff] %v10661_v47  ;;  %v9511_v47 = vld [vmem:[#allocation2 + $0x169] sm:$0xff] }
 0x938   : > { %v8689_v38 = vpop.f32.mrf.mxu1  ;;  %v9731_v21 = vpop.f32.mrf.mxu3 }
 0x939   : > { %v9884_v31 = vadd.f32 %v9731_v21, %v9362_v1  ;;  %10295 = vmatmul.bf16.gmra.mxu0 %v8580_v28  ;;  %v8840_v27 = vadd.f32 %v8689_v38, %v8510_v15  ;;  %v8991_v38 = vld [vmem:[#allocation2 + $0x180] sm:$0xff]  ;;  %v8992_v21 = vld [vmem:[#allocation2 + $0x188] sm:$0xff] }
 0x93a   : > { %v9214_v11 = vpop.f32.mrf.mxu2  ;;  %v10538_v15 = vld [vmem:[%s15493_s4 + $0x48] sm:$0xff] }
 0x93b   : > { %8728 = vmatmul.bf16.gmra.mxu1 %v8579_v51  ;;  %v10406_v20 = vadd.f32 %v10253_v32, %v9884_v31  ;;  %v9363_v2 = vadd.f32 %v9212_v45, %v8840_v27  ;;  %v9510_v51 = vld [vmem:[#allocation2 + $0x159] sm:$0xff]  ;;  %v8468_v45 = vld [vmem:[#allocation2 + $0x16a] sm:$0xff]  ;;  %v9105_v27 = vpack.c.bf16 %v8992_v21, %v8991_v38 }
 0x93c   : > { %v9625_v62 = vpack.c.bf16 %v9510_v51, %v9509_v12  ;;  %v8582_v57 = vpack.c.bf16 %v8469_v30, %v8468_v45  ;;  %v8514_v31 = vld [vmem:[#allocation3 + $0x118] sm:$0xff] }
 0x93d   : > { %9773 = vmatmul.bf16.gmra.mxu3 %v9624_v22  ;;  %10470 = vst [vmem:[#allocation3 + $0x168] sm:$0xff] %v10406_v20  ;;  %v10662_v33 = vadd.f32 %v10534_v37, %v10406_v20 }
 0x93e   : > { %v10258_v8 = vpop.f32.mrf.mxu0 }
 0x93f   : > { %10726 = vst [vmem:[%s15493_s4 + $0x28] sm:$0xff] %v10662_v33  ;;  %9256 = vmatmul.bf16.gmra.mxu2 %v9103_v63 }
 0x940   : > { %v8691_v59 = vpop.f32.mrf.mxu1  ;;  %v9734_v55 = vpop.f32.mrf.mxu3 }
 0x941   : > { %v9885_v60 = vadd.f32 %v9734_v55, %v9363_v2  ;;  %v8841_v23 = vadd.f32 %v8691_v59, %v8511_v54  ;;  %v8515_v59 = vld [vmem:[#allocation3 + $0x98] sm:$0xff] }
 0x942   : > { %v9217_v4 = vpop.f32.mrf.mxu2 }
 0x943   : > { %v10407_v42 = vadd.f32 %v10256_v36, %v9885_v60  ;;  %v9364_v43 = vadd.f32 %v9214_v11, %v8841_v23  ;;  %v10539_v60 = vld [vmem:[%s15493_s4 + $0x50] sm:$0xff] }
 0x945   : > { %10471 = vst [vmem:[#allocation3 + $0x130] sm:$0xff] %v10407_v42  ;;  %v10663_v13 = vadd.f32 %v10535_v52, %v10407_v42  ;;  %v8471_v52 = vld [vmem:[#allocation2 + $0x18a] sm:$0xff] }
 0x946   : > { %v10261_v41 = vpop.f32.mrf.mxu0 }
 0x947   : > { %10727 = vst [vmem:[%s15493_s4 + $0x30] sm:$0xff] %v10663_v13  ;;  %v9513_v13 = vld [vmem:[#allocation2 + $0x181] sm:$0xff] }
 0x948   : > { %v8694_v3 = vpop.f32.mrf.mxu1  ;;  %v9736_v29 = vpop.f32.mrf.mxu3 }
 0x949   : > { %v9886_v35 = vadd.f32 %v9736_v29, %v9364_v43  ;;  %10300 = vmatmul.bf16.gmra.mxu0 %v8581_v39  ;;  %v8842_v53 = vadd.f32 %v8694_v3, %v8512_v26  ;;  %v8993_v3 = vld [vmem:[#allocation2 + $0x198] sm:$0xff]  ;;  %v8994_v29 = vld [vmem:[#allocation2 + $0x1a0] sm:$0xff] }
 0x94a   : > { %v9219_v6 = vpop.f32.mrf.mxu2  ;;  %v10540_v26 = vld [vmem:[%s15493_s4 + $0x58] sm:$0xff] }
 0x94b   : > { %8733 = vmatmul.bf16.gmra.mxu1 %v8580_v28  ;;  %v10408_v19 = vadd.f32 %v10258_v8, %v9886_v35  ;;  %v9365_v34 = vadd.f32 %v9217_v4, %v8842_v53  ;;  %v9512_v28 = vld [vmem:[#allocation2 + $0x171] sm:$0xff]  ;;  %v8470_v4 = vld [vmem:[#allocation2 + $0x182] sm:$0xff]  ;;  %v9106_v53 = vpack.c.bf16 %v8994_v29, %v8993_v3 }
 0x94c   : > { %v9626_v7 = vpack.c.bf16 %v9512_v28, %v9511_v47  ;;  %v8583_v42 = vpack.c.bf16 %v8471_v52, %v8470_v4  ;;  %v8516_v35 = vld [vmem:[#allocation3 + $0x120] sm:$0xff]  ;;  %v8997_v29 = vld [vmem:[#allocation2 + $0x1f8] sm:$0xff] }
 0x94d   : > { %9778 = vmatmul.bf16.gmra.mxu3 %v9625_v62  ;;  %10472 = vst [vmem:[#allocation3 + $0x48] sm:$0xff] %v10408_v19  ;;  %v10664_v14 = vadd.f32 %v10536_v0, %v10408_v19 }
 0x94e   : > { %v10263_v25 = vpop.f32.mrf.mxu0 }
 0x94f   : > { %10728 = vst [vmem:[%s15493_s4 + $0x38] sm:$0xff] %v10664_v14  ;;  %9261 = vmatmul.bf16.gmra.mxu2 %v9104_v49 }
 0x950   : > { %v8696_v32 = vpop.f32.mrf.mxu1  ;;  %v9739_v18 = vpop.f32.mrf.mxu3 }
 0x951   : > { %v9887_v5 = vadd.f32 %v9739_v18, %v9365_v34  ;;  %v8843_v50 = vadd.f32 %v8696_v32, %v8513_v56  ;;  %v8517_v32 = vld [vmem:[#allocation3 + $0x150] sm:$0xff] }
 0x952   : > { %v9222_v24 = vpop.f32.mrf.mxu2 }
 0x953   : > { %v10409_v48 = vadd.f32 %v10261_v41, %v9887_v5  ;;  %v9366_v61 = vadd.f32 %v9219_v6, %v8843_v50  ;;  %v10541_v5 = vld [vmem:[%s15493_s4 + $0x60] sm:$0xff] }
 0x955   : > { %10473 = vst [vmem:[#allocation3 + $0x180] sm:$0xff] %v10409_v48  ;;  %v10665_v10 = vadd.f32 %v10537_v16, %v10409_v48  ;;  %v10038_v16 = vld [vmem:[#allocation2 + $0x1a2] sm:$0xff] }
 0x956   : > { %v10266_v46 = vpop.f32.mrf.mxu0 }
 0x957   : > { %10729 = vst [vmem:[%s15493_s4 + $0x40] sm:$0xff] %v10665_v10  ;;  %v9515_v10 = vld [vmem:[#allocation2 + $0x199] sm:$0xff] }
 0x958   : > { %v8699_v36 = vpop.f32.mrf.mxu1  ;;  %v9741_v1 = vpop.f32.mrf.mxu3 }
 0x959   : > { %v9888_v9 = vadd.f32 %v9741_v1, %v9366_v61  ;;  %10305 = vmatmul.bf16.gmra.mxu0 %v8582_v57  ;;  %v8844_v11 = vadd.f32 %v8699_v36, %v8514_v31  ;;  %v8995_v36 = vld [vmem:[#allocation2 + $0x1e0] sm:$0xff]  ;;  %v8996_v1 = vld [vmem:[#allocation2 + $0x1e8] sm:$0xff] }
 0x95a   : > { %v9224_v22 = vpop.f32.mrf.mxu2  ;;  %v10542_v31 = vld [vmem:[%s15493_s4 + $0x68] sm:$0xff] }
 0x95b   : > { %8738 = vmatmul.bf16.gmra.mxu1 %v8581_v39  ;;  %v10410_v37 = vadd.f32 %v10263_v25, %v9888_v9  ;;  %v9367_v33 = vadd.f32 %v9222_v24, %v8844_v11  ;;  %v9514_v39 = vld [vmem:[#allocation2 + $0x189] sm:$0xff]  ;;  %v10037_v24 = vld [vmem:[#allocation2 + $0x19a] sm:$0xff]  ;;  %v9107_v11 = vpack.c.bf16 %v8996_v1, %v8995_v36 }
 0x95c   : > { %v9627_v17 = vpack.c.bf16 %v9514_v39, %v9513_v13  ;;  %v10150_v48 = vpack.c.bf16 %v10038_v16, %v10037_v24  ;;  %v8518_v9 = vld [vmem:[#allocation3 + $0x108] sm:$0xff]  ;;  %v10545_v24 = vld [vmem:[%s15493_s4 + $0x80] sm:$0xff]  ;;  %v8999_v1 = vld [vmem:[#allocation2 + $0x210] sm:$0xff] }
 0x95d   : > { %9783 = vmatmul.bf16.gmra.mxu3 %v9626_v7  ;;  %10474 = vst [vmem:[#allocation3 + $0x110] sm:$0xff] %v10410_v37  ;;  %v10666_v20 = vadd.f32 %v10538_v15, %v10410_v37  ;;  %v9517_v13 = vld [vmem:[#allocation2 + $0x1e1] sm:$0xff]  ;;  %v9518_v39 = vld [vmem:[#allocation2 + $0x1e9] sm:$0xff] }
 0x95e   : > { %v10268_v63 = vpop.f32.mrf.mxu0  ;;  %v8476_v16 = vld [vmem:[#allocation2 + $0x1fa] sm:$0xff] }
 0x95f   : > { %10730 = vst [vmem:[%s15493_s4 + $0x48] sm:$0xff] %v10666_v20  ;;  %9266 = vmatmul.bf16.gmra.mxu2 %v9105_v27 }
 0x960   : > { %v8701_v8 = vpop.f32.mrf.mxu1  ;;  %v9744_v2 = vpop.f32.mrf.mxu3 }
 0x961   : > { %v9889_v55 = vadd.f32 %v9744_v2, %v9367_v33  ;;  %v8845_v44 = vadd.f32 %v8701_v8, %v8515_v59  ;;  %v8519_v8 = vld [vmem:[#allocation3 + $0x60] sm:$0xff] }
 0x962   : > { %v9227_v54 = vpop.f32.mrf.mxu2 }
 0x963   : > { %v10411_v40 = vadd.f32 %v10266_v46, %v9889_v55  ;;  %v9368_v51 = vadd.f32 %v9224_v22, %v8845_v44  ;;  %v10543_v55 = vld [vmem:[%s15493_s4 + $0x70] sm:$0xff] }
 0x964   : > { %v8472_v44 = vld [vmem:[#allocation2 + $0x1ca] sm:$0xff] }
 0x965   : > { %10475 = vst [vmem:[#allocation3 + $0x118] sm:$0xff] %v10411_v40  ;;  %v10667_v23 = vadd.f32 %v10539_v60, %v10411_v40  ;;  %v8475_v60 = vld [vmem:[#allocation2 + $0x1ea] sm:$0xff]  ;;  %v8473_v40 = vld [vmem:[#allocation2 + $0x1d2] sm:$0xff] }
 0x966   : > { %v10271_v12 = vpop.f32.mrf.mxu0 }
 0x967   : > { %10731 = vst [vmem:[%s15493_s4 + $0x50] sm:$0xff] %v10667_v23 }
 0x968   : > { %v8704_v41 = vpop.f32.mrf.mxu1  ;;  %v9746_v43 = vpop.f32.mrf.mxu3 }
 0x969   : > { %v9890_v58 = vadd.f32 %v9746_v43, %v9368_v51  ;;  %10310 = vmatmul.bf16.gmra.mxu0 %v8583_v42  ;;  %v8846_v6 = vadd.f32 %v8704_v41, %v8516_v35  ;;  %v8584_v41 = vpack.c.bf16 %v8473_v40, %v8472_v44  ;;  %v9629_v35 = vpack.c.bf16 %v9518_v39, %v9517_v13  ;;  %v9522_v13 = vld [vmem:[#allocation2 + $0x219] sm:$0xff] }
 0x96a   : > { %v9229_v62 = vpop.f32.mrf.mxu2 }
 0x96b   : > { %8743 = vmatmul.bf16.gmra.mxu1 %v8582_v57  ;;  %v10412_v0 = vadd.f32 %v10268_v63, %v9890_v58  ;;  %v9369_v14 = vadd.f32 %v9227_v54, %v8846_v6  ;;  %v9516_v57 = vld [vmem:[#allocation2 + $0x1a1] sm:$0xff]  ;;  %v10544_v6 = vld [vmem:[%s15493_s4 + $0x78] sm:$0xff] }
 0x96c   : > { %v9628_v21 = vpack.c.bf16 %v9516_v57, %v9515_v10  ;;  %v8474_v54 = vld [vmem:[#allocation2 + $0x1e2] sm:$0xff]  ;;  %v9519_v57 = vld [vmem:[#allocation2 + $0x1f9] sm:$0xff] }
 0x96d   : > { %9788 = vmatmul.bf16.gmra.mxu3 %v9627_v17  ;;  %10476 = vst [vmem:[#allocation3 + $0x98] sm:$0xff] %v10412_v0  ;;  %v10668_v19 = vadd.f32 %v10540_v26, %v10412_v0  ;;  %v8998_v58 = vld [vmem:[#allocation2 + $0x200] sm:$0xff] }
 0x96e   : > { %v10273_v49 = vpop.f32.mrf.mxu0 }
 0x96f   : > { %10732 = vst [vmem:[%s15493_s4 + $0x58] sm:$0xff] %v10668_v19  ;;  %9271 = vmatmul.bf16.gmra.mxu2 %v9106_v53  ;;  %v9108_v19 = vpack.c.bf16 %v8998_v58, %v8997_v29 }
 0x970   : > { %v8706_v25 = vpop.f32.mrf.mxu1  ;;  %v9749_v34 = vpop.f32.mrf.mxu3 }
 0x971   : > { %v9891_v18 = vadd.f32 %v9749_v34, %v9369_v14  ;;  %v8847_v45 = vadd.f32 %v8706_v25, %v8517_v32 }
 0x972   : > { %v9232_v56 = vpop.f32.mrf.mxu2 }
 0x973   : > { %v10413_v30 = vadd.f32 %v10271_v12, %v9891_v18  ;;  %v9370_v28 = vadd.f32 %v9229_v62, %v8847_v45  ;;  %v8520_v62 = vld [vmem:[#allocation3 + $0xe0] sm:$0xff]  ;;  %v8521_v18 = vld [vmem:[#allocation3 + $0x188] sm:$0xff] }
 0x974   : > { %v8477_v45 = vld [vmem:[#allocation2 + $0x202] sm:$0xff] }
 0x975   : > { %10477 = vst [vmem:[#allocation3 + $0x120] sm:$0xff] %v10413_v30  ;;  %v10669_v50 = vadd.f32 %v10541_v5, %v10413_v30  ;;  %v8586_v10 = vpack.c.bf16 %v8477_v45, %v8476_v16 }
 0x976   : > { %v10276_v47 = vpop.f32.mrf.mxu0 }
 0x977   : > { %10733 = vst [vmem:[%s15493_s4 + $0x60] sm:$0xff] %v10669_v50 }
 0x978   : > { %v8709_v46 = vpop.f32.mrf.mxu1  ;;  %v9751_v61 = vpop.f32.mrf.mxu3 }
 0x979   : > { %v9892_v38 = vadd.f32 %v9751_v61, %v9370_v28  ;;  %10315 = vmatmul.bf16.gmra.mxu0 %v10150_v48  ;;  %v8848_v22 = vadd.f32 %v8709_v46, %v8518_v9 }
 0x97a   : > { %v9234_v7 = vpop.f32.mrf.mxu2 }
 0x97b   : > { %8748 = vmatmul.bf16.gmra.mxu1 %v8583_v42  ;;  %v10414_v15 = vadd.f32 %v10273_v49, %v9892_v38  ;;  %v9371_v20 = vadd.f32 %v9232_v56, %v8848_v22  ;;  %v8585_v42 = vpack.c.bf16 %v8475_v60, %v8474_v54  ;;  %v9000_v38 = vld [vmem:[#allocation2 + $0x218] sm:$0xff]  ;;  %v10546_v22 = vld [vmem:[%s15493_s4 + $0x88] sm:$0xff]  ;;  %v10547_v54 = vld [vmem:[%s15493_s4 + $0x90] sm:$0xff] }
 0x97c   : > { %v8478_v60 = vld [vmem:[#allocation2 + $0x212] sm:$0xff] }
 0x97d   : > { %9793 = vmatmul.bf16.gmra.mxu3 %v9628_v21  ;;  %10478 = vst [vmem:[#allocation3 + $0x150] sm:$0xff] %v10414_v15  ;;  %v10670_v37 = vadd.f32 %v10542_v31, %v10414_v15 }
 0x97e   : > { %v10278_v27 = vpop.f32.mrf.mxu0 }
 0x97f   : > { %10734 = vst [vmem:[%s15493_s4 + $0x68] sm:$0xff] %v10670_v37  ;;  %9276 = vmatmul.bf16.gmra.mxu2 %v9107_v11  ;;  %v9109_v37 = vpack.c.bf16 %v9000_v38, %v8999_v1 }
 0x980   : > { %v8711_v63 = vpop.f32.mrf.mxu1  ;;  %v9754_v33 = vpop.f32.mrf.mxu3 }
 0x981   : > { %v9893_v2 = vadd.f32 %v9754_v33, %v9371_v20  ;;  %v8849_v4 = vadd.f32 %v8711_v63, %v8519_v8 }
 0x982   : > { %v9237_v59 = vpop.f32.mrf.mxu2 }
 0x983   : > { %v10415_v52 = vadd.f32 %v10276_v47, %v9893_v2  ;;  %v9372_v51 = vadd.f32 %v9234_v7, %v8849_v4  ;;  %v9520_v47 = vld [vmem:[#allocation2 + $0x201] sm:$0xff]  ;;  %v8522_v7 = vld [vmem:[#allocation3 + $0x138] sm:$0xff] }
 0x984   : > { %v9630_v9 = vpack.c.bf16 %v9520_v47, %v9519_v57  ;;  %v8523_v2 = vld [vmem:[#allocation3 + $0x140] sm:$0xff] }
 0x985   : > { %10479 = vst [vmem:[#allocation3 + $0x108] sm:$0xff] %v10415_v52  ;;  %v10671_v23 = vadd.f32 %v10543_v55, %v10415_v52  ;;  %v8479_v4 = vld [vmem:[#allocation2 + $0x21a] sm:$0xff] }
 0x986   : > { %v10281_v12 = vpop.f32.mrf.mxu0 }
 0x987   : > { %10735 = vst [vmem:[%s15493_s4 + $0x70] sm:$0xff] %v10671_v23  ;;  %v8587_v23 = vpack.c.bf16 %v8479_v4, %v8478_v60 }
 0x988   : > { %v8714_v43 = vpop.f32.mrf.mxu1  ;;  %v9756_v3 = vpop.f32.mrf.mxu3 }
 0x989   : > { %v9894_v17 = vadd.f32 %v9756_v3, %v9372_v51  ;;  %10320 = vmatmul.bf16.gmra.mxu0 %v8585_v42  ;;  %v8850_v0 = vadd.f32 %v8714_v43, %v8520_v62  ;;  %v9001_v43 = vld [vmem:[#allocation2 + $0x228] sm:$0xff]  ;;  %v9002_v3 = vld [vmem:[#allocation2 + $0x230] sm:$0xff]  ;;  %v10548_v62 = vld [vmem:[%s15493_s4 + $0x98] sm:$0xff] }
 0x98a   : > { %v9239_v26 = vpop.f32.mrf.mxu2 }
 0x98b   : > { %8753 = vmatmul.bf16.gmra.mxu1 %v8584_v41  ;;  %v10416_v53 = vadd.f32 %v10278_v27, %v9894_v17  ;;  %v9373_v25 = vadd.f32 %v9237_v59, %v8850_v0  ;;  %v8524_v17 = vld [vmem:[#allocation3 + $0x80] sm:$0xff]  ;;  %v9110_v0 = vpack.c.bf16 %v9002_v3, %v9001_v43 }
 0x98d   : > { %9798 = vmatmul.bf16.gmra.mxu3 %v9629_v35  ;;  %10480 = vst [vmem:[#allocation3 + $0x60] sm:$0xff] %v10416_v53  ;;  %v10672_v49 = vadd.f32 %v10544_v6, %v10416_v53 }
 0x98e   : > { %v10283_v14 = vpop.f32.mrf.mxu0 }
 0x98f   : > { %10736 = vst [vmem:[%s15493_s4 + $0x78] sm:$0xff] %v10672_v49  ;;  %9281 = vmatmul.bf16.gmra.mxu2 %v9108_v19 }
 0x990   : > { %v8716_v34 = vpop.f32.mrf.mxu1  ;;  %v9759_v32 = vpop.f32.mrf.mxu3 }
 0x991   : > { %v9895_v56 = vadd.f32 %v9759_v32, %v9373_v25  ;;  %v8851_v30 = vadd.f32 %v8716_v34, %v8521_v18  ;;  %v8525_v34 = vld [vmem:[#allocation3 + $0x1a8] sm:$0xff] }
 0x992   : > { %v9242_v5 = vpop.f32.mrf.mxu2 }
 0x993   : > { %v10417_v50 = vadd.f32 %v10281_v12, %v9895_v56  ;;  %v9374_v46 = vadd.f32 %v9239_v26, %v8851_v30  ;;  %v10549_v56 = vld [vmem:[%s15493_s4 + $0xa0] sm:$0xff] }
 0x995   : > { %10481 = vst [vmem:[#allocation3 + $0xe0] sm:$0xff] %v10417_v50  ;;  %v10673_v48 = vadd.f32 %v10545_v24, %v10417_v50  ;;  %v8481_v24 = vld [vmem:[#allocation2 + $0x232] sm:$0xff] }
 0x996   : > { %v10286_v28 = vpop.f32.mrf.mxu0 }
 0x997   : > { %10737 = vst [vmem:[%s15493_s4 + $0x80] sm:$0xff] %v10673_v48  ;;  %v9523_v48 = vld [vmem:[#allocation2 + $0x229] sm:$0xff] }
 0x998   : > { %v8719_v61 = vpop.f32.mrf.mxu1  ;;  %v9761_v36 = vpop.f32.mrf.mxu3 }
 0x999   : > { %v9896_v21 = vadd.f32 %v9761_v36, %v9374_v46  ;;  %10325 = vmatmul.bf16.gmra.mxu0 %v8586_v10  ;;  %v8852_v15 = vadd.f32 %v8719_v61, %v8522_v7  ;;  %v9003_v61 = vld [vmem:[#allocation2 + $0x240] sm:$0xff]  ;;  %v9004_v36 = vld [vmem:[#allocation2 + $0x248] sm:$0xff] }
 0x99a   : > { %v9244_v31 = vpop.f32.mrf.mxu2  ;;  %v10550_v7 = vld [vmem:[%s15493_s4 + $0xa8] sm:$0xff] }
 0x99b   : > { %8758 = vmatmul.bf16.gmra.mxu1 %v8585_v42  ;;  %v10418_v11 = vadd.f32 %v10283_v14, %v9896_v21  ;;  %v9375_v63 = vadd.f32 %v9242_v5, %v8852_v15  ;;  %v9521_v42 = vld [vmem:[#allocation2 + $0x211] sm:$0xff]  ;;  %v9111_v15 = vpack.c.bf16 %v9004_v36, %v9003_v61 }
 0x99c   : > { %v9631_v58 = vpack.c.bf16 %v9522_v13, %v9521_v42  ;;  %v8480_v5 = vld [vmem:[#allocation2 + $0x22a] sm:$0xff]  ;;  %v8526_v21 = vld [vmem:[#allocation3 + $0x1b8] sm:$0xff] }
 0x99d   : > { %9803 = vmatmul.bf16.gmra.mxu3 %v9630_v9  ;;  %10482 = vst [vmem:[#allocation3 + $0x188] sm:$0xff] %v10418_v11  ;;  %v10674_v27 = vadd.f32 %v10546_v22, %v10418_v11  ;;  %v8588_v50 = vpack.c.bf16 %v8481_v24, %v8480_v5 }
 0x99e   : > { %v10288_v20 = vpop.f32.mrf.mxu0 }
 0x99f   : > { %10738 = vst [vmem:[%s15493_s4 + $0x88] sm:$0xff] %v10674_v27  ;;  %9286 = vmatmul.bf16.gmra.mxu2 %v9109_v37 }
 0x9a0   : > { %v8721_v33 = vpop.f32.mrf.mxu1  ;;  %v9764_v8 = vpop.f32.mrf.mxu3 }
 0x9a1   : > { %v9897_v59 = vadd.f32 %v9764_v8, %v9375_v63  ;;  %v8853_v52 = vadd.f32 %v8721_v33, %v8523_v2  ;;  %v8527_v33 = vld [vmem:[#allocation3 + $0x28] sm:$0xff] }
 0x9a2   : > { %v9247_v55 = vpop.f32.mrf.mxu2 }
 0x9a3   : > { %v10419_v44 = vadd.f32 %v10286_v28, %v9897_v59  ;;  %v9376_v12 = vadd.f32 %v9244_v31, %v8853_v52  ;;  %v10551_v59 = vld [vmem:[%s15493_s4 + $0xb0] sm:$0xff] }
 0x9a5   : > { %10483 = vst [vmem:[#allocation3 + $0x138] sm:$0xff] %v10419_v44  ;;  %v10675_v40 = vadd.f32 %v10547_v54, %v10419_v44  ;;  %v8483_v54 = vld [vmem:[#allocation2 + $0x24a] sm:$0xff] }
 0x9a6   : > { %v10291_v39 = vpop.f32.mrf.mxu0 }
 0x9a7   : > { %10739 = vst [vmem:[%s15493_s4 + $0x90] sm:$0xff] %v10675_v40  ;;  %v9525_v40 = vld [vmem:[#allocation2 + $0x241] sm:$0xff] }
 0x9a8   : > { %v8724_v51 = vpop.f32.mrf.mxu1  ;;  %v9766_v41 = vpop.f32.mrf.mxu3 }
 0x9a9   : > { %v9898_v29 = vadd.f32 %v9766_v41, %v9376_v12  ;;  %10330 = vmatmul.bf16.gmra.mxu0 %v8587_v23  ;;  %v8854_v26 = vadd.f32 %v8724_v51, %v8524_v17  ;;  %v9005_v51 = vld [vmem:[#allocation2 + $0x258] sm:$0xff]  ;;  %v9006_v41 = vld [vmem:[#allocation2 + $0x260] sm:$0xff] }
 0x9aa   : > { %v9249_v35 = vpop.f32.mrf.mxu2  ;;  %v10552_v17 = vld [vmem:[%s15493_s4 + $0xb8] sm:$0xff] }
 0x9ab   : > { %8763 = vmatmul.bf16.gmra.mxu1 %v8586_v10  ;;  %v10420_v6 = vadd.f32 %v10288_v20, %v9898_v29  ;;  %v9377_v49 = vadd.f32 %v9247_v55, %v8854_v26  ;;  %v9524_v10 = vld [vmem:[#allocation2 + $0x231] sm:$0xff]  ;;  %v8482_v55 = vld [vmem:[#allocation2 + $0x242] sm:$0xff]  ;;  %v9112_v26 = vpack.c.bf16 %v9006_v41, %v9005_v51 }
 0x9ac   : > { %v9632_v38 = vpack.c.bf16 %v9524_v10, %v9523_v48  ;;  %v8589_v44 = vpack.c.bf16 %v8483_v54, %v8482_v55  ;;  %v8528_v29 = vld [vmem:[#allocation3 + $0x1e8] sm:$0xff] }
 0x9ad   : > { %9808 = vmatmul.bf16.gmra.mxu3 %v9631_v58  ;;  %10484 = vst [vmem:[#allocation3 + $0x140] sm:$0xff] %v10420_v6  ;;  %v10676_v53 = vadd.f32 %v10548_v62, %v10420_v6 }
 0x9ae   : > { %v10293_v19 = vpop.f32.mrf.mxu0 }
 0x9af   : > { %10740 = vst [vmem:[%s15493_s4 + $0x98] sm:$0xff] %v10676_v53  ;;  %9291 = vmatmul.bf16.gmra.mxu2 %v9110_v0 }
 0x9b0   : > { %v8726_v14 = vpop.f32.mrf.mxu1  ;;  %v9769_v25 = vpop.f32.mrf.mxu3 }
 0x9b1   : > { %v9899_v32 = vadd.f32 %v9769_v25, %v9377_v49  ;;  %v8855_v16 = vadd.f32 %v8726_v14, %v8525_v34  ;;  %v8529_v14 = vld [vmem:[#allocation3 + $0xf8] sm:$0xff] }
 0x9b2   : > { %v9252_v18 = vpop.f32.mrf.mxu2 }
 0x9b3   : > { %v10421_v45 = vadd.f32 %v10291_v39, %v9899_v32  ;;  %v9378_v47 = vadd.f32 %v9249_v35, %v8855_v16  ;;  %v10553_v32 = vld [vmem:[%s15493_s4 + $0xc0] sm:$0xff] }
 0x9b5   : > { %10485 = vst [vmem:[#allocation3 + $0x80] sm:$0xff] %v10421_v45  ;;  %v10677_v30 = vadd.f32 %v10549_v56, %v10421_v45  ;;  %v8485_v56 = vld [vmem:[#allocation2 + $0x262] sm:$0xff] }
 0x9b6   : > { %v10296_v57 = vpop.f32.mrf.mxu0 }
 0x9b7   : > { %10741 = vst [vmem:[%s15493_s4 + $0xa0] sm:$0xff] %v10677_v30  ;;  %v9527_v30 = vld [vmem:[#allocation2 + $0x259] sm:$0xff] }
 0x9b8   : > { %v8729_v28 = vpop.f32.mrf.mxu1  ;;  %v9771_v46 = vpop.f32.mrf.mxu3 }
 0x9b9   : > { %v9900_v1 = vadd.f32 %v9771_v46, %v9378_v47  ;;  %10335 = vmatmul.bf16.gmra.mxu0 %v8588_v50  ;;  %v8856_v31 = vadd.f32 %v8729_v28, %v8526_v21  ;;  %v9007_v28 = vld [vmem:[#allocation2 + $0x270] sm:$0xff]  ;;  %v9008_v46 = vld [vmem:[#allocation2 + $0x278] sm:$0xff]  ;;  %v10554_v21 = vld [vmem:[%s15493_s4 + $0xc8] sm:$0xff] }
 0x9ba   : > { %v9254_v9 = vpop.f32.mrf.mxu2 }
 0x9bb   : > { %8768 = vmatmul.bf16.gmra.mxu1 %v8587_v23  ;;  %v10422_v22 = vadd.f32 %v10293_v19, %v9900_v1  ;;  %v9379_v27 = vadd.f32 %v9252_v18, %v8856_v31  ;;  %v9526_v23 = vld [vmem:[#allocation2 + $0x249] sm:$0xff]  ;;  %v8484_v18 = vld [vmem:[#allocation2 + $0x25a] sm:$0xff]  ;;  %v9113_v31 = vpack.c.bf16 %v9008_v46, %v9007_v28 }
 0x9bc   : > { %v9633_v3 = vpack.c.bf16 %v9526_v23, %v9525_v40  ;;  %v8590_v45 = vpack.c.bf16 %v8485_v56, %v8484_v18  ;;  %v8530_v1 = vld [vmem:[#allocation3 + $0x160] sm:$0xff] }
 0x9bd   : > { %9813 = vmatmul.bf16.gmra.mxu3 %v9632_v38  ;;  %10486 = vst [vmem:[#allocation3 + $0x1a8] sm:$0xff] %v10422_v22  ;;  %v10678_v11 = vadd.f32 %v10550_v7, %v10422_v22 }
 0x9be   : > { %v10298_v37 = vpop.f32.mrf.mxu0 }
 0x9bf   : > { %10742 = vst [vmem:[%s15493_s4 + $0xa8] sm:$0xff] %v10678_v11  ;;  %9296 = vmatmul.bf16.gmra.mxu2 %v9111_v15 }
 0x9c0   : > { %v8731_v20 = vpop.f32.mrf.mxu1  ;;  %v9774_v63 = vpop.f32.mrf.mxu3 }
 0x9c1   : > { %v9901_v8 = vadd.f32 %v9774_v63, %v9379_v27  ;;  %v8857_v60 = vadd.f32 %v8731_v20, %v8527_v33  ;;  %v8531_v20 = vld [vmem:[#allocation3 + $0x30] sm:$0xff] }
 0x9c2   : > { %v9257_v2 = vpop.f32.mrf.mxu2 }
 0x9c3   : > { %v10423_v4 = vadd.f32 %v10296_v57, %v9901_v8  ;;  %v9380_v13 = vadd.f32 %v9254_v9, %v8857_v60  ;;  %v10555_v8 = vld [vmem:[%s15493_s4 + $0xd0] sm:$0xff] }
 0x9c5   : > { %10487 = vst [vmem:[#allocation3 + $0x1b8] sm:$0xff] %v10423_v4  ;;  %v10679_v52 = vadd.f32 %v10551_v59, %v10423_v4  ;;  %v8487_v59 = vld [vmem:[#allocation2 + $0x27a] sm:$0xff] }
 0x9c6   : > { %v10301_v42 = vpop.f32.mrf.mxu0 }
 0x9c7   : > { %10743 = vst [vmem:[%s15493_s4 + $0xb0] sm:$0xff] %v10679_v52  ;;  %v9529_v52 = vld [vmem:[#allocation2 + $0x271] sm:$0xff] }
 0x9c8   : > { %v8734_v39 = vpop.f32.mrf.mxu1  ;;  %v9776_v12 = vpop.f32.mrf.mxu3 }
 0x9c9   : > { %v9902_v43 = vadd.f32 %v9776_v12, %v9380_v13  ;;  %10340 = vmatmul.bf16.gmra.mxu0 %v8589_v44  ;;  %v8858_v35 = vadd.f32 %v8734_v39, %v8528_v29  ;;  %v9009_v39 = vld [vmem:[#allocation2 + $0x288] sm:$0xff]  ;;  %v9010_v12 = vld [vmem:[#allocation2 + $0x290] sm:$0xff]  ;;  %v10556_v29 = vld [vmem:[%s15493_s4 + $0xd8] sm:$0xff] }
 0x9ca   : > { %v9259_v58 = vpop.f32.mrf.mxu2 }
 0x9cb   : > { %8773 = vmatmul.bf16.gmra.mxu1 %v8588_v50  ;;  %v10424_v62 = vadd.f32 %v10298_v37, %v9902_v43  ;;  %v9381_v53 = vadd.f32 %v9257_v2, %v8858_v35  ;;  %v9528_v50 = vld [vmem:[#allocation2 + $0x261] sm:$0xff]  ;;  %v8486_v2 = vld [vmem:[#allocation2 + $0x272] sm:$0xff]  ;;  %v9114_v35 = vpack.c.bf16 %v9010_v12, %v9009_v39 }
 0x9cc   : > { %v9634_v36 = vpack.c.bf16 %v9528_v50, %v9527_v30  ;;  %v8591_v4 = vpack.c.bf16 %v8487_v59, %v8486_v2  ;;  %v8532_v43 = vld [vmem:[#allocation3 + $0x1e0] sm:$0xff] }
 0x9cd   : > { %9818 = vmatmul.bf16.gmra.mxu3 %v9633_v3  ;;  %10488 = vst [vmem:[#allocation3 + $0x28] sm:$0xff] %v10424_v62  ;;  %v10680_v6 = vadd.f32 %v10552_v17, %v10424_v62 }
 0x9ce   : > { %v10303_v0 = vpop.f32.mrf.mxu0 }
 0x9cf   : > { %10744 = vst [vmem:[%s15493_s4 + $0xb8] sm:$0xff] %v10680_v6  ;;  %9301 = vmatmul.bf16.gmra.mxu2 %v9112_v26 }
 0x9d0   : > { %v8736_v19 = vpop.f32.mrf.mxu1  ;;  %v9779_v49 = vpop.f32.mrf.mxu3 }
 0x9d1   : > { %v9903_v25 = vadd.f32 %v9779_v49, %v9381_v53  ;;  %v8859_v5 = vadd.f32 %v8736_v19, %v8529_v14  ;;  %v8533_v19 = vld [vmem:[#allocation3] sm:$0xff] }
 0x9d2   : > { %v9262_v34 = vpop.f32.mrf.mxu2 }
 0x9d3   : > { %v10425_v24 = vadd.f32 %v10301_v42, %v9903_v25  ;;  %v9382_v10 = vadd.f32 %v9259_v58, %v8859_v5  ;;  %v10557_v25 = vld [vmem:[%s15493_s4 + $0xe0] sm:$0xff] }
 0x9d5   : > { %10489 = vst [vmem:[#allocation3 + $0x1e8] sm:$0xff] %v10425_v24  ;;  %v10681_v16 = vadd.f32 %v10553_v32, %v10425_v24  ;;  %v8489_v32 = vld [vmem:[#allocation2 + $0x292] sm:$0xff] }
 0x9d6   : > { %v10306_v48 = vpop.f32.mrf.mxu0 }
 0x9d7   : > { %10745 = vst [vmem:[%s15493_s4 + $0xc0] sm:$0xff] %v10681_v16  ;;  %v9531_v16 = vld [vmem:[#allocation2 + $0x289] sm:$0xff] }
 0x9d8   : > { %v8739_v57 = vpop.f32.mrf.mxu1  ;;  %v9781_v47 = vpop.f32.mrf.mxu3 }
 0x9d9   : > { %v9904_v61 = vadd.f32 %v9781_v47, %v9382_v10  ;;  %10345 = vmatmul.bf16.gmra.mxu0 %v8590_v45  ;;  %v8860_v9 = vadd.f32 %v8739_v57, %v8530_v1  ;;  %v9011_v57 = vld [vmem:[#allocation2 + $0x2a0] sm:$0xff]  ;;  %v9012_v47 = vld [vmem:[#allocation2 + $0x2a8] sm:$0xff] }
 0x9da   : > { %v9264_v38 = vpop.f32.mrf.mxu2  ;;  %v10558_v1 = vld [vmem:[%s15493_s4 + $0xe8] sm:$0xff] }
 0x9db   : > { %8778 = vmatmul.bf16.gmra.mxu1 %v8589_v44  ;;  %v10426_v7 = vadd.f32 %v10303_v0, %v9904_v61  ;;  %v9383_v11 = vadd.f32 %v9262_v34, %v8860_v9  ;;  %v9530_v44 = vld [vmem:[#allocation2 + $0x279] sm:$0xff]  ;;  %v8488_v34 = vld [vmem:[#allocation2 + $0x28a] sm:$0xff]  ;;  %v9115_v9 = vpack.c.bf16 %v9012_v47, %v9011_v57 }
 0x9dc   : > { %v9635_v41 = vpack.c.bf16 %v9530_v44, %v9529_v52  ;;  %v8592_v24 = vpack.c.bf16 %v8489_v32, %v8488_v34  ;;  %v8534_v61 = vld [vmem:[#allocation3 + $0xf0] sm:$0xff] }
 0x9dd   : > { %9823 = vmatmul.bf16.gmra.mxu3 %v9634_v36  ;;  %10490 = vst [vmem:[#allocation3 + $0xf8] sm:$0xff] %v10426_v7  ;;  %v10682_v22 = vadd.f32 %v10554_v21, %v10426_v7 }
 0x9de   : > { %v10308_v15 = vpop.f32.mrf.mxu0 }
 0x9df   : > { %10746 = vst [vmem:[%s15493_s4 + $0xc8] sm:$0xff] %v10682_v22  ;;  %9306 = vmatmul.bf16.gmra.mxu2 %v9113_v31 }
 0x9e0   : > { %v8741_v37 = vpop.f32.mrf.mxu1  ;;  %v9784_v27 = vpop.f32.mrf.mxu3 }
 0x9e1   : > { %v9905_v63 = vadd.f32 %v9784_v27, %v9383_v11  ;;  %v8861_v55 = vadd.f32 %v8741_v37, %v8531_v20  ;;  %v8535_v37 = vld [vmem:[#allocation3 + $0x8] sm:$0xff] }
 0x9e2   : > { %v9267_v33 = vpop.f32.mrf.mxu2 }
 0x9e3   : > { %v10427_v54 = vadd.f32 %v10306_v48, %v9905_v63  ;;  %v9384_v23 = vadd.f32 %v9264_v38, %v8861_v55  ;;  %v10559_v63 = vld [vmem:[%s15493_s4 + $0xf0] sm:$0xff] }
 0x9e5   : > { %10491 = vst [vmem:[#allocation3 + $0x160] sm:$0xff] %v10427_v54  ;;  %v10683_v60 = vadd.f32 %v10555_v8, %v10427_v54  ;;  %v8491_v8 = vld [vmem:[#allocation2 + $0x2aa] sm:$0xff] }
 0x9e6   : > { %v10311_v40 = vpop.f32.mrf.mxu0 }
 0x9e7   : > { %10747 = vst [vmem:[%s15493_s4 + $0xd0] sm:$0xff] %v10683_v60  ;;  %v9533_v60 = vld [vmem:[#allocation2 + $0x2a1] sm:$0xff] }
 0x9e8   : > { %v8744_v42 = vpop.f32.mrf.mxu1  ;;  %v9786_v13 = vpop.f32.mrf.mxu3 }
 0x9e9   : > { %v9906_v51 = vadd.f32 %v9786_v13, %v9384_v23  ;;  %10350 = vmatmul.bf16.gmra.mxu0 %v8591_v4  ;;  %v8862_v58 = vadd.f32 %v8744_v42, %v8532_v43  ;;  %v9013_v42 = vld [vmem:[#allocation2 + $0x2b8] sm:$0xff]  ;;  %v9014_v13 = vld [vmem:[#allocation2 + $0x2c0] sm:$0xff] }
 0x9ea   : > { %v9269_v3 = vpop.f32.mrf.mxu2  ;;  %v10560_v43 = vld [vmem:[%s15493_s4 + $0xf8] sm:$0xff] }
 0x9eb   : > { %8783 = vmatmul.bf16.gmra.mxu1 %v8590_v45  ;;  %v10428_v17 = vadd.f32 %v10308_v15, %v9906_v51  ;;  %v9385_v6 = vadd.f32 %v9267_v33, %v8862_v58  ;;  %v9532_v45 = vld [vmem:[#allocation2 + $0x291] sm:$0xff]  ;;  %v8490_v33 = vld [vmem:[#allocation2 + $0x2a2] sm:$0xff]  ;;  %v9116_v58 = vpack.c.bf16 %v9014_v13, %v9013_v42 }
 0x9ec   : > { %v9636_v46 = vpack.c.bf16 %v9532_v45, %v9531_v16  ;;  %v8593_v54 = vpack.c.bf16 %v8491_v8, %v8490_v33  ;;  %v8536_v51 = vld [vmem:[#allocation3 + $0x148] sm:$0xff] }
 0x9ed   : > { %9828 = vmatmul.bf16.gmra.mxu3 %v9635_v41  ;;  %10492 = vst [vmem:[#allocation3 + $0x30] sm:$0xff] %v10428_v17  ;;  %v10684_v62 = vadd.f32 %v10556_v29, %v10428_v17 }
 0x9ee   : > { %v10313_v26 = vpop.f32.mrf.mxu0 }
 0x9ef   : > { %10748 = vst [vmem:[%s15493_s4 + $0xd8] sm:$0xff] %v10684_v62  ;;  %9311 = vmatmul.bf16.gmra.mxu2 %v9114_v35 }
 0x9f0   : > { %v8746_v0 = vpop.f32.mrf.mxu1  ;;  %v9789_v53 = vpop.f32.mrf.mxu3 }
 0x9f1   : > { %v9907_v49 = vadd.f32 %v9789_v53, %v9385_v6  ;;  %v8863_v18 = vadd.f32 %v8746_v0, %v8533_v19  ;;  %v8537_v0 = vld [vmem:[#allocation3 + $0x1d0] sm:$0xff] }
 0x9f2   : > { %v9272_v14 = vpop.f32.mrf.mxu2 }
 0x9f3   : > { %v10429_v56 = vadd.f32 %v10311_v40, %v9907_v49  ;;  %v9386_v50 = vadd.f32 %v9269_v3, %v8863_v18  ;;  %v10561_v49 = vld [vmem:[%s15493_s4 + $0x100] sm:$0xff] }
 0x9f5   : > { %10493 = vst [vmem:[#allocation3 + $0x1e0] sm:$0xff] %v10429_v56  ;;  %v10685_v5 = vadd.f32 %v10557_v25, %v10429_v56  ;;  %v8493_v25 = vld [vmem:[#allocation2 + $0x2c2] sm:$0xff] }
 0x9f6   : > { %v10316_v30 = vpop.f32.mrf.mxu0 }
 0x9f7   : > { %10749 = vst [vmem:[%s15493_s4 + $0xe0] sm:$0xff] %v10685_v5  ;;  %v9535_v5 = vld [vmem:[#allocation2 + $0x2b9] sm:$0xff] }
 0x9f8   : > { %v8749_v48 = vpop.f32.mrf.mxu1  ;;  %v9791_v10 = vpop.f32.mrf.mxu3 }
 0x9f9   : > { %v9908_v28 = vadd.f32 %v9791_v10, %v9386_v50  ;;  %10355 = vmatmul.bf16.gmra.mxu0 %v8592_v24  ;;  %v8864_v38 = vadd.f32 %v8749_v48, %v8534_v61  ;;  %v9015_v48 = vld [vmem:[#allocation2 + $0x2d0] sm:$0xff]  ;;  %v9016_v10 = vld [vmem:[#allocation2 + $0x2d8] sm:$0xff]  ;;  %v10562_v61 = vld [vmem:[%s15493_s4 + $0x108] sm:$0xff] }
 0x9fa   : > { %v9274_v36 = vpop.f32.mrf.mxu2 }
 0x9fb   : > { %8788 = vmatmul.bf16.gmra.mxu1 %v8591_v4  ;;  %v10430_v21 = vadd.f32 %v10313_v26, %v9908_v28  ;;  %v9387_v22 = vadd.f32 %v9272_v14, %v8864_v38  ;;  %v9534_v4 = vld [vmem:[#allocation2 + $0x2a9] sm:$0xff]  ;;  %v8492_v14 = vld [vmem:[#allocation2 + $0x2ba] sm:$0xff]  ;;  %v9117_v38 = vpack.c.bf16 %v9016_v10, %v9015_v48 }
 0x9fc   : > { %v9637_v12 = vpack.c.bf16 %v9534_v4, %v9533_v60  ;;  %v8594_v56 = vpack.c.bf16 %v8493_v25, %v8492_v14  ;;  %v8538_v28 = vld [vmem:[#allocation3 + $0x100] sm:$0xff] }
 0x9fd   : > { %9833 = vmatmul.bf16.gmra.mxu3 %v9636_v46  ;;  %10494 = vst [vmem:[#allocation3] sm:$0xff] %v10430_v21  ;;  %v10686_v7 = vadd.f32 %v10558_v1, %v10430_v21 }
 0x9fe   : > { %v10318_v31 = vpop.f32.mrf.mxu0 }
 0x9ff   : > { %10750 = vst [vmem:[%s15493_s4 + $0xe8] sm:$0xff] %v10686_v7  ;;  %9316 = vmatmul.bf16.gmra.mxu2 %v9115_v9 }
 0xa00   : > { %v8751_v15 = vpop.f32.mrf.mxu1  ;;  %v9794_v11 = vpop.f32.mrf.mxu3 }
 0xa01   : > { %v9909_v27 = vadd.f32 %v9794_v11, %v9387_v22  ;;  %v8865_v2 = vadd.f32 %v8751_v15, %v8535_v37  ;;  %v8539_v15 = vld [vmem:[#allocation3 + $0xc8] sm:$0xff] }
 0xa02   : > { %v9277_v20 = vpop.f32.mrf.mxu2 }
 0xa03   : > { %v10431_v59 = vadd.f32 %v10316_v30, %v9909_v27  ;;  %v9388_v44 = vadd.f32 %v9274_v36, %v8865_v2  ;;  %v10563_v27 = vld [vmem:[%s15493_s4 + $0x110] sm:$0xff] }
 0xa05   : > { %10495 = vst [vmem:[#allocation3 + $0xf0] sm:$0xff] %v10431_v59  ;;  %v10687_v55 = vadd.f32 %v10559_v63, %v10431_v59  ;;  %v8495_v63 = vld [vmem:[#allocation2 + $0x2da] sm:$0xff] }
 0xa06   : > { %v10321_v52 = vpop.f32.mrf.mxu0 }
 0xa07   : > { %10751 = vst [vmem:[%s15493_s4 + $0xf0] sm:$0xff] %v10687_v55  ;;  %v9537_v55 = vld [vmem:[#allocation2 + $0x2d1] sm:$0xff] }
 0xa08   : > { %v8754_v40 = vpop.f32.mrf.mxu1  ;;  %v9796_v23 = vpop.f32.mrf.mxu3 }
 0xa09   : > { %v9910_v39 = vadd.f32 %v9796_v23, %v9388_v44  ;;  %10360 = vmatmul.bf16.gmra.mxu0 %v8593_v54  ;;  %v8866_v3 = vadd.f32 %v8754_v40, %v8536_v51  ;;  %v9017_v40 = vld [vmem:[#allocation2 + $0x2e8] sm:$0xff]  ;;  %v9018_v23 = vld [vmem:[#allocation2 + $0x2f0] sm:$0xff]  ;;  %v10564_v51 = vld [vmem:[%s15493_s4 + $0x118] sm:$0xff] }
 0xa0a   : > { %v9279_v41 = vpop.f32.mrf.mxu2 }
 0xa0b   : > { %8793 = vmatmul.bf16.gmra.mxu1 %v8592_v24  ;;  %v10432_v29 = vadd.f32 %v10318_v31, %v9910_v39  ;;  %v9389_v62 = vadd.f32 %v9277_v20, %v8866_v3  ;;  %v9536_v24 = vld [vmem:[#allocation2 + $0x2c1] sm:$0xff]  ;;  %v8494_v20 = vld [vmem:[#allocation2 + $0x2d2] sm:$0xff]  ;;  %v9118_v3 = vpack.c.bf16 %v9018_v23, %v9017_v40 }
 0xa0c   : > { %v9638_v47 = vpack.c.bf16 %v9536_v24, %v9535_v5  ;;  %v8595_v59 = vpack.c.bf16 %v8495_v63, %v8494_v20  ;;  %v8540_v39 = vld [vmem:[#allocation3 + $0x40] sm:$0xff] }
 0xa0d   : > { %9838 = vmatmul.bf16.gmra.mxu3 %v9637_v12  ;;  %10496 = vst [vmem:[#allocation3 + $0x8] sm:$0xff] %v10432_v29  ;;  %v10688_v17 = vadd.f32 %v10560_v43, %v10432_v29 }
 0xa0e   : > { %v10323_v35 = vpop.f32.mrf.mxu0 }
 0xa0f   : > { %10752 = vst [vmem:[%s15493_s4 + $0xf8] sm:$0xff] %v10688_v17  ;;  %9321 = vmatmul.bf16.gmra.mxu2 %v9116_v58 }
 0xa10   : > { %v8756_v26 = vpop.f32.mrf.mxu1  ;;  %v9799_v6 = vpop.f32.mrf.mxu3 }
 0xa11   : > { %v9911_v53 = vadd.f32 %v9799_v6, %v9389_v62  ;;  %v8867_v34 = vadd.f32 %v8756_v26, %v8537_v0  ;;  %v8541_v26 = vld [vmem:[#allocation3 + $0x1f8] sm:$0xff] }
 0xa12   : > { %v9282_v19 = vpop.f32.mrf.mxu2 }
 0xa13   : > { %v10433_v32 = vadd.f32 %v10321_v52, %v9911_v53  ;;  %v9390_v45 = vadd.f32 %v9279_v41, %v8867_v34  ;;  %v10565_v53 = vld [vmem:[%s15493_s4 + $0x120] sm:$0xff] }
 0xa15   : > { %10497 = vst [vmem:[#allocation3 + $0x148] sm:$0xff] %v10433_v32  ;;  %v10689_v18 = vadd.f32 %v10561_v49, %v10433_v32  ;;  %v8497_v49 = vld [vmem:[#allocation2 + $0x2f2] sm:$0xff] }
 0xa16   : > { %v10326_v16 = vpop.f32.mrf.mxu0 }
 0xa17   : > { %10753 = vst [vmem:[%s15493_s4 + $0x100] sm:$0xff] %v10689_v18  ;;  %v9539_v18 = vld [vmem:[#allocation2 + $0x2e9] sm:$0xff] }
 0xa18   : > { %v8759_v30 = vpop.f32.mrf.mxu1  ;;  %v9801_v50 = vpop.f32.mrf.mxu3 }
 0xa19   : > { %v9912_v57 = vadd.f32 %v9801_v50, %v9390_v45  ;;  %10365 = vmatmul.bf16.gmra.mxu0 %v8594_v56  ;;  %v8868_v36 = vadd.f32 %v8759_v30, %v8538_v28  ;;  %v9019_v30 = vld [vmem:[#allocation2 + $0x300] sm:$0xff]  ;;  %v9020_v50 = vld [vmem:[#allocation2 + $0x308] sm:$0xff] }
 0xa1a   : > { %v9284_v46 = vpop.f32.mrf.mxu2  ;;  %v10566_v28 = vld [vmem:[%s15493_s4 + $0x128] sm:$0xff] }
 0xa1b   : > { %8798 = vmatmul.bf16.gmra.mxu1 %v8593_v54  ;;  %v10434_v1 = vadd.f32 %v10323_v35, %v9912_v57  ;;  %v9391_v7 = vadd.f32 %v9282_v19, %v8868_v36  ;;  %v9538_v54 = vld [vmem:[#allocation2 + $0x2d9] sm:$0xff]  ;;  %v8496_v19 = vld [vmem:[#allocation2 + $0x2ea] sm:$0xff]  ;;  %v9119_v36 = vpack.c.bf16 %v9020_v50, %v9019_v30 }
 0xa1c   : > { %v9639_v13 = vpack.c.bf16 %v9538_v54, %v9537_v55  ;;  %v8596_v32 = vpack.c.bf16 %v8497_v49, %v8496_v19  ;;  %v8542_v57 = vld [vmem:[#allocation3 + $0x20] sm:$0xff] }
 0xa1d   : > { %9843 = vmatmul.bf16.gmra.mxu3 %v9638_v47  ;;  %10498 = vst [vmem:[#allocation3 + $0x1d0] sm:$0xff] %v10434_v1  ;;  %v10690_v21 = vadd.f32 %v10562_v61, %v10434_v1 }
 0xa1e   : > { %v10328_v9 = vpop.f32.mrf.mxu0 }
 0xa1f   : > { %10754 = vst [vmem:[%s15493_s4 + $0x108] sm:$0xff] %v10690_v21  ;;  %9326 = vmatmul.bf16.gmra.mxu2 %v9117_v38 }
 0xa20   : > { %v8761_v31 = vpop.f32.mrf.mxu1  ;;  %v9804_v22 = vpop.f32.mrf.mxu3 }
 0xa21   : > { %v9913_v11 = vadd.f32 %v9804_v22, %v9391_v7  ;;  %v8869_v33 = vadd.f32 %v8761_v31, %v8539_v15  ;;  %v8543_v31 = vld [vmem:[#allocation3 + $0x128] sm:$0xff] }
 0xa22   : > { %v9287_v37 = vpop.f32.mrf.mxu2 }
 0xa23   : > { %v10435_v8 = vadd.f32 %v10326_v16, %v9913_v11  ;;  %v9392_v4 = vadd.f32 %v9284_v46, %v8869_v33  ;;  %v10567_v11 = vld [vmem:[%s15493_s4 + $0x130] sm:$0xff] }
 0xa25   : > { %10499 = vst [vmem:[#allocation3 + $0x100] sm:$0xff] %v10435_v8  ;;  %v10691_v2 = vadd.f32 %v10563_v27, %v10435_v8  ;;  %v8499_v27 = vld [vmem:[#allocation2 + $0x30a] sm:$0xff] }
 0xa26   : > { %v10331_v60 = vpop.f32.mrf.mxu0 }
 0xa27   : > { %10755 = vst [vmem:[%s15493_s4 + $0x110] sm:$0xff] %v10691_v2  ;;  %v9541_v2 = vld [vmem:[#allocation2 + $0x301] sm:$0xff] }
 0xa28   : > { %v8764_v52 = vpop.f32.mrf.mxu1  ;;  %v9806_v44 = vpop.f32.mrf.mxu3 }
 0xa29   : > { %v9914_v42 = vadd.f32 %v9806_v44, %v9392_v4  ;;  %10370 = vmatmul.bf16.gmra.mxu0 %v8595_v59  ;;  %v8870_v41 = vadd.f32 %v8764_v52, %v8540_v39  ;;  %v9021_v52 = vld [vmem:[#allocation2 + $0x318] sm:$0xff]  ;;  %v9022_v44 = vld [vmem:[#allocation2 + $0x320] sm:$0xff] }
 0xa2a   : > { %v9289_v12 = vpop.f32.mrf.mxu2  ;;  %v10568_v39 = vld [vmem:[%s15493_s4 + $0x138] sm:$0xff] }
 0xa2b   : > { %8803 = vmatmul.bf16.gmra.mxu1 %v8594_v56  ;;  %v10436_v43 = vadd.f32 %v10328_v9, %v9914_v42  ;;  %v9393_v17 = vadd.f32 %v9287_v37, %v8870_v41  ;;  %v9540_v56 = vld [vmem:[#allocation2 + $0x2f1] sm:$0xff]  ;;  %v8498_v37 = vld [vmem:[#allocation2 + $0x302] sm:$0xff]  ;;  %v9120_v41 = vpack.c.bf16 %v9022_v44, %v9021_v52 }
 0xa2c   : > { %v9640_v10 = vpack.c.bf16 %v9540_v56, %v9539_v18  ;;  %v8597_v8 = vpack.c.bf16 %v8499_v27, %v8498_v37  ;;  %v8544_v42 = vld [vmem:[#allocation3 + $0x1a0] sm:$0xff] }
 0xa2d   : > { %9848 = vmatmul.bf16.gmra.mxu3 %v9639_v13  ;;  %10500 = vst [vmem:[#allocation3 + $0xc8] sm:$0xff] %v10436_v43  ;;  %v10692_v29 = vadd.f32 %v10564_v51, %v10436_v43 }
 0xa2e   : > { %v10333_v58 = vpop.f32.mrf.mxu0 }
 0xa2f   : > { %10756 = vst [vmem:[%s15493_s4 + $0x118] sm:$0xff] %v10692_v29  ;;  %9331 = vmatmul.bf16.gmra.mxu2 %v9118_v3 }
 0xa30   : > { %v8766_v35 = vpop.f32.mrf.mxu1  ;;  %v9809_v62 = vpop.f32.mrf.mxu3 }
 0xa31   : > { %v9915_v6 = vadd.f32 %v9809_v62, %v9393_v17  ;;  %v8871_v14 = vadd.f32 %v8766_v35, %v8541_v26  ;;  %v8545_v35 = vld [vmem:[#allocation3 + $0x1f0] sm:$0xff] }
 0xa32   : > { %v9292_v0 = vpop.f32.mrf.mxu2 }
 0xa33   : > { %v10437_v25 = vadd.f32 %v10331_v60, %v9915_v6  ;;  %v9394_v24 = vadd.f32 %v9289_v12, %v8871_v14  ;;  %v10569_v6 = vld [vmem:[%s15493_s4 + $0x140] sm:$0xff] }
 0xa35   : > { %10501 = vst [vmem:[#allocation3 + $0x40] sm:$0xff] %v10437_v25  ;;  %v10693_v34 = vadd.f32 %v10565_v53, %v10437_v25  ;;  %v8501_v53 = vld [vmem:[#allocation2 + $0x322] sm:$0xff] }
 0xa36   : > { %v10336_v5 = vpop.f32.mrf.mxu0 }
 0xa37   : > { %10757 = vst [vmem:[%s15493_s4 + $0x120] sm:$0xff] %v10693_v34  ;;  %v9543_v34 = vld [vmem:[#allocation2 + $0x319] sm:$0xff] }
 0xa38   : > { %v8769_v16 = vpop.f32.mrf.mxu1  ;;  %v9811_v45 = vpop.f32.mrf.mxu3 }
 0xa39   : > { %v9916_v48 = vadd.f32 %v9811_v45, %v9394_v24  ;;  %10375 = vmatmul.bf16.gmra.mxu0 %v8596_v32  ;;  %v8872_v46 = vadd.f32 %v8769_v16, %v8542_v57  ;;  %v9023_v16 = vld [vmem:[#allocation2 + $0x330] sm:$0xff]  ;;  %v9024_v45 = vld [vmem:[#allocation2 + $0x338] sm:$0xff]  ;;  %v10570_v57 = vld [vmem:[%s15493_s4 + $0x148] sm:$0xff] }
 0xa3a   : > { %v9294_v47 = vpop.f32.mrf.mxu2 }
 0xa3b   : > { %8808 = vmatmul.bf16.gmra.mxu1 %v8595_v59  ;;  %v10438_v61 = vadd.f32 %v10333_v58, %v9916_v48  ;;  %v9395_v21 = vadd.f32 %v9292_v0, %v8872_v46  ;;  %v9542_v59 = vld [vmem:[#allocation2 + $0x309] sm:$0xff]  ;;  %v8500_v0 = vld [vmem:[#allocation2 + $0x31a] sm:$0xff]  ;;  %v9121_v46 = vpack.c.bf16 %v9024_v45, %v9023_v16 }
 0xa3c   : > { %v9641_v23 = vpack.c.bf16 %v9542_v59, %v9541_v2  ;;  %v8598_v25 = vpack.c.bf16 %v8501_v53, %v8500_v0  ;;  %v8546_v48 = vld [vmem:[#allocation3 + $0xe8] sm:$0xff]  ;;  %v8550_v16 = vld [vmem:[#allocation3 + $0x1d8] sm:$0xff] }
 0xa3d   : > { %9853 = vmatmul.bf16.gmra.mxu3 %v9640_v10  ;;  %10502 = vst [vmem:[#allocation3 + $0x1f8] sm:$0xff] %v10438_v61  ;;  %v10694_v1 = vadd.f32 %v10566_v28, %v10438_v61 }
 0xa3e   : > { %v10338_v38 = vpop.f32.mrf.mxu0 }
 0xa3f   : > { %10758 = vst [vmem:[%s15493_s4 + $0x128] sm:$0xff] %v10694_v1  ;;  %9336 = vmatmul.bf16.gmra.mxu2 %v9119_v36 }
 0xa40   : > { %v8771_v9 = vpop.f32.mrf.mxu1  ;;  %v9814_v7 = vpop.f32.mrf.mxu3 }
 0xa41   : > { %v9917_v22 = vadd.f32 %v9814_v7, %v9395_v21  ;;  %v8873_v20 = vadd.f32 %v8771_v9, %v8543_v31  ;;  %v8547_v9 = vld [vmem:[#allocation3 + $0x78] sm:$0xff] }
 0xa42   : > { %v9297_v15 = vpop.f32.mrf.mxu2 }
 0xa43   : > { %v10439_v63 = vadd.f32 %v10336_v5, %v9917_v22  ;;  %v9396_v54 = vadd.f32 %v9294_v47, %v8873_v20  ;;  %v10571_v22 = vld [vmem:[%s15493_s4 + $0x150] sm:$0xff] }
 0xa45   : > { %10503 = vst [vmem:[#allocation3 + $0x20] sm:$0xff] %v10439_v63  ;;  %v10695_v33 = vadd.f32 %v10567_v11, %v10439_v63  ;;  %v8503_v11 = vld [vmem:[#allocation2 + $0x33a] sm:$0xff] }
 0xa46   : > { %v10341_v55 = vpop.f32.mrf.mxu0 }
 0xa47   : > { %10759 = vst [vmem:[%s15493_s4 + $0x130] sm:$0xff] %v10695_v33  ;;  %v9545_v33 = vld [vmem:[#allocation2 + $0x331] sm:$0xff] }
 0xa48   : > { %v8774_v60 = vpop.f32.mrf.mxu1  ;;  %v9816_v4 = vpop.f32.mrf.mxu3 }
 0xa49   : > { %v9918_v40 = vadd.f32 %v9816_v4, %v9396_v54  ;;  %10380 = vmatmul.bf16.gmra.mxu0 %v8597_v8  ;;  %v8874_v12 = vadd.f32 %v8774_v60, %v8544_v42  ;;  %v9025_v60 = vld [vmem:[#allocation2 + $0x348] sm:$0xff]  ;;  %v9026_v4 = vld [vmem:[#allocation2 + $0x350] sm:$0xff]  ;;  %v10572_v42 = vld [vmem:[%s15493_s4 + $0x158] sm:$0xff] }
 0xa4a   : > { %v9299_v13 = vpop.f32.mrf.mxu2 }
 0xa4b   : > { %8813 = vmatmul.bf16.gmra.mxu1 %v8596_v32  ;;  %v10440_v51 = vadd.f32 %v10338_v38, %v9918_v40  ;;  %v9397_v29 = vadd.f32 %v9297_v15, %v8874_v12  ;;  %v9544_v32 = vld [vmem:[#allocation2 + $0x321] sm:$0xff]  ;;  %v8502_v15 = vld [vmem:[#allocation2 + $0x332] sm:$0xff]  ;;  %v9122_v12 = vpack.c.bf16 %v9026_v4, %v9025_v60 }
 0xa4c   : > { %v9642_v50 = vpack.c.bf16 %v9544_v32, %v9543_v34  ;;  %v8599_v63 = vpack.c.bf16 %v8503_v11, %v8502_v15  ;;  %v8548_v40 = vld [vmem:[#allocation3 + $0x70] sm:$0xff] }
 0xa4d   : > { %9858 = vmatmul.bf16.gmra.mxu3 %v9641_v23  ;;  %10504 = vst [vmem:[#allocation3 + $0x128] sm:$0xff] %v10440_v51  ;;  %v10696_v43 = vadd.f32 %v10568_v39, %v10440_v51 }
 0xa4e   : > { %v10343_v3 = vpop.f32.mrf.mxu0 }
 0xa4f   : > { %10760 = vst [vmem:[%s15493_s4 + $0x138] sm:$0xff] %v10696_v43  ;;  %9341 = vmatmul.bf16.gmra.mxu2 %v9120_v41 }
 0xa50   : > { %v8776_v58 = vpop.f32.mrf.mxu1  ;;  %v9819_v17 = vpop.f32.mrf.mxu3 }
 0xa51   : > { %v9919_v62 = vadd.f32 %v9819_v17, %v9397_v29  ;;  %v8875_v19 = vadd.f32 %v8776_v58, %v8545_v35  ;;  %v8549_v58 = vld [vmem:[#allocation3 + $0x90] sm:$0xff] }
 0xa52   : > { %v9302_v26 = vpop.f32.mrf.mxu2 }
 0xa53   : > { %v10441_v49 = vadd.f32 %v10341_v55, %v9919_v62  ;;  %v9398_v56 = vadd.f32 %v9299_v13, %v8875_v19  ;;  %v10573_v62 = vld [vmem:[%s15493_s4 + $0x160] sm:$0xff] }
 0xa55   : > { %10505 = vst [vmem:[#allocation3 + $0x1a0] sm:$0xff] %v10441_v49  ;;  %v10697_v14 = vadd.f32 %v10569_v6, %v10441_v49  ;;  %v10070_v6 = vld [vmem:[#allocation2 + $0x352] sm:$0xff] }
 0xa56   : > { %v10346_v18 = vpop.f32.mrf.mxu0 }
 0xa57   : > { %10761 = vst [vmem:[%s15493_s4 + $0x140] sm:$0xff] %v10697_v14  ;;  %v9547_v14 = vld [vmem:[#allocation2 + $0x349] sm:$0xff] }
 0xa58   : > { %v8779_v5 = vpop.f32.mrf.mxu1  ;;  %v9821_v24 = vpop.f32.mrf.mxu3 }
 0xa59   : > { %v9920_v30 = vadd.f32 %v9821_v24, %v9398_v56  ;;  %10385 = vmatmul.bf16.gmra.mxu0 %v8598_v25  ;;  %v8876_v47 = vadd.f32 %v8779_v5, %v8546_v48 }
 0xa5a   : > { %v9304_v10 = vpop.f32.mrf.mxu2 }
 0xa5b   : > { %8818 = vmatmul.bf16.gmra.mxu1 %v8597_v8  ;;  %v10442_v28 = vadd.f32 %v10343_v3, %v9920_v30  ;;  %v9399_v1 = vadd.f32 %v9302_v26, %v8876_v47  ;;  %v9546_v8 = vld [vmem:[#allocation2 + $0x339] sm:$0xff]  ;;  %v10069_v26 = vld [vmem:[#allocation2 + $0x34a] sm:$0xff] }
 0xa5c   : > { %v9643_v44 = vpack.c.bf16 %v9546_v8, %v9545_v33  ;;  %v10166_v49 = vpack.c.bf16 %v10070_v6, %v10069_v26  ;;  %v10574_v30 = vld [vmem:[%s15493_s4 + $0x168] sm:$0xff] }
 0xa5d   : > { %9863 = vmatmul.bf16.gmra.mxu3 %v9642_v50  ;;  %10506 = vst [vmem:[#allocation3 + $0x1f0] sm:$0xff] %v10442_v28  ;;  %v10698_v61 = vadd.f32 %v10570_v57, %v10442_v28 }
 0xa5e   : > { %v10348_v36 = vpop.f32.mrf.mxu0 }
 0xa5f   : > { %10762 = vst [vmem:[%s15493_s4 + $0x148] sm:$0xff] %v10698_v61  ;;  %9346 = vmatmul.bf16.gmra.mxu2 %v9121_v46 }
 0xa60   : > { %v8781_v38 = vpop.f32.mrf.mxu1  ;;  %v9824_v21 = vpop.f32.mrf.mxu3 }
 0xa61   : > { %v9921_v7 = vadd.f32 %v9824_v21, %v9399_v1  ;;  %v8877_v37 = vadd.f32 %v8781_v38, %v8547_v9  ;;  %v10575_v38 = vld [vmem:[%s15493_s4 + $0x170] sm:$0xff] }
 0xa62   : > { %v9307_v31 = vpop.f32.mrf.mxu2 }
 0xa63   : > { %v10443_v27 = vadd.f32 %v10346_v18, %v9921_v7  ;;  %v9400_v59 = vadd.f32 %v9304_v10, %v8877_v37 }
 0xa65   : > { %10507 = vst [vmem:[#allocation3 + $0xe8] sm:$0xff] %v10443_v27  ;;  %v10699_v20 = vadd.f32 %v10571_v22, %v10443_v27  ;;  %v8552_v27 = vld [vmem:[#allocation3 + $0xb8] sm:$0xff] }
 0xa66   : > { %v10351_v2 = vpop.f32.mrf.mxu0 }
 0xa67   : > { %10763 = vst [vmem:[%s15493_s4 + $0x150] sm:$0xff] %v10699_v20 }
 0xa68   : > { %v8784_v55 = vpop.f32.mrf.mxu1  ;;  %v9826_v54 = vpop.f32.mrf.mxu3 }
 0xa69   : > { %v9922_v52 = vadd.f32 %v9826_v54, %v9400_v59  ;;  %10390 = vmatmul.bf16.gmra.mxu0 %v8599_v63  ;;  %v8878_v13 = vadd.f32 %v8784_v55, %v8548_v40  ;;  %v10577_v40 = vld [vmem:[%s15493_s4 + $0x180] sm:$0xff] }
 0xa6a   : > { %v9309_v23 = vpop.f32.mrf.mxu2 }
 0xa6b   : > { %8823 = vmatmul.bf16.gmra.mxu1 %v8598_v25  ;;  %v10444_v39 = vadd.f32 %v10348_v36, %v9922_v52  ;;  %v9401_v43 = vadd.f32 %v9307_v31, %v8878_v13  ;;  %v9548_v25 = vld [vmem:[#allocation2 + $0x351] sm:$0xff]  ;;  %v8553_v52 = vld [vmem:[#allocation3 + $0x88] sm:$0xff] }
 0xa6c   : > { %v9644_v24 = vpack.c.bf16 %v9548_v25, %v9547_v14  ;;  %v8551_v36 = vld [vmem:[#allocation3 + $0xd0] sm:$0xff] }
 0xa6d   : > { %9868 = vmatmul.bf16.gmra.mxu3 %v9643_v44  ;;  %10508 = vst [vmem:[#allocation3 + $0x78] sm:$0xff] %v10444_v39  ;;  %v10700_v51 = vadd.f32 %v10572_v42, %v10444_v39  ;;  %v10579_v25 = vld [vmem:[%s15493_s4 + $0x190] sm:$0xff] }
 0xa6e   : > { %v10353_v41 = vpop.f32.mrf.mxu0 }
 0xa6f   : > { %10764 = vst [vmem:[%s15493_s4 + $0x158] sm:$0xff] %v10700_v51  ;;  %9351 = vmatmul.bf16.gmra.mxu2 %v9122_v12 }
 0xa70   : > { %v8786_v3 = vpop.f32.mrf.mxu1  ;;  %v9829_v29 = vpop.f32.mrf.mxu3 }
 0xa71   : > { %v9923_v17 = vadd.f32 %v9829_v29, %v9401_v43  ;;  %v8879_v0 = vadd.f32 %v8786_v3, %v8549_v58  ;;  %v8554_v3 = vld [vmem:[#allocation3 + $0xa8] sm:$0xff] }
 0xa72   : > { %v9312_v35 = vpop.f32.mrf.mxu2  ;;  %v10578_v58 = vld [vmem:[%s15493_s4 + $0x188] sm:$0xff] }
 0xa73   : > { %v10445_v53 = vadd.f32 %v10351_v2, %v9923_v17  ;;  %v9402_v32 = vadd.f32 %v9309_v23, %v8879_v0 }
 0xa75   : > { %10509 = vst [vmem:[#allocation3 + $0x70] sm:$0xff] %v10445_v53  ;;  %v10701_v19 = vadd.f32 %v10573_v62, %v10445_v53 }
 0xa76   : > { %v10356_v34 = vpop.f32.mrf.mxu0 }
 0xa77   : > { %10765 = vst [vmem:[%s15493_s4 + $0x160] sm:$0xff] %v10701_v19 }
 0xa78   : > { %v8789_v18 = vpop.f32.mrf.mxu1  ;;  %v9831_v56 = vpop.f32.mrf.mxu3 }
 0xa79   : > { %v9924_v5 = vadd.f32 %v9831_v56, %v9402_v32  ;;  %10395 = vmatmul.bf16.gmra.mxu0 %v10166_v49  ;;  %v8880_v50 = vadd.f32 %v8789_v18, %v8550_v16  ;;  %v8555_v49 = vld [vmem:[#allocation3 + $0x1c8] sm:$0xff] }
 0xa7a   : > { %v9314_v45 = vpop.f32.mrf.mxu2 }
 0xa7b   : > { %8828 = vmatmul.bf16.gmra.mxu1 %v8599_v63  ;;  %v10446_v48 = vadd.f32 %v10353_v41, %v9924_v5  ;;  %v9403_v47 = vadd.f32 %v9312_v35, %v8880_v50  ;;  %v10576_v63 = vld [vmem:[%s15493_s4 + $0x178] sm:$0xff] }
 0xa7d   : > { %9873 = vmatmul.bf16.gmra.mxu3 %v9644_v24  ;;  %10510 = vst [vmem:[#allocation3 + $0x90] sm:$0xff] %v10446_v48  ;;  %v10702_v10 = vadd.f32 %v10574_v30, %v10446_v48  ;;  %v8556_v30 = vld [vmem:[#allocation3 + $0x170] sm:$0xff]  ;;  %v10580_v48 = vld [vmem:[%s15493_s4 + $0x198] sm:$0xff] }
 0xa7e   : > { %v10358_v57 = vpop.f32.mrf.mxu0 }
 0xa7f   : > { %10766 = vst [vmem:[%s15493_s4 + $0x168] sm:$0xff] %v10702_v10 }
 0xa80   : > { %v8791_v28 = vpop.f32.mrf.mxu1  ;;  %v9834_v46 = vpop.f32.mrf.mxu3 }
 0xa81   : > { %v9925_v61 = vadd.f32 %v9834_v46, %v9403_v47  ;;  %v8881_v21 = vadd.f32 %v8791_v28, %v8551_v36 }
 0xa82   : > { %v9317_v1 = vpop.f32.mrf.mxu2 }
 0xa83   : > { %v10447_v9 = vadd.f32 %v10356_v34, %v9925_v61  ;;  %v9404_v22 = vadd.f32 %v9314_v45, %v8881_v21 }
 0xa85   : > { %10511 = vst [vmem:[#allocation3 + $0x1d8] sm:$0xff] %v10447_v9  ;;  %v10703_v7 = vadd.f32 %v10575_v38, %v10447_v9  ;;  %v8557_v38 = vld [vmem:[#allocation3 + $0x178] sm:$0xff]  ;;  %v10581_v9 = vld [vmem:[%s15493_s4 + $0x1a0] sm:$0xff] }
 0xa86   : > { %v10361_v31 = vpop.f32.mrf.mxu0 }
 0xa87   : > { %10767 = vst [vmem:[%s15493_s4 + $0x170] sm:$0xff] %v10703_v7 }
 0xa88   : > { %v8794_v15 = vpop.f32.mrf.mxu1  ;;  %v9836_v11 = vpop.f32.mrf.mxu3 }
 0xa89   : > { %v9926_v37 = vadd.f32 %v9836_v11, %v9404_v22  ;;  %v8882_v33 = vadd.f32 %v8794_v15, %v8552_v27 }
 0xa8a   : > { %v9319_v20 = vpop.f32.mrf.mxu2 }
 0xa8b   : > { %v10448_v8 = vadd.f32 %v10358_v57, %v9926_v37  ;;  %v9405_v55 = vadd.f32 %v9317_v1, %v8882_v33 }
 0xa8d   : > { %10512 = vst [vmem:[#allocation3 + $0xd0] sm:$0xff] %v10448_v8  ;;  %v10704_v2 = vadd.f32 %v10576_v63, %v10448_v8  ;;  %v8558_v63 = vld [vmem:[#allocation3 + $0x68] sm:$0xff] }
 0xa8e   : > { %v10363_v59 = vpop.f32.mrf.mxu0  ;;  %v10582_v8 = vld [vmem:[%s15493_s4 + $0x1a8] sm:$0xff] }
 0xa8f   : > { %10768 = vst [vmem:[%s15493_s4 + $0x178] sm:$0xff] %v10704_v2 }
 0xa90   : > { %v8796_v54 = vpop.f32.mrf.mxu1  ;;  %v9839_v60 = vpop.f32.mrf.mxu3 }
 0xa91   : > { %v9927_v4 = vadd.f32 %v9839_v60, %v9405_v55  ;;  %v8883_v23 = vadd.f32 %v8796_v54, %v8553_v52 }
 0xa92   : > { %v9322_v44 = vpop.f32.mrf.mxu2 }
 0xa93   : > { %v10449_v42 = vadd.f32 %v10361_v31, %v9927_v4  ;;  %v9406_v12 = vadd.f32 %v9319_v20, %v8883_v23 }
 0xa95   : > { %10513 = vst [vmem:[#allocation3 + $0xb8] sm:$0xff] %v10449_v42  ;;  %v10705_v13 = vadd.f32 %v10577_v40, %v10449_v42  ;;  %v8559_v40 = vld [vmem:[#allocation3 + $0x190] sm:$0xff] }
 0xa96   : > { %v10366_v39 = vpop.f32.mrf.mxu0  ;;  %v10583_v42 = vld [vmem:[%s15493_s4 + $0x1b0] sm:$0xff] }
 0xa97   : > { %10769 = vst [vmem:[%s15493_s4 + $0x180] sm:$0xff] %v10705_v13 }
 0xa98   : > { %v8799_v51 = vpop.f32.mrf.mxu1  ;;  %v9841_v41 = vpop.f32.mrf.mxu3 }
 0xa99   : > { %v9928_v43 = vadd.f32 %v9841_v41, %v9406_v12  ;;  %v8884_v17 = vadd.f32 %v8799_v51, %v8554_v3 }
 0xa9a   : > { %v9324_v29 = vpop.f32.mrf.mxu2 }
 0xa9b   : > { %v10450_v35 = vadd.f32 %v10363_v59, %v9928_v43  ;;  %v9407_v6 = vadd.f32 %v9322_v44, %v8884_v17 }
 0xa9d   : > { %10514 = vst [vmem:[#allocation3 + $0x88] sm:$0xff] %v10450_v35  ;;  %v10706_v62 = vadd.f32 %v10578_v58, %v10450_v35  ;;  %v8560_v58 = vld [vmem:[#allocation3 + $0x198] sm:$0xff] }
 0xa9e   : > { %v10368_v26 = vpop.f32.mrf.mxu0  ;;  %v10584_v35 = vld [vmem:[%s15493_s4 + $0x1b8] sm:$0xff] }
 0xa9f   : > { %10770 = vst [vmem:[%s15493_s4 + $0x188] sm:$0xff] %v10706_v62 }
 0xaa0   : > { %v8801_v0 = vpop.f32.mrf.mxu1  ;;  %v9844_v53 = vpop.f32.mrf.mxu3 }
 0xaa1   : > { %v9929_v19 = vadd.f32 %v9844_v53, %v9407_v6  ;;  %v8885_v34 = vadd.f32 %v8801_v0, %v8555_v49 }
 0xaa2   : > { %v9327_v14 = vpop.f32.mrf.mxu2 }
 0xaa3   : > { %v10451_v32 = vadd.f32 %v10366_v39, %v9929_v19  ;;  %v9408_v5 = vadd.f32 %v9324_v29, %v8885_v34  ;;  %v10585_v34 = vld [vmem:[%s15493_s4 + $0x1c0] sm:$0xff] }
 0xaa5   : > { %10515 = vst [vmem:[#allocation3 + $0xa8] sm:$0xff] %v10451_v32  ;;  %v10707_v18 = vadd.f32 %v10579_v25, %v10451_v32  ;;  %v8561_v25 = vld [vmem:[#allocation3 + $0x38] sm:$0xff] }
 0xaa6   : > { %v10371_v56 = vpop.f32.mrf.mxu0 }
 0xaa7   : > { %10771 = vst [vmem:[%s15493_s4 + $0x190] sm:$0xff] %v10707_v18 }
 0xaa8   : > { %v8804_v24 = vpop.f32.mrf.mxu1  ;;  %v9846_v16 = vpop.f32.mrf.mxu3 }
 0xaa9   : > { %v9930_v45 = vadd.f32 %v9846_v16, %v9408_v5  ;;  %v8886_v10 = vadd.f32 %v8804_v24, %v8556_v30 }
 0xaaa   : > { %v9329_v50 = vpop.f32.mrf.mxu2 }
 0xaab   : > { %v10452_v57 = vadd.f32 %v10368_v26, %v9930_v45  ;;  %v9409_v46 = vadd.f32 %v9327_v14, %v8886_v10  ;;  %v10586_v10 = vld [vmem:[%s15493_s4 + $0x1c8] sm:$0xff] }
 0xaad   : > { %10516 = vst [vmem:[#allocation3 + $0x1c8] sm:$0xff] %v10452_v57  ;;  %v10708_v47 = vadd.f32 %v10580_v48, %v10452_v57  ;;  %v8562_v48 = vld [vmem:[#allocation3 + $0xc0] sm:$0xff] }
 0xaae   : > { %v10373_v28 = vpop.f32.mrf.mxu0 }
 0xaaf   : > { %10772 = vst [vmem:[%s15493_s4 + $0x198] sm:$0xff] %v10708_v47 }
 0xab0   : > { %v8806_v61 = vpop.f32.mrf.mxu1  ;;  %v9849_v36 = vpop.f32.mrf.mxu3 }
 0xab1   : > { %v9931_v1 = vadd.f32 %v9849_v36, %v9409_v46  ;;  %v8887_v7 = vadd.f32 %v8806_v61, %v8557_v38 }
 0xab2   : > { %v9332_v21 = vpop.f32.mrf.mxu2 }
 0xab3   : > { %v10453_v31 = vadd.f32 %v10371_v56, %v9931_v1  ;;  %v9410_v11 = vadd.f32 %v9329_v50, %v8887_v7  ;;  %v10587_v7 = vld [vmem:[%s15493_s4 + $0x1d0] sm:$0xff] }
 0xab5   : > { %10517 = vst [vmem:[#allocation3 + $0x170] sm:$0xff] %v10453_v31  ;;  %v10709_v22 = vadd.f32 %v10581_v9, %v10453_v31  ;;  %v8563_v9 = vld [vmem:[#allocation3 + $0x1c0] sm:$0xff] }
 0xab6   : > { %v10376_v15 = vpop.f32.mrf.mxu0 }
 0xab7   : > { %10773 = vst [vmem:[%s15493_s4 + $0x1a0] sm:$0xff] %v10709_v22 }
 0xab8   : > { %v8809_v37 = vpop.f32.mrf.mxu1  ;;  %v9851_v27 = vpop.f32.mrf.mxu3 }
 0xab9   : > { %v9932_v20 = vadd.f32 %v9851_v27, %v9410_v11  ;;  %v8888_v2 = vadd.f32 %v8809_v37, %v8558_v63 }
 0xaba   : > { %v9334_v33 = vpop.f32.mrf.mxu2 }
 0xabb   : > { %v10454_v59 = vadd.f32 %v10373_v28, %v9932_v20  ;;  %v9411_v60 = vadd.f32 %v9332_v21, %v8888_v2 }
 0xabd   : > { %10518 = vst [vmem:[#allocation3 + $0x178] sm:$0xff] %v10454_v59  ;;  %v10710_v55 = vadd.f32 %v10582_v8, %v10454_v59  ;;  %v10588_v8 = vld [vmem:[%s15493_s4 + $0x1d8] sm:$0xff] }
 0xabe   : > { %v10378_v54 = vpop.f32.mrf.mxu0 }
 0xabf   : > { %10774 = vst [vmem:[%s15493_s4 + $0x1a8] sm:$0xff] %v10710_v55 }
 0xac0   : > { %v8811_v4 = vpop.f32.mrf.mxu1  ;;  %v9854_v52 = vpop.f32.mrf.mxu3 }
 0xac1   : > { %v9933_v44 = vadd.f32 %v9854_v52, %v9411_v60  ;;  %v8889_v13 = vadd.f32 %v8811_v4, %v8559_v40  ;;  %v8565_v40 = vld [vmem:[#allocation3 + $0x10] sm:$0xff] }
 0xac2   : > { %v9337_v23 = vpop.f32.mrf.mxu2 }
 0xac3   : > { %v10455_v39 = vadd.f32 %v10376_v15, %v9933_v44  ;;  %v9412_v41 = vadd.f32 %v9334_v33, %v8889_v13  ;;  %v8564_v33 = vld [vmem:[#allocation3 + $0x158] sm:$0xff] }
 0xac5   : > { %10519 = vst [vmem:[#allocation3 + $0x68] sm:$0xff] %v10455_v39  ;;  %v10711_v12 = vadd.f32 %v10583_v42, %v10455_v39  ;;  %v10589_v42 = vld [vmem:[%s15493_s4 + $0x1e0] sm:$0xff] }
 0xac6   : > { %v10381_v51 = vpop.f32.mrf.mxu0 }
 0xac7   : > { %10775 = vst [vmem:[%s15493_s4 + $0x1b0] sm:$0xff] %v10711_v12 }
 0xac8   : > { %v8814_v43 = vpop.f32.mrf.mxu1  ;;  %v9856_v3 = vpop.f32.mrf.mxu3 }
 0xac9   : > { %v9934_v29 = vadd.f32 %v9856_v3, %v9412_v41  ;;  %v8890_v62 = vadd.f32 %v8814_v43, %v8560_v58  ;;  %v8566_v58 = vld [vmem:[#allocation3 + $0x58] sm:$0xff] }
 0xaca   : > { %v9339_v17 = vpop.f32.mrf.mxu2 }
 0xacb   : > { %v10456_v26 = vadd.f32 %v10378_v54, %v9934_v29  ;;  %v9413_v53 = vadd.f32 %v9337_v23, %v8890_v62 }
 0xacd   : > { %10520 = vst [vmem:[#allocation3 + $0x190] sm:$0xff] %v10456_v26  ;;  %v10712_v6 = vadd.f32 %v10584_v35, %v10456_v26 }
 0xace   : > { %v10383_v0 = vpop.f32.mrf.mxu0 }
 0xacf   : > { %10776 = vst [vmem:[%s15493_s4 + $0x1b8] sm:$0xff] %v10712_v6 }
 0xad0   : > { %v8816_v19 = vpop.f32.mrf.mxu1  ;;  %v9859_v49 = vpop.f32.mrf.mxu3 }
 0xad1   : > { %v9935_v14 = vadd.f32 %v9859_v49, %v9413_v53  ;;  %v8891_v32 = vadd.f32 %v8816_v19, %v8561_v25  ;;  %v8567_v25 = vld [vmem:[#allocation3 + $0xa0] sm:$0xff] }
 0xad2   : > { %v9342_v18 = vpop.f32.mrf.mxu2 }
 0xad3   : > { %v10457_v56 = vadd.f32 %v10381_v51, %v9935_v14  ;;  %v9414_v24 = vadd.f32 %v9339_v17, %v8891_v32  ;;  %v10590_v17 = vld [vmem:[%s15493_s4 + $0x1e8] sm:$0xff] }
 0xad5   : > { %10521 = vst [vmem:[#allocation3 + $0x198] sm:$0xff] %v10457_v56  ;;  %v10713_v5 = vadd.f32 %v10585_v34, %v10457_v56  ;;  %v10591_v34 = vld [vmem:[%s15493_s4 + $0x1f0] sm:$0xff] }
 0xad6   : > { %v10386_v16 = vpop.f32.mrf.mxu0 }
 0xad7   : > { %10777 = vst [vmem:[%s15493_s4 + $0x1c0] sm:$0xff] %v10713_v5 }
 0xad8   : > { %v8819_v45 = vpop.f32.mrf.mxu1  ;;  %v9861_v30 = vpop.f32.mrf.mxu3 }
 0xad9   : > { %v9936_v50 = vadd.f32 %v9861_v30, %v9414_v24  ;;  %v8892_v57 = vadd.f32 %v8819_v45, %v8562_v48 }
 0xada   : > { %v9344_v28 = vpop.f32.mrf.mxu2 }
 0xadb   : > { %v10458_v47 = vadd.f32 %v10383_v0, %v9936_v50  ;;  %v9415_v61 = vadd.f32 %v9342_v18, %v8892_v57  ;;  %v10592_v50 = vld [vmem:[%s15493_s4 + $0x1f8] sm:$0xff] }
 0xadd   : > { %10522 = vst [vmem:[#allocation3 + $0x38] sm:$0xff] %v10458_v47  ;;  %v10714_v46 = vadd.f32 %v10586_v10, %v10458_v47 }
 0xade   : > { %v10388_v21 = vpop.f32.mrf.mxu0 }
 0xadf   : > { %10778 = vst [vmem:[%s15493_s4 + $0x1c8] sm:$0xff] %v10714_v46 }
 0xae0   : > { %v8821_v36 = vpop.f32.mrf.mxu1  ;;  %v9864_v1 = vpop.f32.mrf.mxu3 }
 0xae1   : > { %v9937_v38 = vadd.f32 %v9864_v1, %v9415_v61  ;;  %v8893_v31 = vadd.f32 %v8821_v36, %v8563_v9 }
 0xae2   : > { %v9347_v37 = vpop.f32.mrf.mxu2 }
 0xae3   : > { %v10459_v22 = vadd.f32 %v10386_v16, %v9937_v38  ;;  %v9416_v11 = vadd.f32 %v9344_v28, %v8893_v31 }
 0xae5   : > { %10523 = vst [vmem:[#allocation3 + $0xc0] sm:$0xff] %v10459_v22  ;;  %v10715_v15 = vadd.f32 %v10587_v7, %v10459_v22 }
 0xae6   : > { %v10391_v55 = vpop.f32.mrf.mxu0 }
 0xae7   : > { %10779 = vst [vmem:[%s15493_s4 + $0x1d0] sm:$0xff] %v10715_v15 }
 0xae8   : > { %v8824_v27 = vpop.f32.mrf.mxu1  ;;  %v9866_v20 = vpop.f32.mrf.mxu3 }
 0xae9   : > { %v9938_v63 = vadd.f32 %v9866_v20, %v9416_v11  ;;  %v8894_v2 = vadd.f32 %v8824_v27, %v8564_v33 }
 0xaea   : > { %v9349_v23 = vpop.f32.mrf.mxu2 }
 0xaeb   : > { %v10460_v59 = vadd.f32 %v10388_v21, %v9938_v63  ;;  %v9417_v60 = vadd.f32 %v9347_v37, %v8894_v2 }
 0xaed   : > { %10524 = vst [vmem:[#allocation3 + $0x1c0] sm:$0xff] %v10460_v59  ;;  %v10716_v54 = vadd.f32 %v10588_v8, %v10460_v59 }
 0xaee   : > { %v10393_v51 = vpop.f32.mrf.mxu0 }
 0xaef   : > { %10780 = vst [vmem:[%s15493_s4 + $0x1d8] sm:$0xff] %v10716_v54 }
 0xaf0   : > { %v8826_v4 = vpop.f32.mrf.mxu1  ;;  %v9869_v52 = vpop.f32.mrf.mxu3 }
 0xaf1   : > { %v9939_v44 = vadd.f32 %v9869_v52, %v9417_v60  ;;  %v8895_v13 = vadd.f32 %v8826_v4, %v8565_v40 }
 0xaf2   : > { %v9352_v26 = vpop.f32.mrf.mxu2 }
 0xaf3   : > { %v10461_v39 = vadd.f32 %v10391_v55, %v9939_v44  ;;  %v9418_v41 = vadd.f32 %v9349_v23, %v8895_v13 }
 0xaf5   : > { %10525 = vst [vmem:[#allocation3 + $0x158] sm:$0xff] %v10461_v39  ;;  %v10717_v12 = vadd.f32 %v10589_v42, %v10461_v39 }
 0xaf6   : > { %v10396_v53 = vpop.f32.mrf.mxu0 }
 0xaf7   : > { %10781 = vst [vmem:[%s15493_s4 + $0x1e0] sm:$0xff] %v10717_v12 }
 0xaf8   : > { %v8829_v43 = vpop.f32.mrf.mxu1  ;;  %v9871_v3 = vpop.f32.mrf.mxu3 }
 0xaf9   : > { %v9940_v29 = vadd.f32 %v9871_v3, %v9418_v41  ;;  %v8896_v35 = vadd.f32 %v8829_v43, %v8566_v58 }
 0xafa   : > { %v9354_v5 = vpop.f32.mrf.mxu2 }
 0xafb   : > { %v10462_v62 = vadd.f32 %v10393_v51, %v9940_v29  ;;  %v9419_v0 = vadd.f32 %v9352_v26, %v8896_v35 }
 0xafd   : > { %10526 = vst [vmem:[#allocation3 + $0x10] sm:$0xff] %v10462_v62  ;;  %v10718_v6 = vadd.f32 %v10590_v17, %v10462_v62 }
 0xafe   : > { %v10398_v30 = vpop.f32.mrf.mxu0 }
 0xaff   : > { %10782 = vst [vmem:[%s15493_s4 + $0x1e8] sm:$0xff] %v10718_v6 }
 0xb00   : > { %v8831_v19 = vpop.f32.mrf.mxu1  ;;  %v9874_v49 = vpop.f32.mrf.mxu3 }
 0xb01   : > { %v9941_v14 = vadd.f32 %v9874_v49, %v9419_v0  ;;  %v8897_v32 = vadd.f32 %v8831_v19, %v8567_v25 }
 0xb03   : > { %v10463_v18 = vadd.f32 %v10396_v53, %v9941_v14  ;;  %v9420_v24 = vadd.f32 %v9354_v5, %v8897_v32 }
 0xb05   : > { %10527 = vst [vmem:[#allocation3 + $0x58] sm:$0xff] %v10463_v18  ;;  %v10719_v56 = vadd.f32 %v10591_v34, %v10463_v18 }
 0xb07   : > { %10783 = vst [vmem:[%s15493_s4 + $0x1f0] sm:$0xff] %v10719_v56 }
 0xb08   : > { %v9876_v16 = vpop.f32.mrf.mxu3 }
 0xb09   : > { %v9942_v45 = vadd.f32 %v9876_v16, %v9420_v24 }
 0xb0b   : > { %v10464_v48 = vadd.f32 %v10398_v30, %v9942_v45 }
 0xb0d   : > { %10528 = vst [vmem:[#allocation3 + $0xa0] sm:$0xff] %v10464_v48  ;;  %v10720_v10 = vadd.f32 %v10592_v50, %v10464_v48 }
 0xb0f   : > { %10784 = vst [vmem:[%s15493_s4 + $0x1f8] sm:$0xff] %v10720_v10 }
 0xb10 PF: > { %s14_s15 = sadd.s32 1, %s12280_s15  }
 0xb11   : > { %p11_p6 = scmp.ge.s32.totalorder %s14_s15, 5  }
 0xb13   :  { %13 = sbr.rel (!%p11_p6) target bundleno = 1 (0x1), region = 96 }

</bundles_post_ra>
